<compile_context>
chip_gen: v7x
topology: tpu7x:2x2x1
jax: 0.10.0
libtpu: 0.0.40
codegen_flags: <defaults>
</compile_context>

<pallas_src>
import functools

import numpy as np

import jax
import jax.numpy as jnp
from jax.experimental import pallas as pl
from jax.experimental.pallas import tpu as pltpu

NUM_CLASSES = 10
_CONV_VMEM = 48 * 1024 * 1024
_FC_VMEM = 32 * 1024 * 1024


# ----------------------------- Pallas kernels ------------------------------

def _conv_pool_kernel(x_ref, w_ref, b_ref, o_ref, *, Ho, Q):
    """Fused 3x3 conv (pad=1) + bias + 2x2 maxpool.

    x_ref: (TB, Ho+1, Kr)   row-paired, spatially padded input
                            (lane = h_parity * Wp*Cin + wp*Cin + ci)
    w_ref: (2, Kr, 4*Q)     block-Toeplitz weights, one per row shift s
                            (column = q*2Q + p*Q + wo*Cout + co, q/p = pool parities)
    b_ref: (1, 4*Q)         bias replicated over columns (f32)
    o_ref: (TB, Ho, Q)      pooled output, lane = wo*Cout + co
    """
    TB = x_ref.shape[0]
    Kr = x_ref.shape[2]

    acc = None
    for s in range(2):                                   # static, unrolled
        xs = x_ref[:, s:s + Ho, :]                       # (TB, Ho, Kr)
        xs = xs.reshape(TB * Ho, Kr).astype(w_ref.dtype)
        part = jnp.dot(xs, w_ref[s], preferred_element_type=jnp.float32)
        acc = part if acc is None else acc + part        # (TB*Ho, 4Q) f32
    acc = acc + b_ref[...]

    # 2x2 maxpool == max over the four aligned 256-lane column groups (q, p).
    m = jnp.maximum(jnp.maximum(acc[:, 0 * Q:1 * Q], acc[:, 1 * Q:2 * Q]),
                    jnp.maximum(acc[:, 2 * Q:3 * Q], acc[:, 3 * Q:4 * Q]))
    o_ref[...] = m.reshape(TB, Ho, Q).astype(o_ref.dtype)


def _fc_kernel(x_ref, w1_ref, b1_ref, w2_ref, b2_ref, o_ref):
    """Fused fc1 + bias + ReLU + fc2 + bias (bf16 MXU, f32 accumulate)."""
    x = x_ref[...]
    h = jnp.dot(x.astype(w1_ref.dtype), w1_ref[...],
                preferred_element_type=jnp.float32)
    h = jnp.maximum(h + b1_ref[...], 0.0)
    o = jnp.dot(h.astype(w2_ref.dtype), w2_ref[...],
                preferred_element_type=jnp.float32)
    o_ref[...] = (o + b2_ref[...]).astype(o_ref.dtype)


# ------------------------------ Pallas wrappers ------------------------------

def _conv_layer(x_paired, w_banded, bias, *, Ho, Q, TB):
    Bp = x_paired.shape[0]
    grid = (Bp // TB,)
    kern = functools.partial(_conv_pool_kernel, Ho=Ho, Q=Q)
    return pl.pallas_call(
        kern,
        out_shape=jax.ShapeDtypeStruct((Bp, Ho, Q), jnp.float32),
        grid=grid,
        in_specs=[
            pl.BlockSpec((TB,) + x_paired.shape[1:], lambda i: (i, 0, 0)),
            pl.BlockSpec(w_banded.shape, lambda i: (0, 0, 0)),
            pl.BlockSpec(bias.shape, lambda i: (0, 0)),
        ],
        out_specs=pl.BlockSpec((TB, Ho, Q), lambda i: (i, 0, 0)),
        compiler_params=pltpu.CompilerParams(
            dimension_semantics=("parallel",),
            vmem_limit_bytes=_CONV_VMEM),
    )(x_paired, w_banded, bias)


def _fc(x, w1, b1, w2, b2, *, TB):
    Bp, K = x.shape
    N = w2.shape[1]
    grid = (Bp // TB,)
    return pl.pallas_call(
        _fc_kernel,
        out_shape=jax.ShapeDtypeStruct((Bp, N), jnp.float32),
        grid=grid,
        in_specs=[
            pl.BlockSpec((TB, K), lambda i: (i, 0)),
            pl.BlockSpec(w1.shape, lambda i: (0, 0)),
            pl.BlockSpec(b1.shape, lambda i: (0, 0)),
            pl.BlockSpec(w2.shape, lambda i: (0, 0)),
            pl.BlockSpec(b2.shape, lambda i: (0, 0)),
        ],
        out_specs=pl.BlockSpec((TB, N), lambda i: (i, 0)),
        compiler_params=pltpu.CompilerParams(
            dimension_semantics=("parallel",),
            vmem_limit_bytes=_FC_VMEM),
    )(x, w1, b1, w2, b2)


# ------------------------- weight preparation (once) -------------------------

def _make_banded_conv_weights(wt, b, *, W, mxu_dtype):
    """Fold im2col + both maxpool parities into a block-Toeplitz weight matrix.

    wt: (Cout, Cin, 3, 3) PyTorch OIHW.  Returns (w_banded (2, Kr, 4Q), bias (1, 4Q)).
      input lane  k = r*Wp*Cin + wp*Cin + ci          (r = input-row parity)
      output col  n = q*2Q + p*Q + j*Cout + co        (q/p = pool parities, j = wo)
      w_banded[s, k, n] = wt[co, ci, dh, dw] with dh = 2s + r - q, dw = wp - (2j + p)
      (zero when dh/dw are outside [0, 3)).
    """
    Cout, Cin, _, _ = wt.shape
    Wo, Wp = W // 2, W + 2
    K_in, Kr, Q = Wp * Cin, 2 * Wp * Cin, Wo * Cout

    k = np.arange(Kr)
    r = k // K_in
    wp = (k % K_in) // Cin
    ci = (k % Cin).astype(np.int32)

    n = np.arange(4 * Q)
    q = n // (2 * Q)
    p = (n // Q) % 2
    j = (n % Q) // Cout
    co = (n % Cout).astype(np.int32)

    # (9, Cin, Cout) taps indexed by t = dh*3 + dw, plus a zero tap at index 9.
    w10 = jnp.concatenate(
        [jnp.transpose(wt, (2, 3, 1, 0)).reshape(9, Cin, Cout),
         jnp.zeros((1, Cin, Cout), wt.dtype)], axis=0)

    mats = []
    for s in range(2):
        dh = 2 * s + r[:, None] - q[None, :]
        dw = wp[:, None] - (2 * j[None, :] + p[None, :])
        valid = (dh >= 0) & (dh <= 2) & (dw >= 0) & (dw <= 2)
        t = np.where(valid, dh * 3 + dw, 9).astype(np.int32)
        mats.append(w10[t, ci[:, None], co[None, :]])
    w_banded = jnp.stack(mats, axis=0).astype(mxu_dtype)          # (2, Kr, 4Q)
    bvec = b[jnp.asarray(co)].reshape(1, 4 * Q).astype(jnp.float32)
    return w_banded, bvec


def prepare_params(params, mxu_dtype=jnp.bfloat16):
    """One-time layout/permutation/cast of PyTorch-style params for the kernels."""
    c1w, c1b = _make_banded_conv_weights(params["conv1_w"], params["conv1_b"],
                                         W=32, mxu_dtype=mxu_dtype)
    c2w, c2b = _make_banded_conv_weights(params["conv2_w"], params["conv2_b"],
                                         W=16, mxu_dtype=mxu_dtype)
    # fc1 consumes the NHWC-flattened features (h, w, c); permute its columns
    # from PyTorch's NCHW flatten (c, h, w) once, and pre-transpose to (K, N).
    w1 = (params["fc1_w"].reshape(64, 32, 8, 8)
          .transpose(0, 2, 3, 1).reshape(64, 32 * 8 * 8).T)
    return {
        "c1w": c1w, "c1b": c1b,
        "c2w": c2w, "c2b": c2b,
        "w1": w1.astype(mxu_dtype),
        "b1": params["fc1_b"].reshape(1, 64).astype(jnp.float32),
        "w2": params["fc2_w"].T.astype(mxu_dtype),
        "b2": params["fc2_b"].reshape(1, NUM_CLASSES).astype(jnp.float32),
    }


# ---------------------------------- model ------------------------------------

def init_params(key):
    ks = jax.random.split(key, 8)

    def init(k, shape, fan_in):
        return jax.random.normal(k, shape, jnp.float32) / jnp.sqrt(float(fan_in))

    return {
        "conv1_w": init(ks[0], (16, 3, 3, 3), 3 * 9),        # OIHW, like nn.Conv2d
        "conv1_b": init(ks[1], (16,), 3 * 9),
        "conv2_w": init(ks[2], (32, 16, 3, 3), 16 * 9),
        "conv2_b": init(ks[3], (32,), 16 * 9),
        "fc1_w": init(ks[4], (64, 32 * 8 * 8), 32 * 8 * 8),   # (out, in), like nn.Linear
        "fc1_b": init(ks[5], (64,), 32 * 8 * 8),
        "fc2_w": init(ks[6], (NUM_CLASSES, 64), 64),
        "fc2_b": init(ks[7], (NUM_CLASSES,), 64),
    }


def student_cnn_forward(prep, x_nchw, *, max_tb=32):
    """prep = prepare_params(params); x_nchw: (B, 3, 32, 32) float32."""
    B = x_nchw.shape[0]
    TB = min(max_tb, B)
    Bp = ((B + TB - 1) // TB) * TB

    x = jnp.transpose(x_nchw, (0, 2, 3, 1))                 # NHWC (B, 32, 32, 3)
    if Bp != B:
        x = jnp.pad(x, ((0, Bp - B), (0, 0), (0, 0), (0, 0)))

    # conv1 + pool: pad spatially, merge (row-pair, w, c) into lanes.
    xp = jnp.pad(x, ((0, 0), (1, 1), (1, 1), (0, 0)))       # (Bp, 34, 34, 3)
    x1 = xp.reshape(Bp, 17, 2 * 34 * 3)                     # (Bp, 17, 204)
    y1 = _conv_layer(x1, prep["c1w"], prep["c1b"], Ho=16, Q=16 * 16, TB=TB)
    # y1: (Bp, 16, 256) == pooled NHWC (16, 16, 16) with lanes = (wo, c)

    # conv2 + pool
    y1 = jnp.pad(y1.reshape(Bp, 16, 16, 16), ((0, 0), (1, 1), (1, 1), (0, 0)))
    x2 = y1.reshape(Bp, 9, 2 * 18 * 16)                     # (Bp, 9, 576)
    y2 = _conv_layer(x2, prep["c2w"], prep["c2b"], Ho=8, Q=8 * 32, TB=TB)
    # y2: (Bp, 8, 256) == pooled NHWC (8, 8, 32) with lanes = (wo, c)

    feat = y2.reshape(Bp, 32 * 8 * 8)                       # NHWC flatten (free)
    logits = _fc(feat, prep["w1"], prep["b1"], prep["w2"], prep["b2"], TB=TB)
    return logits[:B]


# ----------------------------- pure-JAX reference ---------------------------

def reference_forward(params, x_nchw):
    def conv(x, w, b):
        dn = jax.lax.conv_dimension_numbers(x.shape, w.shape,
                                            ("NCHW", "OIHW", "NCHW"))
        y = jax.lax.conv_general_dilated(x, w, (1, 1), "SAME",
                                         dimension_numbers=dn)
        return y + b[None, :, None, None]

    def pool(x):
        return jax.lax.reduce_window(x, -jnp.inf, jax.lax.max,
                                     (1, 1, 2, 2), (1, 1, 2, 2), "VALID")

    x = pool(conv(x_nchw, params["conv1_w"], params["conv1_b"]))
    x = pool(conv(x, params["conv2_w"], params["conv2_b"]))
    x = x.reshape(x.shape[0], -1)
    x = jnp.maximum(x @ params["fc1_w"].T + params["fc1_b"], 0.0)
    x = x @ params["fc2_w"].T + params["fc2_b"]
    return x


# ----------------------------------- main ------------------------------------

if __name__ == "__main__":
    key = jax.random.PRNGKey(0)
    pkey, xkey = jax.random.split(key)
    params = init_params(pkey)
    # 32x32 spatial is implied by fc1's 32*8*8 input size (two 2x2 pools).
    x = jax.random.normal(xkey, (2, 3, 32, 32), jnp.float32)

    fwd = jax.jit(student_cnn_forward)
    ref = jax.block_until_ready(reference_forward(params, x))

    # Strict correctness check: f32 MXU operands.
    prep_f32 = prepare_params(params, mxu_dtype=jnp.float32)
    out_f32 = jax.block_until_ready(fwd(prep_f32, x))
    assert out_f32.shape == (2, NUM_CLASSES)
    assert jnp.allclose(out_f32, ref, rtol=1e-3, atol=1e-3), "f32 path mismatch"

    # Fast path: bf16 MXU operands with f32 accumulation (looser tolerance).
    prep_bf16 = prepare_params(params, mxu_dtype=jnp.bfloat16)
    out_bf16 = jax.block_until_ready(fwd(prep_bf16, x))
    assert out_bf16.shape == (2, NUM_CLASSES)
    assert jnp.allclose(out_bf16, ref, rtol=1e-1, atol=1e-1), "bf16 path mismatch"

    print("KERNEL_OK")
</pallas_src>

<mosaic_0001>
module attributes {stable_mosaic.version = 11 : i64} {
  func.func @_conv_pool_kernel(%arg0: i32, %arg1: memref<2x17x204xf32, #tpu.memory_space<vmem>>, %arg2: memref<2x204x1024xf32, #tpu.memory_space<vmem>>, %arg3: memref<1x1024xf32, #tpu.memory_space<vmem>>, %arg4: memref<2x16x256xf32, #tpu.memory_space<vmem>>) attributes {dimension_semantics = [#tpu.dimension_semantics<parallel>], iteration_bounds = array<i64: 1>, scalar_prefetch = 0 : i64, scratch_operands = 0 : i64, tpu.core_type = #tpu.core_type<tc>, window_params = [{transform_indices = @transform_0, window_bounds = array<i64: 2, 17, 204>}, {pipeline_mode = #tpu.pipeline_mode<synchronous>, transform_indices = @transform_1, window_bounds = array<i64: 2, 204, 1024>}, {pipeline_mode = #tpu.pipeline_mode<synchronous>, transform_indices = @transform_2, window_bounds = array<i64: 1, 1024>}, {transform_indices = @transform_3, window_bounds = array<i64: 2, 16, 256>}]} {
    %c0 = arith.constant 0 : index
    %c0_0 = arith.constant 0 : index
    %c0_1 = arith.constant 0 : index
    %0 = vector.load %arg1[%c0, %c0_0, %c0_1] : memref<2x17x204xf32, #tpu.memory_space<vmem>>, vector<2x16x204xf32>
    %1 = vector.shape_cast %0 : vector<2x16x204xf32> to vector<32x204xf32>
    %c0_2 = arith.constant 0 : index
    %c0_3 = arith.constant 0 : index
    %c0_4 = arith.constant 0 : index
    %2 = vector.load %arg2[%c0_2, %c0_3, %c0_4] : memref<2x204x1024xf32, #tpu.memory_space<vmem>>, vector<1x204x1024xf32>
    %3 = vector.shape_cast %2 : vector<1x204x1024xf32> to vector<204x1024xf32>
    %cst = arith.constant dense<0.000000e+00> : vector<32x1024xf32>
    %4 = tpu.matmul %1, %3, %cst {dimension_numbers = #tpu.dot_dimension_numbers<[1], [0], [0], [1], [0, 0, 1, 1], [], []>} : vector<32x204xf32>, vector<204x1024xf32>, vector<32x1024xf32> -> vector<32x1024xf32>
    %c0_5 = arith.constant 0 : index
    %c1 = arith.constant 1 : index
    %c0_6 = arith.constant 0 : index
    %5 = vector.load %arg1[%c0_5, %c1, %c0_6] : memref<2x17x204xf32, #tpu.memory_space<vmem>>, vector<2x16x204xf32>
    %6 = vector.shape_cast %5 : vector<2x16x204xf32> to vector<32x204xf32>
    %c1_7 = arith.constant 1 : index
    %c0_8 = arith.constant 0 : index
    %c0_9 = arith.constant 0 : index
    %7 = vector.load %arg2[%c1_7, %c0_8, %c0_9] : memref<2x204x1024xf32, #tpu.memory_space<vmem>>, vector<1x204x1024xf32>
    %8 = vector.shape_cast %7 : vector<1x204x1024xf32> to vector<204x1024xf32>
    %cst_10 = arith.constant dense<0.000000e+00> : vector<32x1024xf32>
    %9 = tpu.matmul %6, %8, %cst_10 {dimension_numbers = #tpu.dot_dimension_numbers<[1], [0], [0], [1], [0, 0, 1, 1], [], []>} : vector<32x204xf32>, vector<204x1024xf32>, vector<32x1024xf32> -> vector<32x1024xf32>
    %10 = arith.addf %4, %9 : vector<32x1024xf32>
    %c0_11 = arith.constant 0 : index
    %c0_12 = arith.constant 0 : index
    %11 = vector.load %arg3[%c0_11, %c0_12] : memref<1x1024xf32, #tpu.memory_space<vmem>>, vector<1x1024xf32>
    %12 = vector.broadcast %11 : vector<1x1024xf32> to vector<32x1024xf32>
    %13 = arith.addf %10, %12 : vector<32x1024xf32>
    %14 = vector.extract_strided_slice %13 {offsets = [0, 0], sizes = [32, 256], strides = [1, 1]} : vector<32x1024xf32> to vector<32x256xf32>
    %15 = vector.extract_strided_slice %13 {offsets = [0, 256], sizes = [32, 256], strides = [1, 1]} : vector<32x1024xf32> to vector<32x256xf32>
    %16 = arith.maximumf %14, %15 : vector<32x256xf32>
    %17 = vector.extract_strided_slice %13 {offsets = [0, 512], sizes = [32, 256], strides = [1, 1]} : vector<32x1024xf32> to vector<32x256xf32>
    %18 = vector.extract_strided_slice %13 {offsets = [0, 768], sizes = [32, 256], strides = [1, 1]} : vector<32x1024xf32> to vector<32x256xf32>
    %19 = arith.maximumf %17, %18 : vector<32x256xf32>
    %20 = arith.maximumf %16, %19 : vector<32x256xf32>
    %21 = vector.shape_cast %20 : vector<32x256xf32> to vector<2x16x256xf32>
    %c0_13 = arith.constant 0 : index
    %c0_14 = arith.constant 0 : index
    %c0_15 = arith.constant 0 : index
    %22 = vector.load %arg4[%c0_13, %c0_14, %c0_15] : memref<2x16x256xf32, #tpu.memory_space<vmem>>, vector<2x16x256xf32>
    tpu.vector_store %arg4[%c0_13, %c0_14, %c0_15], %21 {strides = array<i32>} : memref<2x16x256xf32, #tpu.memory_space<vmem>>, vector<2x16x256xf32>,
    return
  }
  func.func @transform_0(%arg0: i32) -> (i32, i32, i32) {
    %c0_i32 = arith.constant 0 : i32
    %c0_i32_0 = arith.constant 0 : i32
    %c0_i32_1 = arith.constant 0 : i32
    return %arg0, %c0_i32, %c0_i32_0 : i32, i32, i32
  }
  func.func @transform_1(%arg0: i32) -> (i32, i32, i32) {
    %c0_i32 = arith.constant 0 : i32
    %c0_i32_0 = arith.constant 0 : i32
    %c0_i32_1 = arith.constant 0 : i32
    %c0_i32_2 = arith.constant 0 : i32
    return %c0_i32, %c0_i32_0, %c0_i32_1 : i32, i32, i32
  }
  func.func @transform_2(%arg0: i32) -> (i32, i32) {
    %c0_i32 = arith.constant 0 : i32
    %c0_i32_0 = arith.constant 0 : i32
    %c0_i32_1 = arith.constant 0 : i32
    return %c0_i32, %c0_i32_0 : i32, i32
  }
  func.func @transform_3(%arg0: i32) -> (i32, i32, i32) {
    %c0_i32 = arith.constant 0 : i32
    %c0_i32_0 = arith.constant 0 : i32
    %c0_i32_1 = arith.constant 0 : i32
    return %arg0, %c0_i32, %c0_i32_0 : i32, i32, i32
  }
}

module attributes {stable_mosaic.version = 11 : i64} {
  func.func @_conv_pool_kernel(%arg0: i32, %arg1: memref<2x9x576xf32, #tpu.memory_space<vmem>>, %arg2: memref<2x576x1024xf32, #tpu.memory_space<vmem>>, %arg3: memref<1x1024xf32, #tpu.memory_space<vmem>>, %arg4: memref<2x8x256xf32, #tpu.memory_space<vmem>>) attributes {dimension_semantics = [#tpu.dimension_semantics<parallel>], iteration_bounds = array<i64: 1>, scalar_prefetch = 0 : i64, scratch_operands = 0 : i64, tpu.core_type = #tpu.core_type<tc>, window_params = [{transform_indices = @transform_0, window_bounds = array<i64: 2, 9, 576>}, {pipeline_mode = #tpu.pipeline_mode<synchronous>, transform_indices = @transform_1, window_bounds = array<i64: 2, 576, 1024>}, {pipeline_mode = #tpu.pipeline_mode<synchronous>, transform_indices = @transform_2, window_bounds = array<i64: 1, 1024>}, {transform_indices = @transform_3, window_bounds = array<i64: 2, 8, 256>}]} {
    %c0 = arith.constant 0 : index
    %c0_0 = arith.constant 0 : index
    %c0_1 = arith.constant 0 : index
    %0 = vector.load %arg1[%c0, %c0_0, %c0_1] : memref<2x9x576xf32, #tpu.memory_space<vmem>>, vector<2x8x576xf32>
    %1 = vector.shape_cast %0 : vector<2x8x576xf32> to vector<16x576xf32>
    %c0_2 = arith.constant 0 : index
    %c0_3 = arith.constant 0 : index
    %c0_4 = arith.constant 0 : index
    %2 = vector.load %arg2[%c0_2, %c0_3, %c0_4] : memref<2x576x1024xf32, #tpu.memory_space<vmem>>, vector<1x576x1024xf32>
    %3 = vector.shape_cast %2 : vector<1x576x1024xf32> to vector<576x1024xf32>
    %cst = arith.constant dense<0.000000e+00> : vector<16x1024xf32>
    %4 = tpu.matmul %1, %3, %cst {dimension_numbers = #tpu.dot_dimension_numbers<[1], [0], [0], [1], [0, 0, 1, 1], [], []>} : vector<16x576xf32>, vector<576x1024xf32>, vector<16x1024xf32> -> vector<16x1024xf32>
    %c0_5 = arith.constant 0 : index
    %c1 = arith.constant 1 : index
    %c0_6 = arith.constant 0 : index
    %5 = vector.load %arg1[%c0_5, %c1, %c0_6] : memref<2x9x576xf32, #tpu.memory_space<vmem>>, vector<2x8x576xf32>
    %6 = vector.shape_cast %5 : vector<2x8x576xf32> to vector<16x576xf32>
    %c1_7 = arith.constant 1 : index
    %c0_8 = arith.constant 0 : index
    %c0_9 = arith.constant 0 : index
    %7 = vector.load %arg2[%c1_7, %c0_8, %c0_9] : memref<2x576x1024xf32, #tpu.memory_space<vmem>>, vector<1x576x1024xf32>
    %8 = vector.shape_cast %7 : vector<1x576x1024xf32> to vector<576x1024xf32>
    %cst_10 = arith.constant dense<0.000000e+00> : vector<16x1024xf32>
    %9 = tpu.matmul %6, %8, %cst_10 {dimension_numbers = #tpu.dot_dimension_numbers<[1], [0], [0], [1], [0, 0, 1, 1], [], []>} : vector<16x576xf32>, vector<576x1024xf32>, vector<16x1024xf32> -> vector<16x1024xf32>
    %10 = arith.addf %4, %9 : vector<16x1024xf32>
    %c0_11 = arith.constant 0 : index
    %c0_12 = arith.constant 0 : index
    %11 = vector.load %arg3[%c0_11, %c0_12] : memref<1x1024xf32, #tpu.memory_space<vmem>>, vector<1x1024xf32>
    %12 = vector.broadcast %11 : vector<1x1024xf32> to vector<16x1024xf32>
    %13 = arith.addf %10, %12 : vector<16x1024xf32>
    %14 = vector.extract_strided_slice %13 {offsets = [0, 0], sizes = [16, 256], strides = [1, 1]} : vector<16x1024xf32> to vector<16x256xf32>
    %15 = vector.extract_strided_slice %13 {offsets = [0, 256], sizes = [16, 256], strides = [1, 1]} : vector<16x1024xf32> to vector<16x256xf32>
    %16 = arith.maximumf %14, %15 : vector<16x256xf32>
    %17 = vector.extract_strided_slice %13 {offsets = [0, 512], sizes = [16, 256], strides = [1, 1]} : vector<16x1024xf32> to vector<16x256xf32>
    %18 = vector.extract_strided_slice %13 {offsets = [0, 768], sizes = [16, 256], strides = [1, 1]} : vector<16x1024xf32> to vector<16x256xf32>
    %19 = arith.maximumf %17, %18 : vector<16x256xf32>
    %20 = arith.maximumf %16, %19 : vector<16x256xf32>
    %21 = vector.shape_cast %20 : vector<16x256xf32> to vector<2x8x256xf32>
    %c0_13 = arith.constant 0 : index
    %c0_14 = arith.constant 0 : index
    %c0_15 = arith.constant 0 : index
    %22 = vector.load %arg4[%c0_13, %c0_14, %c0_15] : memref<2x8x256xf32, #tpu.memory_space<vmem>>, vector<2x8x256xf32>
    tpu.vector_store %arg4[%c0_13, %c0_14, %c0_15], %21 {strides = array<i32>} : memref<2x8x256xf32, #tpu.memory_space<vmem>>, vector<2x8x256xf32>,
    return
  }
  func.func @transform_0(%arg0: i32) -> (i32, i32, i32) {
    %c0_i32 = arith.constant 0 : i32
    %c0_i32_0 = arith.constant 0 : i32
    %c0_i32_1 = arith.constant 0 : i32
    return %arg0, %c0_i32, %c0_i32_0 : i32, i32, i32
  }
  func.func @transform_1(%arg0: i32) -> (i32, i32, i32) {
    %c0_i32 = arith.constant 0 : i32
    %c0_i32_0 = arith.constant 0 : i32
    %c0_i32_1 = arith.constant 0 : i32
    %c0_i32_2 = arith.constant 0 : i32
    return %c0_i32, %c0_i32_0, %c0_i32_1 : i32, i32, i32
  }
  func.func @transform_2(%arg0: i32) -> (i32, i32) {
    %c0_i32 = arith.constant 0 : i32
    %c0_i32_0 = arith.constant 0 : i32
    %c0_i32_1 = arith.constant 0 : i32
    return %c0_i32, %c0_i32_0 : i32, i32
  }
  func.func @transform_3(%arg0: i32) -> (i32, i32, i32) {
    %c0_i32 = arith.constant 0 : i32
    %c0_i32_0 = arith.constant 0 : i32
    %c0_i32_1 = arith.constant 0 : i32
    return %arg0, %c0_i32, %c0_i32_0 : i32, i32, i32
  }
}

module attributes {stable_mosaic.version = 11 : i64} {
  func.func @_fc_kernel(%arg0: i32, %arg1: memref<2x2048xf32, #tpu.memory_space<vmem>>, %arg2: memref<2048x64xf32, #tpu.memory_space<vmem>>, %arg3: memref<1x64xf32, #tpu.memory_space<vmem>>, %arg4: memref<64x10xf32, #tpu.memory_space<vmem>>, %arg5: memref<1x10xf32, #tpu.memory_space<vmem>>, %arg6: memref<2x10xf32, #tpu.memory_space<vmem>>) attributes {dimension_semantics = [#tpu.dimension_semantics<parallel>], iteration_bounds = array<i64: 1>, scalar_prefetch = 0 : i64, scratch_operands = 0 : i64, tpu.core_type = #tpu.core_type<tc>, window_params = [{transform_indices = @transform_0, window_bounds = array<i64: 2, 2048>}, {pipeline_mode = #tpu.pipeline_mode<synchronous>, transform_indices = @transform_1, window_bounds = array<i64: 2048, 64>}, {pipeline_mode = #tpu.pipeline_mode<synchronous>, transform_indices = @transform_2, window_bounds = array<i64: 1, 64>}, {pipeline_mode = #tpu.pipeline_mode<synchronous>, transform_indices = @transform_3, window_bounds = array<i64: 64, 10>}, {pipeline_mode = #tpu.pipeline_mode<synchronous>, transform_indices = @transform_4, window_bounds = array<i64: 1, 10>}, {transform_indices = @transform_5, window_bounds = array<i64: 2, 10>}]} {
    %c0 = arith.constant 0 : index
    %c0_0 = arith.constant 0 : index
    %0 = vector.load %arg1[%c0, %c0_0] : memref<2x2048xf32, #tpu.memory_space<vmem>>, vector<2x2048xf32>
    %c0_1 = arith.constant 0 : index
    %c0_2 = arith.constant 0 : index
    %1 = vector.load %arg2[%c0_1, %c0_2] : memref<2048x64xf32, #tpu.memory_space<vmem>>, vector<2048x64xf32>
    %cst = arith.constant dense<0.000000e+00> : vector<2x64xf32>
    %2 = tpu.matmul %0, %1, %cst {dimension_numbers = #tpu.dot_dimension_numbers<[1], [0], [0], [1], [0, 0, 1, 1], [], []>} : vector<2x2048xf32>, vector<2048x64xf32>, vector<2x64xf32> -> vector<2x64xf32>
    %c0_3 = arith.constant 0 : index
    %c0_4 = arith.constant 0 : index
    %3 = vector.load %arg3[%c0_3, %c0_4] : memref<1x64xf32, #tpu.memory_space<vmem>>, vector<1x64xf32>
    %4 = vector.broadcast %3 : vector<1x64xf32> to vector<2x64xf32>
    %5 = arith.addf %2, %4 : vector<2x64xf32>
    %cst_5 = arith.constant 0.000000e+00 : f32
    %6 = vector.broadcast %cst_5 : f32 to vector<2x64xf32>
    %7 = arith.maximumf %5, %6 : vector<2x64xf32>
    %c0_6 = arith.constant 0 : index
    %c0_7 = arith.constant 0 : index
    %8 = vector.load %arg4[%c0_6, %c0_7] : memref<64x10xf32, #tpu.memory_space<vmem>>, vector<64x10xf32>
    %cst_8 = arith.constant dense<0.000000e+00> : vector<2x10xf32>
    %9 = tpu.matmul %7, %8, %cst_8 {dimension_numbers = #tpu.dot_dimension_numbers<[1], [0], [0], [1], [0, 0, 1, 1], [], []>} : vector<2x64xf32>, vector<64x10xf32>, vector<2x10xf32> -> vector<2x10xf32>
    %c0_9 = arith.constant 0 : index
    %c0_10 = arith.constant 0 : index
    %10 = vector.load %arg5[%c0_9, %c0_10] : memref<1x10xf32, #tpu.memory_space<vmem>>, vector<1x10xf32>
    %11 = vector.broadcast %10 : vector<1x10xf32> to vector<2x10xf32>
    %12 = arith.addf %9, %11 : vector<2x10xf32>
    %c0_11 = arith.constant 0 : index
    %c0_12 = arith.constant 0 : index
    %13 = vector.load %arg6[%c0_11, %c0_12] : memref<2x10xf32, #tpu.memory_space<vmem>>, vector<2x10xf32>
    tpu.vector_store %arg6[%c0_11, %c0_12], %12 {strides = array<i32>} : memref<2x10xf32, #tpu.memory_space<vmem>>, vector<2x10xf32>,
    return
  }
  func.func @transform_0(%arg0: i32) -> (i32, i32) {
    %c0_i32 = arith.constant 0 : i32
    %c0_i32_0 = arith.constant 0 : i32
    return %arg0, %c0_i32 : i32, i32
  }
  func.func @transform_1(%arg0: i32) -> (i32, i32) {
    %c0_i32 = arith.constant 0 : i32
    %c0_i32_0 = arith.constant 0 : i32
    %c0_i32_1 = arith.constant 0 : i32
    return %c0_i32, %c0_i32_0 : i32, i32
  }
  func.func @transform_2(%arg0: i32) -> (i32, i32) {
    %c0_i32 = arith.constant 0 : i32
    %c0_i32_0 = arith.constant 0 : i32
    %c0_i32_1 = arith.constant 0 : i32
    return %c0_i32, %c0_i32_0 : i32, i32
  }
  func.func @transform_3(%arg0: i32) -> (i32, i32) {
    %c0_i32 = arith.constant 0 : i32
    %c0_i32_0 = arith.constant 0 : i32
    %c0_i32_1 = arith.constant 0 : i32
    return %c0_i32, %c0_i32_0 : i32, i32
  }
  func.func @transform_4(%arg0: i32) -> (i32, i32) {
    %c0_i32 = arith.constant 0 : i32
    %c0_i32_0 = arith.constant 0 : i32
    %c0_i32_1 = arith.constant 0 : i32
    return %c0_i32, %c0_i32_0 : i32, i32
  }
  func.func @transform_5(%arg0: i32) -> (i32, i32) {
    %c0_i32 = arith.constant 0 : i32
    %c0_i32_0 = arith.constant 0 : i32
    return %arg0, %c0_i32 : i32, i32
  }
}

</mosaic_0001>

<bundles_post_ra>
// kernel: student_cnn_forward.3
= control target key start
LH: loop header
LB: loop body
LE: loop exit
PB: predicated region body
PF: predicated region fallthrough
CT: control target
= control target key end

     0   :  { %vm250_vm0 = vcmask 1046528   ;;  %vm484_vm1 = vcmask 621568   ;;  %vm493_vm2 = vcmask 1043456   ;;  %vm2099_vm3 = vmmov 1   ;;  %s3693_s1 = inlined_call_operand.vmem [shape: f32[2,204,1024], index: 1, kind: input, shape index: {}]   ;;  %s3694_s0 = inlined_call_operand.vmem [shape: f32[2,17,204], index: 0, kind: input, shape index: {}]   ;;  %s3695_s2 = inlined_call_operand.vmem [shape: f32[1,1024], index: 2, kind: input, shape index: {}]   ;;  %s3696_s3 = inlined_call_operand.vmem [shape: f32[2,16,256], index: 3, kind: output, shape index: {}]  }
   0x1   :  { %v1375_v0 = vld [vmem:[%s3693_s1 + $0x688] sm:$0xff]  ;;  %v1377_v2 = vld [vmem:[%s3693_s1 + $0x698] sm:$0xff]  ;;  %v1374_v5 = vld [vmem:[%s3693_s1 + $0x680] sm:$0xff] }
   0x2   :  { %v1383_v1 = vld [vmem:[%s3693_s1 + $0x6c8] sm:$0xff]  ;;  %v1385_v4 = vld [vmem:[%s3693_s1 + $0x6d8] sm:$0xff]  ;;  %v1382_v6 = vld [vmem:[%s3693_s1 + $0x6c0] sm:$0xff] }
   0x3   :  { %v1630_v3 = vpack.c.bf16 %v1383_v1, %v1375_v0  ;;  %v1684_v7 = vpack.c.bf16 %v1385_v4, %v1377_v2  ;;  %v1632_v8 = vpack.c.bf16 %v1382_v6, %v1374_v5  ;;  %v1376_v9 = vld [vmem:[%s3693_s1 + $0x690] sm:$0xff]  ;;  %v1391_v11 = vld [vmem:[%s3693_s1 + $0x708] sm:$0xff]  ;;  %v1393_v14 = vld [vmem:[%s3693_s1 + $0x718] sm:$0xff] }
   0x4   :  { %v1384_v10 = vld [vmem:[%s3693_s1 + $0x6d0] sm:$0xff]  ;;  %v1399_v13 = vld [vmem:[%s3693_s1 + $0x748] sm:$0xff]  ;;  %v1401_v15 = vld [vmem:[%s3693_s1 + $0x758] sm:$0xff] }
   0x5   :  { %1631 = vmatprep.subr.bf16.mxu0 %v1630_v3  ;;  %v1686_v12 = vpack.c.bf16 %v1384_v10, %v1376_v9  ;;  %1685 = vmatprep.subr.bf16.mxu1 %v1684_v7  ;;  %v1634_v16 = vpack.c.bf16 %v1399_v13, %v1391_v11  ;;  %v1688_v17 = vpack.c.bf16 %v1401_v15, %v1393_v14  ;;  %v1390_v18 = vld [vmem:[%s3693_s1 + $0x700] sm:$0xff]  ;;  %v1392_v20 = vld [vmem:[%s3693_s1 + $0x710] sm:$0xff]  ;;  %v1407_v23 = vld [vmem:[%s3693_s1 + $0x788] sm:$0xff] }
   0x6   :  { %1633 = vmatpush1.bf16.msra.mxu0 %v1632_v8  ;;  %v1398_v19 = vld [vmem:[%s3693_s1 + $0x740] sm:$0xff]  ;;  %v1400_v22 = vld [vmem:[%s3693_s1 + $0x750] sm:$0xff]  ;;  %v1415_v24 = vld [vmem:[%s3693_s1 + $0x7c8] sm:$0xff] }
   0x7   :  { %1687 = vmatpush1.bf16.msra.mxu1 %v1686_v12  ;;  %v1636_v21 = vpack.c.bf16 %v1398_v19, %v1390_v18  ;;  %1635 = vmatprep.subr.bf16.mxu0 %v1634_v16  ;;  %v1690_v25 = vpack.c.bf16 %v1400_v22, %v1392_v20  ;;  %v1638_v26 = vpack.c.bf16 %v1415_v24, %v1407_v23  ;;  %v1409_v27 = vld [vmem:[%s3693_s1 + $0x798] sm:$0xff]  ;;  %v1406_v29 = vld [vmem:[%s3693_s1 + $0x780] sm:$0xff]  ;;  %v1408_v32 = vld [vmem:[%s3693_s1 + $0x790] sm:$0xff] }
   0x8   :  { %1689 = vmatprep.subr.bf16.mxu1 %v1688_v17  ;;  %v1417_v28 = vld [vmem:[%s3693_s1 + $0x7d8] sm:$0xff]  ;;  %v1414_v31 = vld [vmem:[%s3693_s1 + $0x7c0] sm:$0xff]  ;;  %v1416_v33 = vld [vmem:[%s3693_s1 + $0x7d0] sm:$0xff] }
   0x9   :  { %v1692_v30 = vpack.c.bf16 %v1417_v28, %v1409_v27  ;;  %v1640_v34 = vpack.c.bf16 %v1414_v31, %v1406_v29  ;;  %v1423_v35 = vld [vmem:[%s3693_s1 + $0x808] sm:$0xff]  ;;  %v1425_v37 = vld [vmem:[%s3693_s1 + $0x818] sm:$0xff]  ;;  %v1694_v38 = vpack.c.bf16 %v1416_v33, %v1408_v32  ;;  %v1422_v41 = vld [vmem:[%s3693_s1 + $0x800] sm:$0xff] }
   0xa   :  { %1637 = vmatpush1.bf16.msra.mxu0 %v1636_v21  ;;  %v1431_v36 = vld [vmem:[%s3693_s1 + $0x848] sm:$0xff]  ;;  %v1433_v40 = vld [vmem:[%s3693_s1 + $0x858] sm:$0xff]  ;;  %v1430_v42 = vld [vmem:[%s3693_s1 + $0x840] sm:$0xff] }
   0xb   :  { %1691 = vmatpush1.bf16.msra.mxu1 %v1690_v25  ;;  %1639 = vmatprep.subr.bf16.mxu0 %v1638_v26  ;;  %v1642_v39 = vpack.c.bf16 %v1431_v36, %v1423_v35  ;;  %v1696_v43 = vpack.c.bf16 %v1433_v40, %v1425_v37  ;;  %v1424_v44 = vld [vmem:[%s3693_s1 + $0x810] sm:$0xff]  ;;  %v1439_v46 = vld [vmem:[%s3693_s1 + $0x888] sm:$0xff]  ;;  %v1441_v48 = vld [vmem:[%s3693_s1 + $0x898] sm:$0xff]  ;;  %v1644_v50 = vpack.c.bf16 %v1430_v42, %v1422_v41 }
   0xc   :  { %1693 = vmatprep.subr.bf16.mxu1 %v1692_v30  ;;  %v1432_v45 = vld [vmem:[%s3693_s1 + $0x850] sm:$0xff]  ;;  %v1447_v47 = vld [vmem:[%s3693_s1 + $0x8c8] sm:$0xff]  ;;  %v1449_v49 = vld [vmem:[%s3693_s1 + $0x8d8] sm:$0xff] }
   0xd   :  { %v1698_v51 = vpack.c.bf16 %v1432_v45, %v1424_v44  ;;  %v1646_v52 = vpack.c.bf16 %v1447_v47, %v1439_v46  ;;  %v1438_v53 = vld [vmem:[%s3693_s1 + $0x880] sm:$0xff]  ;;  %v1440_v55 = vld [vmem:[%s3693_s1 + $0x890] sm:$0xff]  ;;  %v1700_v56 = vpack.c.bf16 %v1449_v49, %v1441_v48  ;;  %v1455_v58 = vld [vmem:[%s3693_s1 + $0x908] sm:$0xff] }
   0xe   :  { %1641 = vmatpush1.bf16.msra.mxu0 %v1640_v34  ;;  %v1446_v54 = vld [vmem:[%s3693_s1 + $0x8c0] sm:$0xff]  ;;  %v1448_v57 = vld [vmem:[%s3693_s1 + $0x8d0] sm:$0xff]  ;;  %v1463_v59 = vld [vmem:[%s3693_s1 + $0x948] sm:$0xff] }
   0xf   :  { %1695 = vmatpush1.bf16.msra.mxu1 %v1694_v38  ;;  %1643 = vmatprep.subr.bf16.mxu0 %v1642_v39  ;;  %v1457_v60 = vld [vmem:[%s3693_s1 + $0x918] sm:$0xff]  ;;  %v1648_v62 = vpack.c.bf16 %v1446_v54, %v1438_v53  ;;  %v1702_v63 = vpack.c.bf16 %v1448_v57, %v1440_v55  ;;  %v1650_v0 = vpack.c.bf16 %v1463_v59, %v1455_v58  ;;  %v1454_v1 = vld [vmem:[%s3693_s1 + $0x900] sm:$0xff]  ;;  %v1456_v3 = vld [vmem:[%s3693_s1 + $0x910] sm:$0xff] }
  0x10   :  { %1697 = vmatprep.subr.bf16.mxu1 %v1696_v43  ;;  %v1465_v61 = vld [vmem:[%s3693_s1 + $0x958] sm:$0xff]  ;;  %v1462_v2 = vld [vmem:[%s3693_s1 + $0x940] sm:$0xff]  ;;  %v1464_v5 = vld [vmem:[%s3693_s1 + $0x950] sm:$0xff] }
  0x11   :  { %v1704_v4 = vpack.c.bf16 %v1465_v61, %v1457_v60  ;;  %v1471_v6 = vld [vmem:[%s3693_s1 + $0x988] sm:$0xff]  ;;  %v1473_v8 = vld [vmem:[%s3693_s1 + $0x998] sm:$0xff]  ;;  %v1652_v10 = vpack.c.bf16 %v1462_v2, %v1454_v1  ;;  %v1706_v11 = vpack.c.bf16 %v1464_v5, %v1456_v3  ;;  %v1470_v13 = vld [vmem:[%s3693_s1 + $0x980] sm:$0xff] }
  0x12   :  { %1645 = vmatpush1.bf16.msra.mxu0 %v1644_v50  ;;  %v1479_v7 = vld [vmem:[%s3693_s1 + $0x9c8] sm:$0xff]  ;;  %v1481_v9 = vld [vmem:[%s3693_s1 + $0x9d8] sm:$0xff]  ;;  %v1478_v14 = vld [vmem:[%s3693_s1 + $0x9c0] sm:$0xff] }
  0x13   :  { %1699 = vmatpush1.bf16.msra.mxu1 %v1698_v51  ;;  %1647 = vmatprep.subr.bf16.mxu0 %v1646_v52  ;;  %v1654_v12 = vpack.c.bf16 %v1479_v7, %v1471_v6  ;;  %v1472_v15 = vld [vmem:[%s3693_s1 + $0x990] sm:$0xff]  ;;  %v1708_v16 = vpack.c.bf16 %v1481_v9, %v1473_v8  ;;  %v1487_v18 = vld [vmem:[%s3693_s1 + $0xa08] sm:$0xff]  ;;  %v1489_v20 = vld [vmem:[%s3693_s1 + $0xa18] sm:$0xff]  ;;  %v1656_v22 = vpack.c.bf16 %v1478_v14, %v1470_v13 }
  0x14   :  { %1701 = vmatprep.subr.bf16.mxu1 %v1700_v56  ;;  %v1480_v17 = vld [vmem:[%s3693_s1 + $0x9d0] sm:$0xff]  ;;  %v1495_v19 = vld [vmem:[%s3693_s1 + $0xa48] sm:$0xff]  ;;  %v1497_v21 = vld [vmem:[%s3693_s1 + $0xa58] sm:$0xff] }
  0x15   :  { %v1710_v23 = vpack.c.bf16 %v1480_v17, %v1472_v15  ;;  %v1658_v24 = vpack.c.bf16 %v1495_v19, %v1487_v18  ;;  %v1486_v25 = vld [vmem:[%s3693_s1 + $0xa00] sm:$0xff]  ;;  %v1488_v27 = vld [vmem:[%s3693_s1 + $0xa10] sm:$0xff]  ;;  %v1712_v28 = vpack.c.bf16 %v1497_v21, %v1489_v20  ;;  %v1503_v30 = vld [vmem:[%s3693_s1 + $0xa88] sm:$0xff] }
  0x16   :  { %1649 = vmatpush1.bf16.msra.mxu0 %v1648_v62  ;;  %v1494_v26 = vld [vmem:[%s3693_s1 + $0xa40] sm:$0xff]  ;;  %v1496_v29 = vld [vmem:[%s3693_s1 + $0xa50] sm:$0xff]  ;;  %v1511_v31 = vld [vmem:[%s3693_s1 + $0xac8] sm:$0xff] }
  0x17   :  { %1703 = vmatpush1.bf16.msra.mxu1 %v1702_v63  ;;  %1651 = vmatprep.subr.bf16.mxu0 %v1650_v0  ;;  %v1505_v32 = vld [vmem:[%s3693_s1 + $0xa98] sm:$0xff]  ;;  %v1660_v34 = vpack.c.bf16 %v1494_v26, %v1486_v25  ;;  %v1714_v35 = vpack.c.bf16 %v1496_v29, %v1488_v27  ;;  %v1662_v36 = vpack.c.bf16 %v1511_v31, %v1503_v30  ;;  %v1502_v37 = vld [vmem:[%s3693_s1 + $0xa80] sm:$0xff]  ;;  %v1504_v39 = vld [vmem:[%s3693_s1 + $0xa90] sm:$0xff] }
  0x18   :  { %1705 = vmatprep.subr.bf16.mxu1 %v1704_v4  ;;  %v1513_v33 = vld [vmem:[%s3693_s1 + $0xad8] sm:$0xff]  ;;  %v1510_v38 = vld [vmem:[%s3693_s1 + $0xac0] sm:$0xff]  ;;  %v1512_v41 = vld [vmem:[%s3693_s1 + $0xad0] sm:$0xff] }
  0x19   :  { %v1716_v40 = vpack.c.bf16 %v1513_v33, %v1505_v32  ;;  %v1519_v42 = vld [vmem:[%s3693_s1 + $0xb08] sm:$0xff]  ;;  %v1521_v44 = vld [vmem:[%s3693_s1 + $0xb18] sm:$0xff]  ;;  %v1664_v46 = vpack.c.bf16 %v1510_v38, %v1502_v37  ;;  %v1518_v47 = vld [vmem:[%s3693_s1 + $0xb00] sm:$0xff]  ;;  %v1718_v48 = vpack.c.bf16 %v1512_v41, %v1504_v39 }
  0x1a   :  { %1653 = vmatpush1.bf16.msra.mxu0 %v1652_v10  ;;  %v1527_v43 = vld [vmem:[%s3693_s1 + $0xb48] sm:$0xff]  ;;  %v1529_v45 = vld [vmem:[%s3693_s1 + $0xb58] sm:$0xff]  ;;  %v1526_v50 = vld [vmem:[%s3693_s1 + $0xb40] sm:$0xff] }
  0x1b   :  { %1707 = vmatpush1.bf16.msra.mxu1 %v1706_v11  ;;  %1655 = vmatprep.subr.bf16.mxu0 %v1654_v12  ;;  %v1666_v49 = vpack.c.bf16 %v1527_v43, %v1519_v42  ;;  %v1520_v51 = vld [vmem:[%s3693_s1 + $0xb10] sm:$0xff]  ;;  %v1720_v53 = vpack.c.bf16 %v1529_v45, %v1521_v44  ;;  %v1535_v54 = vld [vmem:[%s3693_s1 + $0xb88] sm:$0xff]  ;;  %v1537_v56 = vld [vmem:[%s3693_s1 + $0xb98] sm:$0xff]  ;;  %v1668_v60 = vpack.c.bf16 %v1526_v50, %v1518_v47 }
  0x1c   :  { %1709 = vmatprep.subr.bf16.mxu1 %v1708_v16  ;;  %v1528_v52 = vld [vmem:[%s3693_s1 + $0xb50] sm:$0xff]  ;;  %v1543_v55 = vld [vmem:[%s3693_s1 + $0xbc8] sm:$0xff]  ;;  %v1545_v57 = vld [vmem:[%s3693_s1 + $0xbd8] sm:$0xff] }
  0x1d   :  { %v2375_v58 = vld [vmem:[%s3694_s0 + $0x18] sm:$0xff]  ;;  %v231_v59 = vld [vmem:[%s3694_s0 + $0x8] sm:$0xfe]  ;;  %v1722_v63 = vpack.c.bf16 %v1528_v52, %v1520_v51  ;;  %v1670_v0 = vpack.c.bf16 %v1543_v55, %v1535_v54  ;;  %v1534_v1 = vld [vmem:[%s3693_s1 + $0xb80] sm:$0xff]  ;;  %v1724_v4 = vpack.c.bf16 %v1545_v57, %v1537_v56 }
  0x1e   :  { %1657 = vmatpush1.bf16.msra.mxu0 %v1656_v22  ;;  %v254_v61 = vrot.slane %v231_v59, 1  ;;  %v255_v62 = vrot.slane %v2375_v58, 1  ;;  %v1542_v2 = vld [vmem:[%s3693_s1 + $0xbc0] sm:$0xff]  ;;  %v1536_v3 = vld [vmem:[%s3693_s1 + $0xb90] sm:$0xff]  ;;  %v1551_v6 = vld [vmem:[%s3693_s1 + $0xc08] sm:$0xff] }
  0x1f   :  { %1711 = vmatpush1.bf16.msra.mxu1 %v1710_v23  ;;  %1659 = vmatprep.subr.bf16.mxu0 %v1658_v24  ;;  %v1544_v5 = vld [vmem:[%s3693_s1 + $0xbd0] sm:$0xff]  ;;  %v1559_v7 = vld [vmem:[%s3693_s1 + $0xc48] sm:$0xff]  ;;  %v1553_v9 = vld [vmem:[%s3693_s1 + $0xc18] sm:$0xff]  ;;  %v1672_v11 = vpack.c.bf16 %v1542_v2, %v1534_v1 }
  0x20   :  { %1713 = vmatprep.subr.bf16.mxu1 %v1712_v28  ;;  %v2402_v8 = vsel %vm250_vm0, %v254_v61, %v255_v62  ;;  %v1561_v10 = vld [vmem:[%s3693_s1 + $0xc58] sm:$0xff]  ;;  %v1726_v12 = vpack.c.bf16 %v1544_v5, %v1536_v3  ;;  %v1674_v13 = vpack.c.bf16 %v1559_v7, %v1551_v6  ;;  %v1550_v14 = vld [vmem:[%s3693_s1 + $0xc00] sm:$0xff]  ;;  %v1552_v16 = vld [vmem:[%s3693_s1 + $0xc10] sm:$0xff] }
  0x21   :  { %1584 = vmatprep.mubr.msk.f32.mxu0 %vm484_vm1, %v2402_v8  ;;  %1590 = vmatprep.mubr.msk.f32.mxu1 %vm484_vm1, %v2402_v8  ;;  %v1558_v15 = vld [vmem:[%s3693_s1 + $0xc40] sm:$0xff]  ;;  %v1728_v17 = vpack.c.bf16 %v1561_v10, %v1553_v9  ;;  %v1560_v18 = vld [vmem:[%s3693_s1 + $0xc50] sm:$0xff]  ;;  %v1567_v19 = vld [vmem:[%s3693_s1 + $0xc88] sm:$0xff] }
  0x22   :  { %1661 = vmatpush1.bf16.msra.mxu0 %v1660_v34  ;;  %v1575_v20 = vld [vmem:[%s3693_s1 + $0xcc8] sm:$0xf]  ;;  %v1569_v21 = vld [vmem:[%s3693_s1 + $0xc98] sm:$0xff]  ;;  %v1676_v23 = vpack.c.bf16 %v1558_v15, %v1550_v14  ;;  %vm2438_vm4 = vmpackc.low %vm493_vm2, %vm2099_vm3  ;;  %v1730_v27 = vpack.c.bf16 %v1560_v18, %v1552_v16 }
  0x23   :  { %1715 = vmatpush1.bf16.msra.mxu1 %v1714_v35  ;;  %1663 = vmatprep.subr.bf16.mxu0 %v1662_v36  ;;  %v1577_v22 = vld [vmem:[%s3693_s1 + $0xcd8] sm:$0xf]  ;;  %v1566_v25 = vld [vmem:[%s3693_s1 + $0xc80] sm:$0xff]  ;;  %v1678_v28 = vpack.c.bf16 %v1575_v20, %v1567_v19  ;;  %v1568_v29 = vld [vmem:[%s3693_s1 + $0xc90] sm:$0xff] }
  0x24   :  { %1717 = vmatprep.subr.bf16.mxu1 %v1716_v40  ;;  %v1574_v26 = vld [vmem:[%s3693_s1 + $0xcc0] sm:$0xf]  ;;  %v2454_v30 = vld [vmem:[%s3694_s0 + $0x10] sm:$0xff]  ;;  %v1732_v32 = vpack.c.bf16 %v1577_v22, %v1569_v21  ;;  %v1379_v34 = vld [vmem:[%s3693_s1 + $0x6a8] sm:$0xff] }
  0x25   :  { %v230_v31 = vld [vmem:[%s3694_s0] sm:$0xfe]  ;;  %v1576_v33 = vld [vmem:[%s3693_s1 + $0xcd0] sm:$0xf]  ;;  %v1387_v35 = vld [vmem:[%s3693_s1 + $0x6e8] sm:$0xff]  ;;  %v1681_v38 = vpack.c.bf16 %v1574_v26, %v1566_v25  ;;  %v252_v40 = vrot.slane %v2454_v30, 1 }
  0x26   :  { %1665 = vmatpush1.bf16.msra.mxu0 %v1664_v46  ;;  %v1381_v36 = vld [vmem:[%s3693_s1 + $0x6b8] sm:$0xff]  ;;  %v251_v39 = vrot.slane %v230_v31, 1  ;;  %v1735_v41 = vpack.c.bf16 %v1576_v33, %v1568_v29  ;;  %v1738_v42 = vpack.c.bf16 %v1387_v35, %v1379_v34  ;;  %v1378_v43 = vld [vmem:[%s3693_s1 + $0x6a0] sm:$0xff]  ;;  %v1380_v45 = vld [vmem:[%s3693_s1 + $0x6b0] sm:$0xff] }
  0x27   :  { %1719 = vmatpush1.bf16.msra.mxu1 %v1718_v48  ;;  %1667 = vmatprep.subr.bf16.mxu0 %v1666_v49  ;;  %v1389_v37 = vld [vmem:[%s3693_s1 + $0x6f8] sm:$0xff]  ;;  %v1386_v44 = vld [vmem:[%s3693_s1 + $0x6e0] sm:$0xff]  ;;  %v1388_v47 = vld [vmem:[%s3693_s1 + $0x6f0] sm:$0xff] }
  0x28   :  { %1721 = vmatprep.subr.bf16.mxu1 %v1720_v53  ;;  %v1792_v46 = vpack.c.bf16 %v1389_v37, %v1381_v36  ;;  %v1395_v48 = vld [vmem:[%s3693_s1 + $0x728] sm:$0xff]  ;;  %v1397_v50 = vld [vmem:[%s3693_s1 + $0x738] sm:$0xff]  ;;  %v2508_v52 = vsel %vm250_vm0, %v251_v39, %v252_v40  ;;  %v1740_v53 = vpack.c.bf16 %v1386_v44, %v1378_v43  ;;  %v1794_v54 = vpack.c.bf16 %v1388_v47, %v1380_v45  ;;  %v1394_v56 = vld [vmem:[%s3693_s1 + $0x720] sm:$0xff] }
  0x29   :  { %v1403_v49 = vld [vmem:[%s3693_s1 + $0x768] sm:$0xff]  ;;  %v1405_v51 = vld [vmem:[%s3693_s1 + $0x778] sm:$0xff]  ;;  %v1402_v57 = vld [vmem:[%s3693_s1 + $0x760] sm:$0xff] }
  0x2a   :  { %1669 = vmatpush1.bf16.msra.mxu0 %v1668_v60  ;;  %v1742_v55 = vpack.c.bf16 %v1403_v49, %v1395_v48  ;;  %v1396_v59 = vld [vmem:[%s3693_s1 + $0x730] sm:$0xff]  ;;  %v1796_v60 = vpack.c.bf16 %v1405_v51, %v1397_v50  ;;  %v1413_v1 = vld [vmem:[%s3693_s1 + $0x7b8] sm:$0xff]  ;;  %v1744_v3 = vpack.c.bf16 %v1402_v57, %v1394_v56  ;;  %v1410_v6 = vld [vmem:[%s3693_s1 + $0x7a0] sm:$0xff] }
  0x2b   :  { %1723 = vmatpush1.bf16.msra.mxu1 %v1722_v63  ;;  %1671 = vmatprep.subr.bf16.mxu0 %v1670_v0  ;;  %v1404_v61 = vld [vmem:[%s3693_s1 + $0x770] sm:$0xff]  ;;  %v1411_v63 = vld [vmem:[%s3693_s1 + $0x7a8] sm:$0xff]  ;;  %v1421_v2 = vld [vmem:[%s3693_s1 + $0x7f8] sm:$0xff] }
  0x2c   :  { %1725 = vmatprep.subr.bf16.mxu1 %v1724_v4  ;;  %v1419_v0 = vld [vmem:[%s3693_s1 + $0x7e8] sm:$0xff]  ;;  %v1798_v4 = vpack.c.bf16 %v1404_v61, %v1396_v59  ;;  %v1418_v7 = vld [vmem:[%s3693_s1 + $0x7e0] sm:$0xff]  ;;  %v1412_v9 = vld [vmem:[%s3693_s1 + $0x7b0] sm:$0xff]  ;;  %v1800_v10 = vpack.c.bf16 %v1421_v2, %v1413_v1 }
  0x2d   :  { %v1746_v5 = vpack.c.bf16 %v1419_v0, %v1411_v63  ;;  %v1429_v14 = vld [vmem:[%s3693_s1 + $0x838] sm:$0xff]  ;;  %v1748_v16 = vpack.c.bf16 %v1418_v7, %v1410_v6  ;;  %v1426_v19 = vld [vmem:[%s3693_s1 + $0x820] sm:$0xff]  ;;  %v1428_v21 = vld [vmem:[%s3693_s1 + $0x830] sm:$0xff] }
  0x2e   :  { %1673 = vmatpush1.bf16.msra.mxu0 %v1672_v11  ;;  %v1420_v11 = vld [vmem:[%s3693_s1 + $0x7f0] sm:$0xff]  ;;  %v1437_v15 = vld [vmem:[%s3693_s1 + $0x878] sm:$0xff]  ;;  %v1434_v20 = vld [vmem:[%s3693_s1 + $0x860] sm:$0xff] }
  0x2f   :  { %1727 = vmatpush1.bf16.msra.mxu1 %v1726_v12  ;;  %1675 = vmatprep.subr.bf16.mxu0 %v1674_v13  ;;  %v1427_v12 = vld [vmem:[%s3693_s1 + $0x828] sm:$0xff]  ;;  %v1804_v22 = vpack.c.bf16 %v1437_v15, %v1429_v14  ;;  %v1752_v31 = vpack.c.bf16 %v1434_v20, %v1426_v19  ;;  %v1450_v33 = vld [vmem:[%s3693_s1 + $0x8e0] sm:$0xff]  ;;  %v1452_v39 = vld [vmem:[%s3693_s1 + $0x8f0] sm:$0xff] }
  0x30   :  { %1729 = vmatprep.subr.bf16.mxu1 %v1728_v17  ;;  %v1435_v13 = vld [vmem:[%s3693_s1 + $0x868] sm:$0xff]  ;;  %v1802_v17 = vpack.c.bf16 %v1420_v11, %v1412_v9  ;;  %v232_v35 = vld [vmem:[%s3694_s0 + $0x20] sm:$0x1]  ;;  %v235_v47 = vld [vmem:[%s3694_s0 + $0x38] sm:$0xfe] }
  0x31   :  { %v1750_v18 = vpack.c.bf16 %v1435_v13, %v1427_v12  ;;  %v1443_v25 = vld [vmem:[%s3693_s1 + $0x8a8] sm:$0xff]  ;;  %v1461_v48 = vld [vmem:[%s3693_s1 + $0x938] sm:$0xff]  ;;  %v264_v49 = vrot.slane %v235_v47, 1  ;;  %v234_v30 = vld [vmem:[%s3694_s0 + $0x30] sm:$0xfe] }
  0x32   :  { %1677 = vmatpush1.bf16.msra.mxu0 %v1676_v23  ;;  %v1436_v23 = vld [vmem:[%s3693_s1 + $0x870] sm:$0xff]  ;;  %v1451_v26 = vld [vmem:[%s3693_s1 + $0x8e8] sm:$0xff]  ;;  %v1469_v58 = vld [vmem:[%s3693_s1 + $0x978] sm:$0xff]  ;;  %v261_v61 = vrot.slane %v234_v30, 1 }
  0x33   :  { %1731 = vmatpush1.bf16.msra.mxu1 %v1730_v27  ;;  %1680 = vmatprep.subr.msk.bf16.mxu0 %vm2438_vm4, %v1678_v28  ;;  %v1445_v27 = vld [vmem:[%s3693_s1 + $0x8b8] sm:$0xff]  ;;  %v233_v29 = vld [vmem:[%s3694_s0 + $0x28] sm:$0x1]  ;;  %v1806_v36 = vpack.c.bf16 %v1436_v23, %v1428_v21  ;;  %v1754_v37 = vpack.c.bf16 %v1451_v26, %v1443_v25  ;;  %v1466_v56 = vld [vmem:[%s3693_s1 + $0x960] sm:$0xff]  ;;  %v1812_v0 = vpack.c.bf16 %v1469_v58, %v1461_v48 }
  0x34   :  { %1734 = vmatprep.subr.msk.bf16.mxu1 %vm2438_vm4, %v1732_v32  ;;  %v1453_v28 = vld [vmem:[%s3693_s1 + $0x8f8] sm:$0xff]  ;;  %v1442_v32 = vld [vmem:[%s3693_s1 + $0x8a0] sm:$0xff]  ;;  %v259_v34 = vrot.slane %v233_v29, 1  ;;  %v1467_v44 = vld [vmem:[%s3693_s1 + $0x968] sm:$0xff] }
  0x35   :  { %v1808_v43 = vpack.c.bf16 %v1453_v28, %v1445_v27  ;;  %v1756_v51 = vpack.c.bf16 %v1450_v33, %v1442_v32  ;;  %v1460_v57 = vld [vmem:[%s3693_s1 + $0x930] sm:$0xff]  ;;  %v1475_v1 = vld [vmem:[%s3693_s1 + $0x9a8] sm:$0xff]  ;;  %v1474_v13 = vld [vmem:[%s3693_s1 + $0x9a0] sm:$0xff] }
  0x36   :  { %1683 = vmatpush1.bf16.msk.msra.mxu0 %vm2438_vm4, %v1681_v38  ;;  %v1444_v38 = vld [vmem:[%s3693_s1 + $0x8b0] sm:$0xff]  ;;  %v2613_v45 = vsel %vm250_vm0, %v255_v62, %v259_v34  ;;  %v1483_v2 = vld [vmem:[%s3693_s1 + $0x9e8] sm:$0xff]  ;;  %v1482_v14 = vld [vmem:[%s3693_s1 + $0x9e0] sm:$0xff] }
  0x37   :  { %1737 = vmatpush1.bf16.msk.msra.mxu1 %vm2438_vm4, %v1735_v41  ;;  %1739 = vmatprep.subr.bf16.mxu0 %v1738_v42  ;;  %v1459_v41 = vld [vmem:[%s3693_s1 + $0x928] sm:$0xff]  ;;  %v257_v42 = vrot.slane %v232_v35, 1  ;;  %v1468_v59 = vld [vmem:[%s3693_s1 + $0x970] sm:$0xff]  ;;  %v1762_v12 = vpack.c.bf16 %v1483_v2, %v1475_v1  ;;  %v1501_v23 = vld [vmem:[%s3693_s1 + $0xa78] sm:$0xff]  ;;  %v1764_v26 = vpack.c.bf16 %v1482_v14, %v1474_v13 }
  0x38   :  { %1793 = vmatprep.subr.bf16.mxu1 %v1792_v46  ;;  %v2618_v46 = vld [vmem:[%s3694_s0 + $0x48] sm:$0xff]  ;;  %v1814_v11 = vpack.c.bf16 %v1468_v59, %v1460_v57  ;;  %v1476_v15 = vld [vmem:[%s3693_s1 + $0x9b0] sm:$0xff]  ;;  %v1490_v29 = vld [vmem:[%s3693_s1 + $0xa20] sm:$0xff] }
  0x39   :  { %583 = vmatmul.mubr.f32.vlgmr.msra.gmra.mrb[0].mxu0 %v2508_v52  ;;  %v2636_v62 = vsel %vm250_vm0, %v252_v40, %v257_v42  ;;  %v265_v50 = vrot.slane %v2618_v46, 1  ;;  %v1758_v40 = vpack.c.bf16 %v1467_v44, %v1459_v41  ;;  %v1484_v19 = vld [vmem:[%s3693_s1 + $0x9f0] sm:$0xff]  ;;  %v1491_v20 = vld [vmem:[%s3693_s1 + $0xa28] sm:$0xff]  ;;  %v1514_v44 = vld [vmem:[%s3693_s1 + $0xae0] sm:$0xff] }
  0x3a   :  { %672 = vmatmul.mubr.f32.vlgmr.msra.gmra.mrb[0].mxu1 %v2508_v52  ;;  %1741 = vmatpush1.bf16.msra.mxu0 %v1740_v53  ;;  %v1810_v53 = vpack.c.bf16 %v1452_v39, %v1444_v38  ;;  %v1499_v21 = vld [vmem:[%s3693_s1 + $0xa68] sm:$0xff]  ;;  %v1818_v27 = vpack.c.bf16 %v1484_v19, %v1476_v15  ;;  %v1492_v32 = vld [vmem:[%s3693_s1 + $0xa30] sm:$0xff]  ;;  %v1517_v38 = vld [vmem:[%s3693_s1 + $0xaf8] sm:$0xff] }
  0x3b   :  { %1795 = vmatpush1.bf16.msra.mxu1 %v1794_v54  ;;  %1743 = vmatprep.subr.bf16.mxu0 %v1742_v55  ;;  %v1458_v54 = vld [vmem:[%s3693_s1 + $0x920] sm:$0xff]  ;;  %v1766_v28 = vpack.c.bf16 %v1499_v21, %v1491_v20  ;;  %v1500_v34 = vld [vmem:[%s3693_s1 + $0xa70] sm:$0xff]  ;;  %v1507_v35 = vld [vmem:[%s3693_s1 + $0xaa8] sm:$0xff] }
  0x3c   :  { %1797 = vmatprep.subr.bf16.mxu1 %v1796_v60  ;;  %1585 = vmatprep.mubr.msk.f32.mxu0 %vm484_vm1, %v2613_v45  ;;  %v2646_v55 = vld [vmem:[%s3694_s0 + $0x40] sm:$0xff]  ;;  %v2661_v60 = vsel %vm250_vm0, %v264_v49, %v265_v50  ;;  %v1760_v9 = vpack.c.bf16 %v1466_v56, %v1458_v54  ;;  %v1822_v41 = vpack.c.bf16 %v1500_v34, %v1492_v32  ;;  %v1508_v47 = vld [vmem:[%s3693_s1 + $0xab0] sm:$0xff]  ;;  %v1523_v58 = vld [vmem:[%s3693_s1 + $0xb28] sm:$0xff] }
  0x3d   :  { %1591 = vmatprep.mubr.msk.f32.mxu1 %vm484_vm1, %v2613_v45  ;;  %v262_v63 = vrot.slane %v2646_v55, 1  ;;  %589 = vmatmul.mubr.f32.gmra.mrb[2].mxu0 %v2636_v62  ;;  %v1516_v48 = vld [vmem:[%s3693_s1 + $0xaf0] sm:$0xff]  ;;  %v1531_v49 = vld [vmem:[%s3693_s1 + $0xb68] sm:$0xff]  ;;  %v1530_v56 = vld [vmem:[%s3693_s1 + $0xb60] sm:$0xff] }
  0x3e   :  { %1745 = vmatpush1.bf16.msra.mxu0 %v1744_v3  ;;  %678 = vmatmul.mubr.f32.gmra.mrb[2].mxu1 %v2636_v62  ;;  %v237_v3 = vld [vmem:[%s3694_s0 + $0x58] sm:$0x1]  ;;  %v1826_v54 = vpack.c.bf16 %v1516_v48, %v1508_v47  ;;  %v1774_v30 = vpack.c.bf16 %v1531_v49, %v1523_v58  ;;  %v1524_v57 = vld [vmem:[%s3693_s1 + $0xb30] sm:$0xff]  ;;  %v1555_v13 = vld [vmem:[%s3693_s1 + $0xc28] sm:$0xff] }
  0x3f   :  { %1799 = vmatpush1.bf16.msra.mxu1 %v1798_v4  ;;  %1747 = vmatprep.subr.bf16.mxu0 %v1746_v5  ;;  %v1477_v4 = vld [vmem:[%s3693_s1 + $0x9b8] sm:$0xff]  ;;  %v2685_v6 = vsel %vm250_vm0, %v261_v61, %v262_v63  ;;  %v269_v7 = vrot.slane %v237_v3, 1  ;;  %v1532_v61 = vld [vmem:[%s3693_s1 + $0xb70] sm:$0xff]  ;;  %v1563_v14 = vld [vmem:[%s3693_s1 + $0xc68] sm:$0xff] }
  0x40   :  { %1801 = vmatprep.subr.bf16.mxu1 %v1800_v10  ;;  %v1485_v5 = vld [vmem:[%s3693_s1 + $0x9f8] sm:$0xff]  ;;  %1586 = vmatprep.mubr.msk.f32.mxu0 %vm484_vm1, %v2661_v60  ;;  %v236_v10 = vld [vmem:[%s3694_s0 + $0x50] sm:$0x1]  ;;  %v1782_v20 = vpack.c.bf16 %v1563_v14, %v1555_v13  ;;  %v1554_v21 = vld [vmem:[%s3693_s1 + $0xc20] sm:$0xff] }
  0x41   :  { %1592 = vmatprep.mubr.msk.f32.mxu1 %vm484_vm1, %v2661_v60  ;;  %595 = vmatmul.mubr.f32.gmra.mrb[4].mxu0 %v2685_v6  ;;  %v1541_v1 = vld [vmem:[%s3693_s1 + $0xbb8] sm:$0xff]  ;;  %v22_v49 = vld [vmem:[%s3693_s1] sm:$0xff]  ;;  %v2097_v24 = vld [vmem:[%s3694_s0 + $0x48] sm:$0xff] }
  0x42   :  { %1749 = vmatpush1.bf16.msra.mxu0 %v1748_v16  ;;  %684 = vmatmul.mubr.f32.gmra.mrb[4].mxu1 %v2685_v6  ;;  %v2701_v16 = vsel %vm250_vm0, %v265_v50, %v269_v7  ;;  %v1525_v50 = vld [vmem:[%s3693_s1 + $0xb38] sm:$0xff]  ;;  %v1538_v7 = vld [vmem:[%s3693_s1 + $0xba0] sm:$0xff] }
  0x43   :  { %1803 = vmatpush1.bf16.msra.mxu1 %v1802_v17  ;;  %1751 = vmatprep.subr.bf16.mxu0 %v1750_v18  ;;  %v267_v17 = vrot.slane %v236_v10, 1  ;;  %v1816_v18 = vpack.c.bf16 %v1485_v5, %v1477_v4  ;;  %v1549_v2 = vld [vmem:[%s3693_s1 + $0xbf8] sm:$0xff]  ;;  %v1830_v4 = vpack.c.bf16 %v1532_v61, %v1524_v57  ;;  %v1540_v10 = vld [vmem:[%s3693_s1 + $0xbb0] sm:$0xff]  ;;  %v54_v14 = vld [vmem:[%s3693_s1 + $0x100] sm:$0xff] }
  0x44   :  { %1805 = vmatprep.subr.bf16.mxu1 %v1804_v22  ;;  %v1493_v22 = vld [vmem:[%s3693_s1 + $0xa38] sm:$0xff]  ;;  %1587 = vmatprep.mubr.msk.f32.mxu0 %vm484_vm1, %v2701_v16 }
  0x45   :  { %1593 = vmatprep.mubr.msk.f32.mxu1 %vm484_vm1, %v2701_v16  ;;  %v2724_v25 = vsel %vm250_vm0, %v262_v63, %v267_v17  ;;  %v1820_v33 = vpack.c.bf16 %v1501_v23, %v1493_v22  ;;  %v1539_v63 = vld [vmem:[%s3693_s1 + $0xba8] sm:$0xff]  ;;  %v1557_v15 = vld [vmem:[%s3693_s1 + $0xc38] sm:$0xff]  ;;  %v1562_v22 = vld [vmem:[%s3693_s1 + $0xc60] sm:$0xff] }
  0x46   :  { %1753 = vmatpush1.bf16.msra.mxu0 %v1752_v31  ;;  %690 = vmatmul.mubr.f32.gmra.mrb[6].mxu1 %v2724_v25  ;;  %v1498_v31 = vld [vmem:[%s3693_s1 + $0xa60] sm:$0xff]  ;;  %v1565_v17 = vld [vmem:[%s3693_s1 + $0xc78] sm:$0xff]  ;;  %v1556_v23 = vld [vmem:[%s3693_s1 + $0xc30] sm:$0xff] }
  0x47   :  { %1807 = vmatpush1.bf16.msra.mxu1 %v1806_v36  ;;  %1755 = vmatprep.subr.bf16.mxu0 %v1754_v37  ;;  %v1515_v36 = vld [vmem:[%s3693_s1 + $0xae8] sm:$0xff]  ;;  %v1509_v37 = vld [vmem:[%s3693_s1 + $0xab8] sm:$0xff]  ;;  %v1768_v39 = vpack.c.bf16 %v1498_v31, %v1490_v29 }
  0x48   :  { %1809 = vmatprep.subr.bf16.mxu1 %v1808_v43  ;;  %601 = vmatmul.mubr.f32.gmra.mrb[6].mxu0 %v2724_v25  ;;  %v1770_v42 = vpack.c.bf16 %v1515_v36, %v1507_v35  ;;  %v1506_v43 = vld [vmem:[%s3693_s1 + $0xaa0] sm:$0xff]  ;;  %v1579_v29 = vld [vmem:[%s3693_s1 + $0xce8] sm:$0xf]  ;;  %v1573_v31 = vld [vmem:[%s3693_s1 + $0xcb8] sm:$0xff] }
  0x49   :  { %1596 = vmatprep.mubr.msk.f32.mxu0 %vm484_vm1, %v2402_v8  ;;  %1602 = vmatprep.mubr.msk.f32.mxu1 %vm484_vm1, %v2402_v8  ;;  %v1824_v8 = vpack.c.bf16 %v1517_v38, %v1509_v37  ;;  %v1581_v32 = vld [vmem:[%s3693_s1 + $0xcf8] sm:$0xf]  ;;  %v1570_v36 = vld [vmem:[%s3693_s1 + $0xca0] sm:$0xff]  ;;  %v1572_v38 = vld [vmem:[%s3693_s1 + $0xcb0] sm:$0xff] }
  0x4a   :  { %1757 = vmatpush1.bf16.msra.mxu0 %v1756_v51  ;;  %v1533_v51 = vld [vmem:[%s3693_s1 + $0xb78] sm:$0xff]  ;;  %v1578_v37 = vld [vmem:[%s3693_s1 + $0xce0] sm:$0xf] }
  0x4b   :  { %1811 = vmatpush1.bf16.msra.mxu1 %v1810_v53  ;;  %1759 = vmatprep.subr.bf16.mxu0 %v1758_v40  ;;  %v1772_v53 = vpack.c.bf16 %v1514_v44, %v1506_v43  ;;  %v1522_v40 = vld [vmem:[%s3693_s1 + $0xb20] sm:$0xff]  ;;  %v1828_v59 = vpack.c.bf16 %v1533_v51, %v1525_v50  ;;  %v31_v43 = vld [vmem:[%s3693_s1 + $0x48] sm:$0xff]  ;;  %v25_v44 = vld [vmem:[%s3693_s1 + $0x18] sm:$0xff] }
  0x4c   :  { %1813 = vmatprep.subr.bf16.mxu1 %v1812_v0  ;;  %v1547_v0 = vld [vmem:[%s3693_s1 + $0xbe8] sm:$0xff]  ;;  %v1776_v3 = vpack.c.bf16 %v1530_v56, %v1522_v40  ;;  %v33_v47 = vld [vmem:[%s3693_s1 + $0x58] sm:$0xff]  ;;  %v30_v50 = vld [vmem:[%s3693_s1 + $0x40] sm:$0xff] }
  0x4d   :  { %v1778_v5 = vpack.c.bf16 %v1547_v0, %v1539_v63  ;;  %v24_v51 = vld [vmem:[%s3693_s1 + $0x10] sm:$0xff]  ;;  %v47_v40 = vld [vmem:[%s3693_s1 + $0xc8] sm:$0xff]  ;;  %v41_v56 = vld [vmem:[%s3693_s1 + $0x98] sm:$0xff] }
  0x4e   :  { %1761 = vmatpush1.bf16.msra.mxu0 %v1760_v9  ;;  %v1546_v9 = vld [vmem:[%s3693_s1 + $0xbe0] sm:$0xff]  ;;  %v49_v57 = vld [vmem:[%s3693_s1 + $0xd8] sm:$0xff] }
  0x4f   :  { %1815 = vmatpush1.bf16.msra.mxu1 %v1814_v11  ;;  %1763 = vmatprep.subr.bf16.mxu0 %v1762_v12  ;;  %v1832_v11 = vpack.c.bf16 %v1549_v2, %v1541_v1  ;;  %v1548_v12 = vld [vmem:[%s3693_s1 + $0xbf0] sm:$0xff]  ;;  %v38_v0 = vld [vmem:[%s3693_s1 + $0x80] sm:$0xff] }
  0x50   :  { %1817 = vmatprep.subr.bf16.mxu1 %v1816_v18  ;;  %v1780_v18 = vpack.c.bf16 %v1546_v9, %v1538_v7  ;;  %v1834_v19 = vpack.c.bf16 %v1548_v12, %v1540_v10  ;;  %v46_v1 = vld [vmem:[%s3693_s1 + $0xc0] sm:$0xff]  ;;  %v40_v2 = vld [vmem:[%s3693_s1 + $0x90] sm:$0xff]  ;;  %v63_v7 = vld [vmem:[%s3693_s1 + $0x148] sm:$0xff] }
  0x51   :  { %v57_v9 = vld [vmem:[%s3693_s1 + $0x118] sm:$0xff] }
  0x52   :  { %1765 = vmatpush1.bf16.msra.mxu0 %v1764_v26  ;;  %v1836_v26 = vpack.c.bf16 %v1565_v17, %v1557_v15  ;;  %v65_v10 = vld [vmem:[%s3693_s1 + $0x158] sm:$0xff]  ;;  %v62_v15 = vld [vmem:[%s3693_s1 + $0x140] sm:$0xff]  ;;  %v56_v17 = vld [vmem:[%s3693_s1 + $0x110] sm:$0xff] }
  0x53   :  { %1819 = vmatpush1.bf16.msra.mxu1 %v1818_v27  ;;  %1767 = vmatprep.subr.bf16.mxu0 %v1766_v28  ;;  %v1564_v27 = vld [vmem:[%s3693_s1 + $0xc70] sm:$0xff]  ;;  %v1571_v28 = vld [vmem:[%s3693_s1 + $0xca8] sm:$0xff] }
  0x54   :  { %1821 = vmatprep.subr.bf16.mxu1 %v1820_v33  ;;  %v1784_v33 = vpack.c.bf16 %v1562_v22, %v1554_v21  ;;  %v1838_v34 = vpack.c.bf16 %v1564_v27, %v1556_v23  ;;  %v1786_v35 = vpack.c.bf16 %v1579_v29, %v1571_v28  ;;  %v73_v21 = vld [vmem:[%s3693_s1 + $0x198] sm:$0xff]  ;;  %v1856_v23 = vpack.c.bf16 %v62_v15, %v54_v14  ;;  %v70_v28 = vld [vmem:[%s3693_s1 + $0x180] sm:$0xff] }
  0x55   :  { %v81_v22 = vld [vmem:[%s3693_s1 + $0x1d8] sm:$0xff]  ;;  %v78_v29 = vld [vmem:[%s3693_s1 + $0x1c0] sm:$0xff] }
  0x56   :  { %1769 = vmatpush1.bf16.msra.mxu0 %v1768_v39  ;;  %v1840_v39 = vpack.c.bf16 %v1581_v32, %v1573_v31  ;;  %v1912_v31 = vpack.c.bf16 %v81_v22, %v73_v21  ;;  %v87_v32 = vld [vmem:[%s3693_s1 + $0x208] sm:$0xff]  ;;  %v134_v14 = vld [vmem:[%s3693_s1 + $0x380] sm:$0xff]  ;;  %v153_v21 = vld [vmem:[%s3693_s1 + $0x418] sm:$0xff] }
  0x57   :  { %1823 = vmatpush1.bf16.msra.mxu1 %v1822_v41  ;;  %1771 = vmatprep.subr.bf16.mxu0 %v1770_v42  ;;  %v1580_v41 = vld [vmem:[%s3693_s1 + $0xcf0] sm:$0xf]  ;;  %v23_v42 = vld [vmem:[%s3693_s1 + $0x8] sm:$0xff]  ;;  %v142_v15 = vld [vmem:[%s3693_s1 + $0x3c0] sm:$0xff] }
  0x58   :  { %1825 = vmatprep.subr.bf16.mxu1 %v1824_v8  ;;  %v1789_v8 = vpack.c.bf16 %v1578_v37, %v1570_v36  ;;  %v1843_v48 = vpack.c.bf16 %v1580_v41, %v1572_v38  ;;  %v1846_v58 = vpack.c.bf16 %v31_v43, %v23_v42  ;;  %v1860_v36 = vpack.c.bf16 %v78_v29, %v70_v28  ;;  %v94_v41 = vld [vmem:[%s3693_s1 + $0x240] sm:$0xff]  ;;  %v103_v43 = vld [vmem:[%s3693_s1 + $0x288] sm:$0xff]  ;;  %v161_v22 = vld [vmem:[%s3693_s1 + $0x458] sm:$0xff] }
  0x59   :  { %v150_v28 = vld [vmem:[%s3693_s1 + $0x400] sm:$0xff] }
  0x5a   :  { %1773 = vmatpush1.bf16.msra.mxu0 %v1772_v53  ;;  %v1900_v53 = vpack.c.bf16 %v33_v47, %v25_v44  ;;  %v111_v44 = vld [vmem:[%s3693_s1 + $0x2c8] sm:$0xff]  ;;  %v105_v47 = vld [vmem:[%s3693_s1 + $0x298] sm:$0xff]  ;;  %v158_v29 = vld [vmem:[%s3693_s1 + $0x440] sm:$0xff] }
  0x5b   :  { %1827 = vmatpush1.bf16.msra.mxu1 %v1826_v54  ;;  %1775 = vmatprep.subr.bf16.mxu0 %v1774_v30  ;;  %v32_v54 = vld [vmem:[%s3693_s1 + $0x50] sm:$0xff]  ;;  %v39_v30 = vld [vmem:[%s3693_s1 + $0x88] sm:$0xff] }
  0x5c   :  { %1829 = vmatprep.subr.bf16.mxu1 %v1828_v59  ;;  %v1848_v59 = vpack.c.bf16 %v30_v50, %v22_v49  ;;  %v1902_v61 = vpack.c.bf16 %v32_v54, %v24_v51  ;;  %v1850_v63 = vpack.c.bf16 %v47_v40, %v39_v30  ;;  %v1866_v50 = vpack.c.bf16 %v111_v44, %v103_v43  ;;  %v102_v51 = vld [vmem:[%s3693_s1 + $0x280] sm:$0xff]  ;;  %v119_v30 = vld [vmem:[%s3693_s1 + $0x308] sm:$0xff] }
  0x5d   :  { %v127_v40 = vld [vmem:[%s3693_s1 + $0x348] sm:$0xff] }
  0x5e   :  { %1777 = vmatpush1.bf16.msra.mxu0 %v1776_v3  ;;  %v1904_v3 = vpack.c.bf16 %v49_v57, %v41_v56  ;;  %v121_v56 = vld [vmem:[%s3693_s1 + $0x318] sm:$0xff]  ;;  %v183_v43 = vld [vmem:[%s3693_s1 + $0x508] sm:$0xff] }
  0x5f   :  { %1831 = vmatpush1.bf16.msra.mxu1 %v1830_v4  ;;  %1779 = vmatprep.subr.bf16.mxu0 %v1778_v5  ;;  %v48_v4 = vld [vmem:[%s3693_s1 + $0xd0] sm:$0xff]  ;;  %v55_v5 = vld [vmem:[%s3693_s1 + $0x108] sm:$0xff]  ;;  %v129_v57 = vld [vmem:[%s3693_s1 + $0x358] sm:$0xff] }
  0x60   :  { %1833 = vmatprep.subr.bf16.mxu1 %v1832_v11  ;;  %v1852_v11 = vpack.c.bf16 %v46_v1, %v38_v0  ;;  %v1906_v12 = vpack.c.bf16 %v48_v4, %v40_v2  ;;  %v1854_v13 = vpack.c.bf16 %v63_v7, %v55_v5  ;;  %v118_v0 = vld [vmem:[%s3693_s1 + $0x300] sm:$0xff]  ;;  %v120_v2 = vld [vmem:[%s3693_s1 + $0x310] sm:$0xff]  ;;  %v135_v5 = vld [vmem:[%s3693_s1 + $0x388] sm:$0xff] }
  0x61   :  { %v126_v1 = vld [vmem:[%s3693_s1 + $0x340] sm:$0xff]  ;;  %v128_v4 = vld [vmem:[%s3693_s1 + $0x350] sm:$0xff]  ;;  %v143_v7 = vld [vmem:[%s3693_s1 + $0x3c8] sm:$0xff] }
  0x62   :  { %1781 = vmatpush1.bf16.msra.mxu0 %v1780_v18  ;;  %v64_v18 = vld [vmem:[%s3693_s1 + $0x150] sm:$0xff]  ;;  %v191_v44 = vld [vmem:[%s3693_s1 + $0x548] sm:$0xff] }
  0x63   :  { %1835 = vmatpush1.bf16.msra.mxu1 %v1834_v19  ;;  %1783 = vmatprep.subr.bf16.mxu0 %v1782_v20  ;;  %v71_v19 = vld [vmem:[%s3693_s1 + $0x188] sm:$0xff] }
  0x64   :  { %1837 = vmatprep.subr.bf16.mxu1 %v1836_v26  ;;  %v79_v20 = vld [vmem:[%s3693_s1 + $0x1c8] sm:$0xff]  ;;  %v1910_v26 = vpack.c.bf16 %v64_v18, %v56_v17  ;;  %v136_v17 = vld [vmem:[%s3693_s1 + $0x390] sm:$0xff] }
  0x65   :  { %v1858_v27 = vpack.c.bf16 %v79_v20, %v71_v19  ;;  %v144_v18 = vld [vmem:[%s3693_s1 + $0x3d0] sm:$0xff]  ;;  %v151_v19 = vld [vmem:[%s3693_s1 + $0x408] sm:$0xff] }
  0x66   :  { %1785 = vmatpush1.bf16.msra.mxu0 %v1784_v33  ;;  %v95_v33 = vld [vmem:[%s3693_s1 + $0x248] sm:$0xff] }
  0x67   :  { %1839 = vmatpush1.bf16.msra.mxu1 %v1838_v34  ;;  %1788 = vmatprep.subr.msk.bf16.mxu0 %vm2438_vm4, %v1786_v35  ;;  %v89_v34 = vld [vmem:[%s3693_s1 + $0x218] sm:$0xff]  ;;  %v1862_v38 = vpack.c.bf16 %v95_v33, %v87_v32  ;;  %v159_v20 = vld [vmem:[%s3693_s1 + $0x448] sm:$0xff] }
  0x68   :  { %1842 = vmatprep.subr.msk.bf16.mxu1 %vm2438_vm4, %v1840_v39  ;;  %v97_v35 = vld [vmem:[%s3693_s1 + $0x258] sm:$0xff]  ;;  %v86_v39 = vld [vmem:[%s3693_s1 + $0x200] sm:$0xff]  ;;  %v167_v32 = vld [vmem:[%s3693_s1 + $0x488] sm:$0xff] }
  0x69   :  { %v1916_v42 = vpack.c.bf16 %v97_v35, %v89_v34  ;;  %v175_v33 = vld [vmem:[%s3693_s1 + $0x4c8] sm:$0xff]  ;;  %v169_v34 = vld [vmem:[%s3693_s1 + $0x498] sm:$0xff] }
  0x6a   :  { %1791 = vmatpush1.bf16.msk.msra.mxu0 %vm2438_vm4, %v1789_v8  ;;  %v113_v8 = vld [vmem:[%s3693_s1 + $0x2d8] sm:$0xff] }
  0x6b   :  { %1845 = vmatpush1.bf16.msk.msra.mxu1 %vm2438_vm4, %v1843_v48  ;;  %1847 = vmatprep.subr.bf16.mxu0 %v1846_v58  ;;  %v3026_v48 = vld [vmem:[%s3694_s0 + $0x8] sm:$0xff]  ;;  %v1864_v58 = vpack.c.bf16 %v94_v41, %v86_v39  ;;  %v1920_v54 = vpack.c.bf16 %v113_v8, %v105_v47  ;;  %v177_v35 = vld [vmem:[%s3693_s1 + $0x4d8] sm:$0xff]  ;;  %v166_v39 = vld [vmem:[%s3693_s1 + $0x480] sm:$0xff] }
  0x6c   :  { %1901 = vmatprep.subr.bf16.mxu1 %v1900_v53  ;;  %v104_v53 = vld [vmem:[%s3693_s1 + $0x290] sm:$0xff]  ;;  %v174_v41 = vld [vmem:[%s3693_s1 + $0x4c0] sm:$0xff]  ;;  %v185_v47 = vld [vmem:[%s3693_s1 + $0x518] sm:$0xff] }
  0x6d   :  { %761 = vmatmul.mubr.f32.vlgmr.msra.gmra.mrb[8].mxu0 %v2508_v52  ;;  %v193_v8 = vld [vmem:[%s3693_s1 + $0x558] sm:$0xff] }
  0x6e   :  { %850 = vmatmul.mubr.f32.vlgmr.msra.gmra.mrb[8].mxu1 %v2508_v52  ;;  %1849 = vmatpush1.bf16.msra.mxu0 %v1848_v59  ;;  %v1908_v52 = vpack.c.bf16 %v65_v10, %v57_v9  ;;  %v137_v9 = vld [vmem:[%s3693_s1 + $0x398] sm:$0xff] }
  0x6f   :  { %1903 = vmatpush1.bf16.msra.mxu1 %v1902_v61  ;;  %1851 = vmatprep.subr.bf16.mxu0 %v1850_v63  ;;  %v1870_v63 = vpack.c.bf16 %v127_v40, %v119_v30  ;;  %v145_v10 = vld [vmem:[%s3693_s1 + $0x3d8] sm:$0xff]  ;;  %v199_v30 = vld [vmem:[%s3693_s1 + $0x588] sm:$0xff] }
  0x70   :  { %1905 = vmatprep.subr.bf16.mxu1 %v1904_v3  ;;  %1597 = vmatprep.mubr.msk.f32.mxu0 %vm484_vm1, %v2613_v45  ;;  %v1924_v3 = vpack.c.bf16 %v129_v57, %v121_v56  ;;  %v207_v40 = vld [vmem:[%s3693_s1 + $0x5c8] sm:$0xff]  ;;  %v201_v56 = vld [vmem:[%s3693_s1 + $0x598] sm:$0xff] }
  0x71   :  { %1603 = vmatprep.mubr.msk.f32.mxu1 %vm484_vm1, %v2613_v45  ;;  %767 = vmatmul.mubr.f32.gmra.mrb[10].mxu0 %v2636_v62  ;;  %v72_v45 = vld [vmem:[%s3693_s1 + $0x190] sm:$0xff]  ;;  %v209_v57 = vld [vmem:[%s3693_s1 + $0x5d8] sm:$0xff] }
  0x72   :  { %1853 = vmatpush1.bf16.msra.mxu0 %v1852_v11  ;;  %856 = vmatmul.mubr.f32.gmra.mrb[10].mxu1 %v2636_v62  ;;  %v80_v62 = vld [vmem:[%s3693_s1 + $0x1d0] sm:$0xff]  ;;  %v1872_v11 = vpack.c.bf16 %v126_v1, %v118_v0  ;;  %v198_v0 = vld [vmem:[%s3693_s1 + $0x580] sm:$0xff] }
  0x73   :  { %1907 = vmatpush1.bf16.msra.mxu1 %v1906_v12  ;;  %1855 = vmatprep.subr.bf16.mxu0 %v1854_v13  ;;  %v1914_v37 = vpack.c.bf16 %v80_v62, %v72_v45  ;;  %v1926_v12 = vpack.c.bf16 %v128_v4, %v120_v2  ;;  %v1874_v13 = vpack.c.bf16 %v143_v7, %v135_v5  ;;  %v152_v45 = vld [vmem:[%s3693_s1 + $0x410] sm:$0xff]  ;;  %v206_v1 = vld [vmem:[%s3693_s1 + $0x5c0] sm:$0xff]  ;;  %v215_v5 = vld [vmem:[%s3693_s1 + $0x608] sm:$0xff] }
  0x74   :  { %1909 = vmatprep.subr.bf16.mxu1 %v1908_v52  ;;  %1598 = vmatprep.mubr.msk.f32.mxu0 %vm484_vm1, %v2661_v60  ;;  %v1928_v52 = vpack.c.bf16 %v145_v10, %v137_v9  ;;  %v160_v62 = vld [vmem:[%s3693_s1 + $0x450] sm:$0xff]  ;;  %v223_v7 = vld [vmem:[%s3693_s1 + $0x648] sm:$0xf]  ;;  %v217_v9 = vld [vmem:[%s3693_s1 + $0x618] sm:$0xff] }
  0x75   :  { %1604 = vmatprep.mubr.msk.f32.mxu1 %vm484_vm1, %v2661_v60  ;;  %773 = vmatmul.mubr.f32.gmra.mrb[12].mxu0 %v2685_v6  ;;  %v88_v60 = vld [vmem:[%s3693_s1 + $0x210] sm:$0xff]  ;;  %v225_v10 = vld [vmem:[%s3693_s1 + $0x658] sm:$0xf] }
  0x76   :  { %1857 = vmatpush1.bf16.msra.mxu0 %v1856_v23  ;;  %862 = vmatmul.mubr.f32.gmra.mrb[12].mxu1 %v2685_v6  ;;  %v96_v6 = vld [vmem:[%s3693_s1 + $0x250] sm:$0xff]  ;;  %v1876_v23 = vpack.c.bf16 %v142_v15, %v134_v14  ;;  %v214_v14 = vld [vmem:[%s3693_s1 + $0x600] sm:$0xff] }
  0x77   :  { %1911 = vmatpush1.bf16.msra.mxu1 %v1910_v26  ;;  %1859 = vmatprep.subr.bf16.mxu0 %v1858_v27  ;;  %v1918_v49 = vpack.c.bf16 %v96_v6, %v88_v60  ;;  %v1930_v26 = vpack.c.bf16 %v144_v18, %v136_v17  ;;  %v1878_v27 = vpack.c.bf16 %v159_v20, %v151_v19  ;;  %v168_v60 = vld [vmem:[%s3693_s1 + $0x490] sm:$0xff]  ;;  %v222_v15 = vld [vmem:[%s3693_s1 + $0x640] sm:$0xf]  ;;  %v27_v19 = vld [vmem:[%s3693_s1 + $0x28] sm:$0xff] }
  0x78   :  { %1913 = vmatprep.subr.bf16.mxu1 %v1912_v31  ;;  %1599 = vmatprep.mubr.msk.f32.mxu0 %vm484_vm1, %v2701_v16  ;;  %v1932_v31 = vpack.c.bf16 %v161_v22, %v153_v21  ;;  %v176_v6 = vld [vmem:[%s3693_s1 + $0x4d0] sm:$0xff]  ;;  %v35_v20 = vld [vmem:[%s3693_s1 + $0x68] sm:$0xff]  ;;  %v29_v21 = vld [vmem:[%s3693_s1 + $0x38] sm:$0xff] }
  0x79   :  { %1605 = vmatprep.mubr.msk.f32.mxu1 %vm484_vm1, %v2701_v16  ;;  %779 = vmatmul.mubr.f32.gmra.mrb[14].mxu0 %v2724_v25  ;;  %v110_v16 = vld [vmem:[%s3693_s1 + $0x2c0] sm:$0xff]  ;;  %v200_v2 = vld [vmem:[%s3693_s1 + $0x590] sm:$0xff]  ;;  %v37_v22 = vld [vmem:[%s3693_s1 + $0x78] sm:$0xff] }
  0x7a   :  { %1861 = vmatpush1.bf16.msra.mxu0 %v1860_v36  ;;  %868 = vmatmul.mubr.f32.gmra.mrb[14].mxu1 %v2724_v25  ;;  %v112_v25 = vld [vmem:[%s3693_s1 + $0x2d0] sm:$0xff]  ;;  %v1868_v59 = vpack.c.bf16 %v110_v16, %v102_v51  ;;  %v1880_v36 = vpack.c.bf16 %v158_v29, %v150_v28  ;;  %v182_v51 = vld [vmem:[%s3693_s1 + $0x500] sm:$0xff] }
  0x7b   :  { %1915 = vmatpush1.bf16.msra.mxu1 %v1914_v37  ;;  %1863 = vmatprep.subr.bf16.mxu0 %v1862_v38  ;;  %v1922_v61 = vpack.c.bf16 %v112_v25, %v104_v53  ;;  %v1934_v37 = vpack.c.bf16 %v160_v62, %v152_v45  ;;  %v1882_v38 = vpack.c.bf16 %v175_v33, %v167_v32  ;;  %v190_v16 = vld [vmem:[%s3693_s1 + $0x540] sm:$0xff]  ;;  %v184_v53 = vld [vmem:[%s3693_s1 + $0x510] sm:$0xff]  ;;  %v43_v32 = vld [vmem:[%s3693_s1 + $0xa8] sm:$0xff] }
  0x7c   :  { %1917 = vmatprep.subr.bf16.mxu1 %v1916_v42  ;;  %1608 = vmatprep.mubr.msk.f32.mxu0 %vm484_vm1, %v3026_v48  ;;  %v1936_v42 = vpack.c.bf16 %v177_v35, %v169_v34  ;;  %v192_v25 = vld [vmem:[%s3693_s1 + $0x550] sm:$0xff]  ;;  %v26_v28 = vld [vmem:[%s3693_s1 + $0x20] sm:$0xff]  ;;  %v2008_v45 = vpack.c.bf16 %v37_v22, %v29_v21  ;;  %v51_v33 = vld [vmem:[%s3693_s1 + $0xe8] sm:$0xff] }
  0x7d   :  { %1614 = vmatprep.mubr.msk.f32.mxu1 %vm484_vm1, %v3026_v48  ;;  %v208_v4 = vld [vmem:[%s3693_s1 + $0x5d0] sm:$0xff]  ;;  %v34_v29 = vld [vmem:[%s3693_s1 + $0x60] sm:$0xff] }
  0x7e   :  { %1865 = vmatpush1.bf16.msra.mxu0 %v1864_v58  ;;  %v1884_v58 = vpack.c.bf16 %v174_v41, %v166_v39  ;;  %v216_v17 = vld [vmem:[%s3693_s1 + $0x610] sm:$0xff]  ;;  %v3252_v34 = vld [vmem:[%s3694_s0] sm:$0xff]  ;;  %v1956_v35 = vpack.c.bf16 %v34_v29, %v26_v28  ;;  %v117_v28 = vld [vmem:[%s3693_s1 + $0x2f8] sm:$0xff] }
  0x7f   :  { %1919 = vmatpush1.bf16.msra.mxu1 %v1918_v49  ;;  %1867 = vmatprep.subr.bf16.mxu0 %v1866_v50  ;;  %v1938_v49 = vpack.c.bf16 %v176_v6, %v168_v60  ;;  %v1886_v50 = vpack.c.bf16 %v191_v44, %v183_v43  ;;  %v224_v18 = vld [vmem:[%s3693_s1 + $0x650] sm:$0xf]  ;;  %v42_v39 = vld [vmem:[%s3693_s1 + $0xa0] sm:$0xff]  ;;  %v1958_v60 = vpack.c.bf16 %v51_v33, %v43_v32  ;;  %v59_v44 = vld [vmem:[%s3693_s1 + $0x128] sm:$0xff] }
  0x80   :  { %1921 = vmatprep.subr.bf16.mxu1 %v1920_v54  ;;  %v1940_v54 = vpack.c.bf16 %v193_v8, %v185_v47  ;;  %v36_v62 = vld [vmem:[%s3693_s1 + $0x70] sm:$0xff]  ;;  %v50_v41 = vld [vmem:[%s3693_s1 + $0xe0] sm:$0xff]  ;;  %v67_v47 = vld [vmem:[%s3693_s1 + $0x168] sm:$0xff] }
  0x81   :  { %v52_v6 = vld [vmem:[%s3693_s1 + $0xf0] sm:$0xff]  ;;  %v1960_v8 = vpack.c.bf16 %v50_v41, %v42_v39  ;;  %v114_v32 = vld [vmem:[%s3693_s1 + $0x2e0] sm:$0xff]  ;;  %v133_v39 = vld [vmem:[%s3693_s1 + $0x378] sm:$0xff] }
  0x82   :  { %1869 = vmatpush1.bf16.msra.mxu0 %v1868_v59  ;;  %v1888_v59 = vpack.c.bf16 %v190_v16, %v182_v51  ;;  %v58_v16 = vld [vmem:[%s3693_s1 + $0x120] sm:$0xff]  ;;  %v92_v21 = vld [vmem:[%s3693_s1 + $0x230] sm:$0xff] }
  0x83   :  { %1923 = vmatpush1.bf16.msra.mxu1 %v1922_v61  ;;  %1871 = vmatprep.subr.bf16.mxu0 %v1870_v63  ;;  %v1942_v61 = vpack.c.bf16 %v192_v25, %v184_v53  ;;  %v1890_v63 = vpack.c.bf16 %v207_v40, %v199_v30  ;;  %v66_v53 = vld [vmem:[%s3693_s1 + $0x160] sm:$0xff]  ;;  %v1962_v25 = vpack.c.bf16 %v67_v47, %v59_v44  ;;  %v60_v30 = vld [vmem:[%s3693_s1 + $0x130] sm:$0xff] }
  0x84   :  { %1925 = vmatprep.subr.bf16.mxu1 %v1924_v3  ;;  %v1944_v3 = vpack.c.bf16 %v209_v57, %v201_v56  ;;  %v68_v40 = vld [vmem:[%s3693_s1 + $0x170] sm:$0xff] }
  0x85   :  { %v3317_v56 = vld [vmem:[%s3694_s0 + $0x10] sm:$0xff] }
  0x86   :  { %1873 = vmatpush1.bf16.msra.mxu0 %v1872_v11  ;;  %v1892_v11 = vpack.c.bf16 %v206_v1, %v198_v0  ;;  %v1964_v0 = vpack.c.bf16 %v66_v53, %v58_v16  ;;  %v77_v1 = vld [vmem:[%s3693_s1 + $0x1b8] sm:$0xff]  ;;  %v108_v33 = vld [vmem:[%s3693_s1 + $0x2b0] sm:$0xff] }
  0x87   :  { %1927 = vmatpush1.bf16.msra.mxu1 %v1926_v12  ;;  %1875 = vmatprep.subr.bf16.mxu0 %v1874_v13  ;;  %v1946_v12 = vpack.c.bf16 %v208_v4, %v200_v2  ;;  %v1894_v13 = vpack.c.bf16 %v223_v7, %v215_v5  ;;  %v85_v2 = vld [vmem:[%s3693_s1 + $0x1f8] sm:$0xff]  ;;  %v74_v4 = vld [vmem:[%s3693_s1 + $0x1a0] sm:$0xff]  ;;  %v76_v7 = vld [vmem:[%s3693_s1 + $0x1b0] sm:$0xff] }
  0x88   :  { %1929 = vmatprep.subr.bf16.mxu1 %v1928_v52  ;;  %v1948_v52 = vpack.c.bf16 %v225_v10, %v217_v9  ;;  %v82_v5 = vld [vmem:[%s3693_s1 + $0x1e0] sm:$0xff]  ;;  %v84_v10 = vld [vmem:[%s3693_s1 + $0x1f0] sm:$0xff] }
  0x89   :  { %v124_v44 = vld [vmem:[%s3693_s1 + $0x330] sm:$0xff] }
  0x8a   :  { %1877 = vmatpush1.bf16.msra.mxu0 %v1876_v23  ;;  %v1897_v23 = vpack.c.bf16 %v222_v15, %v214_v14  ;;  %v93_v14 = vld [vmem:[%s3693_s1 + $0x238] sm:$0xff]  ;;  %v132_v47 = vld [vmem:[%s3693_s1 + $0x370] sm:$0xff] }
  0x8b   :  { %1931 = vmatpush1.bf16.msra.mxu1 %v1930_v26  ;;  %1879 = vmatprep.subr.bf16.mxu0 %v1878_v27  ;;  %v1951_v26 = vpack.c.bf16 %v224_v18, %v216_v17  ;;  %v1954_v27 = vpack.c.bf16 %v35_v20, %v27_v19  ;;  %v101_v15 = vld [vmem:[%s3693_s1 + $0x278] sm:$0xff]  ;;  %v1968_v17 = vpack.c.bf16 %v82_v5, %v74_v4  ;;  %v90_v19 = vld [vmem:[%s3693_s1 + $0x220] sm:$0xff] }
  0x8c   :  { %1933 = vmatprep.subr.bf16.mxu1 %v1932_v31  ;;  %v28_v31 = vld [vmem:[%s3693_s1 + $0x30] sm:$0xff]  ;;  %v98_v20 = vld [vmem:[%s3693_s1 + $0x260] sm:$0xff]  ;;  %v2024_v22 = vpack.c.bf16 %v101_v15, %v93_v14  ;;  %v2034_v53 = vpack.c.bf16 %v132_v47, %v124_v44  ;;  %v171_v14 = vld [vmem:[%s3693_s1 + $0x4a8] sm:$0xff] }
  0x8d   :  { %v1972_v29 = vpack.c.bf16 %v98_v20, %v90_v19  ;;  %v179_v15 = vld [vmem:[%s3693_s1 + $0x4e8] sm:$0xff]  ;;  %v202_v44 = vld [vmem:[%s3693_s1 + $0x5a0] sm:$0xff]  ;;  %v204_v47 = vld [vmem:[%s3693_s1 + $0x5b0] sm:$0xff] }
  0x8e   :  { %1881 = vmatpush1.bf16.msra.mxu0 %v1880_v36  ;;  %v45_v36 = vld [vmem:[%s3693_s1 + $0xb8] sm:$0xff]  ;;  %v1990_v20 = vpack.c.bf16 %v179_v15, %v171_v14 }
  0x8f   :  { %1935 = vmatpush1.bf16.msra.mxu1 %v1934_v37  ;;  %1883 = vmatprep.subr.bf16.mxu0 %v1882_v38  ;;  %v53_v37 = vld [vmem:[%s3693_s1 + $0xf8] sm:$0xff]  ;;  %v2010_v38 = vpack.c.bf16 %v36_v62, %v28_v31  ;;  %v106_v62 = vld [vmem:[%s3693_s1 + $0x2a0] sm:$0xff] }
  0x90   :  { %1937 = vmatprep.subr.bf16.mxu1 %v1936_v42  ;;  %v44_v42 = vld [vmem:[%s3693_s1 + $0xb0] sm:$0xff]  ;;  %v2012_v43 = vpack.c.bf16 %v53_v37, %v45_v36  ;;  %v123_v36 = vld [vmem:[%s3693_s1 + $0x328] sm:$0xff]  ;;  %v1976_v41 = vpack.c.bf16 %v114_v32, %v106_v62 }
  0x91   :  { %v2014_v51 = vpack.c.bf16 %v52_v6, %v44_v42  ;;  %v131_v37 = vld [vmem:[%s3693_s1 + $0x368] sm:$0xff]  ;;  %v122_v6 = vld [vmem:[%s3693_s1 + $0x320] sm:$0xff] }
  0x92   :  { %1885 = vmatpush1.bf16.msra.mxu0 %v1884_v58  ;;  %v61_v58 = vld [vmem:[%s3693_s1 + $0x138] sm:$0xff]  ;;  %v1978_v42 = vpack.c.bf16 %v131_v37, %v123_v36  ;;  %v196_v37 = vld [vmem:[%s3693_s1 + $0x570] sm:$0xff] }
  0x93   :  { %1939 = vmatpush1.bf16.msra.mxu1 %v1938_v49  ;;  %1887 = vmatprep.subr.bf16.mxu0 %v1886_v50  ;;  %v69_v49 = vld [vmem:[%s3693_s1 + $0x178] sm:$0xff] }
  0x94   :  { %1941 = vmatprep.subr.bf16.mxu1 %v1940_v54  ;;  %v3291_v50 = vld [vmem:[%s3694_s0 + $0x18] sm:$0xff]  ;;  %v2016_v57 = vpack.c.bf16 %v69_v49, %v61_v58  ;;  %v147_v58 = vld [vmem:[%s3693_s1 + $0x3e8] sm:$0xff] }
  0x95   :  { %v3306_v54 = vld [vmem:[%s3694_s0 + $0x38] sm:$0xff] }
  0x96   :  { %1889 = vmatpush1.bf16.msra.mxu0 %v1888_v59  ;;  %v75_v59 = vld [vmem:[%s3693_s1 + $0x1a8] sm:$0xff]  ;;  %v141_v49 = vld [vmem:[%s3693_s1 + $0x3b8] sm:$0xff] }
  0x97   :  { %1943 = vmatpush1.bf16.msra.mxu1 %v1942_v61  ;;  %1891 = vmatprep.subr.bf16.mxu0 %v1890_v63  ;;  %v83_v61 = vld [vmem:[%s3693_s1 + $0x1e8] sm:$0xff]  ;;  %v3330_v63 = vld [vmem:[%s3694_s0 + $0x30] sm:$0xff] }
  0x98   :  { %1945 = vmatprep.subr.bf16.mxu1 %v1944_v3  ;;  %v2018_v3 = vpack.c.bf16 %v68_v40, %v60_v30  ;;  %v1966_v9 = vpack.c.bf16 %v83_v61, %v75_v59  ;;  %v138_v30 = vld [vmem:[%s3693_s1 + $0x3a0] sm:$0xff]  ;;  %v148_v61 = vld [vmem:[%s3693_s1 + $0x3f0] sm:$0xff] }
  0x99   :  { %v146_v40 = vld [vmem:[%s3693_s1 + $0x3e0] sm:$0xff] }
  0x9a   :  { %1893 = vmatpush1.bf16.msra.mxu0 %v1892_v11  ;;  %v91_v11 = vld [vmem:[%s3693_s1 + $0x228] sm:$0xff]  ;;  %v1984_v4 = vpack.c.bf16 %v146_v40, %v138_v30 }
  0x9b   :  { %1947 = vmatpush1.bf16.msra.mxu1 %v1946_v12  ;;  %1896 = vmatprep.subr.msk.bf16.mxu0 %vm2438_vm4, %v1894_v13  ;;  %v99_v12 = vld [vmem:[%s3693_s1 + $0x268] sm:$0xff]  ;;  %v2020_v13 = vpack.c.bf16 %v85_v2, %v77_v1  ;;  %v157_v2 = vld [vmem:[%s3693_s1 + $0x438] sm:$0xff] }
  0x9c   :  { %1950 = vmatprep.subr.msk.bf16.mxu1 %vm2438_vm4, %v1948_v52  ;;  %v2022_v52 = vpack.c.bf16 %v84_v10, %v76_v7  ;;  %v1970_v18 = vpack.c.bf16 %v99_v12, %v91_v11  ;;  %v163_v1 = vld [vmem:[%s3693_s1 + $0x468] sm:$0xff]  ;;  %v162_v10 = vld [vmem:[%s3693_s1 + $0x460] sm:$0xff]  ;;  %v156_v11 = vld [vmem:[%s3693_s1 + $0x430] sm:$0xff] }
  0x9e   :  { %1899 = vmatpush1.bf16.msk.msra.mxu0 %vm2438_vm4, %v1897_v23  ;;  %v100_v23 = vld [vmem:[%s3693_s1 + $0x270] sm:$0xff] }
  0x9f   :  { %1953 = vmatpush1.bf16.msk.msra.mxu1 %vm2438_vm4, %v1951_v26  ;;  %1955 = vmatprep.subr.bf16.mxu0 %v1954_v27  ;;  %v107_v26 = vld [vmem:[%s3693_s1 + $0x2a8] sm:$0xff] }
  0xa0   :  { %2009 = vmatprep.subr.bf16.mxu1 %v2008_v45  ;;  %v115_v27 = vld [vmem:[%s3693_s1 + $0x2e8] sm:$0xff]  ;;  %v2026_v45 = vpack.c.bf16 %v100_v23, %v92_v21  ;;  %v170_v21 = vld [vmem:[%s3693_s1 + $0x4a0] sm:$0xff]  ;;  %v172_v23 = vld [vmem:[%s3693_s1 + $0x4b0] sm:$0xff] }
  0xa1   :  { %973 = vmatmul.mubr.f32.vlgmr.msra.gmra.mrb[0].mxu0 %v3252_v34  ;;  %v1974_v31 = vpack.c.bf16 %v115_v27, %v107_v26  ;;  %v180_v27 = vld [vmem:[%s3693_s1 + $0x4f0] sm:$0xff] }
  0xa2   :  { %1062 = vmatmul.mubr.f32.vlgmr.msra.gmra.mrb[0].mxu1 %v3252_v34  ;;  %1957 = vmatpush1.bf16.msra.mxu0 %v1956_v35  ;;  %v116_v35 = vld [vmem:[%s3693_s1 + $0x2f0] sm:$0xff]  ;;  %v2046_v62 = vpack.c.bf16 %v180_v27, %v172_v23 }
  0xa3   :  { %2011 = vmatpush1.bf16.msra.mxu1 %v2010_v38  ;;  %1609 = vmatprep.mubr.msk.f32.mxu0 %vm484_vm1, %v3291_v50  ;;  %v125_v38 = vld [vmem:[%s3693_s1 + $0x338] sm:$0xff] }
  0xa4   :  { %1615 = vmatprep.mubr.msk.f32.mxu1 %vm484_vm1, %v3291_v50  ;;  %1959 = vmatprep.subr.bf16.mxu0 %v1958_v60  ;;  %v2030_v60 = vpack.c.bf16 %v116_v35, %v108_v33  ;;  %v186_v33 = vld [vmem:[%s3693_s1 + $0x520] sm:$0xff]  ;;  %v188_v35 = vld [vmem:[%s3693_s1 + $0x530] sm:$0xff] }
  0xa5   :  { %979 = vmatmul.mubr.f32.gmra.mrb[2].mxu0 %v3317_v56  ;;  %2013 = vmatprep.subr.bf16.mxu1 %v2012_v43  ;;  %v130_v43 = vld [vmem:[%s3693_s1 + $0x360] sm:$0xff] }
  0xa6   :  { %1068 = vmatmul.mubr.f32.gmra.mrb[2].mxu1 %v3317_v56  ;;  %1961 = vmatpush1.bf16.msra.mxu0 %v1960_v8  ;;  %v139_v8 = vld [vmem:[%s3693_s1 + $0x3a8] sm:$0xff]  ;;  %v1980_v16 = vpack.c.bf16 %v130_v43, %v122_v6  ;;  %v2050_v6 = vpack.c.bf16 %v196_v37, %v188_v35 }
  0xa7   :  { %2015 = vmatpush1.bf16.msra.mxu1 %v2014_v51  ;;  %1610 = vmatprep.mubr.msk.f32.mxu0 %vm484_vm1, %v3306_v54  ;;  %v149_v51 = vld [vmem:[%s3693_s1 + $0x3f8] sm:$0xff] }
  0xa8   :  { %1616 = vmatprep.mubr.msk.f32.mxu1 %vm484_vm1, %v3306_v54  ;;  %1963 = vmatprep.subr.bf16.mxu0 %v1962_v25  ;;  %v1982_v25 = vpack.c.bf16 %v147_v58, %v139_v8  ;;  %v2036_v59 = vpack.c.bf16 %v149_v51, %v141_v49  ;;  %v212_v58 = vld [vmem:[%s3693_s1 + $0x5f0] sm:$0xff]  ;;  %v219_v49 = vld [vmem:[%s3693_s1 + $0x628] sm:$0xff] }
  0xa9   :  { %985 = vmatmul.mubr.f32.gmra.mrb[4].mxu0 %v3330_v63  ;;  %2017 = vmatprep.subr.bf16.mxu1 %v2016_v57  ;;  %v140_v57 = vld [vmem:[%s3693_s1 + $0x3b0] sm:$0xff]  ;;  %v227_v51 = vld [vmem:[%s3693_s1 + $0x668] sm:$0xf]  ;;  %v2054_v30 = vpack.c.bf16 %v212_v58, %v204_v47 }
  0xaa   :  { %1074 = vmatmul.mubr.f32.gmra.mrb[4].mxu1 %v3330_v63  ;;  %1965 = vmatpush1.bf16.msra.mxu0 %v1964_v0  ;;  %v155_v0 = vld [vmem:[%s3693_s1 + $0x428] sm:$0xff]  ;;  %v2038_v5 = vpack.c.bf16 %v148_v61, %v140_v57  ;;  %v2002_v40 = vpack.c.bf16 %v227_v51, %v219_v49  ;;  %v218_v57 = vld [vmem:[%s3693_s1 + $0x620] sm:$0xff] }
  0xab   :  { %2019 = vmatpush1.bf16.msra.mxu1 %v2018_v3  ;;  %1611 = vmatprep.mubr.msk.f32.mxu0 %vm484_vm1, %v2618_v46  ;;  %v165_v3 = vld [vmem:[%s3693_s1 + $0x478] sm:$0xff]  ;;  %v1986_v7 = vpack.c.bf16 %v163_v1, %v155_v0  ;;  %v220_v0 = vld [vmem:[%s3693_s1 + $0x630] sm:$0xff] }
  0xac   :  { %1617 = vmatprep.mubr.msk.f32.mxu1 %vm484_vm1, %v2618_v46  ;;  %1967 = vmatprep.subr.bf16.mxu0 %v1966_v9  ;;  %v109_v46 = vld [vmem:[%s3693_s1 + $0x2b8] sm:$0xff]  ;;  %v154_v9 = vld [vmem:[%s3693_s1 + $0x420] sm:$0xff]  ;;  %v2040_v12 = vpack.c.bf16 %v165_v3, %v157_v2  ;;  %v228_v1 = vld [vmem:[%s3693_s1 + $0x670] sm:$0xf] }
  0xad   :  { %991 = vmatmul.mubr.f32.gmra.mrb[6].mxu0 %v2646_v55  ;;  %2021 = vmatprep.subr.bf16.mxu1 %v2020_v13  ;;  %v164_v13 = vld [vmem:[%s3693_s1 + $0x470] sm:$0xff]  ;;  %v2059_v3 = vpack.c.bf16 %v228_v1, %v220_v0 }
  0xae   :  { %1080 = vmatmul.mubr.f32.gmra.mrb[6].mxu1 %v2646_v55  ;;  %1969 = vmatpush1.bf16.msra.mxu0 %v1968_v17  ;;  %v2028_v55 = vpack.c.bf16 %v117_v28, %v109_v46  ;;  %v173_v17 = vld [vmem:[%s3693_s1 + $0x4b8] sm:$0xff]  ;;  %v2042_v19 = vpack.c.bf16 %v164_v13, %v156_v11  ;;  %v187_v46 = vld [vmem:[%s3693_s1 + $0x528] sm:$0xff] }
  0xaf   :  { %2023 = vmatpush1.bf16.msra.mxu1 %v2022_v52  ;;  %1971 = vmatprep.subr.bf16.mxu0 %v1970_v18  ;;  %v181_v52 = vld [vmem:[%s3693_s1 + $0x4f8] sm:$0xff]  ;;  %v1988_v18 = vpack.c.bf16 %v162_v10, %v154_v9  ;;  %v195_v28 = vld [vmem:[%s3693_s1 + $0x568] sm:$0xff] }
  0xb0   :  { %2025 = vmatprep.subr.bf16.mxu1 %v2024_v22  ;;  %1620 = vmatprep.mubr.msk.f32.mxu0 %vm484_vm1, %v3026_v48  ;;  %v178_v22 = vld [vmem:[%s3693_s1 + $0x4e0] sm:$0xff]  ;;  %v2044_v26 = vpack.c.bf16 %v181_v52, %v173_v17  ;;  %v1994_v32 = vpack.c.bf16 %v195_v28, %v187_v46 }
  0xb1   :  { %1626 = vmatprep.mubr.msk.f32.mxu1 %vm484_vm1, %v3026_v48  ;;  %v2032_v48 = vpack.c.bf16 %v133_v39, %v125_v38  ;;  %v203_v38 = vld [vmem:[%s3693_s1 + $0x5a8] sm:$0xff] }
  0xb2   :  { %1973 = vmatpush1.bf16.msra.mxu0 %v1972_v29  ;;  %v189_v29 = vld [vmem:[%s3693_s1 + $0x538] sm:$0xff]  ;;  %v211_v39 = vld [vmem:[%s3693_s1 + $0x5e8] sm:$0xff] }
  0xb3   :  { %2027 = vmatpush1.bf16.msra.mxu1 %v2026_v45  ;;  %1975 = vmatprep.subr.bf16.mxu0 %v1974_v31  ;;  %v197_v45 = vld [vmem:[%s3693_s1 + $0x578] sm:$0xff]  ;;  %v1992_v31 = vpack.c.bf16 %v178_v22, %v170_v21  ;;  %v1998_v43 = vpack.c.bf16 %v211_v39, %v203_v38 }
  0xb4   :  { %2029 = vmatprep.subr.bf16.mxu1 %v2028_v55  ;;  %v194_v55 = vld [vmem:[%s3693_s1 + $0x560] sm:$0xff]  ;;  %v2048_v36 = vpack.c.bf16 %v197_v45, %v189_v29 }
  0xb6   :  { %1977 = vmatpush1.bf16.msra.mxu0 %v1976_v41  ;;  %v205_v41 = vld [vmem:[%s3693_s1 + $0x5b8] sm:$0xff] }
  0xb7   :  { %2031 = vmatpush1.bf16.msra.mxu1 %v2030_v60  ;;  %1979 = vmatprep.subr.bf16.mxu0 %v1978_v42  ;;  %v213_v60 = vld [vmem:[%s3693_s1 + $0x5f8] sm:$0xff]  ;;  %v1996_v42 = vpack.c.bf16 %v194_v55, %v186_v33 }
  0xb8   :  { %2033 = vmatprep.subr.bf16.mxu1 %v2032_v48  ;;  %v210_v48 = vld [vmem:[%s3693_s1 + $0x5e0] sm:$0xff]  ;;  %v2052_v8 = vpack.c.bf16 %v213_v60, %v205_v41 }
  0xba   :  { %1981 = vmatpush1.bf16.msra.mxu0 %v1980_v16  ;;  %v221_v16 = vld [vmem:[%s3693_s1 + $0x638] sm:$0xff] }
  0xbb   :  { %2035 = vmatpush1.bf16.msra.mxu1 %v2034_v53  ;;  %1983 = vmatprep.subr.bf16.mxu0 %v1982_v25  ;;  %v229_v53 = vld [vmem:[%s3693_s1 + $0x678] sm:$0xf]  ;;  %v2000_v25 = vpack.c.bf16 %v210_v48, %v202_v44 }
  0xbc   :  { %2037 = vmatprep.subr.bf16.mxu1 %v2036_v59  ;;  %v226_v59 = vld [vmem:[%s3693_s1 + $0x660] sm:$0xf]  ;;  %v2056_v61 = vpack.c.bf16 %v229_v53, %v221_v16 }
  0xbd   :  { %v2005_v2 = vpack.c.bf16 %v226_v59, %v218_v57 }
  0xbe   :  { %1985 = vmatpush1.bf16.msra.mxu0 %v1984_v4 }
  0xbf   :  { %2039 = vmatpush1.bf16.msra.mxu1 %v2038_v5  ;;  %1987 = vmatprep.subr.bf16.mxu0 %v1986_v7 }
  0xc0   :  { %2041 = vmatprep.subr.bf16.mxu1 %v2040_v12 }
  0xc2   :  { %1989 = vmatpush1.bf16.msra.mxu0 %v1988_v18 }
  0xc3   :  { %2043 = vmatpush1.bf16.msra.mxu1 %v2042_v19  ;;  %1991 = vmatprep.subr.bf16.mxu0 %v1990_v20 }
  0xc4   :  { %2045 = vmatprep.subr.bf16.mxu1 %v2044_v26 }
  0xc6   :  { %1993 = vmatpush1.bf16.msra.mxu0 %v1992_v31 }
  0xc7   :  { %2047 = vmatpush1.bf16.msra.mxu1 %v2046_v62  ;;  %1995 = vmatprep.subr.bf16.mxu0 %v1994_v32 }
  0xc8   :  { %2049 = vmatprep.subr.bf16.mxu1 %v2048_v36 }
  0xca   :  { %1997 = vmatpush1.bf16.msra.mxu0 %v1996_v42 }
  0xcb   :  { %2051 = vmatpush1.bf16.msra.mxu1 %v2050_v6  ;;  %1999 = vmatprep.subr.bf16.mxu0 %v1998_v43 }
  0xcc   :  { %2053 = vmatprep.subr.bf16.mxu1 %v2052_v8 }
  0xce   :  { %2001 = vmatpush1.bf16.msra.mxu0 %v2000_v25 }
  0xcf   :  { %2055 = vmatpush1.bf16.msra.mxu1 %v2054_v30  ;;  %2004 = vmatprep.subr.msk.bf16.mxu0 %vm2438_vm4, %v2002_v40 }
  0xd0   :  { %2058 = vmatprep.subr.msk.bf16.mxu1 %vm2438_vm4, %v2056_v61 }
  0xd2   :  { %2007 = vmatpush1.bf16.msk.msra.mxu0 %vm2438_vm4, %v2005_v2 }
  0xd3   :  { %2061 = vmatpush1.bf16.msk.msra.mxu1 %vm2438_vm4, %v2059_v3 }
  0xd5   :  { %1151 = vmatmul.mubr.f32.vlgmr.msra.gmra.mrb[8].mxu0 %v3252_v34 }
  0xd6   :  { %1240 = vmatmul.mubr.f32.vlgmr.msra.gmra.mrb[8].mxu1 %v3252_v34  ;;  %1621 = vmatprep.mubr.msk.f32.mxu0 %vm484_vm1, %v3291_v50  ;;  %v2098_v34 = vld [vmem:[%s3694_s0 + $0x40] sm:$0xff] }
  0xd7   :  { %1627 = vmatprep.mubr.msk.f32.mxu1 %vm484_vm1, %v3291_v50  ;;  %v1266_v50 = vlaneseq }
  0xd9   :  { %1157 = vmatmul.mubr.f32.gmra.mrb[10].mxu0 %v3317_v56 }
  0xda   :  { %1246 = vmatmul.mubr.f32.gmra.mrb[10].mxu1 %v3317_v56  ;;  %1622 = vmatprep.mubr.msk.f32.mxu0 %vm484_vm1, %v3306_v54 }
  0xdb   :  { %1628 = vmatprep.mubr.msk.f32.mxu1 %vm484_vm1, %v3306_v54  ;;  %v1267_v54 = vshrl.u32 %v1266_v50, 7 }
  0xdd   :  { %1163 = vmatmul.mubr.f32.gmra.mrb[12].mxu0 %v3330_v63  ;;  %v1268_v56 = vsub.s32 0, %v1267_v54  ;;  %v1276_v4 = vsub.s32 2, %v1267_v54  ;;  %v1272_v5 = vsub.s32 1, %v1267_v54  ;;  %v1280_v7 = vsub.s32 3, %v1267_v54 }
  0xde   :  { %1252 = vmatmul.mubr.f32.gmra.mrb[12].mxu1 %v3330_v63  ;;  %1623 = vmatprep.mubr.msk.f32.mxu0 %vm484_vm1, %v2097_v24  ;;  %v1264_v63 = vld [vmem:[%s3695_s2] sm:$0xff]  ;;  %v1284_v53 = vsub.s32 4, %v1267_v54  ;;  %v1292_v25 = vsub.s32 6, %v1267_v54  ;;  %v1288_v30 = vsub.s32 5, %v1267_v54  ;;  %v1296_v40 = vsub.s32 7, %v1267_v54 }
  0xdf   :  { %1629 = vmatprep.mubr.msk.f32.mxu1 %vm484_vm1, %v2097_v24  ;;  %v1269_v9 = vrot.slane %v1264_v63, %v1268_v56  ;;  %v1277_v10 = vrot.slane %v1264_v63, %v1276_v4  ;;  %v1273_v11 = vrot.slane %v1264_v63, %v1272_v5  ;;  %v1281_v12 = vrot.slane %v1264_v63, %v1280_v7 }
  0xe0   :  { %v1285_v57 = vrot.slane %v1264_v63, %v1284_v53  ;;  %v1293_v59 = vrot.slane %v1264_v63, %v1292_v25  ;;  %v1289_v61 = vrot.slane %v1264_v63, %v1288_v30  ;;  %v1297_v0 = vrot.slane %v1264_v63, %v1296_v40 }
  0xe1   :  { %1169 = vmatmul.mubr.f32.gmra.mrb[14].mxu0 %v2098_v34 }
  0xe2   :  { %1258 = vmatmul.mubr.f32.gmra.mrb[14].mxu1 %v2098_v34 }
 0x174   :  { %v974_v13 = vpop.f32.mrb[0].mxu0 }
 0x175   :  { %v3615_v14 = vadd.f32 %v1269_v9, %v974_v13  ;;  %v1063_v15 = vpop.f32.mrb[0].mxu1  ;;  %v976_v17 = vpop.f32.mrb[1].mxu0 }
 0x176   :  { %v1308_v52 = vadd.f32 %v1277_v10, %v1063_v15  ;;  %v3617_v18 = vadd.f32 %v1273_v11, %v976_v17  ;;  %v1065_v19 = vpop.f32.mrb[1].mxu1 }
 0x177   :  { %v1309_v20 = vadd.f32 %v1281_v12, %v1065_v19 }
 0x178   :  { %v1338_v21 = vmax.f32 %v3615_v14, %v1308_v52  ;;  %v980_v22 = vpop.f32.mrb[2].mxu0 }
 0x179   :  { %v1339_v23 = vmax.f32 %v3617_v18, %v1309_v20  ;;  %v3621_v26 = vadd.f32 %v1269_v9, %v980_v22  ;;  %v1069_v27 = vpop.f32.mrb[2].mxu1  ;;  %v982_v46 = vpop.f32.mrb[3].mxu0 }
 0x17a   :  { %v3623_v28 = vadd.f32 %v1277_v10, %v1069_v27  ;;  %v3625_v29 = vadd.f32 %v1273_v11, %v982_v46  ;;  %v1071_v45 = vpop.f32.mrb[3].mxu1 }
 0x17b   :  { %v3627_v31 = vadd.f32 %v1281_v12, %v1071_v45 }
 0x17c   :  { %v1340_v62 = vmax.f32 %v3621_v26, %v3623_v28  ;;  %v986_v32 = vpop.f32.mrb[4].mxu0 }
 0x17d   :  { %v1341_v33 = vmax.f32 %v3625_v29, %v3627_v31  ;;  %v3633_v55 = vadd.f32 %v1269_v9, %v986_v32  ;;  %v1075_v35 = vpop.f32.mrb[4].mxu1  ;;  %v988_v36 = vpop.f32.mrb[5].mxu0 }
 0x17e   :  { %v3635_v37 = vadd.f32 %v1277_v10, %v1075_v35  ;;  %v3637_v38 = vadd.f32 %v1273_v11, %v988_v36  ;;  %v1077_v39 = vpop.f32.mrb[5].mxu1 }
 0x17f   :  { %v3639_v41 = vadd.f32 %v1281_v12, %v1077_v39 }
 0x180   :  { %v1342_v60 = vmax.f32 %v3633_v55, %v3635_v37  ;;  %v992_v42 = vpop.f32.mrb[6].mxu0 }
 0x181   :  { %v1343_v6 = vmax.f32 %v3637_v38, %v3639_v41  ;;  %v3645_v43 = vadd.f32 %v1269_v9, %v992_v42  ;;  %v1081_v44 = vpop.f32.mrb[6].mxu1  ;;  %v994_v48 = vpop.f32.mrb[7].mxu0 }
 0x182   :  { %v3647_v47 = vadd.f32 %v1277_v10, %v1081_v44  ;;  %v3649_v8 = vadd.f32 %v1273_v11, %v994_v48  ;;  %v1083_v58 = vpop.f32.mrb[7].mxu1 }
 0x183   :  { %v3651_v49 = vadd.f32 %v1281_v12, %v1083_v58 }
 0x184   :  { %v1344_v51 = vmax.f32 %v3645_v43, %v3647_v47 }
 0x185   :  { %v1345_v16 = vmax.f32 %v3649_v8, %v3651_v49 }
 0x1a8   :  { %v1152_v1 = vpop.f32.mrb[8].mxu0 }
 0x1a9   :  { %v1310_v2 = vadd.f32 %v1285_v57, %v1152_v1  ;;  %v1241_v3 = vpop.f32.mrb[8].mxu1  ;;  %v1154_v24 = vpop.f32.mrb[9].mxu0 }
 0x1aa   :  { %v1312_v34 = vadd.f32 %v1293_v59, %v1241_v3  ;;  %v1311_v50 = vadd.f32 %v1289_v61, %v1154_v24  ;;  %v1243_v56 = vpop.f32.mrb[9].mxu1 }
 0x1ab   :  { %v1313_v4 = vadd.f32 %v1297_v0, %v1243_v56 }
 0x1ac   :  { %v1346_v5 = vmax.f32 %v1310_v2, %v1312_v34  ;;  %v1158_v7 = vpop.f32.mrb[10].mxu0 }
 0x1ad   :  { %v1347_v9 = vmax.f32 %v1311_v50, %v1313_v4  ;;  %v1318_v10 = vadd.f32 %v1285_v57, %v1158_v7  ;;  %v1247_v11 = vpop.f32.mrb[10].mxu1  ;;  %v1160_v12 = vpop.f32.mrb[11].mxu0 }
 0x1ae   :  { %v1354_v13 = vmax.f32 %v1338_v21, %v1346_v5  ;;  %v1320_v54 = vadd.f32 %v1293_v59, %v1247_v11  ;;  %v1319_v14 = vadd.f32 %v1289_v61, %v1160_v12  ;;  %v1249_v15 = vpop.f32.mrb[11].mxu1 }
 0x1af   :  { %v1355_v17 = vmax.f32 %v1339_v23, %v1347_v9  ;;  %v1321_v63 = vadd.f32 %v1297_v0, %v1249_v15 }
 0x1b0   :  { %1362 = vst [vmem:[%s3696_s3] sm:$0xff] %v1354_v13  ;;  %v1348_v52 = vmax.f32 %v1318_v10, %v1320_v54  ;;  %v1164_v18 = vpop.f32.mrb[12].mxu0 }
 0x1b1   :  { %1363 = vst [vmem:[%s3696_s3 + $0x8] sm:$0xff] %v1355_v17  ;;  %v1349_v19 = vmax.f32 %v1319_v14, %v1321_v63  ;;  %v1326_v20 = vadd.f32 %v1285_v57, %v1164_v18  ;;  %v1253_v22 = vpop.f32.mrb[12].mxu1  ;;  %v1166_v26 = vpop.f32.mrb[13].mxu0 }
 0x1b2   :  { %v1356_v21 = vmax.f32 %v1340_v62, %v1348_v52  ;;  %v1328_v27 = vadd.f32 %v1293_v59, %v1253_v22  ;;  %v1327_v46 = vadd.f32 %v1289_v61, %v1166_v26  ;;  %v1255_v28 = vpop.f32.mrb[13].mxu1 }
 0x1b3   :  { %v1357_v23 = vmax.f32 %v1341_v33, %v1349_v19  ;;  %v1329_v29 = vadd.f32 %v1297_v0, %v1255_v28 }
 0x1b4   :  { %1364 = vst [vmem:[%s3696_s3 + $0x10] sm:$0xff] %v1356_v21  ;;  %v1350_v45 = vmax.f32 %v1326_v20, %v1328_v27  ;;  %v1170_v31 = vpop.f32.mrb[14].mxu0 }
 0x1b5   :  { %1365 = vst [vmem:[%s3696_s3 + $0x18] sm:$0xff] %v1357_v23  ;;  %v1351_v32 = vmax.f32 %v1327_v46, %v1329_v29  ;;  %v1334_v35 = vadd.f32 %v1285_v57, %v1170_v31  ;;  %v1259_v36 = vpop.f32.mrb[14].mxu1  ;;  %v1172_v39 = vpop.f32.mrb[15].mxu0 }
 0x1b6   :  { %v1358_v62 = vmax.f32 %v1342_v60, %v1350_v45  ;;  %v1336_v33 = vadd.f32 %v1293_v59, %v1259_v36  ;;  %v1335_v42 = vadd.f32 %v1289_v61, %v1172_v39  ;;  %v1261_v44 = vpop.f32.mrb[15].mxu1 }
 0x1b7   :  { %v1359_v48 = vmax.f32 %v1343_v6, %v1351_v32  ;;  %v1337_v58 = vadd.f32 %v1297_v0, %v1261_v44 }
 0x1b8   :  { %1366 = vst [vmem:[%s3696_s3 + $0x20] sm:$0xff] %v1358_v62  ;;  %v1352_v53 = vmax.f32 %v1334_v35, %v1336_v33 }
 0x1b9   :  { %1367 = vst [vmem:[%s3696_s3 + $0x28] sm:$0xff] %v1359_v48  ;;  %v1353_v25 = vmax.f32 %v1335_v42, %v1337_v58 }
 0x1ba   :  { %v1360_v55 = vmax.f32 %v1344_v51, %v1352_v53 }
 0x1bb   :  { %v1361_v37 = vmax.f32 %v1345_v16, %v1353_v25 }
 0x1bc   :  { %1368 = vst [vmem:[%s3696_s3 + $0x30] sm:$0xff] %v1360_v55 }
 0x1bd   :  { %1369 = vst [vmem:[%s3696_s3 + $0x38] sm:$0xff] %v1361_v37 }

// kernel: student_cnn_forward.5
= control target key start
LH: loop header
LB: loop body
LE: loop exit
PB: predicated region body
PF: predicated region fallthrough
CT: control target
= control target key end

     0   :  { %v1654_v47 = vmov 1983009808   ;;  %v296_v49 = vlaneseq  ;;  %s2551_s0 = inlined_call_operand.vmem [shape: f32[2,2048], index: 0, kind: input, shape index: {}]   ;;  %s2552_s1 = inlined_call_operand.vmem [shape: f32[2048,64], index: 1, kind: input, shape index: {}]   ;;  %s2553_s2 = inlined_call_operand.vmem [shape: f32[1,64], index: 2, kind: input, shape index: {}]   ;;  %s2554_s3 = inlined_call_operand.vmem [shape: f32[64,10], index: 3, kind: input, shape index: {}]   ;;  %s2555_s4 = inlined_call_operand.vmem [shape: f32[1,10], index: 4, kind: input, shape index: {}]   ;;  %s2556_s5 = inlined_call_operand.hbm [shape: f32[2,10], index: 5, kind: output, shape index: {}]  }
   0x1   :  { %v41_v0 = vld [vmem:[%s2552_s1 + $0x80] sm:$0xff]  ;;  %v42_v1 = vld [vmem:[%s2552_s1 + $0x88] sm:$0xff]  ;;  %v43_v11 = vld [vmem:[%s2552_s1 + $0x90] sm:$0xff]  ;;  %v294_v48 = vunpack.c.l.s4 %v1654_v47 }
   0x2   :  { %v25_v2 = vld [vmem:[%s2552_s1] sm:$0xff]  ;;  %v1353_v3 = vpack.c.bf16 %v42_v1, %v41_v0  ;;  %v26_v4 = vld [vmem:[%s2552_s1 + $0x8] sm:$0xff]  ;;  %v44_v13 = vld [vmem:[%s2552_s1 + $0x98] sm:$0xff]  ;;  %v297_v0 = vshrl.u32 %v296_v49, 7 }
   0x3   :  { %v73_v5 = vld [vmem:[%s2552_s1 + $0x180] sm:$0xff]  ;;  %v74_v6 = vld [vmem:[%s2552_s1 + $0x188] sm:$0xff]  ;;  %v1355_v7 = vpack.c.bf16 %v26_v4, %v25_v2  ;;  %v27_v14 = vld [vmem:[%s2552_s1 + $0x10] sm:$0xff]  ;;  %v1357_v16 = vpack.c.bf16 %v44_v13, %v43_v11  ;;  %v295_v63 = vunpack.c.0.s8 %v294_v48 }
   0x4   :  { %v1385_v8 = vpack.c.bf16 %v74_v6, %v73_v5  ;;  %v57_v9 = vld [vmem:[%s2552_s1 + $0x100] sm:$0xff]  ;;  %v58_v10 = vld [vmem:[%s2552_s1 + $0x108] sm:$0xff]  ;;  %1354 = vmatprep.subr.bf16.mxu0 %v1353_v3  ;;  %v28_v15 = vld [vmem:[%s2552_s1 + $0x18] sm:$0xff] }
   0x5   :  { %v1387_v12 = vpack.c.bf16 %v58_v10, %v57_v9  ;;  %1356 = vmatpush3.bf16.msra.mxu0 %v1355_v7  ;;  %v1359_v17 = vpack.c.bf16 %v28_v15, %v27_v14  ;;  %v75_v18 = vld [vmem:[%s2552_s1 + $0x190] sm:$0xff]  ;;  %v76_v19 = vld [vmem:[%s2552_s1 + $0x198] sm:$0xff]  ;;  %v45_v23 = vld [vmem:[%s2552_s1 + $0xa0] sm:$0xff]  ;;  %v1839_v13 = vsub.s32 %v295_v63, %v297_v0 }
   0x6   :  { %1386 = vmatprep.subr.bf16.mxu1 %v1385_v8  ;;  %v59_v20 = vld [vmem:[%s2552_s1 + $0x110] sm:$0xff]  ;;  %v1389_v21 = vpack.c.bf16 %v76_v19, %v75_v18  ;;  %v60_v22 = vld [vmem:[%s2552_s1 + $0x118] sm:$0xff]  ;;  %v46_v24 = vld [vmem:[%s2552_s1 + $0xa8] sm:$0xff]  ;;  %1358 = vmatprep.subr.bf16.mxu0 %v1357_v16 }
   0x7   :  { %1388 = vmatpush3.bf16.msra.mxu1 %v1387_v12  ;;  %v1391_v25 = vpack.c.bf16 %v60_v22, %v59_v20  ;;  %v1361_v26 = vpack.c.bf16 %v46_v24, %v45_v23  ;;  %v29_v27 = vld [vmem:[%s2552_s1 + $0x20] sm:$0xff]  ;;  %v30_v28 = vld [vmem:[%s2552_s1 + $0x28] sm:$0xff]  ;;  %v47_v35 = vld [vmem:[%s2552_s1 + $0xb0] sm:$0xff] }
   0x8   :  { %v77_v29 = vld [vmem:[%s2552_s1 + $0x1a0] sm:$0xff]  ;;  %1390 = vmatprep.subr.bf16.mxu1 %v1389_v21  ;;  %v78_v30 = vld [vmem:[%s2552_s1 + $0x1a8] sm:$0xff]  ;;  %v1363_v33 = vpack.c.bf16 %v30_v28, %v29_v27  ;;  %v48_v36 = vld [vmem:[%s2552_s1 + $0xb8] sm:$0xff] }
   0x9   :  { %v61_v31 = vld [vmem:[%s2552_s1 + $0x120] sm:$0xff]  ;;  %v62_v32 = vld [vmem:[%s2552_s1 + $0x128] sm:$0xff]  ;;  %1360 = vmatpush3.bf16.msra.mxu0 %v1359_v17  ;;  %v1393_v34 = vpack.c.bf16 %v78_v30, %v77_v29  ;;  %v31_v37 = vld [vmem:[%s2552_s1 + $0x30] sm:$0xff]  ;;  %v1365_v39 = vpack.c.bf16 %v48_v36, %v47_v35 }
   0xa   :  { %1362 = vmatprep.subr.bf16.mxu0 %v1361_v26  ;;  %v1395_v38 = vpack.c.bf16 %v62_v32, %v61_v31  ;;  %v32_v40 = vld [vmem:[%s2552_s1 + $0x38] sm:$0xff]  ;;  %v79_v41 = vld [vmem:[%s2552_s1 + $0x1b0] sm:$0xff]  ;;  %v49_v46 = vld [vmem:[%s2552_s1 + $0xc0] sm:$0xff] }
   0xb   :  { %1392 = vmatpush3.bf16.msra.mxu1 %v1391_v25  ;;  %v80_v42 = vld [vmem:[%s2552_s1 + $0x1b8] sm:$0xff]  ;;  %v63_v44 = vld [vmem:[%s2552_s1 + $0x130] sm:$0xff]  ;;  %v50_v50 = vld [vmem:[%s2552_s1 + $0xc8] sm:$0xff]  ;;  %v1367_v51 = vpack.c.bf16 %v32_v40, %v31_v37 }
   0xc   :  { %1394 = vmatprep.subr.bf16.mxu1 %v1393_v34  ;;  %v1397_v43 = vpack.c.bf16 %v80_v42, %v79_v41  ;;  %v64_v45 = vld [vmem:[%s2552_s1 + $0x138] sm:$0xff]  ;;  %v81_v52 = vld [vmem:[%s2552_s1 + $0x1c0] sm:$0xff]  ;;  %v82_v53 = vld [vmem:[%s2552_s1 + $0x1c8] sm:$0xff]  ;;  %v1369_v55 = vpack.c.bf16 %v50_v50, %v49_v46 }
   0xd   :  { %1364 = vmatpush3.bf16.msra.mxu0 %v1363_v33  ;;  %v1399_v54 = vpack.c.bf16 %v64_v45, %v63_v44  ;;  %v33_v56 = vld [vmem:[%s2552_s1 + $0x40] sm:$0xff]  ;;  %v34_v57 = vld [vmem:[%s2552_s1 + $0x48] sm:$0xff]  ;;  %v1401_v59 = vpack.c.bf16 %v82_v53, %v81_v52  ;;  %v51_v61 = vld [vmem:[%s2552_s1 + $0xd0] sm:$0xff] }
   0xe   :  { %1366 = vmatprep.subr.bf16.mxu0 %v1365_v39  ;;  %v65_v58 = vld [vmem:[%s2552_s1 + $0x140] sm:$0xff]  ;;  %v66_v60 = vld [vmem:[%s2552_s1 + $0x148] sm:$0xff]  ;;  %v52_v62 = vld [vmem:[%s2552_s1 + $0xd8] sm:$0xff]  ;;  %v1371_v3 = vpack.c.bf16 %v34_v57, %v33_v56 }
   0xf   :  { %1396 = vmatpush3.bf16.msra.mxu1 %v1395_v38  ;;  %v83_v1 = vld [vmem:[%s2552_s1 + $0x1d0] sm:$0xff]  ;;  %v84_v2 = vld [vmem:[%s2552_s1 + $0x1d8] sm:$0xff]  ;;  %v1403_v4 = vpack.c.bf16 %v66_v60, %v65_v58  ;;  %v1373_v5 = vpack.c.bf16 %v52_v62, %v51_v61  ;;  %v53_v11 = vld [vmem:[%s2552_s1 + $0xe0] sm:$0xff] }
  0x10   :  { %1398 = vmatprep.subr.bf16.mxu1 %v1397_v43  ;;  %v35_v6 = vld [vmem:[%s2552_s1 + $0x50] sm:$0xff]  ;;  %v36_v7 = vld [vmem:[%s2552_s1 + $0x58] sm:$0xff]  ;;  %v1405_v9 = vpack.c.bf16 %v84_v2, %v83_v1  ;;  %v54_v12 = vld [vmem:[%s2552_s1 + $0xe8] sm:$0xff] }
  0x11   :  { %1368 = vmatpush3.bf16.msra.mxu0 %v1367_v51  ;;  %v67_v8 = vld [vmem:[%s2552_s1 + $0x150] sm:$0xff]  ;;  %v68_v10 = vld [vmem:[%s2552_s1 + $0x158] sm:$0xff]  ;;  %v85_v14 = vld [vmem:[%s2552_s1 + $0x1e0] sm:$0xff]  ;;  %v1375_v16 = vpack.c.bf16 %v36_v7, %v35_v6  ;;  %v1377_v19 = vpack.c.bf16 %v54_v12, %v53_v11 }
  0x12   :  { %1370 = vmatprep.subr.bf16.mxu0 %v1369_v55  ;;  %v86_v15 = vld [vmem:[%s2552_s1 + $0x1e8] sm:$0xff]  ;;  %v37_v17 = vld [vmem:[%s2552_s1 + $0x60] sm:$0xff]  ;;  %v1407_v18 = vpack.c.bf16 %v68_v10, %v67_v8  ;;  %v55_v25 = vld [vmem:[%s2552_s1 + $0xf0] sm:$0xff] }
  0x13   :  { %1400 = vmatpush3.bf16.msra.mxu1 %v1399_v54  ;;  %v38_v20 = vld [vmem:[%s2552_s1 + $0x68] sm:$0xff]  ;;  %v69_v21 = vld [vmem:[%s2552_s1 + $0x160] sm:$0xff]  ;;  %v1409_v23 = vpack.c.bf16 %v86_v15, %v85_v14  ;;  %v56_v26 = vld [vmem:[%s2552_s1 + $0xf8] sm:$0xff] }
  0x14   :  { %1402 = vmatprep.subr.bf16.mxu1 %v1401_v59  ;;  %v21_v22 = vld [vmem:[%s2551_s0] sm:$0xff]  ;;  %v70_v24 = vld [vmem:[%s2552_s1 + $0x168] sm:$0xff]  ;;  %v87_v29 = vld [vmem:[%s2552_s1 + $0x1f0] sm:$0xff]  ;;  %v1379_v31 = vpack.c.bf16 %v38_v20, %v37_v17  ;;  %v1381_v35 = vpack.c.bf16 %v56_v26, %v55_v25 }
  0x15   :  { %1372 = vmatpush3.bf16.msra.mxu0 %v1371_v3  ;;  %v299_v27 = vrot.slane %v21_v22, %v1839_v13  ;;  %v292_v28 = vcombine.high %v21_v22, %v21_v22  ;;  %v88_v30 = vld [vmem:[%s2552_s1 + $0x1f8] sm:$0xff]  ;;  %v1411_v34 = vpack.c.bf16 %v70_v24, %v69_v21  ;;  %v39_v36 = vld [vmem:[%s2552_s1 + $0x70] sm:$0xff]  ;;  %v105_v41 = vld [vmem:[%s2552_s1 + $0x280] sm:$0xff] }
  0x16   :  { %1374 = vmatprep.subr.bf16.mxu0 %v1373_v5  ;;  %v40_v37 = vld [vmem:[%s2552_s1 + $0x78] sm:$0xff]  ;;  %v71_v38 = vld [vmem:[%s2552_s1 + $0x170] sm:$0xff]  ;;  %v1413_v39 = vpack.c.bf16 %v88_v30, %v87_v29  ;;  %v106_v42 = vld [vmem:[%s2552_s1 + $0x288] sm:$0xff] }
  0x17   :  { %1404 = vmatpush3.bf16.msra.mxu1 %v1403_v4  ;;  %v307_v32 = vcombine.high %v299_v27, %v299_v27  ;;  %v306_v33 = vrot.slane %v292_v28, %v1839_v13  ;;  %v72_v40 = vld [vmem:[%s2552_s1 + $0x178] sm:$0xff]  ;;  %v137_v44 = vld [vmem:[%s2552_s1 + $0x380] sm:$0xff]  ;;  %v138_v45 = vld [vmem:[%s2552_s1 + $0x388] sm:$0xff]  ;;  %v1383_v46 = vpack.c.bf16 %v40_v37, %v39_v36  ;;  %v1417_v48 = vpack.c.bf16 %v106_v42, %v105_v41 }
  0x18   :  { %1406 = vmatprep.subr.bf16.mxu1 %v1405_v9  ;;  %v1415_v47 = vpack.c.bf16 %v72_v40, %v71_v38  ;;  %v89_v49 = vld [vmem:[%s2552_s1 + $0x200] sm:$0xff]  ;;  %v90_v50 = vld [vmem:[%s2552_s1 + $0x208] sm:$0xff]  ;;  %v1449_v52 = vpack.c.bf16 %v138_v45, %v137_v44  ;;  %v107_v54 = vld [vmem:[%s2552_s1 + $0x290] sm:$0xff] }
  0x19   :  { %1376 = vmatpush3.bf16.msra.mxu0 %v1375_v16  ;;  %440 = vmatprep.mubr.f32.mxu0 %v307_v32  ;;  %v308_v43 = vcombine.high %v306_v33, %v306_v33  ;;  %v121_v51 = vld [vmem:[%s2552_s1 + $0x300] sm:$0xff]  ;;  %v122_v53 = vld [vmem:[%s2552_s1 + $0x308] sm:$0xff]  ;;  %v108_v55 = vld [vmem:[%s2552_s1 + $0x298] sm:$0xff]  ;;  %v1419_v58 = vpack.c.bf16 %v90_v50, %v89_v49 }
  0x1a   :  { %1378 = vmatprep.subr.bf16.mxu0 %v1377_v19  ;;  %v139_v56 = vld [vmem:[%s2552_s1 + $0x390] sm:$0xff]  ;;  %v140_v57 = vld [vmem:[%s2552_s1 + $0x398] sm:$0xff]  ;;  %v1451_v59 = vpack.c.bf16 %v122_v53, %v121_v51  ;;  %v1421_v60 = vpack.c.bf16 %v108_v55, %v107_v54  ;;  %v109_v2 = vld [vmem:[%s2552_s1 + $0x2a0] sm:$0xff] }
  0x1b   :  { %1408 = vmatpush3.bf16.msra.mxu1 %v1407_v18  ;;  %510 = vmatprep.mubr.f32.mxu1 %v308_v43  ;;  %v91_v61 = vld [vmem:[%s2552_s1 + $0x210] sm:$0xff]  ;;  %v92_v62 = vld [vmem:[%s2552_s1 + $0x218] sm:$0xff]  ;;  %v1453_v0 = vpack.c.bf16 %v140_v57, %v139_v56  ;;  %v110_v3 = vld [vmem:[%s2552_s1 + $0x2a8] sm:$0xff] }
  0x1c   :  { %1410 = vmatprep.subr.bf16.mxu1 %v1409_v23  ;;  %v123_v63 = vld [vmem:[%s2552_s1 + $0x310] sm:$0xff]  ;;  %v124_v1 = vld [vmem:[%s2552_s1 + $0x318] sm:$0xff]  ;;  %v141_v4 = vld [vmem:[%s2552_s1 + $0x3a0] sm:$0xff]  ;;  %v1423_v6 = vpack.c.bf16 %v92_v62, %v91_v61  ;;  %v1425_v8 = vpack.c.bf16 %v110_v3, %v109_v2 }
  0x1d   :  { %1380 = vmatpush3.bf16.msra.mxu0 %v1379_v31  ;;  %v142_v5 = vld [vmem:[%s2552_s1 + $0x3a8] sm:$0xff]  ;;  %v1455_v7 = vpack.c.bf16 %v124_v1, %v123_v63  ;;  %v93_v9 = vld [vmem:[%s2552_s1 + $0x220] sm:$0xff]  ;;  %v111_v15 = vld [vmem:[%s2552_s1 + $0x2b0] sm:$0xff] }
  0x1e   :  { %1382 = vmatprep.subr.bf16.mxu0 %v1381_v35  ;;  %v94_v10 = vld [vmem:[%s2552_s1 + $0x228] sm:$0xff]  ;;  %v125_v11 = vld [vmem:[%s2552_s1 + $0x320] sm:$0xff]  ;;  %v1457_v12 = vpack.c.bf16 %v142_v5, %v141_v4  ;;  %v112_v16 = vld [vmem:[%s2552_s1 + $0x2b8] sm:$0xff] }
  0x1f   :  { %1412 = vmatpush3.bf16.msra.mxu1 %v1411_v34  ;;  %v126_v14 = vld [vmem:[%s2552_s1 + $0x328] sm:$0xff]  ;;  %v143_v17 = vld [vmem:[%s2552_s1 + $0x3b0] sm:$0xff]  ;;  %v144_v18 = vld [vmem:[%s2552_s1 + $0x3b8] sm:$0xff]  ;;  %v1427_v19 = vpack.c.bf16 %v94_v10, %v93_v9  ;;  %v1429_v21 = vpack.c.bf16 %v112_v16, %v111_v15 }
  0x20   :  { %1414 = vmatprep.subr.bf16.mxu1 %v1413_v39  ;;  %v1459_v20 = vpack.c.bf16 %v126_v14, %v125_v11  ;;  %v95_v22 = vld [vmem:[%s2552_s1 + $0x230] sm:$0xff]  ;;  %v96_v23 = vld [vmem:[%s2552_s1 + $0x238] sm:$0xff]  ;;  %v1461_v25 = vpack.c.bf16 %v144_v18, %v143_v17  ;;  %v114_v28 = vld [vmem:[%s2552_s1 + $0x2c8] sm:$0xff] }
  0x21   :  { %1384 = vmatpush3.bf16.msra.mxu0 %v1383_v46  ;;  %v127_v24 = vld [vmem:[%s2552_s1 + $0x330] sm:$0xff]  ;;  %v128_v26 = vld [vmem:[%s2552_s1 + $0x338] sm:$0xff]  ;;  %v145_v29 = vld [vmem:[%s2552_s1 + $0x3c0] sm:$0xff]  ;;  %v1431_v32 = vpack.c.bf16 %v96_v23, %v95_v22 }
  0x22   :  { %1418 = vmatprep.subr.bf16.mxu0 %v1417_v48  ;;  %v146_v30 = vld [vmem:[%s2552_s1 + $0x3c8] sm:$0xff]  ;;  %v1463_v35 = vpack.c.bf16 %v128_v26, %v127_v24  ;;  %v97_v37 = vld [vmem:[%s2552_s1 + $0x240] sm:$0xff]  ;;  %v115_v42 = vld [vmem:[%s2552_s1 + $0x2d0] sm:$0xff] }
  0x23   :  { %1416 = vmatpush3.bf16.msra.mxu1 %v1415_v47  ;;  %v22_v31 = vld [vmem:[%s2551_s0 + $0x8] sm:$0xff]  ;;  %v129_v39 = vld [vmem:[%s2552_s1 + $0x340] sm:$0xff]  ;;  %v1465_v40 = vpack.c.bf16 %v146_v30, %v145_v29  ;;  %v116_v43 = vld [vmem:[%s2552_s1 + $0x2d8] sm:$0xff] }
  0x24   :  { %1450 = vmatprep.subr.bf16.mxu1 %v1449_v52  ;;  %441 = vmatmul.mubr.f32.vlgmr.msra.gmra.mrb[0].mxu0 %v299_v27  ;;  %v113_v27 = vld [vmem:[%s2552_s1 + $0x2c0] sm:$0xff]  ;;  %v309_v34 = vcombine.high %v22_v31, %v22_v31  ;;  %v98_v38 = vld [vmem:[%s2552_s1 + $0x248] sm:$0xff]  ;;  %v147_v46 = vld [vmem:[%s2552_s1 + $0x3d0] sm:$0xff]  ;;  %v1437_v51 = vpack.c.bf16 %v116_v43, %v115_v42 }
  0x25   :  { %1420 = vmatpush3.bf16.msra.mxu0 %v1419_v58  ;;  %v1433_v36 = vpack.c.bf16 %v114_v28, %v113_v27  ;;  %v130_v41 = vld [vmem:[%s2552_s1 + $0x348] sm:$0xff]  ;;  %v148_v47 = vld [vmem:[%s2552_s1 + $0x3d8] sm:$0xff]  ;;  %v1435_v48 = vpack.c.bf16 %v98_v38, %v97_v37  ;;  %v99_v52 = vld [vmem:[%s2552_s1 + $0x250] sm:$0xff] }
  0x26   :  { %511 = vmatmul.mubr.f32.vlgmr.msra.gmra.mrb[0].mxu1 %v306_v33  ;;  %1422 = vmatprep.subr.bf16.mxu0 %v1421_v60  ;;  %v2000_v33 = vrot.slane %v22_v31, %v1839_v13  ;;  %v2023_v45 = vrot.slane %v309_v34, %v1839_v13  ;;  %v1467_v50 = vpack.c.bf16 %v130_v41, %v129_v39  ;;  %v100_v53 = vld [vmem:[%s2552_s1 + $0x258] sm:$0xff]  ;;  %v131_v54 = vld [vmem:[%s2552_s1 + $0x350] sm:$0xff]  ;;  %v117_v57 = vld [vmem:[%s2552_s1 + $0x2e0] sm:$0xff] }
  0x27   :  { %1452 = vmatpush3.bf16.msra.mxu1 %v1451_v59  ;;  %v1469_v55 = vpack.c.bf16 %v148_v47, %v147_v46  ;;  %v132_v56 = vld [vmem:[%s2552_s1 + $0x358] sm:$0xff]  ;;  %v118_v58 = vld [vmem:[%s2552_s1 + $0x2e8] sm:$0xff]  ;;  %v149_v59 = vld [vmem:[%s2552_s1 + $0x3e0] sm:$0xff]  ;;  %v1439_v61 = vpack.c.bf16 %v100_v53, %v99_v52 }
  0x28   :  { %1454 = vmatprep.subr.bf16.mxu1 %v1453_v0  ;;  %v324_v44 = vcombine.high %v2000_v33, %v2000_v33  ;;  %v325_v49 = vcombine.high %v2023_v45, %v2023_v45  ;;  %v150_v60 = vld [vmem:[%s2552_s1 + $0x3e8] sm:$0xff]  ;;  %v1471_v62 = vpack.c.bf16 %v132_v56, %v131_v54  ;;  %v1441_v63 = vpack.c.bf16 %v118_v58, %v117_v57  ;;  %v101_v0 = vld [vmem:[%s2552_s1 + $0x260] sm:$0xff]  ;;  %v119_v5 = vld [vmem:[%s2552_s1 + $0x2f0] sm:$0xff] }
  0x29   :  { %1424 = vmatpush3.bf16.msra.mxu0 %v1423_v6  ;;  %v102_v1 = vld [vmem:[%s2552_s1 + $0x268] sm:$0xff]  ;;  %v133_v2 = vld [vmem:[%s2552_s1 + $0x360] sm:$0xff]  ;;  %v1473_v3 = vpack.c.bf16 %v150_v60, %v149_v59  ;;  %v120_v6 = vld [vmem:[%s2552_s1 + $0x2f8] sm:$0xff] }
  0x2a   :  { %1426 = vmatprep.subr.bf16.mxu0 %v1425_v8  ;;  %580 = vmatprep.mubr.f32.mxu0 %v324_v44  ;;  %v134_v4 = vld [vmem:[%s2552_s1 + $0x368] sm:$0xff]  ;;  %v152_v8 = vld [vmem:[%s2552_s1 + $0x3f8] sm:$0xff]  ;;  %v1443_v9 = vpack.c.bf16 %v102_v1, %v101_v0  ;;  %v1445_v11 = vpack.c.bf16 %v120_v6, %v119_v5  ;;  %v135_v15 = vld [vmem:[%s2552_s1 + $0x370] sm:$0xff] }
  0x2b   :  { %1456 = vmatpush3.bf16.msra.mxu1 %v1455_v7  ;;  %650 = vmatprep.mubr.f32.mxu1 %v325_v49  ;;  %v151_v7 = vld [vmem:[%s2552_s1 + $0x3f0] sm:$0xff]  ;;  %v1475_v10 = vpack.c.bf16 %v134_v4, %v133_v2  ;;  %v104_v14 = vld [vmem:[%s2552_s1 + $0x278] sm:$0xff]  ;;  %v169_v18 = vld [vmem:[%s2552_s1 + $0x480] sm:$0xff] }
  0x2c   :  { %1458 = vmatprep.subr.bf16.mxu1 %v1457_v12  ;;  %v103_v12 = vld [vmem:[%s2552_s1 + $0x270] sm:$0xff]  ;;  %v1477_v16 = vpack.c.bf16 %v152_v8, %v151_v7  ;;  %v136_v17 = vld [vmem:[%s2552_s1 + $0x378] sm:$0xff]  ;;  %v153_v23 = vld [vmem:[%s2552_s1 + $0x400] sm:$0xff] }
  0x2d   :  { %1428 = vmatpush3.bf16.msra.mxu0 %v1427_v19  ;;  %v170_v19 = vld [vmem:[%s2552_s1 + $0x488] sm:$0xff]  ;;  %v1447_v22 = vpack.c.bf16 %v104_v14, %v103_v12  ;;  %v1479_v24 = vpack.c.bf16 %v136_v17, %v135_v15  ;;  %v185_v27 = vld [vmem:[%s2552_s1 + $0x500] sm:$0xff]  ;;  %v171_v30 = vld [vmem:[%s2552_s1 + $0x490] sm:$0xff] }
  0x2e   :  { %1430 = vmatprep.subr.bf16.mxu0 %v1429_v21  ;;  %v202_v21 = vld [vmem:[%s2552_s1 + $0x588] sm:$0xff]  ;;  %v172_v31 = vld [vmem:[%s2552_s1 + $0x498] sm:$0xff]  ;;  %v23_v37 = vld [vmem:[%s2551_s0 + $0x10] sm:$0xff] }
  0x2f   :  { %1460 = vmatpush3.bf16.msra.mxu1 %v1459_v20  ;;  %v201_v20 = vld [vmem:[%s2552_s1 + $0x580] sm:$0xff]  ;;  %v154_v26 = vld [vmem:[%s2552_s1 + $0x408] sm:$0xff]  ;;  %v204_v34 = vld [vmem:[%s2552_s1 + $0x598] sm:$0xff]  ;;  %v1485_v38 = vpack.c.bf16 %v172_v31, %v171_v30  ;;  %v2142_v42 = vrot.slane %v23_v37, %v1839_v13  ;;  %v326_v43 = vcombine.high %v23_v37, %v23_v37 }
  0x30   :  { %1462 = vmatprep.subr.bf16.mxu1 %v1461_v25  ;;  %v1481_v25 = vpack.c.bf16 %v170_v19, %v169_v18  ;;  %v186_v28 = vld [vmem:[%s2552_s1 + $0x508] sm:$0xff]  ;;  %v1513_v29 = vpack.c.bf16 %v202_v21, %v201_v20  ;;  %v155_v39 = vld [vmem:[%s2552_s1 + $0x410] sm:$0xff]  ;;  %v188_v46 = vld [vmem:[%s2552_s1 + $0x518] sm:$0xff] }
  0x31   :  { %1432 = vmatpush3.bf16.msra.mxu0 %v1431_v32  ;;  %v203_v32 = vld [vmem:[%s2552_s1 + $0x590] sm:$0xff]  ;;  %v173_v47 = vld [vmem:[%s2552_s1 + $0x4a0] sm:$0xff]  ;;  %v2163_v52 = vrot.slane %v326_v43, %v1839_v13  ;;  %v158_v56 = vld [vmem:[%s2552_s1 + $0x428] sm:$0xff] }
  0x32   :  { %1434 = vmatprep.subr.bf16.mxu0 %v1433_v36  ;;  %v1515_v36 = vpack.c.bf16 %v186_v28, %v185_v27  ;;  %v187_v41 = vld [vmem:[%s2552_s1 + $0x510] sm:$0xff]  ;;  %v1517_v44 = vpack.c.bf16 %v204_v34, %v203_v32  ;;  %v205_v49 = vld [vmem:[%s2552_s1 + $0x5a0] sm:$0xff]  ;;  %v190_v59 = vld [vmem:[%s2552_s1 + $0x528] sm:$0xff] }
  0x33   :  { %1464 = vmatpush3.bf16.msra.mxu1 %v1463_v35  ;;  %v1483_v35 = vpack.c.bf16 %v154_v26, %v153_v23  ;;  %v189_v57 = vld [vmem:[%s2552_s1 + $0x520] sm:$0xff]  ;;  %v175_v60 = vld [vmem:[%s2552_s1 + $0x4b0] sm:$0xff]  ;;  %v160_v4 = vld [vmem:[%s2552_s1 + $0x438] sm:$0xff] }
  0x34   :  { %1466 = vmatprep.subr.bf16.mxu1 %v1465_v40  ;;  %v156_v40 = vld [vmem:[%s2552_s1 + $0x418] sm:$0xff]  ;;  %v1523_v1 = vpack.c.bf16 %v190_v59, %v189_v57  ;;  %v191_v5 = vld [vmem:[%s2552_s1 + $0x530] sm:$0xff]  ;;  %v177_v8 = vld [vmem:[%s2552_s1 + $0x4c0] sm:$0xff] }
  0x35   :  { %1436 = vmatpush3.bf16.msra.mxu0 %v1435_v48  ;;  %v174_v48 = vld [vmem:[%s2552_s1 + $0x4a8] sm:$0xff]  ;;  %v1487_v53 = vpack.c.bf16 %v156_v40, %v155_v39  ;;  %v192_v7 = vld [vmem:[%s2552_s1 + $0x538] sm:$0xff]  ;;  %v193_v18 = vld [vmem:[%s2552_s1 + $0x540] sm:$0xff] }
  0x36   :  { %1438 = vmatprep.subr.bf16.mxu0 %v1437_v51  ;;  %v341_v51 = vcombine.high %v2142_v42, %v2142_v42  ;;  %v1489_v54 = vpack.c.bf16 %v174_v48, %v173_v47  ;;  %v1527_v14 = vpack.c.bf16 %v192_v7, %v191_v5  ;;  %v162_v17 = vld [vmem:[%s2552_s1 + $0x448] sm:$0xff]  ;;  %v179_v21 = vld [vmem:[%s2552_s1 + $0x4d0] sm:$0xff]  ;;  %v196_v32 = vld [vmem:[%s2552_s1 + $0x558] sm:$0xff] }
  0x37   :  { %1468 = vmatpush3.bf16.msra.mxu1 %v1467_v50  ;;  %v206_v50 = vld [vmem:[%s2552_s1 + $0x5a8] sm:$0xff]  ;;  %v211_v23 = vld [vmem:[%s2552_s1 + $0x5d0] sm:$0xff]  ;;  %v181_v34 = vld [vmem:[%s2552_s1 + $0x4e0] sm:$0xff] }
  0x38   :  { %1470 = vmatprep.subr.bf16.mxu1 %v1469_v55  ;;  %v157_v55 = vld [vmem:[%s2552_s1 + $0x420] sm:$0xff]  ;;  %v1521_v58 = vpack.c.bf16 %v206_v50, %v205_v49  ;;  %v194_v20 = vld [vmem:[%s2552_s1 + $0x548] sm:$0xff]  ;;  %v163_v28 = vld [vmem:[%s2552_s1 + $0x450] sm:$0xff] }
  0x39   :  { %1440 = vmatpush3.bf16.msra.mxu0 %v1439_v61  ;;  %v176_v61 = vld [vmem:[%s2552_s1 + $0x4b8] sm:$0xff]  ;;  %v1491_v0 = vpack.c.bf16 %v158_v56, %v157_v55  ;;  %v1531_v26 = vpack.c.bf16 %v194_v20, %v193_v18  ;;  %v195_v30 = vld [vmem:[%s2552_s1 + $0x550] sm:$0xff]  ;;  %v214_v37 = vld [vmem:[%s2552_s1 + $0x5e8] sm:$0xff] }
  0x3a   :  { %1442 = vmatprep.subr.bf16.mxu0 %v1441_v63  ;;  %v208_v63 = vld [vmem:[%s2552_s1 + $0x5b8] sm:$0xff]  ;;  %v1493_v2 = vpack.c.bf16 %v176_v61, %v175_v60  ;;  %v165_v39 = vld [vmem:[%s2552_s1 + $0x460] sm:$0xff]  ;;  %v1535_v40 = vpack.c.bf16 %v196_v32, %v195_v30  ;;  %v166_v43 = vld [vmem:[%s2552_s1 + $0x468] sm:$0xff] }
  0x3b   :  { %1472 = vmatpush3.bf16.msra.mxu1 %v1471_v62  ;;  %v207_v62 = vld [vmem:[%s2552_s1 + $0x5b0] sm:$0xff]  ;;  %v184_v49 = vld [vmem:[%s2552_s1 + $0x4f8] sm:$0xff] }
  0x3c   :  { %1474 = vmatprep.subr.bf16.mxu1 %v1473_v3  ;;  %v159_v3 = vld [vmem:[%s2552_s1 + $0x430] sm:$0xff]  ;;  %v1525_v6 = vpack.c.bf16 %v208_v63, %v207_v62 }
  0x3d   :  { %1444 = vmatpush3.bf16.msra.mxu0 %v1443_v9  ;;  %v178_v9 = vld [vmem:[%s2552_s1 + $0x4c8] sm:$0xff]  ;;  %v1495_v12 = vpack.c.bf16 %v160_v4, %v159_v3  ;;  %v183_v48 = vld [vmem:[%s2552_s1 + $0x4f0] sm:$0xff] }
  0x3e   :  { %1446 = vmatprep.subr.bf16.mxu0 %v1445_v11  ;;  %v210_v11 = vld [vmem:[%s2552_s1 + $0x5c8] sm:$0xff]  ;;  %v1497_v15 = vpack.c.bf16 %v178_v9, %v177_v8 }
  0x3f   :  { %1476 = vmatpush3.bf16.msra.mxu1 %v1475_v10  ;;  %v209_v10 = vld [vmem:[%s2552_s1 + $0x5c0] sm:$0xff] }
  0x40   :  { %1478 = vmatprep.subr.bf16.mxu1 %v1477_v16  ;;  %v161_v16 = vld [vmem:[%s2552_s1 + $0x440] sm:$0xff]  ;;  %v1529_v19 = vpack.c.bf16 %v210_v11, %v209_v10 }
  0x41   :  { %1448 = vmatpush3.bf16.msra.mxu0 %v1447_v22  ;;  %v180_v22 = vld [vmem:[%s2552_s1 + $0x4d8] sm:$0xff] }
  0x42   :  { %1482 = vmatprep.subr.bf16.mxu0 %v1481_v25  ;;  %v1499_v25 = vpack.c.bf16 %v162_v17, %v161_v16  ;;  %v1501_v27 = vpack.c.bf16 %v180_v22, %v179_v21 }
  0x43   :  { %1480 = vmatpush3.bf16.msra.mxu1 %v1479_v24  ;;  %v212_v24 = vld [vmem:[%s2552_s1 + $0x5d8] sm:$0xff] }
  0x44   :  { %1514 = vmatprep.subr.bf16.mxu1 %v1513_v29  ;;  %581 = vmatmul.mubr.f32.vlgmr.msra.gmra.mrb[2].mxu0 %v2000_v33  ;;  %v1519_v33 = vpack.c.bf16 %v188_v46, %v187_v41  ;;  %v164_v29 = vld [vmem:[%s2552_s1 + $0x458] sm:$0xff]  ;;  %v1533_v31 = vpack.c.bf16 %v212_v24, %v211_v23  ;;  %v198_v46 = vld [vmem:[%s2552_s1 + $0x568] sm:$0xff] }
  0x45   :  { %1484 = vmatpush3.bf16.msra.mxu0 %v1483_v35  ;;  %720 = vmatprep.mubr.f32.mxu0 %v341_v51  ;;  %v182_v35 = vld [vmem:[%s2552_s1 + $0x4e8] sm:$0xff] }
  0x46   :  { %651 = vmatmul.mubr.f32.vlgmr.msra.gmra.mrb[2].mxu1 %v2023_v45  ;;  %1486 = vmatprep.subr.bf16.mxu0 %v1485_v38  ;;  %v342_v45 = vcombine.high %v2163_v52, %v2163_v52  ;;  %v1503_v38 = vpack.c.bf16 %v164_v29, %v163_v28  ;;  %v1505_v41 = vpack.c.bf16 %v182_v35, %v181_v34 }
  0x47   :  { %1516 = vmatpush3.bf16.msra.mxu1 %v1515_v36  ;;  %v213_v36 = vld [vmem:[%s2552_s1 + $0x5e0] sm:$0xff] }
  0x48   :  { %1518 = vmatprep.subr.bf16.mxu1 %v1517_v44  ;;  %790 = vmatprep.mubr.f32.mxu1 %v342_v45  ;;  %v197_v44 = vld [vmem:[%s2552_s1 + $0x560] sm:$0xff]  ;;  %v1537_v47 = vpack.c.bf16 %v214_v37, %v213_v36 }
  0x49   :  { %1488 = vmatpush3.bf16.msra.mxu0 %v1487_v53 }
  0x4a   :  { %1490 = vmatprep.subr.bf16.mxu0 %v1489_v54 }
  0x4b   :  { %1520 = vmatpush3.bf16.msra.mxu1 %v1519_v33 }
  0x4c   :  { %1522 = vmatprep.subr.bf16.mxu1 %v1521_v58 }
  0x4d   :  { %1492 = vmatpush3.bf16.msra.mxu0 %v1491_v0 }
  0x4e   :  { %1494 = vmatprep.subr.bf16.mxu0 %v1493_v2 }
  0x4f   :  { %1524 = vmatpush3.bf16.msra.mxu1 %v1523_v1 }
  0x50   :  { %1526 = vmatprep.subr.bf16.mxu1 %v1525_v6 }
  0x51   :  { %1496 = vmatpush3.bf16.msra.mxu0 %v1495_v12 }
  0x52   :  { %1498 = vmatprep.subr.bf16.mxu0 %v1497_v15 }
  0x53   :  { %1528 = vmatpush3.bf16.msra.mxu1 %v1527_v14 }
  0x54   :  { %1530 = vmatprep.subr.bf16.mxu1 %v1529_v19 }
  0x55   :  { %1500 = vmatpush3.bf16.msra.mxu0 %v1499_v25 }
  0x56   :  { %1502 = vmatprep.subr.bf16.mxu0 %v1501_v27 }
  0x57   :  { %1532 = vmatpush3.bf16.msra.mxu1 %v1531_v26 }
  0x58   :  { %1534 = vmatprep.subr.bf16.mxu1 %v1533_v31 }
  0x59   :  { %10 = vsyncpa [#allocation3], 0  ;;  %v215_v50 = vld [vmem:[%s2552_s1 + $0x5f0] sm:$0xff]  ;;  %v216_v51 = vld [vmem:[%s2552_s1 + $0x5f8] sm:$0xff]  ;;  %1504 = vmatpush3.bf16.msra.mxu0 %v1503_v38  ;;  %v1507_v53 = vpack.c.bf16 %v166_v43, %v165_v39  ;;  %v1539_v54 = vpack.c.bf16 %v198_v46, %v197_v44  ;;  %v1509_v55 = vpack.c.bf16 %v184_v49, %v183_v48  ;;  %vm1656_vm0 = vmmov 0   ;;  %s1658_s24 = smov [#allocation2]  }
  0x5a   :  { %v24_v33 = vld [vmem:[%s2551_s0 + $0x18] sm:$0xff]  ;;  %1506 = vmatprep.subr.bf16.mxu0 %v1505_v41  ;;  %v167_v56 = vld [vmem:[%s2552_s1 + $0x470] sm:$0xff]  ;;  %v1541_v58 = vpack.c.bf16 %v216_v51, %v215_v50  ;;  %v233_v60 = vld [vmem:[%s2552_s1 + $0x680] sm:$0xff]  ;;  %vm952_vm1 = vcmask 523264   ;;  %s1034_s25 = sshll.u32 %s1658_s24, 4  ;;  %vm1026_vm2 = vcmask 74752   ;;  %s1035_s25 = int_to_ptr.vmem [resolvable:$true] %s1034_s25 }
  0x5b   :  { %1536 = vmatpush3.bf16.msra.mxu1 %v1535_v40  ;;  %v168_v57 = vld [vmem:[%s2552_s1 + $0x478] sm:$0xff]  ;;  %v199_v45 = vld [vmem:[%s2552_s1 + $0x570] sm:$0xff]  ;;  %v234_v61 = vld [vmem:[%s2552_s1 + $0x688] sm:$0xff]  ;;  %v343_v0 = vcombine.high %v24_v33, %v24_v33  ;;  %v2334_v11 = vrot.slane %v24_v33, %v1839_v13  ;;  %s1630_s26 = scalar_lea.vmem %s1035_s25, 32  ;;  %p1635_p1 = scmp.lt.s32.totalorder %s1035_s25, %s1035_s25 }
  0x5c   :  { %1538 = vmatprep.subr.bf16.mxu1 %v1537_v47  ;;  %v200_v59 = vld [vmem:[%s2552_s1 + $0x578] sm:$0xff]  ;;  %v265_v62 = vld [vmem:[%s2552_s1 + $0x780] sm:$0xff]  ;;  %v266_v63 = vld [vmem:[%s2552_s1 + $0x788] sm:$0xff]  ;;  %v1511_v1 = vpack.c.bf16 %v168_v57, %v167_v56  ;;  %v1545_v3 = vpack.c.bf16 %v234_v61, %v233_v60  ;;  %p1631_p0 = scmp.ne.s32.totalorder %s1035_s25, %s1630_s26  ;;  %p1636_p2 = scmp.lt.s32.totalorder %s1630_s26, %s1630_s26 }
  0x5d   :  { %1508 = vmatpush3.bf16.msra.mxu0 %v1507_v53  ;;  %v1543_v2 = vpack.c.bf16 %v200_v59, %v199_v45  ;;  %v217_v4 = vld [vmem:[%s2552_s1 + $0x600] sm:$0xff]  ;;  %v218_v5 = vld [vmem:[%s2552_s1 + $0x608] sm:$0xff]  ;;  %v1577_v7 = vpack.c.bf16 %v266_v63, %v265_v62  ;;  %v235_v9 = vld [vmem:[%s2552_s1 + $0x690] sm:$0xff]  ;;  %v2343_v15 = vrot.slane %v343_v0, %v1839_v13  ;;  %v358_v25 = vcombine.high %v2334_v11, %v2334_v11 }
  0x5e   :  { %1510 = vmatprep.subr.bf16.mxu0 %v1509_v55  ;;  %v249_v6 = vld [vmem:[%s2552_s1 + $0x700] sm:$0xff]  ;;  %v250_v8 = vld [vmem:[%s2552_s1 + $0x708] sm:$0xff]  ;;  %v236_v10 = vld [vmem:[%s2552_s1 + $0x698] sm:$0xff]  ;;  %v1547_v16 = vpack.c.bf16 %v218_v5, %v217_v4  ;;  %p1637_p3 = por %p1636_p2, %p1635_p1 }
  0x5f   :  { %1540 = vmatpush3.bf16.msra.mxu1 %v1539_v54  ;;  %v267_v12 = vld [vmem:[%s2552_s1 + $0x790] sm:$0xff]  ;;  %v268_v14 = vld [vmem:[%s2552_s1 + $0x798] sm:$0xff]  ;;  %v1579_v17 = vpack.c.bf16 %v250_v8, %v249_v6  ;;  %v1549_v18 = vpack.c.bf16 %v236_v10, %v235_v9  ;;  %v237_v23 = vld [vmem:[%s2552_s1 + $0x6a0] sm:$0xff]  ;;  %v359_v28 = vcombine.high %v2343_v15, %v2343_v15 }
  0x60   :  { %1542 = vmatprep.subr.bf16.mxu1 %v1541_v58  ;;  %v219_v19 = vld [vmem:[%s2552_s1 + $0x610] sm:$0xff]  ;;  %v220_v20 = vld [vmem:[%s2552_s1 + $0x618] sm:$0xff]  ;;  %v1581_v13 = vpack.c.bf16 %v268_v14, %v267_v12  ;;  %v238_v24 = vld [vmem:[%s2552_s1 + $0x6a8] sm:$0xff]  ;;  %p1638_p4 = pnand %p1637_p3, %p1631_p0 }
  0x61   :  { %1512 = vmatpush3.bf16.msra.mxu0 %v1511_v1  ;;  %v251_v21 = vld [vmem:[%s2552_s1 + $0x710] sm:$0xff]  ;;  %v252_v22 = vld [vmem:[%s2552_s1 + $0x718] sm:$0xff]  ;;  %v269_v26 = vld [vmem:[%s2552_s1 + $0x7a0] sm:$0xff]  ;;  %v1551_v29 = vpack.c.bf16 %v220_v20, %v219_v19  ;;  %v1553_v31 = vpack.c.bf16 %v238_v24, %v237_v23 }
  0x62   :  { %1546 = vmatprep.subr.bf16.mxu0 %v1545_v3  ;;  %v270_v27 = vld [vmem:[%s2552_s1 + $0x7a8] sm:$0xff]  ;;  %v1583_v30 = vpack.c.bf16 %v252_v22, %v251_v21  ;;  %v253_v34 = vld [vmem:[%s2552_s1 + $0x720] sm:$0xff]  ;;  %v239_v36 = vld [vmem:[%s2552_s1 + $0x6b0] sm:$0xff] }
  0x63   :  { %1544 = vmatpush3.bf16.msra.mxu1 %v1543_v2  ;;  %v222_v32 = vld [vmem:[%s2552_s1 + $0x628] sm:$0xff]  ;;  %v1585_v35 = vpack.c.bf16 %v270_v27, %v269_v26  ;;  %v240_v37 = vld [vmem:[%s2552_s1 + $0x6b8] sm:$0xff]  ;;  %v271_v38 = vld [vmem:[%s2552_s1 + $0x7b0] sm:$0xff] }
  0x64   :  { %1578 = vmatprep.subr.bf16.mxu1 %v1577_v7  ;;  %721 = vmatmul.mubr.f32.vlgmr.msra.gmra.mrb[4].mxu0 %v2142_v42  ;;  %v221_v42 = vld [vmem:[%s2552_s1 + $0x620] sm:$0xff]  ;;  %v272_v39 = vld [vmem:[%s2552_s1 + $0x7b8] sm:$0xff]  ;;  %v1557_v43 = vpack.c.bf16 %v240_v37, %v239_v36  ;;  %v223_v44 = vld [vmem:[%s2552_s1 + $0x630] sm:$0xff] }
  0x65   :  { %1548 = vmatpush3.bf16.msra.mxu0 %v1547_v16  ;;  %860 = vmatprep.mubr.f32.mxu0 %v358_v25  ;;  %v1555_v40 = vpack.c.bf16 %v222_v32, %v221_v42  ;;  %v224_v46 = vld [vmem:[%s2552_s1 + $0x638] sm:$0xff]  ;;  %v255_v47 = vld [vmem:[%s2552_s1 + $0x730] sm:$0xff]  ;;  %v1589_v48 = vpack.c.bf16 %v272_v39, %v271_v38  ;;  %v241_v50 = vld [vmem:[%s2552_s1 + $0x6c0] sm:$0xff]  ;;  %v1655_v39 = vmov 0.0|0.0  }
  0x66   :  { %791 = vmatmul.mubr.f32.vlgmr.msra.gmra.mrb[4].mxu1 %v2163_v52  ;;  %1550 = vmatprep.subr.bf16.mxu0 %v1549_v18  ;;  %v254_v52 = vld [vmem:[%s2552_s1 + $0x728] sm:$0xff]  ;;  %v256_v49 = vld [vmem:[%s2552_s1 + $0x738] sm:$0xff]  ;;  %v273_v53 = vld [vmem:[%s2552_s1 + $0x7c0] sm:$0xff]  ;;  %v1559_v54 = vpack.c.bf16 %v224_v46, %v223_v44 }
  0x67   :  { %1580 = vmatpush3.bf16.msra.mxu1 %v1579_v17  ;;  %930 = vmatprep.mubr.f32.mxu1 %v359_v28  ;;  %v1587_v41 = vpack.c.bf16 %v254_v52, %v253_v34  ;;  %v242_v51 = vld [vmem:[%s2552_s1 + $0x6c8] sm:$0xff]  ;;  %v1591_v55 = vpack.c.bf16 %v256_v49, %v255_v47  ;;  %v225_v57 = vld [vmem:[%s2552_s1 + $0x640] sm:$0xff]  ;;  %v243_v61 = vld [vmem:[%s2552_s1 + $0x6d0] sm:$0xff]  ;;  %v1657_v49 = vmov 0.0  }
  0x68   :  { %1582 = vmatprep.subr.bf16.mxu1 %v1581_v13  ;;  %v274_v33 = vld [vmem:[%s2552_s1 + $0x7c8] sm:$0xff]  ;;  %v1561_v56 = vpack.c.bf16 %v242_v51, %v241_v50  ;;  %v257_v58 = vld [vmem:[%s2552_s1 + $0x740] sm:$0xff]  ;;  %v244_v62 = vld [vmem:[%s2552_s1 + $0x6d8] sm:$0xff] }
  0x69   :  { %1552 = vmatpush3.bf16.msra.mxu0 %v1551_v29  ;;  %v226_v45 = vld [vmem:[%s2552_s1 + $0x648] sm:$0xff]  ;;  %v1593_v59 = vpack.c.bf16 %v274_v33, %v273_v53  ;;  %v275_v63 = vld [vmem:[%s2552_s1 + $0x7d0] sm:$0xff]  ;;  %v276_v0 = vld [vmem:[%s2552_s1 + $0x7d8] sm:$0xff]  ;;  %v1565_v3 = vpack.c.bf16 %v244_v62, %v243_v61 }
  0x6a   :  { %1554 = vmatprep.subr.bf16.mxu0 %v1553_v31  ;;  %v258_v60 = vld [vmem:[%s2552_s1 + $0x748] sm:$0xff]  ;;  %v1563_v1 = vpack.c.bf16 %v226_v45, %v225_v57  ;;  %v227_v4 = vld [vmem:[%s2552_s1 + $0x650] sm:$0xff]  ;;  %v228_v5 = vld [vmem:[%s2552_s1 + $0x658] sm:$0xff]  ;;  %v1597_v7 = vpack.c.bf16 %v276_v0, %v275_v63 }
  0x6b   :  { %1584 = vmatpush3.bf16.msra.mxu1 %v1583_v30  ;;  %v1595_v2 = vpack.c.bf16 %v258_v60, %v257_v58  ;;  %v259_v6 = vld [vmem:[%s2552_s1 + $0x750] sm:$0xff]  ;;  %v260_v8 = vld [vmem:[%s2552_s1 + $0x758] sm:$0xff]  ;;  %v245_v9 = vld [vmem:[%s2552_s1 + $0x6e0] sm:$0xff]  ;;  %v1567_v16 = vpack.c.bf16 %v228_v5, %v227_v4 }
  0x6c   :  { %1586 = vmatprep.subr.bf16.mxu1 %v1585_v35  ;;  %v246_v10 = vld [vmem:[%s2552_s1 + $0x6e8] sm:$0xff]  ;;  %v277_v12 = vld [vmem:[%s2552_s1 + $0x7e0] sm:$0xff]  ;;  %v1599_v17 = vpack.c.bf16 %v260_v8, %v259_v6  ;;  %v247_v23 = vld [vmem:[%s2552_s1 + $0x6f0] sm:$0xff] }
  0x6d   :  { %1556 = vmatpush3.bf16.msra.mxu0 %v1555_v40  ;;  %v278_v14 = vld [vmem:[%s2552_s1 + $0x7e8] sm:$0xff]  ;;  %v1569_v18 = vpack.c.bf16 %v246_v10, %v245_v9  ;;  %v229_v19 = vld [vmem:[%s2552_s1 + $0x660] sm:$0xff]  ;;  %v248_v24 = vld [vmem:[%s2552_s1 + $0x6f8] sm:$0xff] }
  0x6e   :  { %1558 = vmatprep.subr.bf16.mxu0 %v1557_v43  ;;  %v230_v20 = vld [vmem:[%s2552_s1 + $0x668] sm:$0xff]  ;;  %v261_v21 = vld [vmem:[%s2552_s1 + $0x760] sm:$0xff]  ;;  %v1601_v13 = vpack.c.bf16 %v278_v14, %v277_v12  ;;  %v279_v25 = vld [vmem:[%s2552_s1 + $0x7f0] sm:$0xff]  ;;  %v1573_v29 = vpack.c.bf16 %v248_v24, %v247_v23 }
  0x6f   :  { %1588 = vmatpush3.bf16.msra.mxu1 %v1587_v41  ;;  %v262_v22 = vld [vmem:[%s2552_s1 + $0x768] sm:$0xff]  ;;  %v280_v26 = vld [vmem:[%s2552_s1 + $0x7f8] sm:$0xff]  ;;  %v1571_v27 = vpack.c.bf16 %v230_v20, %v229_v19  ;;  %v231_v30 = vld [vmem:[%s2552_s1 + $0x670] sm:$0xff] }
  0x70   :  { %1590 = vmatprep.subr.bf16.mxu1 %v1589_v48  ;;  %v1603_v28 = vpack.c.bf16 %v262_v22, %v261_v21  ;;  %v232_v31 = vld [vmem:[%s2552_s1 + $0x678] sm:$0xff]  ;;  %v1605_v42 = vpack.c.bf16 %v280_v26, %v279_v25  ;;  %v263_v32 = vld [vmem:[%s2552_s1 + $0x770] sm:$0xff]  ;;  %v937_v36 = vld [vmem:[%s2554_s3] sm:$0xff] }
  0x71   :  { %1560 = vmatpush3.bf16.msra.mxu0 %v1559_v54  ;;  %v264_v34 = vld [vmem:[%s2552_s1 + $0x778] sm:$0xff]  ;;  %v1575_v35 = vpack.c.bf16 %v232_v31, %v231_v30  ;;  %v938_v37 = vld [vmem:[%s2554_s3 + $0x8] sm:$0xff]  ;;  %v939_v38 = vld [vmem:[%s2554_s3 + $0x10] sm:$0xff] }
  0x72   :  { %1562 = vmatprep.subr.bf16.mxu0 %v1561_v56  ;;  %v1607_v52 = vpack.c.bf16 %v264_v34, %v263_v32  ;;  %v1610_v40 = vpack.c.bf16 %v938_v37, %v937_v36  ;;  %v941_v41 = vld [vmem:[%s2554_s3 + $0x20] sm:$0xff]  ;;  %v942_v43 = vld [vmem:[%s2554_s3 + $0x28] sm:$0xff]  ;;  %v943_v46 = vld [vmem:[%s2554_s3 + $0x30] sm:$0xff] }
  0x73   :  { %1592 = vmatpush3.bf16.msra.mxu1 %v1591_v55  ;;  %v1616_v44 = vpack.c.bf16 %v942_v43, %v941_v41  ;;  %v944_v47 = vld [vmem:[%s2554_s3 + $0x38] sm:$0xff]  ;;  %v1042_v51 = vld [vmem:[%s2553_s2] ss:$0 sm:$0xff] }
  0x74   :  { %1594 = vmatprep.subr.bf16.mxu1 %v1593_v59  ;;  %v1619_v48 = vpack.c.bf16 %v944_v47, %v943_v46 }
  0x75   :  { %1564 = vmatpush3.bf16.msra.mxu0 %v1563_v1 }
  0x76   :  { %1566 = vmatprep.subr.bf16.mxu0 %v1565_v3 }
  0x77   :  { %1596 = vmatpush3.bf16.msra.mxu1 %v1595_v2 }
  0x78   :  { %1598 = vmatprep.subr.bf16.mxu1 %v1597_v7 }
  0x79   :  { %1568 = vmatpush3.bf16.msra.mxu0 %v1567_v16 }
  0x7a   :  { %1570 = vmatprep.subr.bf16.mxu0 %v1569_v18 }
  0x7b   :  { %1600 = vmatpush3.bf16.msra.mxu1 %v1599_v17 }
  0x7c   :  { %1602 = vmatprep.subr.bf16.mxu1 %v1601_v13  ;;  %v1043_v13 = vld [vmem:[%s2555_s4] ss:$0 sm:$0xff] }
  0x7d   :  { %1572 = vmatpush3.bf16.msra.mxu0 %v1571_v27 }
  0x7e   :  { %1574 = vmatprep.subr.bf16.mxu0 %v1573_v29 }
  0x7f   :  { %1604 = vmatpush3.bf16.msra.mxu1 %v1603_v28 }
  0x80   :  { %1606 = vmatprep.subr.bf16.mxu1 %v1605_v42 }
  0x81   :  { %1576 = vmatpush3.bf16.msra.mxu0 %v1575_v35 }
  0x82   :  { %1609 = vmatprep.subr.bf16.mxu0 %v1655_v39 }
  0x83   :  { %1608 = vmatpush3.bf16.msra.mxu1 %v1607_v52 }
  0x84   :  { %861 = vmatmul.mubr.f32.vlgmr.msra.gmra.mrb[6].mxu0 %v2334_v11  ;;  %v940_v11 = vld [vmem:[%s2554_s3 + $0x18] sm:$0xff] }
  0x85   :  { %1611 = vmatpush3.bf16.msra.mxu0 %v1610_v40  ;;  %1350 = vmatprep.mubr.msk.f32.mxu0 %vm1656_vm0, %v1657_v49 }
  0x86   :  { %931 = vmatmul.mubr.f32.vlgmr.msra.gmra.mrb[6].mxu1 %v2343_v15  ;;  %v1613_v15 = vpack.c.bf16 %v940_v11, %v939_v38  ;;  %1612 = vmatprep.subr.bf16.mxu0 %v1655_v39 }
  0x89   :  { %1614 = vmatpush3.bf16.msra.mxu0 %v1613_v15 }
  0x8a   :  { %1615 = vmatprep.subr.bf16.mxu0 %v1655_v39 }
  0x8d   :  { %1617 = vmatpush3.bf16.msra.mxu0 %v1616_v44 }
  0x8e   :  { %1618 = vmatprep.subr.bf16.mxu0 %v1655_v39 }
  0x91   :  { %1620 = vmatpush3.bf16.msra.mxu0 %v1619_v48 }
  0xf7   :  { %v1077_v50 = vpop.f32.mrb[0].mxu0 }
  0xf8   :  { %v1078_v53 = vpop.f32.mrb[1].mxu0 }
  0xf9   :  { %v1112_v33 = vpop.f32.mrb[0].mxu1  ;;  %v1079_v54 = vadd.f32 %v1078_v53, %v1077_v50 }
  0xfa   :  { %v1113_v55 = vpop.f32.mrb[1].mxu1 }
  0xfb   :  { %v1114_v56 = vadd.f32 %v1113_v55, %v1112_v33  ;;  %v443_v57 = vadd.f32 %v1079_v54, %v1042_v51 }
  0xfd   :  { %v513_v45 = vadd.f32 %v1114_v56, %v443_v57 }
 0x117   :  { %v1147_v58 = vpop.f32.mrb[2].mxu0 }
 0x118   :  { %v1148_v59 = vpop.f32.mrb[3].mxu0 }
 0x119   :  { %v1182_v60 = vpop.f32.mrb[2].mxu1  ;;  %v1149_v61 = vadd.f32 %v1148_v59, %v1147_v58 }
 0x11a   :  { %v1183_v62 = vpop.f32.mrb[3].mxu1 }
 0x11b   :  { %v1184_v63 = vadd.f32 %v1183_v62, %v1182_v60  ;;  %v583_v0 = vadd.f32 %v1149_v61, %v513_v45 }
 0x11d   :  { %v653_v1 = vadd.f32 %v1184_v63, %v583_v0 }
 0x137   :  { %v1217_v2 = vpop.f32.mrb[4].mxu0 }
 0x138   :  { %v1218_v3 = vpop.f32.mrb[5].mxu0 }
 0x139   :  { %v1252_v4 = vpop.f32.mrb[4].mxu1  ;;  %v1219_v5 = vadd.f32 %v1218_v3, %v1217_v2 }
 0x13a   :  { %v1253_v6 = vpop.f32.mrb[5].mxu1 }
 0x13b   :  { %v1254_v7 = vadd.f32 %v1253_v6, %v1252_v4  ;;  %v723_v8 = vadd.f32 %v1219_v5, %v653_v1 }
 0x13d   :  { %v793_v9 = vadd.f32 %v1254_v7, %v723_v8 }
 0x157   :  { %v1287_v10 = vpop.f32.mrb[6].mxu0 }
 0x158   :  { %v1288_v12 = vpop.f32.mrb[7].mxu0 }
 0x159   :  { %v1322_v14 = vpop.f32.mrb[6].mxu1  ;;  %v1289_v16 = vadd.f32 %v1288_v12, %v1287_v10 }
 0x15a   :  { %v1323_v17 = vpop.f32.mrb[7].mxu1 }
 0x15b   :  { %v1324_v18 = vadd.f32 %v1323_v17, %v1322_v14  ;;  %v863_v19 = vadd.f32 %v1289_v16, %v793_v9 }
 0x15d   :  { %v933_v20 = vadd.f32 %v1324_v18, %v863_v19 }
 0x15f   :  { %v936_v21 = vmax.f32 %v933_v20, 0.0 }
 0x161   :  { %1351 = vmatmul.mubr.msk.f32.vlgmr.msra.gmra.mrb[8].mxu0 %vm952_vm1, %v936_v21 }
 0x234   :  { %v1022_v22 = vpop.f32.mrb[8].mxu0 }
 0x235   :  { %v1023_v23 = vadd.f32 %v1043_v13, %v1022_v22  ;;  %v1352_v24 = vpop.f32.mrb[9].mxu0 }
 0x237   :  { %1027 = vst.msk [vmem:[#allocation2] sm:$0x3] %vm1026_vm2, %v1023_v23 }
 0x238   :  { %1641 = shalt.err (!%p1638_p4)
}
 0x239   :  { %s1642_s29 = scalar_lea.hbm %s2556_s5, 32 }
 0x23a   :  { %p1643_p5 = scmp.ne.s32.totalorder %s2556_s5, %s1642_s29  ;;  %p1646_p6 = scmp.lt.u32.totalorder %s1642_s29, %s2556_s5 }
 0x23c   :  { %p1648_p7 = pnand %p1646_p6, %p1643_p5 }
 0x23e   :  { %1651 = shalt.err (!%p1648_p7)
}
 0x23f   :  { %1037 = dma.vmem_to_hbm [thread:$0]  %s1035_s25, 32, %s2556_s5, [#allocation3]  }
 0x240   :  { %1652 = dma.done.wait [#allocation3], 32  }
 0x241   :  { %1653 = vsyncadd [#allocation3], 4294967264 }
 0x242   :  { %1041 = vsyncpa [#allocation3], 1 }

// kernel: student_cnn_forward.4
= control target key start
LH: loop header
LB: loop body
LE: loop exit
PB: predicated region body
PF: predicated region fallthrough
CT: control target
= control target key end

     0   :  { %vm640_vm0 = vcmask 1046528   ;;  %vm1256_vm1 = vcmask 523264   ;;  %s8742_s1 = inlined_call_operand.vmem [shape: f32[2,576,1024], index: 1, kind: input, shape index: {}]   ;;  %s8743_s0 = inlined_call_operand.vmem [shape: f32[2,9,576], index: 0, kind: input, shape index: {}]   ;;  %s8744_s2 = inlined_call_operand.vmem [shape: f32[1,1024], index: 2, kind: input, shape index: {}]   ;;  %s8745_s3 = inlined_call_operand.vmem [shape: f32[2,8,256], index: 3, kind: output, shape index: {}]  }
   0x1   :  { %v3194_v0 = vld [vmem:[%s8742_s1 + $0x1208] sm:$0xff]  ;;  %v3196_v2 = vld [vmem:[%s8742_s1 + $0x1218] sm:$0xff]  ;;  %v3193_v5 = vld [vmem:[%s8742_s1 + $0x1200] sm:$0xff] }
   0x2   :  { %v3202_v1 = vld [vmem:[%s8742_s1 + $0x1248] sm:$0xff]  ;;  %v3204_v4 = vld [vmem:[%s8742_s1 + $0x1258] sm:$0xff]  ;;  %v3201_v6 = vld [vmem:[%s8742_s1 + $0x1240] sm:$0xff] }
   0x3   :  { %v3785_v3 = vpack.c.bf16 %v3202_v1, %v3194_v0  ;;  %v3929_v7 = vpack.c.bf16 %v3204_v4, %v3196_v2  ;;  %v3787_v8 = vpack.c.bf16 %v3201_v6, %v3193_v5  ;;  %v3195_v9 = vld [vmem:[%s8742_s1 + $0x1210] sm:$0xff]  ;;  %v3210_v11 = vld [vmem:[%s8742_s1 + $0x1288] sm:$0xff]  ;;  %v3212_v14 = vld [vmem:[%s8742_s1 + $0x1298] sm:$0xff] }
   0x4   :  { %v3203_v10 = vld [vmem:[%s8742_s1 + $0x1250] sm:$0xff]  ;;  %v3218_v13 = vld [vmem:[%s8742_s1 + $0x12c8] sm:$0xff]  ;;  %v3220_v15 = vld [vmem:[%s8742_s1 + $0x12d8] sm:$0xff] }
   0x5   :  { %3786 = vmatprep.subr.bf16.mxu0 %v3785_v3  ;;  %v3931_v12 = vpack.c.bf16 %v3203_v10, %v3195_v9  ;;  %3930 = vmatprep.subr.bf16.mxu1 %v3929_v7  ;;  %v3789_v16 = vpack.c.bf16 %v3218_v13, %v3210_v11  ;;  %v3933_v17 = vpack.c.bf16 %v3220_v15, %v3212_v14  ;;  %v3209_v18 = vld [vmem:[%s8742_s1 + $0x1280] sm:$0xff]  ;;  %v3211_v20 = vld [vmem:[%s8742_s1 + $0x1290] sm:$0xff]  ;;  %v3226_v23 = vld [vmem:[%s8742_s1 + $0x1308] sm:$0xff] }
   0x6   :  { %3788 = vmatpush1.bf16.msra.mxu0 %v3787_v8  ;;  %v3217_v19 = vld [vmem:[%s8742_s1 + $0x12c0] sm:$0xff]  ;;  %v3219_v22 = vld [vmem:[%s8742_s1 + $0x12d0] sm:$0xff]  ;;  %v3234_v24 = vld [vmem:[%s8742_s1 + $0x1348] sm:$0xff] }
   0x7   :  { %3932 = vmatpush1.bf16.msra.mxu1 %v3931_v12  ;;  %v3791_v21 = vpack.c.bf16 %v3217_v19, %v3209_v18  ;;  %3790 = vmatprep.subr.bf16.mxu0 %v3789_v16  ;;  %v3935_v25 = vpack.c.bf16 %v3219_v22, %v3211_v20  ;;  %v3793_v26 = vpack.c.bf16 %v3234_v24, %v3226_v23  ;;  %v3228_v27 = vld [vmem:[%s8742_s1 + $0x1318] sm:$0xff]  ;;  %v3225_v29 = vld [vmem:[%s8742_s1 + $0x1300] sm:$0xff]  ;;  %v3227_v32 = vld [vmem:[%s8742_s1 + $0x1310] sm:$0xff] }
   0x8   :  { %3934 = vmatprep.subr.bf16.mxu1 %v3933_v17  ;;  %v3236_v28 = vld [vmem:[%s8742_s1 + $0x1358] sm:$0xff]  ;;  %v3233_v31 = vld [vmem:[%s8742_s1 + $0x1340] sm:$0xff]  ;;  %v3235_v33 = vld [vmem:[%s8742_s1 + $0x1350] sm:$0xff] }
   0x9   :  { %v3937_v30 = vpack.c.bf16 %v3236_v28, %v3228_v27  ;;  %v3795_v34 = vpack.c.bf16 %v3233_v31, %v3225_v29  ;;  %v3242_v35 = vld [vmem:[%s8742_s1 + $0x1388] sm:$0xff]  ;;  %v3244_v37 = vld [vmem:[%s8742_s1 + $0x1398] sm:$0xff]  ;;  %v3939_v38 = vpack.c.bf16 %v3235_v33, %v3227_v32  ;;  %v3241_v41 = vld [vmem:[%s8742_s1 + $0x1380] sm:$0xff] }
   0xa   :  { %3792 = vmatpush1.bf16.msra.mxu0 %v3791_v21  ;;  %v3250_v36 = vld [vmem:[%s8742_s1 + $0x13c8] sm:$0xff]  ;;  %v3252_v40 = vld [vmem:[%s8742_s1 + $0x13d8] sm:$0xff]  ;;  %v3249_v42 = vld [vmem:[%s8742_s1 + $0x13c0] sm:$0xff] }
   0xb   :  { %3936 = vmatpush1.bf16.msra.mxu1 %v3935_v25  ;;  %3794 = vmatprep.subr.bf16.mxu0 %v3793_v26  ;;  %v3797_v39 = vpack.c.bf16 %v3250_v36, %v3242_v35  ;;  %v3941_v43 = vpack.c.bf16 %v3252_v40, %v3244_v37  ;;  %v3243_v44 = vld [vmem:[%s8742_s1 + $0x1390] sm:$0xff]  ;;  %v3258_v46 = vld [vmem:[%s8742_s1 + $0x1408] sm:$0xff]  ;;  %v3260_v48 = vld [vmem:[%s8742_s1 + $0x1418] sm:$0xff]  ;;  %v3799_v50 = vpack.c.bf16 %v3249_v42, %v3241_v41 }
   0xc   :  { %3938 = vmatprep.subr.bf16.mxu1 %v3937_v30  ;;  %v3251_v45 = vld [vmem:[%s8742_s1 + $0x13d0] sm:$0xff]  ;;  %v3266_v47 = vld [vmem:[%s8742_s1 + $0x1448] sm:$0xff]  ;;  %v3268_v49 = vld [vmem:[%s8742_s1 + $0x1458] sm:$0xff] }
   0xd   :  { %v3943_v51 = vpack.c.bf16 %v3251_v45, %v3243_v44  ;;  %v3801_v52 = vpack.c.bf16 %v3266_v47, %v3258_v46  ;;  %v3257_v53 = vld [vmem:[%s8742_s1 + $0x1400] sm:$0xff]  ;;  %v3259_v55 = vld [vmem:[%s8742_s1 + $0x1410] sm:$0xff]  ;;  %v3945_v56 = vpack.c.bf16 %v3268_v49, %v3260_v48  ;;  %v3274_v58 = vld [vmem:[%s8742_s1 + $0x1488] sm:$0xff] }
   0xe   :  { %3796 = vmatpush1.bf16.msra.mxu0 %v3795_v34  ;;  %v3265_v54 = vld [vmem:[%s8742_s1 + $0x1440] sm:$0xff]  ;;  %v3267_v57 = vld [vmem:[%s8742_s1 + $0x1450] sm:$0xff]  ;;  %v3282_v59 = vld [vmem:[%s8742_s1 + $0x14c8] sm:$0xff] }
   0xf   :  { %3940 = vmatpush1.bf16.msra.mxu1 %v3939_v38  ;;  %3798 = vmatprep.subr.bf16.mxu0 %v3797_v39  ;;  %v3276_v60 = vld [vmem:[%s8742_s1 + $0x1498] sm:$0xff]  ;;  %v3803_v62 = vpack.c.bf16 %v3265_v54, %v3257_v53  ;;  %v3947_v63 = vpack.c.bf16 %v3267_v57, %v3259_v55  ;;  %v3805_v0 = vpack.c.bf16 %v3282_v59, %v3274_v58  ;;  %v3273_v1 = vld [vmem:[%s8742_s1 + $0x1480] sm:$0xff]  ;;  %v3275_v3 = vld [vmem:[%s8742_s1 + $0x1490] sm:$0xff] }
  0x10   :  { %3942 = vmatprep.subr.bf16.mxu1 %v3941_v43  ;;  %v3284_v61 = vld [vmem:[%s8742_s1 + $0x14d8] sm:$0xff]  ;;  %v3281_v2 = vld [vmem:[%s8742_s1 + $0x14c0] sm:$0xff]  ;;  %v3283_v5 = vld [vmem:[%s8742_s1 + $0x14d0] sm:$0xff] }
  0x11   :  { %v3949_v4 = vpack.c.bf16 %v3284_v61, %v3276_v60  ;;  %v3290_v6 = vld [vmem:[%s8742_s1 + $0x1508] sm:$0xff]  ;;  %v3292_v8 = vld [vmem:[%s8742_s1 + $0x1518] sm:$0xff]  ;;  %v3807_v10 = vpack.c.bf16 %v3281_v2, %v3273_v1  ;;  %v3951_v11 = vpack.c.bf16 %v3283_v5, %v3275_v3  ;;  %v3289_v13 = vld [vmem:[%s8742_s1 + $0x1500] sm:$0xff] }
  0x12   :  { %3800 = vmatpush1.bf16.msra.mxu0 %v3799_v50  ;;  %v3298_v7 = vld [vmem:[%s8742_s1 + $0x1548] sm:$0xff]  ;;  %v3300_v9 = vld [vmem:[%s8742_s1 + $0x1558] sm:$0xff]  ;;  %v3297_v14 = vld [vmem:[%s8742_s1 + $0x1540] sm:$0xff] }
  0x13   :  { %3944 = vmatpush1.bf16.msra.mxu1 %v3943_v51  ;;  %3802 = vmatprep.subr.bf16.mxu0 %v3801_v52  ;;  %v3809_v12 = vpack.c.bf16 %v3298_v7, %v3290_v6  ;;  %v3291_v15 = vld [vmem:[%s8742_s1 + $0x1510] sm:$0xff]  ;;  %v3953_v16 = vpack.c.bf16 %v3300_v9, %v3292_v8  ;;  %v3306_v18 = vld [vmem:[%s8742_s1 + $0x1588] sm:$0xff]  ;;  %v3308_v20 = vld [vmem:[%s8742_s1 + $0x1598] sm:$0xff]  ;;  %v3811_v22 = vpack.c.bf16 %v3297_v14, %v3289_v13 }
  0x14   :  { %3946 = vmatprep.subr.bf16.mxu1 %v3945_v56  ;;  %v3299_v17 = vld [vmem:[%s8742_s1 + $0x1550] sm:$0xff]  ;;  %v3314_v19 = vld [vmem:[%s8742_s1 + $0x15c8] sm:$0xff]  ;;  %v3316_v21 = vld [vmem:[%s8742_s1 + $0x15d8] sm:$0xff] }
  0x15   :  { %v3955_v23 = vpack.c.bf16 %v3299_v17, %v3291_v15  ;;  %v3813_v24 = vpack.c.bf16 %v3314_v19, %v3306_v18  ;;  %v3305_v25 = vld [vmem:[%s8742_s1 + $0x1580] sm:$0xff]  ;;  %v3307_v27 = vld [vmem:[%s8742_s1 + $0x1590] sm:$0xff]  ;;  %v3957_v28 = vpack.c.bf16 %v3316_v21, %v3308_v20  ;;  %v3322_v30 = vld [vmem:[%s8742_s1 + $0x1608] sm:$0xff] }
  0x16   :  { %3804 = vmatpush1.bf16.msra.mxu0 %v3803_v62  ;;  %v3313_v26 = vld [vmem:[%s8742_s1 + $0x15c0] sm:$0xff]  ;;  %v3315_v29 = vld [vmem:[%s8742_s1 + $0x15d0] sm:$0xff]  ;;  %v3330_v31 = vld [vmem:[%s8742_s1 + $0x1648] sm:$0xff] }
  0x17   :  { %3948 = vmatpush1.bf16.msra.mxu1 %v3947_v63  ;;  %3806 = vmatprep.subr.bf16.mxu0 %v3805_v0  ;;  %v3324_v32 = vld [vmem:[%s8742_s1 + $0x1618] sm:$0xff]  ;;  %v3815_v34 = vpack.c.bf16 %v3313_v26, %v3305_v25  ;;  %v3959_v35 = vpack.c.bf16 %v3315_v29, %v3307_v27  ;;  %v3817_v36 = vpack.c.bf16 %v3330_v31, %v3322_v30  ;;  %v3321_v37 = vld [vmem:[%s8742_s1 + $0x1600] sm:$0xff]  ;;  %v3323_v39 = vld [vmem:[%s8742_s1 + $0x1610] sm:$0xff] }
  0x18   :  { %3950 = vmatprep.subr.bf16.mxu1 %v3949_v4  ;;  %v3332_v33 = vld [vmem:[%s8742_s1 + $0x1658] sm:$0xff]  ;;  %v3329_v38 = vld [vmem:[%s8742_s1 + $0x1640] sm:$0xff]  ;;  %v3331_v41 = vld [vmem:[%s8742_s1 + $0x1650] sm:$0xff] }
  0x19   :  { %v3961_v40 = vpack.c.bf16 %v3332_v33, %v3324_v32  ;;  %v3338_v42 = vld [vmem:[%s8742_s1 + $0x1688] sm:$0xff]  ;;  %v3340_v44 = vld [vmem:[%s8742_s1 + $0x1698] sm:$0xff]  ;;  %v3819_v46 = vpack.c.bf16 %v3329_v38, %v3321_v37  ;;  %v3963_v47 = vpack.c.bf16 %v3331_v41, %v3323_v39  ;;  %v3337_v49 = vld [vmem:[%s8742_s1 + $0x1680] sm:$0xff] }
  0x1a   :  { %3808 = vmatpush1.bf16.msra.mxu0 %v3807_v10  ;;  %v3346_v43 = vld [vmem:[%s8742_s1 + $0x16c8] sm:$0xff]  ;;  %v3348_v45 = vld [vmem:[%s8742_s1 + $0x16d8] sm:$0xff]  ;;  %v3345_v50 = vld [vmem:[%s8742_s1 + $0x16c0] sm:$0xff] }
  0x1b   :  { %3952 = vmatpush1.bf16.msra.mxu1 %v3951_v11  ;;  %3810 = vmatprep.subr.bf16.mxu0 %v3809_v12  ;;  %v3821_v48 = vpack.c.bf16 %v3346_v43, %v3338_v42  ;;  %v3339_v51 = vld [vmem:[%s8742_s1 + $0x1690] sm:$0xff]  ;;  %v3965_v52 = vpack.c.bf16 %v3348_v45, %v3340_v44  ;;  %v3354_v54 = vld [vmem:[%s8742_s1 + $0x1708] sm:$0xff]  ;;  %v3356_v56 = vld [vmem:[%s8742_s1 + $0x1718] sm:$0xff]  ;;  %v3823_v58 = vpack.c.bf16 %v3345_v50, %v3337_v49 }
  0x1c   :  { %3954 = vmatprep.subr.bf16.mxu1 %v3953_v16  ;;  %v3347_v53 = vld [vmem:[%s8742_s1 + $0x16d0] sm:$0xff]  ;;  %v3362_v55 = vld [vmem:[%s8742_s1 + $0x1748] sm:$0xff]  ;;  %v3364_v57 = vld [vmem:[%s8742_s1 + $0x1758] sm:$0xff] }
  0x1d   :  { %v3967_v59 = vpack.c.bf16 %v3347_v53, %v3339_v51  ;;  %v3825_v60 = vpack.c.bf16 %v3362_v55, %v3354_v54  ;;  %v3353_v61 = vld [vmem:[%s8742_s1 + $0x1700] sm:$0xff]  ;;  %v3355_v63 = vld [vmem:[%s8742_s1 + $0x1710] sm:$0xff]  ;;  %v3969_v0 = vpack.c.bf16 %v3364_v57, %v3356_v56  ;;  %v3370_v2 = vld [vmem:[%s8742_s1 + $0x1788] sm:$0xff] }
  0x1e   :  { %3812 = vmatpush1.bf16.msra.mxu0 %v3811_v22  ;;  %v3361_v62 = vld [vmem:[%s8742_s1 + $0x1740] sm:$0xff]  ;;  %v3363_v1 = vld [vmem:[%s8742_s1 + $0x1750] sm:$0xff]  ;;  %v3378_v3 = vld [vmem:[%s8742_s1 + $0x17c8] sm:$0xff] }
  0x1f   :  { %3956 = vmatpush1.bf16.msra.mxu1 %v3955_v23  ;;  %3814 = vmatprep.subr.bf16.mxu0 %v3813_v24  ;;  %v3372_v4 = vld [vmem:[%s8742_s1 + $0x1798] sm:$0xff]  ;;  %v3827_v6 = vpack.c.bf16 %v3361_v62, %v3353_v61  ;;  %v3369_v7 = vld [vmem:[%s8742_s1 + $0x1780] sm:$0xff]  ;;  %v3971_v8 = vpack.c.bf16 %v3363_v1, %v3355_v63  ;;  %v3829_v9 = vpack.c.bf16 %v3378_v3, %v3370_v2  ;;  %v3371_v11 = vld [vmem:[%s8742_s1 + $0x1790] sm:$0xff] }
  0x20   :  { %3958 = vmatprep.subr.bf16.mxu1 %v3957_v28  ;;  %v3380_v5 = vld [vmem:[%s8742_s1 + $0x17d8] sm:$0xff]  ;;  %v3377_v10 = vld [vmem:[%s8742_s1 + $0x17c0] sm:$0xff]  ;;  %v3379_v12 = vld [vmem:[%s8742_s1 + $0x17d0] sm:$0xff] }
  0x21   :  { %v3973_v13 = vpack.c.bf16 %v3380_v5, %v3372_v4  ;;  %v3386_v14 = vld [vmem:[%s8742_s1 + $0x1808] sm:$0xff]  ;;  %v3388_v17 = vld [vmem:[%s8742_s1 + $0x1818] sm:$0xff]  ;;  %v606_v19 = vld [vmem:[%s8743_s0 + $0x30] sm:$0x1]  ;;  %v3831_v21 = vpack.c.bf16 %v3377_v10, %v3369_v7  ;;  %v3975_v23 = vpack.c.bf16 %v3379_v12, %v3371_v11 }
  0x22   :  { %3816 = vmatpush1.bf16.msra.mxu0 %v3815_v34  ;;  %v3394_v15 = vld [vmem:[%s8742_s1 + $0x1848] sm:$0xff]  ;;  %v3396_v18 = vld [vmem:[%s8742_s1 + $0x1858] sm:$0xff]  ;;  %v645_v22 = vrot.slane %v606_v19, 1  ;;  %v3385_v25 = vld [vmem:[%s8742_s1 + $0x1800] sm:$0xff] }
  0x23   :  { %3960 = vmatpush1.bf16.msra.mxu1 %v3959_v35  ;;  %3818 = vmatprep.subr.bf16.mxu0 %v3817_v36  ;;  %v601_v16 = vld [vmem:[%s8743_s0 + $0x8] sm:$0xfe]  ;;  %v3833_v24 = vpack.c.bf16 %v3394_v15, %v3386_v14  ;;  %v3393_v26 = vld [vmem:[%s8742_s1 + $0x1840] sm:$0xff]  ;;  %v3387_v27 = vld [vmem:[%s8742_s1 + $0x1810] sm:$0xff]  ;;  %v3977_v28 = vpack.c.bf16 %v3396_v18, %v3388_v17 }
  0x24   :  { %3962 = vmatprep.subr.bf16.mxu1 %v3961_v40  ;;  %v644_v20 = vrot.slane %v601_v16, 1  ;;  %v3395_v29 = vld [vmem:[%s8742_s1 + $0x1850] sm:$0xff]  ;;  %v3402_v30 = vld [vmem:[%s8742_s1 + $0x1888] sm:$0xff]  ;;  %v3404_v33 = vld [vmem:[%s8742_s1 + $0x1898] sm:$0xff]  ;;  %v3835_v35 = vpack.c.bf16 %v3393_v26, %v3385_v25 }
  0x25   :  { %v3410_v31 = vld [vmem:[%s8742_s1 + $0x18c8] sm:$0xff]  ;;  %v3412_v34 = vld [vmem:[%s8742_s1 + $0x18d8] sm:$0xff]  ;;  %v3979_v36 = vpack.c.bf16 %v3395_v29, %v3387_v27  ;;  %v3401_v38 = vld [vmem:[%s8742_s1 + $0x1880] sm:$0xff] }
  0x26   :  { %3820 = vmatpush1.bf16.msra.mxu0 %v3819_v46  ;;  %v5374_v32 = vsel %vm640_vm0, %v644_v20, %v645_v22  ;;  %v3837_v37 = vpack.c.bf16 %v3410_v31, %v3402_v30  ;;  %v3409_v39 = vld [vmem:[%s8742_s1 + $0x18c0] sm:$0xff]  ;;  %v3403_v40 = vld [vmem:[%s8742_s1 + $0x1890] sm:$0xff]  ;;  %v3981_v41 = vpack.c.bf16 %v3412_v34, %v3404_v33  ;;  %v3418_v43 = vld [vmem:[%s8742_s1 + $0x1908] sm:$0xff] }
  0x27   :  { %3964 = vmatpush1.bf16.msra.mxu1 %v3963_v47  ;;  %3822 = vmatprep.subr.bf16.mxu0 %v3821_v48  ;;  %v3411_v42 = vld [vmem:[%s8742_s1 + $0x18d0] sm:$0xff]  ;;  %v3426_v44 = vld [vmem:[%s8742_s1 + $0x1948] sm:$0xff]  ;;  %v3420_v45 = vld [vmem:[%s8742_s1 + $0x1918] sm:$0xff]  ;;  %v3839_v47 = vpack.c.bf16 %v3409_v39, %v3401_v38 }
  0x28   :  { %3966 = vmatprep.subr.bf16.mxu1 %v3965_v52  ;;  %1325 = vmatprep.mubr.f32.mxu0 %v5374_v32  ;;  %v3428_v46 = vld [vmem:[%s8742_s1 + $0x1958] sm:$0xff]  ;;  %v3983_v48 = vpack.c.bf16 %v3411_v42, %v3403_v40  ;;  %v3841_v49 = vpack.c.bf16 %v3426_v44, %v3418_v43  ;;  %v3417_v50 = vld [vmem:[%s8742_s1 + $0x1900] sm:$0xff]  ;;  %v3419_v52 = vld [vmem:[%s8742_s1 + $0x1910] sm:$0xff] }
  0x29   :  { %1556 = vmatprep.mubr.f32.mxu1 %v5374_v32  ;;  %v3425_v51 = vld [vmem:[%s8742_s1 + $0x1940] sm:$0xff]  ;;  %v3985_v53 = vpack.c.bf16 %v3428_v46, %v3420_v45  ;;  %v3427_v54 = vld [vmem:[%s8742_s1 + $0x1950] sm:$0xff]  ;;  %v3434_v55 = vld [vmem:[%s8742_s1 + $0x1988] sm:$0xff] }
  0x2a   :  { %3824 = vmatpush1.bf16.msra.mxu0 %v3823_v58  ;;  %v3442_v56 = vld [vmem:[%s8742_s1 + $0x19c8] sm:$0xff]  ;;  %v3436_v57 = vld [vmem:[%s8742_s1 + $0x1998] sm:$0xff]  ;;  %v3441_v61 = vld [vmem:[%s8742_s1 + $0x19c0] sm:$0xff]  ;;  %v3987_v62 = vpack.c.bf16 %v3427_v54, %v3419_v52 }
  0x2b   :  { %3968 = vmatpush1.bf16.msra.mxu1 %v3967_v59  ;;  %3826 = vmatprep.subr.bf16.mxu0 %v3825_v60  ;;  %v3444_v58 = vld [vmem:[%s8742_s1 + $0x19d8] sm:$0xff]  ;;  %v3843_v59 = vpack.c.bf16 %v3425_v51, %v3417_v50  ;;  %v3433_v60 = vld [vmem:[%s8742_s1 + $0x1980] sm:$0xff]  ;;  %v3845_v63 = vpack.c.bf16 %v3442_v56, %v3434_v55  ;;  %v605_v2 = vld [vmem:[%s8743_s0 + $0x28] sm:$0x1] }
  0x2c   :  { %3970 = vmatprep.subr.bf16.mxu1 %v3969_v0  ;;  %v3435_v0 = vld [vmem:[%s8742_s1 + $0x1990] sm:$0xff]  ;;  %v600_v1 = vld [vmem:[%s8743_s0] sm:$0xfe]  ;;  %v3989_v3 = vpack.c.bf16 %v3444_v58, %v3436_v57  ;;  %v3450_v5 = vld [vmem:[%s8742_s1 + $0x1a08] sm:$0xff]  ;;  %v642_v11 = vrot.slane %v605_v2, 1 }
  0x2d   :  { %v3443_v4 = vld [vmem:[%s8742_s1 + $0x19d0] sm:$0xff]  ;;  %v3452_v7 = vld [vmem:[%s8742_s1 + $0x1a18] sm:$0xff]  ;;  %v641_v10 = vrot.slane %v600_v1, 1  ;;  %v3449_v14 = vld [vmem:[%s8742_s1 + $0x1a00] sm:$0xff] }
  0x2e   :  { %3828 = vmatpush1.bf16.msra.mxu0 %v3827_v6  ;;  %v3458_v6 = vld [vmem:[%s8742_s1 + $0x1a48] sm:$0xff]  ;;  %v3991_v12 = vpack.c.bf16 %v3443_v4, %v3435_v0  ;;  %v3457_v15 = vld [vmem:[%s8742_s1 + $0x1a40] sm:$0xff]  ;;  %v3451_v16 = vld [vmem:[%s8742_s1 + $0x1a10] sm:$0xff] }
  0x2f   :  { %3972 = vmatpush1.bf16.msra.mxu1 %v3971_v8  ;;  %3830 = vmatprep.subr.bf16.mxu0 %v3829_v9  ;;  %v3460_v8 = vld [vmem:[%s8742_s1 + $0x1a58] sm:$0xff]  ;;  %v3847_v9 = vpack.c.bf16 %v3441_v61, %v3433_v60  ;;  %v3459_v18 = vld [vmem:[%s8742_s1 + $0x1a50] sm:$0xff]  ;;  %v3466_v19 = vld [vmem:[%s8742_s1 + $0x1a88] sm:$0xff] }
  0x30   :  { %3974 = vmatprep.subr.bf16.mxu1 %v3973_v13  ;;  %v3849_v13 = vpack.c.bf16 %v3458_v6, %v3450_v5  ;;  %v3993_v17 = vpack.c.bf16 %v3460_v8, %v3452_v7  ;;  %v3474_v20 = vld [vmem:[%s8742_s1 + $0x1ac8] sm:$0xff]  ;;  %v3476_v22 = vld [vmem:[%s8742_s1 + $0x1ad8] sm:$0xff]  ;;  %v3995_v25 = vpack.c.bf16 %v3459_v18, %v3451_v16  ;;  %v3465_v27 = vld [vmem:[%s8742_s1 + $0x1a80] sm:$0xff] }
  0x31   :  { %v3853_v26 = vpack.c.bf16 %v3474_v20, %v3466_v19  ;;  %v3467_v29 = vld [vmem:[%s8742_s1 + $0x1a90] sm:$0xff]  ;;  %v3482_v33 = vld [vmem:[%s8742_s1 + $0x1b08] sm:$0xff]  ;;  %v3481_v40 = vld [vmem:[%s8742_s1 + $0x1b00] sm:$0xff] }
  0x32   :  { %3832 = vmatpush1.bf16.msra.mxu0 %v3831_v21  ;;  %v3468_v21 = vld [vmem:[%s8742_s1 + $0x1a98] sm:$0xff]  ;;  %v3475_v31 = vld [vmem:[%s8742_s1 + $0x1ad0] sm:$0xff]  ;;  %v3490_v34 = vld [vmem:[%s8742_s1 + $0x1b48] sm:$0xff] }
  0x33   :  { %3976 = vmatpush1.bf16.msra.mxu1 %v3975_v23  ;;  %3834 = vmatprep.subr.bf16.mxu0 %v3833_v24  ;;  %v5487_v23 = vsel %vm640_vm0, %v641_v10, %v642_v11  ;;  %v3851_v24 = vpack.c.bf16 %v3457_v15, %v3449_v14  ;;  %v3997_v30 = vpack.c.bf16 %v3476_v22, %v3468_v21  ;;  %v3483_v42 = vld [vmem:[%s8742_s1 + $0x1b10] sm:$0xff]  ;;  %v3498_v45 = vld [vmem:[%s8742_s1 + $0x1b88] sm:$0xff]  ;;  %v3497_v52 = vld [vmem:[%s8742_s1 + $0x1b80] sm:$0xff] }
  0x34   :  { %3978 = vmatprep.subr.bf16.mxu1 %v3977_v28  ;;  %v3473_v28 = vld [vmem:[%s8742_s1 + $0x1ac0] sm:$0xff]  ;;  %v3999_v38 = vpack.c.bf16 %v3475_v31, %v3467_v29  ;;  %v3857_v39 = vpack.c.bf16 %v3490_v34, %v3482_v33  ;;  %v3491_v44 = vld [vmem:[%s8742_s1 + $0x1b50] sm:$0xff]  ;;  %v3506_v46 = vld [vmem:[%s8742_s1 + $0x1bc8] sm:$0xff] }
  0x35   :  { %v4003_v50 = vpack.c.bf16 %v3491_v44, %v3483_v42  ;;  %v3861_v51 = vpack.c.bf16 %v3506_v46, %v3498_v45  ;;  %v3499_v54 = vld [vmem:[%s8742_s1 + $0x1b90] sm:$0xff]  ;;  %v3514_v57 = vld [vmem:[%s8742_s1 + $0x1c08] sm:$0xff]  ;;  %v3524_v60 = vld [vmem:[%s8742_s1 + $0x1c58] sm:$0xff] }
  0x36   :  { %3836 = vmatpush1.bf16.msra.mxu0 %v3835_v35  ;;  %v3484_v35 = vld [vmem:[%s8742_s1 + $0x1b18] sm:$0xff]  ;;  %v3507_v56 = vld [vmem:[%s8742_s1 + $0x1bd0] sm:$0xff]  ;;  %v3522_v58 = vld [vmem:[%s8742_s1 + $0x1c48] sm:$0xff] }
  0x37   :  { %3980 = vmatpush1.bf16.msra.mxu1 %v3979_v36  ;;  %3838 = vmatprep.subr.bf16.mxu0 %v3837_v37  ;;  %v3492_v36 = vld [vmem:[%s8742_s1 + $0x1b58] sm:$0xff]  ;;  %v3855_v37 = vpack.c.bf16 %v3473_v28, %v3465_v27  ;;  %v3513_v0 = vld [vmem:[%s8742_s1 + $0x1c00] sm:$0xff]  ;;  %v3515_v2 = vld [vmem:[%s8742_s1 + $0x1c10] sm:$0xff] }
  0x38   :  { %3982 = vmatprep.subr.bf16.mxu1 %v3981_v41  ;;  %v3489_v41 = vld [vmem:[%s8742_s1 + $0x1b40] sm:$0xff]  ;;  %v4001_v43 = vpack.c.bf16 %v3492_v36, %v3484_v35  ;;  %v3523_v4 = vld [vmem:[%s8742_s1 + $0x1c50] sm:$0xff]  ;;  %v3530_v5 = vld [vmem:[%s8742_s1 + $0x1c88] sm:$0xff] }
  0x39   :  { %v3521_v1 = vld [vmem:[%s8742_s1 + $0x1c40] sm:$0xff]  ;;  %v3538_v6 = vld [vmem:[%s8742_s1 + $0x1cc8] sm:$0xff]  ;;  %v3532_v7 = vld [vmem:[%s8742_s1 + $0x1c98] sm:$0xff]  ;;  %v4011_v10 = vpack.c.bf16 %v3523_v4, %v3515_v2 }
  0x3a   :  { %3840 = vmatpush1.bf16.msra.mxu0 %v3839_v47  ;;  %v3500_v47 = vld [vmem:[%s8742_s1 + $0x1b98] sm:$0xff]  ;;  %v3869_v11 = vpack.c.bf16 %v3538_v6, %v3530_v5  ;;  %v3531_v14 = vld [vmem:[%s8742_s1 + $0x1c90] sm:$0xff]  ;;  %v3554_v18 = vld [vmem:[%s8742_s1 + $0x1d48] sm:$0xff] }
  0x3b   :  { %3984 = vmatpush1.bf16.msra.mxu1 %v3983_v48  ;;  %3842 = vmatprep.subr.bf16.mxu0 %v3841_v49  ;;  %v3508_v48 = vld [vmem:[%s8742_s1 + $0x1bd8] sm:$0xff]  ;;  %v3859_v49 = vpack.c.bf16 %v3489_v41, %v3481_v40  ;;  %v3539_v16 = vld [vmem:[%s8742_s1 + $0x1cd0] sm:$0xff]  ;;  %v3545_v21 = vld [vmem:[%s8742_s1 + $0x1d00] sm:$0xff] }
  0x3c   :  { %3986 = vmatprep.subr.bf16.mxu1 %v3985_v53  ;;  %v3505_v53 = vld [vmem:[%s8742_s1 + $0x1bc0] sm:$0xff]  ;;  %v4005_v55 = vpack.c.bf16 %v3508_v48, %v3500_v47  ;;  %v3540_v8 = vld [vmem:[%s8742_s1 + $0x1cd8] sm:$0xff]  ;;  %v4015_v27 = vpack.c.bf16 %v3539_v16, %v3531_v14  ;;  %v3547_v29 = vld [vmem:[%s8742_s1 + $0x1d10] sm:$0xff] }
  0x3d   :  { %v3863_v61 = vpack.c.bf16 %v3505_v53, %v3497_v52  ;;  %v4013_v15 = vpack.c.bf16 %v3540_v8, %v3532_v7  ;;  %v3548_v19 = vld [vmem:[%s8742_s1 + $0x1d18] sm:$0xff]  ;;  %v3562_v31 = vld [vmem:[%s8742_s1 + $0x1d88] sm:$0xff]  ;;  %v608_v47 = vld [vmem:[%s8743_s0 + $0x40] sm:$0x1] }
  0x3e   :  { %3844 = vmatpush1.bf16.msra.mxu0 %v3843_v59  ;;  %v3516_v59 = vld [vmem:[%s8742_s1 + $0x1c18] sm:$0xff]  ;;  %v3570_v36 = vld [vmem:[%s8742_s1 + $0x1dc8] sm:$0xff]  ;;  %v3585_v2 = vld [vmem:[%s8742_s1 + $0x1e40] sm:$0xff] }
  0x3f   :  { %3988 = vmatpush1.bf16.msra.mxu1 %v3987_v62  ;;  %3846 = vmatprep.subr.bf16.mxu0 %v3845_v63  ;;  %v4007_v62 = vpack.c.bf16 %v3507_v56, %v3499_v54  ;;  %v3865_v63 = vpack.c.bf16 %v3522_v58, %v3514_v57  ;;  %v3556_v20 = vld [vmem:[%s8742_s1 + $0x1d58] sm:$0xff]  ;;  %v3877_v48 = vpack.c.bf16 %v3570_v36, %v3562_v31  ;;  %v651_v54 = vrot.slane %v608_v47, 1  ;;  %v3571_v56 = vld [vmem:[%s8742_s1 + $0x1dd0] sm:$0xff]  ;;  %v3578_v57 = vld [vmem:[%s8742_s1 + $0x1e08] sm:$0xff] }
  0x40   :  { %3990 = vmatprep.subr.bf16.mxu1 %v3989_v3  ;;  %v4009_v3 = vpack.c.bf16 %v3524_v60, %v3516_v59  ;;  %v4017_v35 = vpack.c.bf16 %v3556_v20, %v3548_v19  ;;  %v3572_v40 = vld [vmem:[%s8742_s1 + $0x1dd8] sm:$0xff]  ;;  %v3586_v58 = vld [vmem:[%s8742_s1 + $0x1e48] sm:$0xff]  ;;  %v3587_v5 = vld [vmem:[%s8742_s1 + $0x1e50] sm:$0xff] }
  0x41   :  { %v603_v46 = vld [vmem:[%s8743_s0 + $0x18] sm:$0xfe]  ;;  %v3594_v6 = vld [vmem:[%s8742_s1 + $0x1e88] sm:$0xff]  ;;  %v3601_v14 = vld [vmem:[%s8742_s1 + $0x1ec0] sm:$0xff] }
  0x42   :  { %3848 = vmatpush1.bf16.msra.mxu0 %v3847_v9  ;;  %v3867_v9 = vpack.c.bf16 %v3521_v1, %v3513_v0  ;;  %v650_v53 = vrot.slane %v603_v46, 1  ;;  %v3580_v59 = vld [vmem:[%s8742_s1 + $0x1e18] sm:$0xff]  ;;  %v3881_v0 = vpack.c.bf16 %v3586_v58, %v3578_v57  ;;  %v3577_v1 = vld [vmem:[%s8742_s1 + $0x1e00] sm:$0xff]  ;;  %v3602_v7 = vld [vmem:[%s8742_s1 + $0x1ec8] sm:$0xff] }
  0x43   :  { %3992 = vmatpush1.bf16.msra.mxu1 %v3991_v12  ;;  %3850 = vmatprep.subr.bf16.mxu0 %v3849_v13  ;;  %v3529_v12 = vld [vmem:[%s8742_s1 + $0x1c80] sm:$0xff]  ;;  %v3588_v60 = vld [vmem:[%s8742_s1 + $0x1e58] sm:$0xff]  ;;  %v3618_v19 = vld [vmem:[%s8742_s1 + $0x1f48] sm:$0xff] }
  0x44   :  { %3994 = vmatprep.subr.bf16.mxu1 %v3993_v17  ;;  %v3537_v13 = vld [vmem:[%s8742_s1 + $0x1cc0] sm:$0xff]  ;;  %v3546_v17 = vld [vmem:[%s8742_s1 + $0x1d08] sm:$0xff]  ;;  %v4025_v4 = vpack.c.bf16 %v3588_v60, %v3580_v59  ;;  %v3596_v8 = vld [vmem:[%s8742_s1 + $0x1e98] sm:$0xff] }
  0x45   :  { %1326 = vmatmul.mubr.f32.vlgmr.msra.gmra.mrb[0].mxu0 %v5487_v23  ;;  %v3871_v22 = vpack.c.bf16 %v3537_v13, %v3529_v12  ;;  %v3873_v28 = vpack.c.bf16 %v3554_v18, %v3546_v17  ;;  %v3885_v12 = vpack.c.bf16 %v3602_v7, %v3594_v6  ;;  %v3593_v13 = vld [vmem:[%s8742_s1 + $0x1e80] sm:$0xff]  ;;  %v3603_v17 = vld [vmem:[%s8742_s1 + $0x1ed0] sm:$0xff]  ;;  %v3610_v18 = vld [vmem:[%s8742_s1 + $0x1f08] sm:$0xff] }
  0x46   :  { %3852 = vmatpush1.bf16.msra.mxu0 %v3851_v24  ;;  %1557 = vmatmul.mubr.f32.vlgmr.msra.gmra.mrb[0].mxu1 %v5487_v23  ;;  %v3553_v24 = vld [vmem:[%s8742_s1 + $0x1d40] sm:$0xff]  ;;  %v3612_v20 = vld [vmem:[%s8742_s1 + $0x1f18] sm:$0xff]  ;;  %v3626_v31 = vld [vmem:[%s8742_s1 + $0x1f88] sm:$0xff] }
  0x47   :  { %3996 = vmatpush1.bf16.msra.mxu1 %v3995_v25  ;;  %3854 = vmatprep.subr.bf16.mxu0 %v3853_v26  ;;  %v611_v25 = vld [vmem:[%s8743_s0 + $0x58] sm:$0xfe]  ;;  %v616_v26 = vld [vmem:[%s8743_s0 + $0x80] sm:$0x1]  ;;  %v3875_v44 = vpack.c.bf16 %v3553_v24, %v3545_v21  ;;  %v3650_v46 = vld [vmem:[%s8742_s1 + $0x2048] sm:$0xff] }
  0x48   :  { %3998 = vmatprep.subr.bf16.mxu1 %v3997_v30  ;;  %v3555_v30 = vld [vmem:[%s8742_s1 + $0x1d50] sm:$0xff]  ;;  %v659_v33 = vrot.slane %v611_v25, 1  ;;  %v660_v34 = vrot.slane %v616_v26, 1  ;;  %v3620_v21 = vld [vmem:[%s8742_s1 + $0x1f58] sm:$0xff]  ;;  %v3889_v25 = vpack.c.bf16 %v3618_v19, %v3610_v18  ;;  %v3609_v26 = vld [vmem:[%s8742_s1 + $0x1f00] sm:$0xff] }
  0x49   :  { %v4019_v45 = vpack.c.bf16 %v3555_v30, %v3547_v29  ;;  %v4033_v29 = vpack.c.bf16 %v3620_v21, %v3612_v20  ;;  %v3619_v30 = vld [vmem:[%s8742_s1 + $0x1f50] sm:$0xff]  ;;  %v3644_v47 = vld [vmem:[%s8742_s1 + $0x2018] sm:$0xff]  ;;  %v3658_v58 = vld [vmem:[%s8742_s1 + $0x2088] sm:$0xff] }
  0x4a   :  { %3856 = vmatpush1.bf16.msra.mxu0 %v3855_v37  ;;  %v610_v37 = vld [vmem:[%s8743_s0 + $0x50] sm:$0xfe]  ;;  %v5648_v41 = vsel %vm640_vm0, %v659_v33, %v660_v34  ;;  %v3634_v33 = vld [vmem:[%s8742_s1 + $0x1fc8] sm:$0xff]  ;;  %v3628_v34 = vld [vmem:[%s8742_s1 + $0x1f98] sm:$0xff] }
  0x4b   :  { %4000 = vmatpush1.bf16.msra.mxu1 %v3999_v38  ;;  %3858 = vmatprep.subr.bf16.mxu0 %v3857_v39  ;;  %v615_v38 = vld [vmem:[%s8743_s0 + $0x78] sm:$0x1]  ;;  %v656_v42 = vrot.slane %v610_v37, 1  ;;  %v3651_v57 = vld [vmem:[%s8742_s1 + $0x2050] sm:$0xff]  ;;  %v3666_v59 = vld [vmem:[%s8742_s1 + $0x20c8] sm:$0xff] }
  0x4c   :  { %4002 = vmatprep.subr.bf16.mxu1 %v4001_v43  ;;  %v3564_v39 = vld [vmem:[%s8742_s1 + $0x1d98] sm:$0xff]  ;;  %v657_v43 = vrot.slane %v615_v38, 1  ;;  %1331 = vmatprep.mubr.f32.mxu0 %v5648_v41  ;;  %v3893_v38 = vpack.c.bf16 %v3634_v33, %v3626_v31  ;;  %v3667_v6 = vld [vmem:[%s8742_s1 + $0x20d0] sm:$0xff]  ;;  %v3674_v7 = vld [vmem:[%s8742_s1 + $0x2108] sm:$0xff] }
  0x4d   :  { %1562 = vmatprep.mubr.f32.mxu1 %v5648_v41  ;;  %v3660_v60 = vld [vmem:[%s8742_s1 + $0x2098] sm:$0xff]  ;;  %v3683_v18 = vld [vmem:[%s8742_s1 + $0x2150] sm:$0xff]  ;;  %v3690_v19 = vld [vmem:[%s8742_s1 + $0x2188] sm:$0xff] }
  0x4e   :  { %3860 = vmatpush1.bf16.msra.mxu0 %v3859_v49  ;;  %v3561_v49 = vld [vmem:[%s8742_s1 + $0x1d80] sm:$0xff]  ;;  %v5667_v52 = vsel %vm640_vm0, %v656_v42, %v657_v43  ;;  %v3627_v42 = vld [vmem:[%s8742_s1 + $0x1f90] sm:$0xff]  ;;  %v3698_v20 = vld [vmem:[%s8742_s1 + $0x21c8] sm:$0xff] }
  0x4f   :  { %4004 = vmatpush1.bf16.msra.mxu1 %v4003_v50  ;;  %3862 = vmatprep.subr.bf16.mxu0 %v3861_v51  ;;  %v3569_v50 = vld [vmem:[%s8742_s1 + $0x1dc0] sm:$0xff]  ;;  %v3563_v51 = vld [vmem:[%s8742_s1 + $0x1d90] sm:$0xff]  ;;  %v3692_v21 = vld [vmem:[%s8742_s1 + $0x2198] sm:$0xff] }
  0x50   :  { %4006 = vmatprep.subr.bf16.mxu1 %v4005_v55  ;;  %v4021_v55 = vpack.c.bf16 %v3572_v40, %v3564_v39  ;;  %1332 = vmatmul.mubr.f32.gmra.mrb[2].mxu0 %v5667_v52  ;;  %v3625_v39 = vld [vmem:[%s8742_s1 + $0x1f80] sm:$0xff]  ;;  %v607_v31 = vld [vmem:[%s8743_s0 + $0x38] sm:$0x1] }
  0x51   :  { %1563 = vmatmul.mubr.f32.gmra.mrb[2].mxu1 %v5667_v52  ;;  %v3633_v40 = vld [vmem:[%s8742_s1 + $0x1fc0] sm:$0xff] }
  0x52   :  { %3864 = vmatpush1.bf16.msra.mxu0 %v3863_v61  ;;  %v5688_v61 = vsel %vm640_vm0, %v650_v53, %v651_v54  ;;  %v3641_v53 = vld [vmem:[%s8742_s1 + $0x2000] sm:$0xff] }
  0x53   :  { %4008 = vmatpush1.bf16.msra.mxu1 %v4007_v62  ;;  %3866 = vmatprep.subr.bf16.mxu0 %v3865_v63  ;;  %v3879_v62 = vpack.c.bf16 %v3569_v50, %v3561_v49  ;;  %v4023_v63 = vpack.c.bf16 %v3571_v56, %v3563_v51  ;;  %v3895_v49 = vpack.c.bf16 %v3633_v40, %v3625_v39  ;;  %v3649_v54 = vld [vmem:[%s8742_s1 + $0x2040] sm:$0xff] }
  0x54   :  { %4010 = vmatprep.subr.bf16.mxu1 %v4009_v3  ;;  %1402 = vmatprep.mubr.f32.mxu0 %v5688_v61  ;;  %v3579_v3 = vld [vmem:[%s8742_s1 + $0x1e10] sm:$0xff]  ;;  %v3705_v40 = vld [vmem:[%s8742_s1 + $0x2200] sm:$0xff] }
  0x55   :  { %1633 = vmatprep.mubr.f32.mxu1 %v5688_v61 }
  0x56   :  { %3868 = vmatpush1.bf16.msra.mxu0 %v3867_v9  ;;  %v3604_v9 = vld [vmem:[%s8742_s1 + $0x1ed8] sm:$0xff] }
  0x57   :  { %4012 = vmatpush1.bf16.msra.mxu1 %v4011_v10  ;;  %3870 = vmatprep.subr.bf16.mxu0 %v3869_v11  ;;  %v3883_v10 = vpack.c.bf16 %v3585_v2, %v3577_v1  ;;  %v4027_v11 = vpack.c.bf16 %v3587_v5, %v3579_v3  ;;  %v4029_v16 = vpack.c.bf16 %v3604_v9, %v3596_v8  ;;  %v3657_v2 = vld [vmem:[%s8742_s1 + $0x2080] sm:$0xff]  ;;  %v3682_v8 = vld [vmem:[%s8742_s1 + $0x2148] sm:$0xff]  ;;  %v3676_v9 = vld [vmem:[%s8742_s1 + $0x2118] sm:$0xff] }
  0x58   :  { %4014 = vmatprep.subr.bf16.mxu1 %v4013_v15  ;;  %v3595_v15 = vld [vmem:[%s8742_s1 + $0x1e90] sm:$0xff]  ;;  %v3901_v1 = vpack.c.bf16 %v3666_v59, %v3658_v58  ;;  %v3665_v3 = vld [vmem:[%s8742_s1 + $0x20c0] sm:$0xff]  ;;  %v3732_v58 = vld [vmem:[%s8742_s1 + $0x22d8] sm:$0xff] }
  0x59   :  { %v4031_v24 = vpack.c.bf16 %v3603_v17, %v3595_v15  ;;  %v3681_v15 = vld [vmem:[%s8742_s1 + $0x2140] sm:$0xff] }
  0x5a   :  { %3872 = vmatpush1.bf16.msra.mxu0 %v3871_v22  ;;  %v3887_v22 = vpack.c.bf16 %v3601_v14, %v3593_v13  ;;  %v3905_v13 = vpack.c.bf16 %v3682_v8, %v3674_v7  ;;  %v3673_v14 = vld [vmem:[%s8742_s1 + $0x2100] sm:$0xff]  ;;  %v3731_v8 = vld [vmem:[%s8742_s1 + $0x22d0] sm:$0xff] }
  0x5b   :  { %4016 = vmatpush1.bf16.msra.mxu1 %v4015_v27  ;;  %3874 = vmatprep.subr.bf16.mxu0 %v3873_v28  ;;  %v3617_v27 = vld [vmem:[%s8742_s1 + $0x1f40] sm:$0xff]  ;;  %v3611_v28 = vld [vmem:[%s8742_s1 + $0x1f10] sm:$0xff] }
  0x5c   :  { %4018 = vmatprep.subr.bf16.mxu1 %v4017_v35  ;;  %v3636_v35 = vld [vmem:[%s8742_s1 + $0x1fd8] sm:$0xff]  ;;  %v3891_v36 = vpack.c.bf16 %v3617_v27, %v3609_v26  ;;  %v4035_v37 = vpack.c.bf16 %v3619_v30, %v3611_v28  ;;  %v602_v26 = vld [vmem:[%s8743_s0 + $0x10] sm:$0xfe]  ;;  %v3909_v28 = vpack.c.bf16 %v3698_v20, %v3690_v19  ;;  %v3745_v19 = vld [vmem:[%s8742_s1 + $0x2340] sm:$0xff] }
  0x5d   :  { %v4037_v43 = vpack.c.bf16 %v3636_v35, %v3628_v34  ;;  %v3691_v30 = vld [vmem:[%s8742_s1 + $0x2190] sm:$0xff]  ;;  %v3706_v35 = vld [vmem:[%s8742_s1 + $0x2208] sm:$0xff]  ;;  %v647_v39 = vrot.slane %v602_v26, 1  ;;  %v3756_v26 = vld [vmem:[%s8742_s1 + $0x2398] sm:$0xff] }
  0x5e   :  { %3876 = vmatpush1.bf16.msra.mxu0 %v3875_v44  ;;  %v3635_v44 = vld [vmem:[%s8742_s1 + $0x1fd0] sm:$0xff] }
  0x5f   :  { %4020 = vmatpush1.bf16.msra.mxu1 %v4019_v45  ;;  %3878 = vmatprep.subr.bf16.mxu0 %v3877_v48  ;;  %v3642_v45 = vld [vmem:[%s8742_s1 + $0x2008] sm:$0xff]  ;;  %v3652_v48 = vld [vmem:[%s8742_s1 + $0x2058] sm:$0xff]  ;;  %v4039_v50 = vpack.c.bf16 %v3635_v44, %v3627_v42  ;;  %v3699_v34 = vld [vmem:[%s8742_s1 + $0x21d0] sm:$0xff] }
  0x60   :  { %4022 = vmatprep.subr.bf16.mxu1 %v4021_v55  ;;  %v3897_v51 = vpack.c.bf16 %v3650_v46, %v3642_v45  ;;  %v3643_v55 = vld [vmem:[%s8742_s1 + $0x2010] sm:$0xff]  ;;  %v4041_v56 = vpack.c.bf16 %v3652_v48, %v3644_v47  ;;  %v3713_v44 = vld [vmem:[%s8742_s1 + $0x2240] sm:$0xff]  ;;  %v613_v45 = vld [vmem:[%s8743_s0 + $0x68] sm:$0xfe]  ;;  %v4055_v47 = vpack.c.bf16 %v3699_v34, %v3691_v30 }
  0x61   :  { %v618_v46 = vld [vmem:[%s8743_s0 + $0x90] sm:$0x1]  ;;  %v665_v59 = vrot.slane %v613_v45, 1  ;;  %v3761_v30 = vld [vmem:[%s8742_s1 + $0x23c0] sm:$0xff] }
  0x62   :  { %3880 = vmatpush1.bf16.msra.mxu0 %v3879_v62  ;;  %v3668_v62 = vld [vmem:[%s8742_s1 + $0x20d8] sm:$0xff]  ;;  %v3739_v20 = vld [vmem:[%s8742_s1 + $0x2310] sm:$0xff] }
  0x63   :  { %4024 = vmatpush1.bf16.msra.mxu1 %v4023_v63  ;;  %3882 = vmatprep.subr.bf16.mxu0 %v3881_v0  ;;  %v3899_v63 = vpack.c.bf16 %v3649_v54, %v3641_v53  ;;  %v4043_v0 = vpack.c.bf16 %v3651_v57, %v3643_v55  ;;  %v4045_v5 = vpack.c.bf16 %v3668_v62, %v3660_v60  ;;  %v3715_v54 = vld [vmem:[%s8742_s1 + $0x2250] sm:$0xff]  ;;  %v3722_v55 = vld [vmem:[%s8742_s1 + $0x2288] sm:$0xff]  ;;  %v3724_v57 = vld [vmem:[%s8742_s1 + $0x2298] sm:$0xff]  ;;  %v666_v60 = vrot.slane %v618_v46, 1 }
  0x64   :  { %4026 = vmatprep.subr.bf16.mxu1 %v4025_v4  ;;  %v3659_v4 = vld [vmem:[%s8742_s1 + $0x2090] sm:$0xff]  ;;  %v4061_v7 = vpack.c.bf16 %v3732_v58, %v3724_v57  ;;  %v3222_v57 = vld [vmem:[%s8742_s1 + $0x12e8] sm:$0xff]  ;;  %v3216_v58 = vld [vmem:[%s8742_s1 + $0x12b8] sm:$0xff] }
  0x65   :  { %v3755_v34 = vld [vmem:[%s8742_s1 + $0x2390] sm:$0xff] }
  0x66   :  { %3884 = vmatpush1.bf16.msra.mxu0 %v3883_v10  ;;  %v3684_v10 = vld [vmem:[%s8742_s1 + $0x2158] sm:$0xff] }
  0x67   :  { %4028 = vmatpush1.bf16.msra.mxu1 %v4027_v11  ;;  %3886 = vmatprep.subr.bf16.mxu0 %v3885_v12  ;;  %v3903_v11 = vpack.c.bf16 %v3665_v3, %v3657_v2  ;;  %v4047_v12 = vpack.c.bf16 %v3667_v6, %v3659_v4  ;;  %v4049_v17 = vpack.c.bf16 %v3684_v10, %v3676_v9  ;;  %v3721_v4 = vld [vmem:[%s8742_s1 + $0x2280] sm:$0xff]  ;;  %v3723_v6 = vld [vmem:[%s8742_s1 + $0x2290] sm:$0xff]  ;;  %v3738_v9 = vld [vmem:[%s8742_s1 + $0x2308] sm:$0xff] }
  0x68   :  { %4030 = vmatprep.subr.bf16.mxu1 %v4029_v16  ;;  %v3675_v16 = vld [vmem:[%s8742_s1 + $0x2110] sm:$0xff]  ;;  %v3746_v10 = vld [vmem:[%s8742_s1 + $0x2348] sm:$0xff] }
  0x69   :  { %v4051_v27 = vpack.c.bf16 %v3683_v18, %v3675_v16  ;;  %v4063_v16 = vpack.c.bf16 %v3731_v8, %v3723_v6  ;;  %v3737_v18 = vld [vmem:[%s8742_s1 + $0x2300] sm:$0xff]  ;;  %v3215_v8 = vld [vmem:[%s8742_s1 + $0x12b0] sm:$0xff] }
  0x6a   :  { %3888 = vmatpush1.bf16.msra.mxu0 %v3887_v22  ;;  %v3700_v22 = vld [vmem:[%s8742_s1 + $0x21d8] sm:$0xff]  ;;  %v3213_v6 = vld [vmem:[%s8742_s1 + $0x12a0] sm:$0xff] }
  0x6b   :  { %4032 = vmatpush1.bf16.msra.mxu1 %v4031_v24  ;;  %3890 = vmatprep.subr.bf16.mxu0 %v3889_v25  ;;  %v3907_v24 = vpack.c.bf16 %v3681_v15, %v3673_v14  ;;  %v3689_v25 = vld [vmem:[%s8742_s1 + $0x2180] sm:$0xff]  ;;  %v4053_v33 = vpack.c.bf16 %v3700_v22, %v3692_v21  ;;  %v3747_v22 = vld [vmem:[%s8742_s1 + $0x2350] sm:$0xff] }
  0x6c   :  { %4034 = vmatprep.subr.bf16.mxu1 %v4033_v29  ;;  %v3697_v29 = vld [vmem:[%s8742_s1 + $0x21c0] sm:$0xff] }
  0x6d   :  { %v3911_v42 = vpack.c.bf16 %v3697_v29, %v3689_v25  ;;  %v3762_v25 = vld [vmem:[%s8742_s1 + $0x23c8] sm:$0xff]  ;;  %v3753_v29 = vld [vmem:[%s8742_s1 + $0x2380] sm:$0xff] }
  0x6e   :  { %3892 = vmatpush1.bf16.msra.mxu0 %v3891_v36  ;;  %v3714_v36 = vld [vmem:[%s8742_s1 + $0x2248] sm:$0xff]  ;;  %v3927_v45 = vpack.c.bf16 %v3761_v30, %v3753_v29  ;;  %v3248_v29 = vld [vmem:[%s8742_s1 + $0x13b8] sm:$0xff] }
  0x6f   :  { %4036 = vmatpush1.bf16.msra.mxu1 %v4035_v37  ;;  %3894 = vmatprep.subr.bf16.mxu0 %v3893_v38  ;;  %v3708_v37 = vld [vmem:[%s8742_s1 + $0x2218] sm:$0xff]  ;;  %v3913_v48 = vpack.c.bf16 %v3714_v36, %v3706_v35  ;;  %v604_v35 = vld [vmem:[%s8743_s0 + $0x20] sm:$0xfe]  ;;  %v609_v36 = vld [vmem:[%s8743_s0 + $0x48] sm:$0x1] }
  0x70   :  { %4038 = vmatprep.subr.bf16.mxu1 %v4037_v43  ;;  %v3716_v38 = vld [vmem:[%s8742_s1 + $0x2258] sm:$0xff]  ;;  %v648_v43 = vrot.slane %v607_v31, 1  ;;  %v4067_v31 = vpack.c.bf16 %v3747_v22, %v3739_v20  ;;  %v653_v46 = vrot.slane %v604_v35, 1  ;;  %v3237_v22 = vld [vmem:[%s8742_s1 + $0x1360] sm:$0xff] }
  0x71   :  { %v4057_v53 = vpack.c.bf16 %v3716_v38, %v3708_v37  ;;  %v3763_v38 = vld [vmem:[%s8742_s1 + $0x23d0] sm:$0xff]  ;;  %v3256_v30 = vld [vmem:[%s8742_s1 + $0x13f8] sm:$0xff]  ;;  %v3245_v35 = vld [vmem:[%s8742_s1 + $0x13a0] sm:$0xff] }
  0x72   :  { %3896 = vmatpush1.bf16.msra.mxu0 %v3895_v49  ;;  %v3707_v49 = vld [vmem:[%s8742_s1 + $0x2210] sm:$0xff]  ;;  %v5927_v62 = vsel %vm640_vm0, %v647_v39, %v648_v43  ;;  %v5028_v39 = vmov 0.0   ;;  %v3200_v43 = vld [vmem:[%s8742_s1 + $0x1238] sm:$0xff] }
  0x73   :  { %4040 = vmatpush1.bf16.msra.mxu1 %v4039_v50  ;;  %3898 = vmatprep.subr.bf16.mxu0 %v3897_v51  ;;  %v612_v50 = vld [vmem:[%s8743_s0 + $0x60] sm:$0xfe]  ;;  %v617_v51 = vld [vmem:[%s8743_s0 + $0x88] sm:$0x1]  ;;  %v4059_v2 = vpack.c.bf16 %v3715_v54, %v3707_v49  ;;  %v4071_v49 = vpack.c.bf16 %v3763_v38, %v3755_v34  ;;  %v3207_v54 = vld [vmem:[%s8742_s1 + $0x1270] sm:$0xff]  ;;  %v4229_v38 = vpack.c.bf16 %v3256_v30, %v3248_v29 }
  0x74   :  { %4042 = vmatprep.subr.bf16.mxu1 %v4041_v56  ;;  %v3730_v56 = vld [vmem:[%s8742_s1 + $0x22c8] sm:$0xff]  ;;  %v3317_v29 = vld [vmem:[%s8742_s1 + $0x15e0] sm:$0xff]  ;;  %v3311_v30 = vld [vmem:[%s8742_s1 + $0x15b0] sm:$0xff] }
  0x75   :  { %v3917_v3 = vpack.c.bf16 %v3730_v56, %v3722_v55  ;;  %v3214_v56 = vld [vmem:[%s8742_s1 + $0x12a8] sm:$0xff] }
  0x76   :  { %3900 = vmatpush1.bf16.msra.mxu0 %v3899_v63  ;;  %v3915_v63 = vpack.c.bf16 %v3713_v44, %v3705_v40  ;;  %v3198_v40 = vld [vmem:[%s8742_s1 + $0x1228] sm:$0xff]  ;;  %v3208_v44 = vld [vmem:[%s8742_s1 + $0x1278] sm:$0xff] }
  0x77   :  { %4044 = vmatpush1.bf16.msra.mxu1 %v4043_v0  ;;  %3902 = vmatprep.subr.bf16.mxu0 %v3901_v1  ;;  %v662_v0 = vrot.slane %v612_v50, 1  ;;  %v663_v1 = vrot.slane %v617_v51, 1  ;;  %v3205_v51 = vld [vmem:[%s8742_s1 + $0x1260] sm:$0xff]  ;;  %v4217_v55 = vpack.c.bf16 %v3208_v44, %v3200_v43  ;;  %v3270_v43 = vld [vmem:[%s8742_s1 + $0x1468] sm:$0xff]  ;;  %v3264_v44 = vld [vmem:[%s8742_s1 + $0x1438] sm:$0xff] }
  0x78   :  { %4046 = vmatprep.subr.bf16.mxu1 %v4045_v5  ;;  %v3729_v5 = vld [vmem:[%s8742_s1 + $0x22c0] sm:$0xff] }
  0x79   :  { %v3919_v14 = vpack.c.bf16 %v3729_v5, %v3721_v4  ;;  %v5959_v15 = vsel %vm640_vm0, %v662_v0, %v663_v1  ;;  %v4077_v5 = vpack.c.bf16 %v3222_v57, %v3214_v56  ;;  %v3280_v56 = vld [vmem:[%s8742_s1 + $0x14b8] sm:$0xff] }
  0x7a   :  { %3904 = vmatpush1.bf16.msra.mxu0 %v3903_v11  ;;  %v3740_v11 = vld [vmem:[%s8742_s1 + $0x2318] sm:$0xff] }
  0x7b   :  { %4048 = vmatpush1.bf16.msra.mxu1 %v4047_v12  ;;  %3906 = vmatprep.subr.bf16.mxu0 %v3905_v13  ;;  %v3748_v12 = vld [vmem:[%s8742_s1 + $0x2358] sm:$0xff]  ;;  %v5955_v13 = vsel %vm640_vm0, %v665_v59, %v666_v60  ;;  %v614_v60 = vld [vmem:[%s8743_s0 + $0x70] sm:$0xfe] }
  0x7c   :  { %4050 = vmatprep.subr.bf16.mxu1 %v4049_v17  ;;  %v3921_v17 = vpack.c.bf16 %v3746_v10, %v3738_v9  ;;  %v4065_v21 = vpack.c.bf16 %v3748_v12, %v3740_v11  ;;  %v3224_v59 = vld [vmem:[%s8742_s1 + $0x12f8] sm:$0xff]  ;;  %v3223_v10 = vld [vmem:[%s8742_s1 + $0x12f0] sm:$0xff]  ;;  %v3230_v11 = vld [vmem:[%s8742_s1 + $0x1328] sm:$0xff] }
  0x7d   :  { %v4221_v9 = vpack.c.bf16 %v3224_v59, %v3216_v58  ;;  %v3238_v12 = vld [vmem:[%s8742_s1 + $0x1368] sm:$0xff]  ;;  %v3288_v57 = vld [vmem:[%s8742_s1 + $0x14f8] sm:$0xff] }
  0x7e   :  { %3908 = vmatpush1.bf16.msra.mxu0 %v3907_v24  ;;  %v3754_v24 = vld [vmem:[%s8742_s1 + $0x2388] sm:$0xff]  ;;  %v4081_v20 = vpack.c.bf16 %v3238_v12, %v3230_v11  ;;  %v3293_v12 = vld [vmem:[%s8742_s1 + $0x1520] sm:$0xff] }
  0x7f   :  { %4052 = vmatpush1.bf16.msra.mxu1 %v4051_v27  ;;  %3910 = vmatprep.subr.bf16.mxu0 %v3909_v28  ;;  %v3764_v27 = vld [vmem:[%s8742_s1 + $0x23d8] sm:$0xff]  ;;  %v3923_v28 = vpack.c.bf16 %v3745_v19, %v3737_v18  ;;  %v4223_v19 = vpack.c.bf16 %v3223_v10, %v3215_v8 }
  0x80   :  { %4054 = vmatprep.subr.bf16.mxu1 %v4053_v33  ;;  %v3925_v33 = vpack.c.bf16 %v3762_v25, %v3754_v24  ;;  %v4069_v37 = vpack.c.bf16 %v3764_v27, %v3756_v26  ;;  %v3231_v24 = vld [vmem:[%s8742_s1 + $0x1330] sm:$0xff]  ;;  %v3246_v27 = vld [vmem:[%s8742_s1 + $0x13a8] sm:$0xff]  ;;  %v3304_v8 = vld [vmem:[%s8742_s1 + $0x1578] sm:$0xff] }
  0x81   :  { %v3239_v26 = vld [vmem:[%s8742_s1 + $0x1370] sm:$0xff] }
  0x82   :  { %3912 = vmatpush1.bf16.msra.mxu0 %v3911_v42  ;;  %v3206_v42 = vld [vmem:[%s8742_s1 + $0x1268] sm:$0xff] }
  0x83   :  { %4056 = vmatpush1.bf16.msra.mxu1 %v4055_v47  ;;  %3914 = vmatprep.subr.bf16.mxu0 %v3913_v48  ;;  %v654_v47 = vrot.slane %v609_v36, 1  ;;  %v3197_v48 = vld [vmem:[%s8742_s1 + $0x1220] sm:$0xff]  ;;  %v4073_v50 = vpack.c.bf16 %v3206_v42, %v3198_v40  ;;  %v3255_v40 = vld [vmem:[%s8742_s1 + $0x13f0] sm:$0xff]  ;;  %v3262_v42 = vld [vmem:[%s8742_s1 + $0x1428] sm:$0xff] }
  0x84   :  { %4058 = vmatprep.subr.bf16.mxu1 %v4057_v53  ;;  %v3199_v53 = vld [vmem:[%s8742_s1 + $0x1230] sm:$0xff]  ;;  %v4075_v1 = vpack.c.bf16 %v3205_v51, %v3197_v48  ;;  %v3253_v36 = vld [vmem:[%s8742_s1 + $0x13e0] sm:$0xff]  ;;  %v4089_v48 = vpack.c.bf16 %v3270_v43, %v3262_v42 }
  0x85   :  { %1403 = vmatmul.mubr.f32.vlgmr.msra.gmra.mrb[0].mxu0 %v5927_v62  ;;  %v6052_v0 = vsel %vm640_vm0, %v653_v46, %v654_v47  ;;  %v4219_v4 = vpack.c.bf16 %v3207_v54, %v3199_v53  ;;  %v4087_v46 = vpack.c.bf16 %v3253_v36, %v3245_v35  ;;  %v3263_v51 = vld [vmem:[%s8742_s1 + $0x1430] sm:$0xff]  ;;  %v3278_v54 = vld [vmem:[%s8742_s1 + $0x14a8] sm:$0xff]  ;;  %v3328_v36 = vld [vmem:[%s8742_s1 + $0x1638] sm:$0xff] }
  0x86   :  { %3916 = vmatpush1.bf16.msra.mxu0 %v3915_v63  ;;  %1634 = vmatmul.mubr.f32.vlgmr.msra.gmra.mrb[0].mxu1 %v5927_v62  ;;  %v619_v63 = vld [vmem:[%s8743_s0 + $0x98] sm:$0x1]  ;;  %v3271_v53 = vld [vmem:[%s8742_s1 + $0x1470] sm:$0xff]  ;;  %v3334_v35 = vld [vmem:[%s8742_s1 + $0x1668] sm:$0xff] }
  0x87   :  { %4060 = vmatpush1.bf16.msra.mxu1 %v4059_v2  ;;  %3918 = vmatprep.subr.bf16.mxu0 %v3917_v3  ;;  %v668_v2 = vrot.slane %v614_v60, 1  ;;  %v669_v3 = vrot.slane %v619_v63, 1  ;;  %v4235_v59 = vpack.c.bf16 %v3271_v53, %v3263_v51  ;;  %v3277_v63 = vld [vmem:[%s8742_s1 + $0x14a0] sm:$0xff]  ;;  %v3352_v51 = vld [vmem:[%s8742_s1 + $0x16f8] sm:$0xff] }
  0x88   :  { %4062 = vmatprep.subr.bf16.mxu1 %v4061_v7  ;;  %1408 = vmatprep.mubr.f32.mxu0 %v5955_v13  ;;  %v3221_v7 = vld [vmem:[%s8742_s1 + $0x12e0] sm:$0xff] }
  0x89   :  { %1639 = vmatprep.mubr.f32.mxu1 %v5955_v13  ;;  %1409 = vmatmul.mubr.f32.gmra.mrb[2].mxu0 %v5959_v15  ;;  %v6083_v18 = vsel %vm640_vm0, %v668_v2, %v669_v3  ;;  %v3279_v2 = vld [vmem:[%s8742_s1 + $0x14b0] sm:$0xff]  ;;  %v4237_v3 = vpack.c.bf16 %v3288_v57, %v3280_v56  ;;  %v3325_v43 = vld [vmem:[%s8742_s1 + $0x1620] sm:$0xff] }
  0x8a   :  { %3920 = vmatpush1.bf16.msra.mxu0 %v3919_v14  ;;  %1640 = vmatmul.mubr.f32.gmra.mrb[2].mxu1 %v5959_v15  ;;  %v3232_v14 = vld [vmem:[%s8742_s1 + $0x1338] sm:$0xff]  ;;  %v3349_v56 = vld [vmem:[%s8742_s1 + $0x16e0] sm:$0xff]  ;;  %v3343_v57 = vld [vmem:[%s8742_s1 + $0x16b0] sm:$0xff] }
  0x8b   :  { %4064 = vmatpush1.bf16.msra.mxu1 %v4063_v16  ;;  %3922 = vmatprep.subr.bf16.mxu0 %v3921_v17  ;;  %v3240_v16 = vld [vmem:[%s8742_s1 + $0x1378] sm:$0xff]  ;;  %v4079_v17 = vpack.c.bf16 %v3221_v7, %v3213_v6  ;;  %v3302_v6 = vld [vmem:[%s8742_s1 + $0x1568] sm:$0xff] }
  0x8c   :  { %4066 = vmatprep.subr.bf16.mxu1 %v4065_v21  ;;  %1479 = vmatprep.mubr.f32.mxu0 %v5028_v39  ;;  %v3229_v21 = vld [vmem:[%s8742_s1 + $0x1320] sm:$0xff]  ;;  %v4225_v25 = vpack.c.bf16 %v3240_v16, %v3232_v14  ;;  %v3296_v7 = vld [vmem:[%s8742_s1 + $0x1538] sm:$0xff]  ;;  %v3295_v16 = vld [vmem:[%s8742_s1 + $0x1530] sm:$0xff] }
  0x8d   :  { %1710 = vmatprep.mubr.f32.mxu1 %v5028_v39  ;;  %v3301_v14 = vld [vmem:[%s8742_s1 + $0x1560] sm:$0xff] }
  0x8e   :  { %3924 = vmatpush1.bf16.msra.mxu0 %v3923_v28  ;;  %v3254_v28 = vld [vmem:[%s8742_s1 + $0x13e8] sm:$0xff] }
  0x8f   :  { %4068 = vmatpush1.bf16.msra.mxu1 %v4067_v31  ;;  %3926 = vmatprep.subr.bf16.mxu0 %v3925_v33  ;;  %v4083_v31 = vpack.c.bf16 %v3237_v22, %v3229_v21  ;;  %v4227_v33 = vpack.c.bf16 %v3239_v26, %v3231_v24  ;;  %v4085_v34 = vpack.c.bf16 %v3254_v28, %v3246_v27  ;;  %v3318_v21 = vld [vmem:[%s8742_s1 + $0x15e8] sm:$0xff]  ;;  %v3312_v22 = vld [vmem:[%s8742_s1 + $0x15b8] sm:$0xff]  ;;  %v3309_v28 = vld [vmem:[%s8742_s1 + $0x15a0] sm:$0xff] }
  0x90   :  { %4070 = vmatprep.subr.bf16.mxu1 %v4069_v37  ;;  %v3247_v37 = vld [vmem:[%s8742_s1 + $0x13b0] sm:$0xff]  ;;  %v3320_v24 = vld [vmem:[%s8742_s1 + $0x15f8] sm:$0xff] }
  0x91   :  { %v4231_v47 = vpack.c.bf16 %v3255_v40, %v3247_v37  ;;  %v3336_v37 = vld [vmem:[%s8742_s1 + $0x1678] sm:$0xff] }
  0x92   :  { %3928 = vmatpush1.bf16.msra.mxu0 %v3927_v45  ;;  %v3272_v45 = vld [vmem:[%s8742_s1 + $0x1478] sm:$0xff] }
  0x93   :  { %4072 = vmatpush1.bf16.msra.mxu1 %v4071_v49  ;;  %4074 = vmatprep.subr.bf16.mxu0 %v4073_v50  ;;  %v3261_v49 = vld [vmem:[%s8742_s1 + $0x1420] sm:$0xff] }
  0x94   :  { %4218 = vmatprep.subr.bf16.mxu1 %v4217_v55  ;;  %v3269_v50 = vld [vmem:[%s8742_s1 + $0x1460] sm:$0xff]  ;;  %v3286_v55 = vld [vmem:[%s8742_s1 + $0x14e8] sm:$0xff] }
  0x95   :  { %3769 = vmatmul.mubr.msk.f32.vlgmr.msra.gmra.mrb[0].mxu0 %vm1256_vm1, %v6052_v0  ;;  %v4091_v58 = vpack.c.bf16 %v3269_v50, %v3261_v49  ;;  %v4093_v60 = vpack.c.bf16 %v3286_v55, %v3278_v54  ;;  %v3350_v49 = vld [vmem:[%s8742_s1 + $0x16e8] sm:$0xff]  ;;  %v3344_v50 = vld [vmem:[%s8742_s1 + $0x16b8] sm:$0xff]  ;;  %v3341_v55 = vld [vmem:[%s8742_s1 + $0x16a0] sm:$0xff] }
  0x96   :  { %3771 = vmatmul.mubr.msk.f32.vlgmr.msra.gmra.mrb[0].mxu1 %vm1256_vm1, %v6052_v0  ;;  %4076 = vmatpush1.bf16.msra.mxu0 %v4075_v1  ;;  %v3285_v1 = vld [vmem:[%s8742_s1 + $0x14e0] sm:$0xff] }
  0x97   :  { %4220 = vmatpush1.bf16.msra.mxu1 %v4219_v4  ;;  %4078 = vmatprep.subr.bf16.mxu0 %v4077_v5  ;;  %v3287_v4 = vld [vmem:[%s8742_s1 + $0x14f0] sm:$0xff]  ;;  %v3294_v5 = vld [vmem:[%s8742_s1 + $0x1528] sm:$0xff] }
  0x98   :  { %4222 = vmatprep.subr.bf16.mxu1 %v4221_v9  ;;  %1485 = vmatprep.mubr.f32.mxu0 %v5028_v39  ;;  %v4095_v9 = vpack.c.bf16 %v3285_v1, %v3277_v63  ;;  %v4239_v10 = vpack.c.bf16 %v3287_v4, %v3279_v2  ;;  %v4097_v11 = vpack.c.bf16 %v3302_v6, %v3294_v5  ;;  %v3366_v63 = vld [vmem:[%s8742_s1 + $0x1768] sm:$0xff]  ;;  %v3360_v1 = vld [vmem:[%s8742_s1 + $0x1738] sm:$0xff]  ;;  %v3357_v6 = vld [vmem:[%s8742_s1 + $0x1720] sm:$0xff] }
  0x99   :  { %1716 = vmatprep.mubr.f32.mxu1 %v5028_v39  ;;  %3770 = vmatmul.mubr.msk.f32.gmra.mrb[2].mxu0 %vm1256_vm1, %v6083_v18  ;;  %v3368_v2 = vld [vmem:[%s8742_s1 + $0x1778] sm:$0xff] }
  0x9a   :  { %4080 = vmatpush1.bf16.msra.mxu0 %v4079_v17  ;;  %3772 = vmatmul.mubr.msk.f32.gmra.mrb[2].mxu1 %vm1256_vm1, %v6083_v18  ;;  %v4241_v17 = vpack.c.bf16 %v3304_v8, %v3296_v7  ;;  %v3365_v7 = vld [vmem:[%s8742_s1 + $0x1760] sm:$0xff]  ;;  %v3359_v8 = vld [vmem:[%s8742_s1 + $0x1730] sm:$0xff] }
  0x9b   :  { %4224 = vmatpush1.bf16.msra.mxu1 %v4223_v19  ;;  %4082 = vmatprep.subr.bf16.mxu0 %v4081_v20  ;;  %v3303_v19 = vld [vmem:[%s8742_s1 + $0x1570] sm:$0xff]  ;;  %v3310_v20 = vld [vmem:[%s8742_s1 + $0x15a8] sm:$0xff] }
  0x9c   :  { %4226 = vmatprep.subr.bf16.mxu1 %v4225_v25  ;;  %1787 = vmatprep.mubr.f32.mxu0 %v5374_v32  ;;  %v4099_v25 = vpack.c.bf16 %v3301_v14, %v3293_v12  ;;  %v4243_v26 = vpack.c.bf16 %v3303_v19, %v3295_v16  ;;  %v4101_v27 = vpack.c.bf16 %v3318_v21, %v3310_v20  ;;  %v3382_v12 = vld [vmem:[%s8742_s1 + $0x17e8] sm:$0xff]  ;;  %v3376_v14 = vld [vmem:[%s8742_s1 + $0x17b8] sm:$0xff]  ;;  %v3373_v21 = vld [vmem:[%s8742_s1 + $0x17a0] sm:$0xff] }
  0x9d   :  { %2018 = vmatprep.mubr.f32.mxu1 %v5374_v32  ;;  %v4233_v32 = vpack.c.bf16 %v3272_v45, %v3264_v44  ;;  %v3333_v44 = vld [vmem:[%s8742_s1 + $0x1660] sm:$0xff]  ;;  %v3327_v45 = vld [vmem:[%s8742_s1 + $0x1630] sm:$0xff]  ;;  %v3384_v16 = vld [vmem:[%s8742_s1 + $0x17f8] sm:$0xff] }
  0x9e   :  { %4084 = vmatpush1.bf16.msra.mxu0 %v4083_v31  ;;  %v4245_v31 = vpack.c.bf16 %v3320_v24, %v3312_v22  ;;  %v3381_v22 = vld [vmem:[%s8742_s1 + $0x17e0] sm:$0xff]  ;;  %v3375_v24 = vld [vmem:[%s8742_s1 + $0x17b0] sm:$0xff] }
  0x9f   :  { %4228 = vmatpush1.bf16.msra.mxu1 %v4227_v33  ;;  %4086 = vmatprep.subr.bf16.mxu0 %v4085_v34  ;;  %v3319_v33 = vld [vmem:[%s8742_s1 + $0x15f0] sm:$0xff]  ;;  %v3326_v34 = vld [vmem:[%s8742_s1 + $0x1628] sm:$0xff] }
  0xa0   :  { %4230 = vmatprep.subr.bf16.mxu1 %v4229_v38  ;;  %v4103_v38 = vpack.c.bf16 %v3317_v29, %v3309_v28  ;;  %v4247_v40 = vpack.c.bf16 %v3319_v33, %v3311_v30  ;;  %v4105_v42 = vpack.c.bf16 %v3334_v35, %v3326_v34  ;;  %v3398_v28 = vld [vmem:[%s8742_s1 + $0x1868] sm:$0xff]  ;;  %v3392_v29 = vld [vmem:[%s8742_s1 + $0x1838] sm:$0xff]  ;;  %v3389_v35 = vld [vmem:[%s8742_s1 + $0x1820] sm:$0xff] }
  0xa1   :  { %v3400_v30 = vld [vmem:[%s8742_s1 + $0x1878] sm:$0xff] }
  0xa2   :  { %4088 = vmatpush1.bf16.msra.mxu0 %v4087_v46  ;;  %v4249_v46 = vpack.c.bf16 %v3336_v37, %v3328_v36  ;;  %v3397_v36 = vld [vmem:[%s8742_s1 + $0x1860] sm:$0xff]  ;;  %v3391_v37 = vld [vmem:[%s8742_s1 + $0x1830] sm:$0xff] }
  0xa3   :  { %4232 = vmatpush1.bf16.msra.mxu1 %v4231_v47  ;;  %4090 = vmatprep.subr.bf16.mxu0 %v4089_v48  ;;  %v3335_v47 = vld [vmem:[%s8742_s1 + $0x1670] sm:$0xff]  ;;  %v3342_v48 = vld [vmem:[%s8742_s1 + $0x16a8] sm:$0xff] }
  0xa4   :  { %4234 = vmatprep.subr.bf16.mxu1 %v4233_v32  ;;  %v4107_v32 = vpack.c.bf16 %v3333_v44, %v3325_v43  ;;  %v4251_v53 = vpack.c.bf16 %v3335_v47, %v3327_v45  ;;  %v4109_v54 = vpack.c.bf16 %v3350_v49, %v3342_v48  ;;  %v3414_v43 = vld [vmem:[%s8742_s1 + $0x18e8] sm:$0xff]  ;;  %v3408_v44 = vld [vmem:[%s8742_s1 + $0x18b8] sm:$0xff]  ;;  %v3405_v49 = vld [vmem:[%s8742_s1 + $0x18a0] sm:$0xff] }
  0xa5   :  { %v3416_v45 = vld [vmem:[%s8742_s1 + $0x18f8] sm:$0xff] }
  0xa6   :  { %4092 = vmatpush1.bf16.msra.mxu0 %v4091_v58  ;;  %v4253_v58 = vpack.c.bf16 %v3352_v51, %v3344_v50  ;;  %v3413_v50 = vld [vmem:[%s8742_s1 + $0x18e0] sm:$0xff]  ;;  %v3407_v51 = vld [vmem:[%s8742_s1 + $0x18b0] sm:$0xff] }
  0xa7   :  { %4236 = vmatpush1.bf16.msra.mxu1 %v4235_v59  ;;  %4094 = vmatprep.subr.bf16.mxu0 %v4093_v60  ;;  %v3351_v59 = vld [vmem:[%s8742_s1 + $0x16f0] sm:$0xff]  ;;  %v3358_v60 = vld [vmem:[%s8742_s1 + $0x1728] sm:$0xff] }
  0xa8   :  { %4238 = vmatprep.subr.bf16.mxu1 %v4237_v3  ;;  %v4111_v3 = vpack.c.bf16 %v3349_v56, %v3341_v55  ;;  %v4255_v4 = vpack.c.bf16 %v3351_v59, %v3343_v57  ;;  %v4113_v5 = vpack.c.bf16 %v3366_v63, %v3358_v60  ;;  %v3430_v55 = vld [vmem:[%s8742_s1 + $0x1968] sm:$0xff]  ;;  %v3424_v56 = vld [vmem:[%s8742_s1 + $0x1938] sm:$0xff]  ;;  %v3421_v63 = vld [vmem:[%s8742_s1 + $0x1920] sm:$0xff] }
  0xa9   :  { %v3432_v57 = vld [vmem:[%s8742_s1 + $0x1978] sm:$0xff] }
  0xaa   :  { %4096 = vmatpush1.bf16.msra.mxu0 %v4095_v9  ;;  %v4257_v9 = vpack.c.bf16 %v3368_v2, %v3360_v1  ;;  %v3429_v1 = vld [vmem:[%s8742_s1 + $0x1960] sm:$0xff]  ;;  %v3423_v2 = vld [vmem:[%s8742_s1 + $0x1930] sm:$0xff] }
  0xab   :  { %4240 = vmatpush1.bf16.msra.mxu1 %v4239_v10  ;;  %4098 = vmatprep.subr.bf16.mxu0 %v4097_v11  ;;  %v3367_v10 = vld [vmem:[%s8742_s1 + $0x1770] sm:$0xff]  ;;  %v3374_v11 = vld [vmem:[%s8742_s1 + $0x17a8] sm:$0xff] }
  0xac   :  { %4242 = vmatprep.subr.bf16.mxu1 %v4241_v17  ;;  %v4115_v17 = vpack.c.bf16 %v3365_v7, %v3357_v6  ;;  %v4259_v19 = vpack.c.bf16 %v3367_v10, %v3359_v8  ;;  %v4117_v20 = vpack.c.bf16 %v3382_v12, %v3374_v11  ;;  %v3446_v6 = vld [vmem:[%s8742_s1 + $0x19e8] sm:$0xff]  ;;  %v3440_v7 = vld [vmem:[%s8742_s1 + $0x19b8] sm:$0xff]  ;;  %v3437_v12 = vld [vmem:[%s8742_s1 + $0x19a0] sm:$0xff] }
  0xad   :  { %v3448_v8 = vld [vmem:[%s8742_s1 + $0x19f8] sm:$0xff] }
  0xae   :  { %4100 = vmatpush1.bf16.msra.mxu0 %v4099_v25  ;;  %v4261_v25 = vpack.c.bf16 %v3384_v16, %v3376_v14  ;;  %v3445_v14 = vld [vmem:[%s8742_s1 + $0x19e0] sm:$0xff]  ;;  %v3439_v16 = vld [vmem:[%s8742_s1 + $0x19b0] sm:$0xff] }
  0xaf   :  { %4244 = vmatpush1.bf16.msra.mxu1 %v4243_v26  ;;  %4102 = vmatprep.subr.bf16.mxu0 %v4101_v27  ;;  %v3383_v26 = vld [vmem:[%s8742_s1 + $0x17f0] sm:$0xff]  ;;  %v3390_v27 = vld [vmem:[%s8742_s1 + $0x1828] sm:$0xff] }
  0xb0   :  { %4246 = vmatprep.subr.bf16.mxu1 %v4245_v31  ;;  %v4119_v31 = vpack.c.bf16 %v3381_v22, %v3373_v21  ;;  %v4263_v33 = vpack.c.bf16 %v3383_v26, %v3375_v24  ;;  %v4121_v34 = vpack.c.bf16 %v3398_v28, %v3390_v27  ;;  %v3462_v21 = vld [vmem:[%s8742_s1 + $0x1a68] sm:$0xff]  ;;  %v3456_v22 = vld [vmem:[%s8742_s1 + $0x1a38] sm:$0xff]  ;;  %v3453_v28 = vld [vmem:[%s8742_s1 + $0x1a20] sm:$0xff] }
  0xb1   :  { %v3464_v24 = vld [vmem:[%s8742_s1 + $0x1a78] sm:$0xff] }
  0xb2   :  { %4104 = vmatpush1.bf16.msra.mxu0 %v4103_v38  ;;  %v4265_v38 = vpack.c.bf16 %v3400_v30, %v3392_v29  ;;  %v3461_v29 = vld [vmem:[%s8742_s1 + $0x1a60] sm:$0xff]  ;;  %v3455_v30 = vld [vmem:[%s8742_s1 + $0x1a30] sm:$0xff] }
  0xb3   :  { %4248 = vmatpush1.bf16.msra.mxu1 %v4247_v40  ;;  %4106 = vmatprep.subr.bf16.mxu0 %v4105_v42  ;;  %v3399_v40 = vld [vmem:[%s8742_s1 + $0x1870] sm:$0xff]  ;;  %v3406_v42 = vld [vmem:[%s8742_s1 + $0x18a8] sm:$0xff] }
  0xb4   :  { %4250 = vmatprep.subr.bf16.mxu1 %v4249_v46  ;;  %v4123_v46 = vpack.c.bf16 %v3397_v36, %v3389_v35  ;;  %v4267_v47 = vpack.c.bf16 %v3399_v40, %v3391_v37  ;;  %v4125_v48 = vpack.c.bf16 %v3414_v43, %v3406_v42  ;;  %v3478_v35 = vld [vmem:[%s8742_s1 + $0x1ae8] sm:$0xff]  ;;  %v3472_v36 = vld [vmem:[%s8742_s1 + $0x1ab8] sm:$0xff]  ;;  %v3469_v43 = vld [vmem:[%s8742_s1 + $0x1aa0] sm:$0xff] }
  0xb5   :  { %v3480_v37 = vld [vmem:[%s8742_s1 + $0x1af8] sm:$0xff] }
  0xb6   :  { %4108 = vmatpush1.bf16.msra.mxu0 %v4107_v32  ;;  %v4269_v32 = vpack.c.bf16 %v3416_v45, %v3408_v44  ;;  %v3477_v44 = vld [vmem:[%s8742_s1 + $0x1ae0] sm:$0xff]  ;;  %v3471_v45 = vld [vmem:[%s8742_s1 + $0x1ab0] sm:$0xff] }
  0xb7   :  { %4252 = vmatpush1.bf16.msra.mxu1 %v4251_v53  ;;  %4110 = vmatprep.subr.bf16.mxu0 %v4109_v54  ;;  %v3415_v53 = vld [vmem:[%s8742_s1 + $0x18f0] sm:$0xff]  ;;  %v3422_v54 = vld [vmem:[%s8742_s1 + $0x1928] sm:$0xff] }
  0xb8   :  { %4254 = vmatprep.subr.bf16.mxu1 %v4253_v58  ;;  %v4127_v58 = vpack.c.bf16 %v3413_v50, %v3405_v49  ;;  %v4271_v59 = vpack.c.bf16 %v3415_v53, %v3407_v51  ;;  %v4129_v60 = vpack.c.bf16 %v3430_v55, %v3422_v54  ;;  %v3494_v49 = vld [vmem:[%s8742_s1 + $0x1b68] sm:$0xff]  ;;  %v3488_v50 = vld [vmem:[%s8742_s1 + $0x1b38] sm:$0xff]  ;;  %v3485_v55 = vld [vmem:[%s8742_s1 + $0x1b20] sm:$0xff] }
  0xb9   :  { %v3496_v51 = vld [vmem:[%s8742_s1 + $0x1b78] sm:$0xff] }
  0xba   :  { %4112 = vmatpush1.bf16.msra.mxu0 %v4111_v3  ;;  %v4273_v3 = vpack.c.bf16 %v3432_v57, %v3424_v56  ;;  %v3493_v56 = vld [vmem:[%s8742_s1 + $0x1b60] sm:$0xff]  ;;  %v3487_v57 = vld [vmem:[%s8742_s1 + $0x1b30] sm:$0xff] }
  0xbb   :  { %4256 = vmatpush1.bf16.msra.mxu1 %v4255_v4  ;;  %4114 = vmatprep.subr.bf16.mxu0 %v4113_v5  ;;  %v3431_v4 = vld [vmem:[%s8742_s1 + $0x1970] sm:$0xff]  ;;  %v3438_v5 = vld [vmem:[%s8742_s1 + $0x19a8] sm:$0xff] }
  0xbc   :  { %4258 = vmatprep.subr.bf16.mxu1 %v4257_v9  ;;  %v4131_v9 = vpack.c.bf16 %v3429_v1, %v3421_v63  ;;  %v4275_v10 = vpack.c.bf16 %v3431_v4, %v3423_v2  ;;  %v4133_v11 = vpack.c.bf16 %v3446_v6, %v3438_v5  ;;  %v3504_v63 = vld [vmem:[%s8742_s1 + $0x1bb8] sm:$0xff]  ;;  %v4147_v2 = vpack.c.bf16 %v3493_v56, %v3485_v55  ;;  %v3501_v5 = vld [vmem:[%s8742_s1 + $0x1ba0] sm:$0xff] }
  0xbd   :  { %v3512_v1 = vld [vmem:[%s8742_s1 + $0x1bf8] sm:$0xff]  ;;  %v3509_v6 = vld [vmem:[%s8742_s1 + $0x1be0] sm:$0xff] }
  0xbe   :  { %4116 = vmatpush1.bf16.msra.mxu0 %v4115_v17  ;;  %v4277_v17 = vpack.c.bf16 %v3448_v8, %v3440_v7  ;;  %v4293_v7 = vpack.c.bf16 %v3512_v1, %v3504_v63  ;;  %v3518_v8 = vld [vmem:[%s8742_s1 + $0x1c28] sm:$0xff] }
  0xbf   :  { %4260 = vmatpush1.bf16.msra.mxu1 %v4259_v19  ;;  %4118 = vmatprep.subr.bf16.mxu0 %v4117_v20  ;;  %v3447_v19 = vld [vmem:[%s8742_s1 + $0x19f0] sm:$0xff]  ;;  %v3454_v20 = vld [vmem:[%s8742_s1 + $0x1a28] sm:$0xff] }
  0xc0   :  { %4262 = vmatprep.subr.bf16.mxu1 %v4261_v25  ;;  %v4135_v25 = vpack.c.bf16 %v3445_v14, %v3437_v12  ;;  %v4279_v26 = vpack.c.bf16 %v3447_v19, %v3439_v16  ;;  %v4137_v27 = vpack.c.bf16 %v3462_v21, %v3454_v20  ;;  %v4151_v12 = vpack.c.bf16 %v3509_v6, %v3501_v5  ;;  %v3525_v19 = vld [vmem:[%s8742_s1 + $0x1c60] sm:$0xff]  ;;  %v3519_v20 = vld [vmem:[%s8742_s1 + $0x1c30] sm:$0xff]  ;;  %v3582_v63 = vld [vmem:[%s8742_s1 + $0x1e28] sm:$0xff] }
  0xc1   :  { %v3527_v21 = vld [vmem:[%s8742_s1 + $0x1c70] sm:$0xff]  ;;  %v3590_v1 = vld [vmem:[%s8742_s1 + $0x1e68] sm:$0xff] }
  0xc2   :  { %4120 = vmatpush1.bf16.msra.mxu0 %v4119_v31  ;;  %v4281_v31 = vpack.c.bf16 %v3464_v24, %v3456_v22  ;;  %v3534_v22 = vld [vmem:[%s8742_s1 + $0x1ca8] sm:$0xff]  ;;  %v4169_v6 = vpack.c.bf16 %v3590_v1, %v3582_v63  ;;  %v3655_v1 = vld [vmem:[%s8742_s1 + $0x2070] sm:$0xff] }
  0xc3   :  { %4264 = vmatpush1.bf16.msra.mxu1 %v4263_v33  ;;  %4122 = vmatprep.subr.bf16.mxu0 %v4121_v34  ;;  %v3463_v33 = vld [vmem:[%s8742_s1 + $0x1a70] sm:$0xff]  ;;  %v3470_v34 = vld [vmem:[%s8742_s1 + $0x1aa8] sm:$0xff] }
  0xc4   :  { %4266 = vmatprep.subr.bf16.mxu1 %v4265_v38  ;;  %v4139_v38 = vpack.c.bf16 %v3461_v29, %v3453_v28  ;;  %v4283_v40 = vpack.c.bf16 %v3463_v33, %v3455_v30  ;;  %v4141_v42 = vpack.c.bf16 %v3478_v35, %v3470_v34  ;;  %v3542_v24 = vld [vmem:[%s8742_s1 + $0x1ce8] sm:$0xff]  ;;  %v4299_v28 = vpack.c.bf16 %v3527_v21, %v3519_v20  ;;  %v3533_v30 = vld [vmem:[%s8742_s1 + $0x1ca0] sm:$0xff]  ;;  %v3535_v33 = vld [vmem:[%s8742_s1 + $0x1cb0] sm:$0xff] }
  0xc5   :  { %v4157_v29 = vpack.c.bf16 %v3542_v24, %v3534_v22  ;;  %v3543_v35 = vld [vmem:[%s8742_s1 + $0x1cf0] sm:$0xff]  ;;  %v3597_v20 = vld [vmem:[%s8742_s1 + $0x1ea0] sm:$0xff] }
  0xc6   :  { %4124 = vmatpush1.bf16.msra.mxu0 %v4123_v46  ;;  %v4285_v46 = vpack.c.bf16 %v3480_v37, %v3472_v36  ;;  %v3550_v36 = vld [vmem:[%s8742_s1 + $0x1d28] sm:$0xff]  ;;  %v3599_v21 = vld [vmem:[%s8742_s1 + $0x1eb0] sm:$0xff] }
  0xc7   :  { %4268 = vmatpush1.bf16.msra.mxu1 %v4267_v47  ;;  %4126 = vmatprep.subr.bf16.mxu0 %v4125_v48  ;;  %v3479_v47 = vld [vmem:[%s8742_s1 + $0x1af0] sm:$0xff]  ;;  %v3486_v48 = vld [vmem:[%s8742_s1 + $0x1b28] sm:$0xff] }
  0xc8   :  { %4270 = vmatprep.subr.bf16.mxu1 %v4269_v32  ;;  %v4143_v32 = vpack.c.bf16 %v3477_v44, %v3469_v43  ;;  %v4287_v53 = vpack.c.bf16 %v3479_v47, %v3471_v45  ;;  %v4145_v54 = vpack.c.bf16 %v3494_v49, %v3486_v48  ;;  %v3558_v37 = vld [vmem:[%s8742_s1 + $0x1d68] sm:$0xff]  ;;  %v4303_v43 = vpack.c.bf16 %v3543_v35, %v3535_v33  ;;  %v3549_v45 = vld [vmem:[%s8742_s1 + $0x1d20] sm:$0xff]  ;;  %v3551_v47 = vld [vmem:[%s8742_s1 + $0x1d30] sm:$0xff] }
  0xc9   :  { %v4161_v44 = vpack.c.bf16 %v3558_v37, %v3550_v36  ;;  %v3559_v49 = vld [vmem:[%s8742_s1 + $0x1d70] sm:$0xff]  ;;  %v3613_v33 = vld [vmem:[%s8742_s1 + $0x1f20] sm:$0xff] }
  0xca   :  { %4128 = vmatpush1.bf16.msra.mxu0 %v4127_v58  ;;  %v4289_v58 = vpack.c.bf16 %v3496_v51, %v3488_v50  ;;  %v3566_v50 = vld [vmem:[%s8742_s1 + $0x1da8] sm:$0xff]  ;;  %v4307_v55 = vpack.c.bf16 %v3559_v49, %v3551_v47  ;;  %v3607_v24 = vld [vmem:[%s8742_s1 + $0x1ef0] sm:$0xff]  ;;  %v3629_v47 = vld [vmem:[%s8742_s1 + $0x1fa0] sm:$0xff] }
  0xcb   :  { %4272 = vmatpush1.bf16.msra.mxu1 %v4271_v59  ;;  %4130 = vmatprep.subr.bf16.mxu0 %v4129_v60  ;;  %v3502_v59 = vld [vmem:[%s8742_s1 + $0x1ba8] sm:$0xff]  ;;  %v3615_v35 = vld [vmem:[%s8742_s1 + $0x1f30] sm:$0xff] }
  0xcc   :  { %4274 = vmatprep.subr.bf16.mxu1 %v4273_v3  ;;  %v3510_v60 = vld [vmem:[%s8742_s1 + $0x1be8] sm:$0xff]  ;;  %v3623_v37 = vld [vmem:[%s8742_s1 + $0x1f70] sm:$0xff] }
  0xcd   :  { %v4149_v4 = vpack.c.bf16 %v3510_v60, %v3502_v59  ;;  %v3574_v51 = vld [vmem:[%s8742_s1 + $0x1de8] sm:$0xff]  ;;  %v3575_v60 = vld [vmem:[%s8742_s1 + $0x1df0] sm:$0xff] }
  0xce   :  { %4132 = vmatpush1.bf16.msra.mxu0 %v4131_v9  ;;  %v3526_v9 = vld [vmem:[%s8742_s1 + $0x1c68] sm:$0xff]  ;;  %v4165_v56 = vpack.c.bf16 %v3574_v51, %v3566_v50  ;;  %v3631_v49 = vld [vmem:[%s8742_s1 + $0x1fb0] sm:$0xff] }
  0xcf   :  { %4276 = vmatpush1.bf16.msra.mxu1 %v4275_v10  ;;  %4134 = vmatprep.subr.bf16.mxu0 %v4133_v11  ;;  %v3520_v10 = vld [vmem:[%s8742_s1 + $0x1c38] sm:$0xff]  ;;  %v4153_v16 = vpack.c.bf16 %v3526_v9, %v3518_v8  ;;  %v3591_v9 = vld [vmem:[%s8742_s1 + $0x1e70] sm:$0xff] }
  0xd0   :  { %4278 = vmatprep.subr.bf16.mxu1 %v4277_v17  ;;  %v3528_v11 = vld [vmem:[%s8742_s1 + $0x1c78] sm:$0xff]  ;;  %v3517_v17 = vld [vmem:[%s8742_s1 + $0x1c20] sm:$0xff]  ;;  %v3639_v51 = vld [vmem:[%s8742_s1 + $0x1ff0] sm:$0xff] }
  0xd2   :  { %4136 = vmatpush1.bf16.msra.mxu0 %v4135_v25  ;;  %v3536_v25 = vld [vmem:[%s8742_s1 + $0x1cb8] sm:$0xff] }
  0xd3   :  { %4280 = vmatpush1.bf16.msra.mxu1 %v4279_v26  ;;  %4138 = vmatprep.subr.bf16.mxu0 %v4137_v27  ;;  %v3544_v26 = vld [vmem:[%s8742_s1 + $0x1cf8] sm:$0xff]  ;;  %v4155_v27 = vpack.c.bf16 %v3525_v19, %v3517_v17 }
  0xd4   :  { %4282 = vmatprep.subr.bf16.mxu1 %v4281_v31  ;;  %v3541_v31 = vld [vmem:[%s8742_s1 + $0x1ce0] sm:$0xff]  ;;  %v4301_v34 = vpack.c.bf16 %v3544_v26, %v3536_v25  ;;  %v3614_v25 = vld [vmem:[%s8742_s1 + $0x1f28] sm:$0xff] }
  0xd5   :  { %1788 = vmatmul.mubr.f32.vlgmr.msra.gmra.mrb[4].mxu0 %v5487_v23  ;;  %v3622_v26 = vld [vmem:[%s8742_s1 + $0x1f68] sm:$0xff] }
  0xd6   :  { %4140 = vmatpush1.bf16.msra.mxu0 %v4139_v38  ;;  %2019 = vmatmul.mubr.f32.vlgmr.msra.gmra.mrb[4].mxu1 %v5487_v23  ;;  %v3495_v23 = vld [vmem:[%s8742_s1 + $0x1b70] sm:$0xff]  ;;  %v3552_v38 = vld [vmem:[%s8742_s1 + $0x1d38] sm:$0xff] }
  0xd7   :  { %4284 = vmatpush1.bf16.msra.mxu1 %v4283_v40  ;;  %4142 = vmatprep.subr.bf16.mxu0 %v4141_v42  ;;  %v4291_v3 = vpack.c.bf16 %v3495_v23, %v3487_v57  ;;  %v3560_v40 = vld [vmem:[%s8742_s1 + $0x1d78] sm:$0xff]  ;;  %v4159_v42 = vpack.c.bf16 %v3541_v31, %v3533_v30  ;;  %v3565_v57 = vld [vmem:[%s8742_s1 + $0x1da0] sm:$0xff]  ;;  %v3567_v23 = vld [vmem:[%s8742_s1 + $0x1db0] sm:$0xff]  ;;  %v4319_v30 = vpack.c.bf16 %v3607_v24, %v3599_v21 }
  0xd8   :  { %4286 = vmatprep.subr.bf16.mxu1 %v4285_v46  ;;  %1793 = vmatprep.mubr.f32.mxu0 %v5648_v41  ;;  %v3557_v46 = vld [vmem:[%s8742_s1 + $0x1d60] sm:$0xff]  ;;  %v4305_v48 = vpack.c.bf16 %v3560_v40, %v3552_v38  ;;  %v4311_v5 = vpack.c.bf16 %v3575_v60, %v3567_v23  ;;  %v4177_v31 = vpack.c.bf16 %v3622_v26, %v3614_v25  ;;  %v3630_v38 = vld [vmem:[%s8742_s1 + $0x1fa8] sm:$0xff]  ;;  %v3647_v60 = vld [vmem:[%s8742_s1 + $0x2030] sm:$0xff] }
  0xd9   :  { %2024 = vmatprep.mubr.f32.mxu1 %v5648_v41  ;;  %1794 = vmatmul.mubr.f32.gmra.mrb[6].mxu0 %v5667_v52  ;;  %v3503_v41 = vld [vmem:[%s8742_s1 + $0x1bb0] sm:$0xff]  ;;  %v3638_v40 = vld [vmem:[%s8742_s1 + $0x1fe8] sm:$0xff]  ;;  %v3645_v23 = vld [vmem:[%s8742_s1 + $0x2020] sm:$0xff] }
  0xda   :  { %4144 = vmatpush1.bf16.msra.mxu0 %v4143_v32  ;;  %2025 = vmatmul.mubr.f32.gmra.mrb[6].mxu1 %v5667_v52  ;;  %v3511_v52 = vld [vmem:[%s8742_s1 + $0x1bf0] sm:$0xff]  ;;  %v3568_v32 = vld [vmem:[%s8742_s1 + $0x1db8] sm:$0xff]  ;;  %v3677_v21 = vld [vmem:[%s8742_s1 + $0x2120] sm:$0xff] }
  0xdb   :  { %4288 = vmatpush1.bf16.msra.mxu1 %v4287_v53  ;;  %4146 = vmatprep.subr.bf16.mxu0 %v4145_v54  ;;  %v4295_v14 = vpack.c.bf16 %v3511_v52, %v3503_v41  ;;  %v3576_v53 = vld [vmem:[%s8742_s1 + $0x1df8] sm:$0xff]  ;;  %v4163_v54 = vpack.c.bf16 %v3557_v46, %v3549_v45  ;;  %v3581_v41 = vld [vmem:[%s8742_s1 + $0x1e20] sm:$0xff]  ;;  %v3583_v52 = vld [vmem:[%s8742_s1 + $0x1e30] sm:$0xff]  ;;  %v4323_v45 = vpack.c.bf16 %v3623_v37, %v3615_v35 }
  0xdc   :  { %4290 = vmatprep.subr.bf16.mxu1 %v4289_v58  ;;  %1864 = vmatprep.mubr.f32.mxu0 %v5688_v61  ;;  %v3573_v58 = vld [vmem:[%s8742_s1 + $0x1de0] sm:$0xff]  ;;  %v4309_v59 = vpack.c.bf16 %v3576_v53, %v3568_v32  ;;  %v4315_v17 = vpack.c.bf16 %v3591_v9, %v3583_v52  ;;  %v4181_v46 = vpack.c.bf16 %v3638_v40, %v3630_v38  ;;  %v3646_v32 = vld [vmem:[%s8742_s1 + $0x2028] sm:$0xff]  ;;  %v3663_v9 = vld [vmem:[%s8742_s1 + $0x20b0] sm:$0xff] }
  0xdd   :  { %2095 = vmatprep.mubr.f32.mxu1 %v5688_v61  ;;  %v4297_v61 = vpack.c.bf16 %v3528_v11, %v3520_v10  ;;  %v3598_v10 = vld [vmem:[%s8742_s1 + $0x1ea8] sm:$0xff]  ;;  %v3661_v52 = vld [vmem:[%s8742_s1 + $0x20a0] sm:$0xff]  ;;  %v3679_v24 = vld [vmem:[%s8742_s1 + $0x2130] sm:$0xff] }
  0xde   :  { %4148 = vmatpush1.bf16.msra.mxu0 %v4147_v2  ;;  %v3584_v2 = vld [vmem:[%s8742_s1 + $0x1e38] sm:$0xff]  ;;  %v3606_v11 = vld [vmem:[%s8742_s1 + $0x1ee8] sm:$0xff]  ;;  %v3687_v26 = vld [vmem:[%s8742_s1 + $0x2170] sm:$0xff] }
  0xdf   :  { %4292 = vmatpush1.bf16.msra.mxu1 %v4291_v3  ;;  %4150 = vmatprep.subr.bf16.mxu0 %v4149_v4  ;;  %v3592_v3 = vld [vmem:[%s8742_s1 + $0x1e78] sm:$0xff]  ;;  %v4167_v4 = vpack.c.bf16 %v3573_v58, %v3565_v57  ;;  %v4173_v19 = vpack.c.bf16 %v3606_v11, %v3598_v10  ;;  %v3654_v53 = vld [vmem:[%s8742_s1 + $0x2068] sm:$0xff]  ;;  %v4327_v57 = vpack.c.bf16 %v3639_v51, %v3631_v49  ;;  %v3671_v11 = vld [vmem:[%s8742_s1 + $0x20f0] sm:$0xff] }
  0xe0   :  { %4294 = vmatprep.subr.bf16.mxu1 %v4293_v7  ;;  %v3589_v7 = vld [vmem:[%s8742_s1 + $0x1e60] sm:$0xff]  ;;  %v4313_v8 = vpack.c.bf16 %v3592_v3, %v3584_v2  ;;  %v4185_v58 = vpack.c.bf16 %v3654_v53, %v3646_v32  ;;  %v3662_v2 = vld [vmem:[%s8742_s1 + $0x20a8] sm:$0xff]  ;;  %v3695_v37 = vld [vmem:[%s8742_s1 + $0x21b0] sm:$0xff] }
  0xe1   :  { %v3670_v3 = vld [vmem:[%s8742_s1 + $0x20e8] sm:$0xff]  ;;  %v3693_v35 = vld [vmem:[%s8742_s1 + $0x21a0] sm:$0xff]  ;;  %v3703_v40 = vld [vmem:[%s8742_s1 + $0x21f0] sm:$0xff] }
  0xe2   :  { %4152 = vmatpush1.bf16.msra.mxu0 %v4151_v12  ;;  %v3600_v12 = vld [vmem:[%s8742_s1 + $0x1eb8] sm:$0xff]  ;;  %v3709_v49 = vld [vmem:[%s8742_s1 + $0x2220] sm:$0xff]  ;;  %v3711_v51 = vld [vmem:[%s8742_s1 + $0x2230] sm:$0xff] }
  0xe3   :  { %4296 = vmatpush1.bf16.msra.mxu1 %v4295_v14  ;;  %4154 = vmatprep.subr.bf16.mxu0 %v4153_v16  ;;  %v3608_v14 = vld [vmem:[%s8742_s1 + $0x1ef8] sm:$0xff]  ;;  %v4171_v16 = vpack.c.bf16 %v3589_v7, %v3581_v41  ;;  %v4331_v41 = vpack.c.bf16 %v3655_v1, %v3647_v60  ;;  %v4189_v7 = vpack.c.bf16 %v3670_v3, %v3662_v2  ;;  %v3719_v53 = vld [vmem:[%s8742_s1 + $0x2270] sm:$0xff]  ;;  %v3725_v60 = vld [vmem:[%s8742_s1 + $0x22a0] sm:$0xff] }
  0xe4   :  { %4298 = vmatprep.subr.bf16.mxu1 %v4297_v61  ;;  %v3605_v61 = vld [vmem:[%s8742_s1 + $0x1ee0] sm:$0xff]  ;;  %v4317_v22 = vpack.c.bf16 %v3608_v14, %v3600_v12  ;;  %v3678_v12 = vld [vmem:[%s8742_s1 + $0x2128] sm:$0xff]  ;;  %v3727_v1 = vld [vmem:[%s8742_s1 + $0x22b0] sm:$0xff] }
  0xe5   :  { %v3686_v14 = vld [vmem:[%s8742_s1 + $0x2168] sm:$0xff]  ;;  %v3735_v3 = vld [vmem:[%s8742_s1 + $0x22f0] sm:$0xff] }
  0xe6   :  { %4156 = vmatpush1.bf16.msra.mxu0 %v4155_v27  ;;  %v3616_v27 = vld [vmem:[%s8742_s1 + $0x1f38] sm:$0xff] }
  0xe7   :  { %4300 = vmatpush1.bf16.msra.mxu1 %v4299_v28  ;;  %4158 = vmatprep.subr.bf16.mxu0 %v4157_v29  ;;  %v3624_v28 = vld [vmem:[%s8742_s1 + $0x1f78] sm:$0xff]  ;;  %v4175_v29 = vpack.c.bf16 %v3605_v61, %v3597_v20  ;;  %v4335_v20 = vpack.c.bf16 %v3671_v11, %v3663_v9  ;;  %v4193_v61 = vpack.c.bf16 %v3686_v14, %v3678_v12  ;;  %v3741_v9 = vld [vmem:[%s8742_s1 + $0x2320] sm:$0xff]  ;;  %v3743_v11 = vld [vmem:[%s8742_s1 + $0x2330] sm:$0xff] }
  0xe8   :  { %4302 = vmatprep.subr.bf16.mxu1 %v4301_v34  ;;  %v3621_v34 = vld [vmem:[%s8742_s1 + $0x1f60] sm:$0xff]  ;;  %v4321_v36 = vpack.c.bf16 %v3624_v28, %v3616_v27  ;;  %v3694_v27 = vld [vmem:[%s8742_s1 + $0x21a8] sm:$0xff] }
  0xe9   :  { %v3702_v28 = vld [vmem:[%s8742_s1 + $0x21e8] sm:$0xff] }
  0xea   :  { %4160 = vmatpush1.bf16.msra.mxu0 %v4159_v42  ;;  %v3632_v42 = vld [vmem:[%s8742_s1 + $0x1fb8] sm:$0xff]  ;;  %v3758_v14 = vld [vmem:[%s8742_s1 + $0x23a8] sm:$0xff] }
  0xeb   :  { %4304 = vmatpush1.bf16.msra.mxu1 %v4303_v43  ;;  %4162 = vmatprep.subr.bf16.mxu0 %v4161_v44  ;;  %v3640_v43 = vld [vmem:[%s8742_s1 + $0x1ff8] sm:$0xff]  ;;  %v4179_v44 = vpack.c.bf16 %v3621_v34, %v3613_v33  ;;  %v4339_v33 = vpack.c.bf16 %v3687_v26, %v3679_v24  ;;  %v4197_v34 = vpack.c.bf16 %v3702_v28, %v3694_v27  ;;  %v3759_v24 = vld [vmem:[%s8742_s1 + $0x23b0] sm:$0xff]  ;;  %v25_v26 = vld [vmem:[%s8742_s1 + $0x8] sm:$0xff] }
  0xec   :  { %4306 = vmatprep.subr.bf16.mxu1 %v4305_v48  ;;  %v3637_v48 = vld [vmem:[%s8742_s1 + $0x1fe0] sm:$0xff]  ;;  %v4325_v50 = vpack.c.bf16 %v3640_v43, %v3632_v42  ;;  %v3710_v42 = vld [vmem:[%s8742_s1 + $0x2228] sm:$0xff]  ;;  %v27_v28 = vld [vmem:[%s8742_s1 + $0x18] sm:$0xff] }
  0xed   :  { %v3718_v43 = vld [vmem:[%s8742_s1 + $0x2268] sm:$0xff] }
  0xee   :  { %4164 = vmatpush1.bf16.msra.mxu0 %v4163_v54  ;;  %v3648_v54 = vld [vmem:[%s8742_s1 + $0x2038] sm:$0xff]  ;;  %v33_v27 = vld [vmem:[%s8742_s1 + $0x48] sm:$0xff] }
  0xef   :  { %4308 = vmatpush1.bf16.msra.mxu1 %v4307_v55  ;;  %4166 = vmatprep.subr.bf16.mxu0 %v4165_v56  ;;  %v3656_v55 = vld [vmem:[%s8742_s1 + $0x2078] sm:$0xff]  ;;  %v4183_v56 = vpack.c.bf16 %v3637_v48, %v3629_v47  ;;  %v4343_v47 = vpack.c.bf16 %v3703_v40, %v3695_v37  ;;  %v4201_v48 = vpack.c.bf16 %v3718_v43, %v3710_v42  ;;  %v41_v40 = vld [vmem:[%s8742_s1 + $0x88] sm:$0xff] }
  0xf0   :  { %4310 = vmatprep.subr.bf16.mxu1 %v4309_v59  ;;  %v3653_v59 = vld [vmem:[%s8742_s1 + $0x2060] sm:$0xff]  ;;  %v4329_v63 = vpack.c.bf16 %v3656_v55, %v3648_v54  ;;  %v3726_v54 = vld [vmem:[%s8742_s1 + $0x22a8] sm:$0xff]  ;;  %v43_v43 = vld [vmem:[%s8742_s1 + $0x98] sm:$0xff] }
  0xf1   :  { %v3734_v55 = vld [vmem:[%s8742_s1 + $0x22e8] sm:$0xff] }
  0xf2   :  { %4168 = vmatpush1.bf16.msra.mxu0 %v4167_v4  ;;  %v3664_v4 = vld [vmem:[%s8742_s1 + $0x20b8] sm:$0xff]  ;;  %v49_v42 = vld [vmem:[%s8742_s1 + $0xc8] sm:$0xff] }
  0xf3   :  { %4312 = vmatpush1.bf16.msra.mxu1 %v4311_v5  ;;  %4170 = vmatprep.subr.bf16.mxu0 %v4169_v6  ;;  %v3672_v5 = vld [vmem:[%s8742_s1 + $0x20f8] sm:$0xff]  ;;  %v4187_v6 = vpack.c.bf16 %v3653_v59, %v3645_v23  ;;  %v4347_v23 = vpack.c.bf16 %v3719_v53, %v3711_v51  ;;  %v4205_v59 = vpack.c.bf16 %v3734_v55, %v3726_v54  ;;  %v57_v53 = vld [vmem:[%s8742_s1 + $0x108] sm:$0xff] }
  0xf4   :  { %4314 = vmatprep.subr.bf16.mxu1 %v4313_v8  ;;  %v3669_v8 = vld [vmem:[%s8742_s1 + $0x20e0] sm:$0xff]  ;;  %v4333_v10 = vpack.c.bf16 %v3672_v5, %v3664_v4  ;;  %v3742_v4 = vld [vmem:[%s8742_s1 + $0x2328] sm:$0xff]  ;;  %v59_v55 = vld [vmem:[%s8742_s1 + $0x118] sm:$0xff] }
  0xf5   :  { %v3750_v5 = vld [vmem:[%s8742_s1 + $0x2368] sm:$0xff] }
  0xf6   :  { %4172 = vmatpush1.bf16.msra.mxu0 %v4171_v16  ;;  %v3680_v16 = vld [vmem:[%s8742_s1 + $0x2138] sm:$0xff]  ;;  %v65_v54 = vld [vmem:[%s8742_s1 + $0x148] sm:$0xff] }
  0xf7   :  { %4316 = vmatpush1.bf16.msra.mxu1 %v4315_v17  ;;  %4174 = vmatprep.subr.bf16.mxu0 %v4173_v19  ;;  %v3688_v17 = vld [vmem:[%s8742_s1 + $0x2178] sm:$0xff]  ;;  %v4191_v19 = vpack.c.bf16 %v3669_v8, %v3661_v52  ;;  %v4351_v52 = vpack.c.bf16 %v3735_v3, %v3727_v1  ;;  %v4209_v8 = vpack.c.bf16 %v3750_v5, %v3742_v4  ;;  %v66_v1 = vld [vmem:[%s8742_s1 + $0x150] sm:$0xff]  ;;  %v81_v3 = vld [vmem:[%s8742_s1 + $0x1c8] sm:$0xff] }
  0xf8   :  { %4318 = vmatprep.subr.bf16.mxu1 %v4317_v22  ;;  %v3685_v22 = vld [vmem:[%s8742_s1 + $0x2160] sm:$0xff]  ;;  %v4337_v25 = vpack.c.bf16 %v3688_v17, %v3680_v16  ;;  %v3766_v16 = vld [vmem:[%s8742_s1 + $0x23e8] sm:$0xff]  ;;  %v3760_v17 = vld [vmem:[%s8742_s1 + $0x23b8] sm:$0xff] }
  0xf9   :  { %v75_v4 = vld [vmem:[%s8742_s1 + $0x198] sm:$0xff] }
  0xfa   :  { %4176 = vmatpush1.bf16.msra.mxu0 %v4175_v29  ;;  %v3696_v29 = vld [vmem:[%s8742_s1 + $0x21b8] sm:$0xff] }
  0xfb   :  { %4320 = vmatpush1.bf16.msra.mxu1 %v4319_v30  ;;  %4178 = vmatprep.subr.bf16.mxu0 %v4177_v31  ;;  %v3704_v30 = vld [vmem:[%s8742_s1 + $0x21f8] sm:$0xff]  ;;  %v4195_v31 = vpack.c.bf16 %v3685_v22, %v3677_v21  ;;  %v4213_v21 = vpack.c.bf16 %v3766_v16, %v3758_v14  ;;  %v3765_v22 = vld [vmem:[%s8742_s1 + $0x23e0] sm:$0xff] }
  0xfc   :  { %4322 = vmatprep.subr.bf16.mxu1 %v4321_v36  ;;  %v3701_v36 = vld [vmem:[%s8742_s1 + $0x21e0] sm:$0xff]  ;;  %v4341_v38 = vpack.c.bf16 %v3704_v30, %v3696_v29  ;;  %v35_v29 = vld [vmem:[%s8742_s1 + $0x58] sm:$0xff] }
  0xfd   :  { %v4505_v37 = vpack.c.bf16 %v35_v29, %v27_v28  ;;  %v83_v5 = vld [vmem:[%s8742_s1 + $0x1d8] sm:$0xff] }
  0xfe   :  { %4180 = vmatpush1.bf16.msra.mxu0 %v4179_v44  ;;  %v3712_v44 = vld [vmem:[%s8742_s1 + $0x2238] sm:$0xff] }
  0xff   :  { %4324 = vmatpush1.bf16.msra.mxu1 %v4323_v45  ;;  %4182 = vmatprep.subr.bf16.mxu0 %v4181_v46  ;;  %v3720_v45 = vld [vmem:[%s8742_s1 + $0x2278] sm:$0xff]  ;;  %v4199_v46 = vpack.c.bf16 %v3701_v36, %v3693_v35  ;;  %v32_v35 = vld [vmem:[%s8742_s1 + $0x40] sm:$0xff]  ;;  %v26_v36 = vld [vmem:[%s8742_s1 + $0x10] sm:$0xff] }
 0x100   :  { %4326 = vmatprep.subr.bf16.mxu1 %v4325_v50  ;;  %v3717_v50 = vld [vmem:[%s8742_s1 + $0x2260] sm:$0xff]  ;;  %v4345_v32 = vpack.c.bf16 %v3720_v45, %v3712_v44  ;;  %v51_v44 = vld [vmem:[%s8742_s1 + $0xd8] sm:$0xff] }
 0x101   :  { %v4509_v51 = vpack.c.bf16 %v51_v44, %v43_v43  ;;  %v91_v14 = vld [vmem:[%s8742_s1 + $0x218] sm:$0xff] }
 0x102   :  { %4184 = vmatpush1.bf16.msra.mxu0 %v4183_v56  ;;  %v3728_v56 = vld [vmem:[%s8742_s1 + $0x22b8] sm:$0xff] }
 0x103   :  { %4328 = vmatpush1.bf16.msra.mxu1 %v4327_v57  ;;  %4186 = vmatprep.subr.bf16.mxu0 %v4185_v58  ;;  %v3736_v57 = vld [vmem:[%s8742_s1 + $0x22f8] sm:$0xff]  ;;  %v4203_v58 = vpack.c.bf16 %v3717_v50, %v3709_v49  ;;  %v48_v49 = vld [vmem:[%s8742_s1 + $0xc0] sm:$0xff]  ;;  %v42_v50 = vld [vmem:[%s8742_s1 + $0x90] sm:$0xff] }
 0x104   :  { %4330 = vmatprep.subr.bf16.mxu1 %v4329_v63  ;;  %v3733_v63 = vld [vmem:[%s8742_s1 + $0x22e0] sm:$0xff]  ;;  %v4349_v2 = vpack.c.bf16 %v3736_v57, %v3728_v56  ;;  %v67_v56 = vld [vmem:[%s8742_s1 + $0x158] sm:$0xff] }
 0x105   :  { %v99_v16 = vld [vmem:[%s8742_s1 + $0x258] sm:$0xff] }
 0x106   :  { %4188 = vmatpush1.bf16.msra.mxu0 %v4187_v6  ;;  %v3744_v6 = vld [vmem:[%s8742_s1 + $0x2338] sm:$0xff] }
 0x107   :  { %4332 = vmatpush1.bf16.msra.mxu1 %v4331_v41  ;;  %4190 = vmatprep.subr.bf16.mxu0 %v4189_v7  ;;  %v3752_v41 = vld [vmem:[%s8742_s1 + $0x2378] sm:$0xff]  ;;  %v4207_v7 = vpack.c.bf16 %v3733_v63, %v3725_v60  ;;  %v64_v60 = vld [vmem:[%s8742_s1 + $0x140] sm:$0xff]  ;;  %v58_v63 = vld [vmem:[%s8742_s1 + $0x110] sm:$0xff] }
 0x108   :  { %4334 = vmatprep.subr.bf16.mxu1 %v4333_v10  ;;  %v3749_v10 = vld [vmem:[%s8742_s1 + $0x2360] sm:$0xff]  ;;  %v4353_v12 = vpack.c.bf16 %v3752_v41, %v3744_v6  ;;  %v15_v6 = vld [vmem:[%s8743_s0 + $0x8] sm:$0xff] }
 0x10a   :  { %4192 = vmatpush1.bf16.msra.mxu0 %v4191_v19  ;;  %v3768_v19 = vld [vmem:[%s8742_s1 + $0x23f8] sm:$0xff] }
 0x10b   :  { %4336 = vmatpush1.bf16.msra.mxu1 %v4335_v20  ;;  %4194 = vmatprep.subr.bf16.mxu0 %v4193_v61  ;;  %v4211_v20 = vpack.c.bf16 %v3749_v10, %v3741_v9  ;;  %v80_v9 = vld [vmem:[%s8742_s1 + $0x1c0] sm:$0xff]  ;;  %v74_v10 = vld [vmem:[%s8742_s1 + $0x190] sm:$0xff] }
 0x10c   :  { %4338 = vmatprep.subr.bf16.mxu1 %v4337_v25  ;;  %v4357_v25 = vpack.c.bf16 %v3768_v19, %v3760_v17 }
 0x10e   :  { %4196 = vmatpush1.bf16.msra.mxu0 %v4195_v31 }
 0x10f   :  { %4340 = vmatpush1.bf16.msra.mxu1 %v4339_v33  ;;  %4198 = vmatprep.subr.bf16.mxu0 %v4197_v34  ;;  %v4361_v33 = vpack.c.bf16 %v33_v27, %v25_v26  ;;  %v24_v34 = vld [vmem:[%s8742_s1] sm:$0xff]  ;;  %v107_v26 = vld [vmem:[%s8742_s1 + $0x298] sm:$0xff] }
 0x110   :  { %4342 = vmatprep.subr.bf16.mxu1 %v4341_v38  ;;  %v34_v38 = vld [vmem:[%s8742_s1 + $0x50] sm:$0xff]  ;;  %v4363_v45 = vpack.c.bf16 %v32_v35, %v24_v34  ;;  %v115_v27 = vld [vmem:[%s8742_s1 + $0x2d8] sm:$0xff] }
 0x111   :  { %v106_v34 = vld [vmem:[%s8742_s1 + $0x290] sm:$0xff]  ;;  %v4525_v35 = vpack.c.bf16 %v115_v27, %v107_v26 }
 0x112   :  { %4200 = vmatpush1.bf16.msra.mxu0 %v4199_v46  ;;  %v4507_v46 = vpack.c.bf16 %v34_v38, %v26_v36  ;;  %v114_v36 = vld [vmem:[%s8742_s1 + $0x2d0] sm:$0xff]  ;;  %v129_v38 = vld [vmem:[%s8742_s1 + $0x348] sm:$0xff] }
 0x113   :  { %4344 = vmatpush1.bf16.msra.mxu1 %v4343_v47  ;;  %4202 = vmatprep.subr.bf16.mxu0 %v4201_v48  ;;  %v4365_v47 = vpack.c.bf16 %v49_v42, %v41_v40  ;;  %v40_v48 = vld [vmem:[%s8742_s1 + $0x80] sm:$0xff]  ;;  %v123_v40 = vld [vmem:[%s8742_s1 + $0x318] sm:$0xff]  ;;  %v4527_v44 = vpack.c.bf16 %v114_v36, %v106_v34  ;;  %v201_v34 = vld [vmem:[%s8742_s1 + $0x588] sm:$0xff] }
 0x114   :  { %4346 = vmatprep.subr.bf16.mxu1 %v4345_v32  ;;  %v50_v32 = vld [vmem:[%s8742_s1 + $0xd0] sm:$0xff]  ;;  %v4367_v57 = vpack.c.bf16 %v48_v49, %v40_v48  ;;  %v131_v42 = vld [vmem:[%s8742_s1 + $0x358] sm:$0xff] }
 0x115   :  { %1865 = vmatmul.mubr.f32.vlgmr.msra.gmra.mrb[4].mxu0 %v5927_v62  ;;  %v122_v48 = vld [vmem:[%s8742_s1 + $0x310] sm:$0xff]  ;;  %v4529_v49 = vpack.c.bf16 %v131_v42, %v123_v40  ;;  %v203_v36 = vld [vmem:[%s8742_s1 + $0x598] sm:$0xff] }
 0x116   :  { %4204 = vmatpush1.bf16.msra.mxu0 %v4203_v58  ;;  %2096 = vmatmul.mubr.f32.vlgmr.msra.gmra.mrb[4].mxu1 %v5927_v62  ;;  %v3751_v62 = vld [vmem:[%s8742_s1 + $0x2370] sm:$0xff]  ;;  %v4511_v58 = vpack.c.bf16 %v50_v32, %v42_v50  ;;  %v145_v32 = vld [vmem:[%s8742_s1 + $0x3c8] sm:$0xff] }
 0x117   :  { %4348 = vmatpush1.bf16.msra.mxu1 %v4347_v23  ;;  %4206 = vmatprep.subr.bf16.mxu0 %v4205_v59  ;;  %v4355_v61 = vpack.c.bf16 %v3751_v62, %v3743_v11  ;;  %v4369_v23 = vpack.c.bf16 %v65_v54, %v57_v53  ;;  %v56_v59 = vld [vmem:[%s8742_s1 + $0x100] sm:$0xff]  ;;  %v4517_v11 = vpack.c.bf16 %v83_v5, %v75_v4  ;;  %v97_v62 = vld [vmem:[%s8742_s1 + $0x248] sm:$0xff]  ;;  %v130_v50 = vld [vmem:[%s8742_s1 + $0x350] sm:$0xff] }
 0x118   :  { %4350 = vmatprep.subr.bf16.mxu1 %v4349_v2  ;;  %1870 = vmatprep.mubr.f32.mxu0 %v5955_v13  ;;  %v73_v2 = vld [vmem:[%s8742_s1 + $0x188] sm:$0xff]  ;;  %v4371_v41 = vpack.c.bf16 %v64_v60, %v56_v59  ;;  %v139_v53 = vld [vmem:[%s8742_s1 + $0x398] sm:$0xff]  ;;  %v138_v59 = vld [vmem:[%s8742_s1 + $0x390] sm:$0xff] }
 0x119   :  { %2101 = vmatprep.mubr.f32.mxu1 %v5955_v13  ;;  %1871 = vmatmul.mubr.f32.gmra.mrb[6].mxu0 %v5959_v15  ;;  %v3757_v13 = vld [vmem:[%s8742_s1 + $0x23a0] sm:$0xff]  ;;  %v147_v54 = vld [vmem:[%s8742_s1 + $0x3d8] sm:$0xff] }
 0x11a   :  { %4208 = vmatpush1.bf16.msra.mxu0 %v4207_v7  ;;  %2102 = vmatmul.mubr.f32.gmra.mrb[6].mxu1 %v5959_v15  ;;  %v3767_v15 = vld [vmem:[%s8742_s1 + $0x23f0] sm:$0xff]  ;;  %v4215_v30 = vpack.c.bf16 %v3765_v22, %v3757_v13  ;;  %v4515_v7 = vpack.c.bf16 %v66_v1, %v58_v63  ;;  %v4521_v22 = vpack.c.bf16 %v99_v16, %v91_v14  ;;  %v161_v1 = vld [vmem:[%s8742_s1 + $0x448] sm:$0xff] }
 0x11b   :  { %4352 = vmatpush1.bf16.msra.mxu1 %v4351_v52  ;;  %4210 = vmatprep.subr.bf16.mxu0 %v4209_v8  ;;  %v4359_v31 = vpack.c.bf16 %v3767_v15, %v3759_v24  ;;  %v4373_v52 = vpack.c.bf16 %v81_v3, %v73_v2  ;;  %v72_v8 = vld [vmem:[%s8742_s1 + $0x180] sm:$0xff]  ;;  %v90_v13 = vld [vmem:[%s8742_s1 + $0x210] sm:$0xff]  ;;  %v113_v15 = vld [vmem:[%s8742_s1 + $0x2c8] sm:$0xff]  ;;  %v4533_v60 = vpack.c.bf16 %v147_v54, %v139_v53 }
 0x11c   :  { %4354 = vmatprep.subr.bf16.mxu1 %v4353_v12  ;;  %1941 = vmatprep.mubr.f32.mxu0 %v5028_v39  ;;  %v89_v12 = vld [vmem:[%s8742_s1 + $0x208] sm:$0xff]  ;;  %v4375_v17 = vpack.c.bf16 %v80_v9, %v72_v8  ;;  %v98_v24 = vld [vmem:[%s8742_s1 + $0x250] sm:$0xff]  ;;  %v155_v2 = vld [vmem:[%s8742_s1 + $0x418] sm:$0xff] }
 0x11d   :  { %2172 = vmatprep.mubr.f32.mxu1 %v5028_v39  ;;  %v4523_v29 = vpack.c.bf16 %v98_v24, %v90_v13  ;;  %v146_v63 = vld [vmem:[%s8742_s1 + $0x3d0] sm:$0xff]  ;;  %v163_v3 = vld [vmem:[%s8742_s1 + $0x458] sm:$0xff]  ;;  %v185_v13 = vld [vmem:[%s8742_s1 + $0x508] sm:$0xff] }
 0x11e   :  { %4212 = vmatpush1.bf16.msra.mxu0 %v4211_v20  ;;  %v4377_v20 = vpack.c.bf16 %v97_v62, %v89_v12  ;;  %v4535_v5 = vpack.c.bf16 %v146_v63, %v138_v59  ;;  %v4537_v8 = vpack.c.bf16 %v163_v3, %v155_v2  ;;  %v162_v9 = vld [vmem:[%s8742_s1 + $0x450] sm:$0xff]  ;;  %v179_v12 = vld [vmem:[%s8742_s1 + $0x4d8] sm:$0xff]  ;;  %v233_v59 = vld [vmem:[%s8742_s1 + $0x688] sm:$0xff] }
 0x11f   :  { %4356 = vmatpush1.bf16.msra.mxu1 %v4355_v61  ;;  %4214 = vmatprep.subr.bf16.mxu0 %v4213_v21  ;;  %v88_v61 = vld [vmem:[%s8742_s1 + $0x200] sm:$0xff]  ;;  %v187_v24 = vld [vmem:[%s8742_s1 + $0x518] sm:$0xff] }
 0x120   :  { %4358 = vmatprep.subr.bf16.mxu1 %v4357_v25  ;;  %v96_v21 = vld [vmem:[%s8742_s1 + $0x240] sm:$0xff]  ;;  %v105_v25 = vld [vmem:[%s8742_s1 + $0x288] sm:$0xff]  ;;  %v235_v63 = vld [vmem:[%s8742_s1 + $0x698] sm:$0xff] }
 0x121   :  { %v4379_v28 = vpack.c.bf16 %v96_v21, %v88_v61  ;;  %v178_v21 = vld [vmem:[%s8742_s1 + $0x4d0] sm:$0xff] }
 0x122   :  { %4216 = vmatpush1.bf16.msra.mxu0 %v4215_v30  ;;  %v4381_v30 = vpack.c.bf16 %v113_v15, %v105_v25  ;;  %v195_v25 = vld [vmem:[%s8742_s1 + $0x558] sm:$0xff] }
 0x123   :  { %4360 = vmatpush1.bf16.msra.mxu1 %v4359_v31  ;;  %4362 = vmatprep.subr.bf16.mxu0 %v4361_v33  ;;  %v104_v31 = vld [vmem:[%s8742_s1 + $0x280] sm:$0xff] }
 0x124   :  { %4506 = vmatprep.subr.bf16.mxu1 %v4505_v37  ;;  %v112_v33 = vld [vmem:[%s8742_s1 + $0x2c0] sm:$0xff]  ;;  %v121_v37 = vld [vmem:[%s8742_s1 + $0x308] sm:$0xff] }
 0x125   :  { %3773 = vmatmul.mubr.msk.f32.vlgmr.msra.gmra.mrb[4].mxu0 %vm1256_vm1, %v6052_v0  ;;  %v4383_v43 = vpack.c.bf16 %v112_v33, %v104_v31  ;;  %v4545_v31 = vpack.c.bf16 %v195_v25, %v187_v24  ;;  %v194_v33 = vld [vmem:[%s8742_s1 + $0x550] sm:$0xff] }
 0x126   :  { %3775 = vmatmul.mubr.msk.f32.vlgmr.msra.gmra.mrb[4].mxu1 %vm1256_vm1, %v6052_v0  ;;  %4364 = vmatpush1.bf16.msra.mxu0 %v4363_v45  ;;  %v4513_v0 = vpack.c.bf16 %v67_v56, %v59_v55  ;;  %v4385_v45 = vpack.c.bf16 %v129_v38, %v121_v37  ;;  %v4531_v56 = vpack.c.bf16 %v130_v50, %v122_v48  ;;  %v211_v37 = vld [vmem:[%s8742_s1 + $0x5d8] sm:$0xff]  ;;  %v217_v48 = vld [vmem:[%s8742_s1 + $0x608] sm:$0xff] }
 0x127   :  { %4508 = vmatpush1.bf16.msra.mxu1 %v4507_v46  ;;  %4366 = vmatprep.subr.bf16.mxu0 %v4365_v47  ;;  %v120_v46 = vld [vmem:[%s8742_s1 + $0x300] sm:$0xff]  ;;  %v219_v50 = vld [vmem:[%s8742_s1 + $0x618] sm:$0xff] }
 0x128   :  { %4510 = vmatprep.subr.bf16.mxu1 %v4509_v51  ;;  %1947 = vmatprep.mubr.f32.mxu0 %v5028_v39  ;;  %v128_v47 = vld [vmem:[%s8742_s1 + $0x340] sm:$0xff]  ;;  %v137_v51 = vld [vmem:[%s8742_s1 + $0x388] sm:$0xff] }
 0x129   :  { %2178 = vmatprep.mubr.f32.mxu1 %v5028_v39  ;;  %3774 = vmatmul.mubr.msk.f32.gmra.mrb[6].mxu0 %vm1256_vm1, %v6083_v18  ;;  %v4387_v55 = vpack.c.bf16 %v128_v47, %v120_v46  ;;  %v4549_v46 = vpack.c.bf16 %v211_v37, %v203_v36  ;;  %v210_v47 = vld [vmem:[%s8742_s1 + $0x5d0] sm:$0xff] }
 0x12a   :  { %4368 = vmatpush1.bf16.msra.mxu0 %v4367_v57  ;;  %3776 = vmatmul.mubr.msk.f32.gmra.mrb[6].mxu1 %vm1256_vm1, %v6083_v18  ;;  %v82_v18 = vld [vmem:[%s8742_s1 + $0x1d0] sm:$0xff]  ;;  %v4389_v57 = vpack.c.bf16 %v145_v32, %v137_v51  ;;  %v227_v51 = vld [vmem:[%s8742_s1 + $0x658] sm:$0xff] }
 0x12b   :  { %4512 = vmatpush1.bf16.msra.mxu1 %v4511_v58  ;;  %4370 = vmatprep.subr.bf16.mxu0 %v4369_v23  ;;  %v4519_v19 = vpack.c.bf16 %v82_v18, %v74_v10  ;;  %v136_v58 = vld [vmem:[%s8742_s1 + $0x380] sm:$0xff]  ;;  %v169_v10 = vld [vmem:[%s8742_s1 + $0x488] sm:$0xff]  ;;  %v171_v18 = vld [vmem:[%s8742_s1 + $0x498] sm:$0xff] }
 0x12c   :  { %4514 = vmatprep.subr.bf16.mxu1 %v4513_v0  ;;  %2255 = vmatprep.mubr.f32.mxu0 %v15_v6  ;;  %v144_v23 = vld [vmem:[%s8742_s1 + $0x3c0] sm:$0xff]  ;;  %v153_v0 = vld [vmem:[%s8742_s1 + $0x408] sm:$0xff]  ;;  %v4541_v61 = vpack.c.bf16 %v179_v12, %v171_v18 }
 0x12d   :  { %2486 = vmatprep.mubr.f32.mxu1 %v15_v6  ;;  %v4391_v4 = vpack.c.bf16 %v144_v23, %v136_v58  ;;  %v4393_v6 = vpack.c.bf16 %v161_v1, %v153_v0  ;;  %v4553_v58 = vpack.c.bf16 %v227_v51, %v219_v50  ;;  %v226_v23 = vld [vmem:[%s8742_s1 + $0x650] sm:$0xff]  ;;  %v243_v0 = vld [vmem:[%s8742_s1 + $0x6d8] sm:$0xff] }
 0x12e   :  { %4372 = vmatpush1.bf16.msra.mxu0 %v4371_v41  ;;  %v152_v41 = vld [vmem:[%s8742_s1 + $0x400] sm:$0xff] }
 0x12f   :  { %4516 = vmatpush1.bf16.msra.mxu1 %v4515_v7  ;;  %4374 = vmatprep.subr.bf16.mxu0 %v4373_v52  ;;  %v160_v7 = vld [vmem:[%s8742_s1 + $0x440] sm:$0xff]  ;;  %v154_v52 = vld [vmem:[%s8742_s1 + $0x410] sm:$0xff] }
 0x130   :  { %4518 = vmatprep.subr.bf16.mxu1 %v4517_v11  ;;  %v177_v11 = vld [vmem:[%s8742_s1 + $0x4c8] sm:$0xff]  ;;  %v4395_v62 = vpack.c.bf16 %v160_v7, %v152_v41  ;;  %v4539_v14 = vpack.c.bf16 %v162_v9, %v154_v52  ;;  %v4557_v41 = vpack.c.bf16 %v243_v0, %v235_v63  ;;  %v242_v7 = vld [vmem:[%s8742_s1 + $0x6d0] sm:$0xff]  ;;  %v251_v9 = vld [vmem:[%s8742_s1 + $0x718] sm:$0xff] }
 0x131   :  { %v4397_v16 = vpack.c.bf16 %v177_v11, %v169_v10  ;;  %v249_v52 = vld [vmem:[%s8742_s1 + $0x708] sm:$0xff]  ;;  %v259_v10 = vld [vmem:[%s8742_s1 + $0x758] sm:$0xff] }
 0x132   :  { %4376 = vmatpush1.bf16.msra.mxu0 %v4375_v17  ;;  %v168_v17 = vld [vmem:[%s8742_s1 + $0x480] sm:$0xff]  ;;  %v20_v63 = vld [vmem:[%s8743_s0 + $0x58] sm:$0xff] }
 0x133   :  { %4520 = vmatpush1.bf16.msra.mxu1 %v4519_v19  ;;  %4378 = vmatprep.subr.bf16.mxu0 %v4377_v20  ;;  %v176_v19 = vld [vmem:[%s8742_s1 + $0x4c0] sm:$0xff]  ;;  %v170_v20 = vld [vmem:[%s8742_s1 + $0x490] sm:$0xff] }
 0x134   :  { %4522 = vmatprep.subr.bf16.mxu1 %v4521_v22  ;;  %v193_v22 = vld [vmem:[%s8742_s1 + $0x548] sm:$0xff]  ;;  %v4399_v15 = vpack.c.bf16 %v176_v19, %v168_v17  ;;  %v4543_v26 = vpack.c.bf16 %v178_v21, %v170_v20  ;;  %v4561_v17 = vpack.c.bf16 %v259_v10, %v251_v9  ;;  %v258_v19 = vld [vmem:[%s8742_s1 + $0x750] sm:$0xff]  ;;  %v267_v21 = vld [vmem:[%s8742_s1 + $0x798] sm:$0xff] }
 0x135   :  { %v4401_v27 = vpack.c.bf16 %v193_v22, %v185_v13  ;;  %v265_v20 = vld [vmem:[%s8742_s1 + $0x788] sm:$0xff]  ;;  %v275_v13 = vld [vmem:[%s8742_s1 + $0x7d8] sm:$0xff] }
 0x136   :  { %4380 = vmatpush1.bf16.msra.mxu0 %v4379_v28  ;;  %v184_v28 = vld [vmem:[%s8742_s1 + $0x500] sm:$0xff]  ;;  %v331_v9 = vld [vmem:[%s8742_s1 + $0x998] sm:$0xff] }
 0x137   :  { %4524 = vmatpush1.bf16.msra.mxu1 %v4523_v29  ;;  %4382 = vmatprep.subr.bf16.mxu0 %v4381_v30  ;;  %v192_v29 = vld [vmem:[%s8742_s1 + $0x540] sm:$0xff]  ;;  %v186_v30 = vld [vmem:[%s8742_s1 + $0x510] sm:$0xff]  ;;  %v339_v10 = vld [vmem:[%s8742_s1 + $0x9d8] sm:$0xff] }
 0x138   :  { %4526 = vmatprep.subr.bf16.mxu1 %v4525_v35  ;;  %v209_v35 = vld [vmem:[%s8742_s1 + $0x5c8] sm:$0xff]  ;;  %v4403_v38 = vpack.c.bf16 %v192_v29, %v184_v28  ;;  %v4547_v40 = vpack.c.bf16 %v194_v33, %v186_v30  ;;  %v4565_v28 = vpack.c.bf16 %v275_v13, %v267_v21  ;;  %v274_v29 = vld [vmem:[%s8742_s1 + $0x7d0] sm:$0xff]  ;;  %v283_v33 = vld [vmem:[%s8742_s1 + $0x818] sm:$0xff] }
 0x139   :  { %v4405_v42 = vpack.c.bf16 %v209_v35, %v201_v34  ;;  %v281_v30 = vld [vmem:[%s8742_s1 + $0x808] sm:$0xff]  ;;  %v291_v34 = vld [vmem:[%s8742_s1 + $0x858] sm:$0xff] }
 0x13a   :  { %4384 = vmatpush1.bf16.msra.mxu0 %v4383_v43  ;;  %v200_v43 = vld [vmem:[%s8742_s1 + $0x580] sm:$0xff]  ;;  %v353_v21 = vld [vmem:[%s8742_s1 + $0xa48] sm:$0xff]  ;;  %v347_v13 = vld [vmem:[%s8742_s1 + $0xa18] sm:$0xff] }
 0x13b   :  { %4528 = vmatpush1.bf16.msra.mxu1 %v4527_v44  ;;  %4386 = vmatprep.subr.bf16.mxu0 %v4385_v45  ;;  %v208_v44 = vld [vmem:[%s8742_s1 + $0x5c0] sm:$0xff]  ;;  %v202_v45 = vld [vmem:[%s8742_s1 + $0x590] sm:$0xff] }
 0x13c   :  { %4530 = vmatprep.subr.bf16.mxu1 %v4529_v49  ;;  %v225_v49 = vld [vmem:[%s8742_s1 + $0x648] sm:$0xff]  ;;  %v4407_v32 = vpack.c.bf16 %v208_v44, %v200_v43  ;;  %v4551_v53 = vpack.c.bf16 %v210_v47, %v202_v45  ;;  %v4569_v43 = vpack.c.bf16 %v291_v34, %v283_v33  ;;  %v290_v44 = vld [vmem:[%s8742_s1 + $0x850] sm:$0xff]  ;;  %v299_v47 = vld [vmem:[%s8742_s1 + $0x898] sm:$0xff] }
 0x13d   :  { %v4409_v54 = vpack.c.bf16 %v225_v49, %v217_v48  ;;  %v297_v45 = vld [vmem:[%s8742_s1 + $0x888] sm:$0xff]  ;;  %v307_v48 = vld [vmem:[%s8742_s1 + $0x8d8] sm:$0xff]  ;;  %v14_v49 = vld [vmem:[%s8743_s0] sm:$0xff] }
 0x13e   :  { %4388 = vmatpush1.bf16.msra.mxu0 %v4387_v55  ;;  %v216_v55 = vld [vmem:[%s8742_s1 + $0x600] sm:$0xff]  ;;  %v369_v33 = vld [vmem:[%s8742_s1 + $0xac8] sm:$0xff]  ;;  %v363_v34 = vld [vmem:[%s8742_s1 + $0xa98] sm:$0xff] }
 0x13f   :  { %4532 = vmatpush1.bf16.msra.mxu1 %v4531_v56  ;;  %4390 = vmatprep.subr.bf16.mxu0 %v4389_v57  ;;  %v224_v56 = vld [vmem:[%s8742_s1 + $0x640] sm:$0xff]  ;;  %v218_v57 = vld [vmem:[%s8742_s1 + $0x610] sm:$0xff] }
 0x140   :  { %4534 = vmatprep.subr.bf16.mxu1 %v4533_v60  ;;  %v241_v60 = vld [vmem:[%s8742_s1 + $0x6c8] sm:$0xff]  ;;  %v4411_v1 = vpack.c.bf16 %v224_v56, %v216_v55  ;;  %v4555_v2 = vpack.c.bf16 %v226_v23, %v218_v57  ;;  %v298_v55 = vld [vmem:[%s8742_s1 + $0x890] sm:$0xff]  ;;  %v4573_v56 = vpack.c.bf16 %v307_v48, %v299_v47  ;;  %v379_v48 = vld [vmem:[%s8742_s1 + $0xb18] sm:$0xff] }
 0x141   :  { %v4413_v3 = vpack.c.bf16 %v241_v60, %v233_v59  ;;  %v306_v57 = vld [vmem:[%s8742_s1 + $0x8d0] sm:$0xff]  ;;  %v321_v23 = vld [vmem:[%s8742_s1 + $0x948] sm:$0xff]  ;;  %v315_v59 = vld [vmem:[%s8742_s1 + $0x918] sm:$0xff] }
 0x142   :  { %4392 = vmatpush1.bf16.msra.mxu0 %v4391_v4  ;;  %v232_v4 = vld [vmem:[%s8742_s1 + $0x680] sm:$0xff]  ;;  %v323_v60 = vld [vmem:[%s8742_s1 + $0x958] sm:$0xff]  ;;  %v385_v47 = vld [vmem:[%s8742_s1 + $0xb48] sm:$0xff] }
 0x143   :  { %4536 = vmatpush1.bf16.msra.mxu1 %v4535_v5  ;;  %4394 = vmatprep.subr.bf16.mxu0 %v4393_v6  ;;  %v240_v5 = vld [vmem:[%s8742_s1 + $0x6c0] sm:$0xff]  ;;  %v234_v6 = vld [vmem:[%s8742_s1 + $0x690] sm:$0xff] }
 0x144   :  { %4538 = vmatprep.subr.bf16.mxu1 %v4537_v8  ;;  %v257_v8 = vld [vmem:[%s8742_s1 + $0x748] sm:$0xff]  ;;  %v4415_v11 = vpack.c.bf16 %v240_v5, %v232_v4  ;;  %v4559_v18 = vpack.c.bf16 %v242_v7, %v234_v6  ;;  %v312_v4 = vld [vmem:[%s8742_s1 + $0x900] sm:$0xff]  ;;  %v314_v6 = vld [vmem:[%s8742_s1 + $0x910] sm:$0xff] }
 0x145   :  { %v4417_v12 = vpack.c.bf16 %v257_v8, %v249_v52  ;;  %v320_v5 = vld [vmem:[%s8742_s1 + $0x940] sm:$0xff]  ;;  %v322_v7 = vld [vmem:[%s8742_s1 + $0x950] sm:$0xff]  ;;  %v329_v52 = vld [vmem:[%s8742_s1 + $0x988] sm:$0xff] }
 0x146   :  { %4396 = vmatpush1.bf16.msra.mxu0 %v4395_v62  ;;  %v248_v62 = vld [vmem:[%s8742_s1 + $0x700] sm:$0xff]  ;;  %v337_v8 = vld [vmem:[%s8742_s1 + $0x9c8] sm:$0xff] }
 0x147   :  { %4540 = vmatpush1.bf16.msra.mxu1 %v4539_v14  ;;  %4398 = vmatprep.subr.bf16.mxu0 %v4397_v16  ;;  %v256_v14 = vld [vmem:[%s8742_s1 + $0x740] sm:$0xff]  ;;  %v250_v16 = vld [vmem:[%s8742_s1 + $0x710] sm:$0xff] }
 0x148   :  { %4542 = vmatprep.subr.bf16.mxu1 %v4541_v61  ;;  %v273_v61 = vld [vmem:[%s8742_s1 + $0x7c8] sm:$0xff]  ;;  %v4419_v22 = vpack.c.bf16 %v256_v14, %v248_v62  ;;  %v4563_v24 = vpack.c.bf16 %v258_v19, %v250_v16  ;;  %v4437_v62 = vpack.c.bf16 %v337_v8, %v329_v52  ;;  %v328_v14 = vld [vmem:[%s8742_s1 + $0x980] sm:$0xff]  ;;  %v4581_v19 = vpack.c.bf16 %v339_v10, %v331_v9  ;;  %v411_v52 = vld [vmem:[%s8742_s1 + $0xc18] sm:$0xff] }
 0x149   :  { %v4421_v25 = vpack.c.bf16 %v273_v61, %v265_v20  ;;  %v336_v16 = vld [vmem:[%s8742_s1 + $0x9c0] sm:$0xff]  ;;  %v338_v20 = vld [vmem:[%s8742_s1 + $0x9d0] sm:$0xff]  ;;  %v345_v61 = vld [vmem:[%s8742_s1 + $0xa08] sm:$0xff] }
 0x14a   :  { %4400 = vmatpush1.bf16.msra.mxu0 %v4399_v15  ;;  %v264_v15 = vld [vmem:[%s8742_s1 + $0x780] sm:$0xff]  ;;  %v419_v8 = vld [vmem:[%s8742_s1 + $0xc58] sm:$0xff] }
 0x14b   :  { %4544 = vmatpush1.bf16.msra.mxu1 %v4543_v26  ;;  %4402 = vmatprep.subr.bf16.mxu0 %v4401_v27  ;;  %v272_v26 = vld [vmem:[%s8742_s1 + $0x7c0] sm:$0xff]  ;;  %v266_v27 = vld [vmem:[%s8742_s1 + $0x790] sm:$0xff] }
 0x14c   :  { %4546 = vmatprep.subr.bf16.mxu1 %v4545_v31  ;;  %v289_v31 = vld [vmem:[%s8742_s1 + $0x848] sm:$0xff]  ;;  %v4423_v35 = vpack.c.bf16 %v272_v26, %v264_v15  ;;  %v4567_v36 = vpack.c.bf16 %v274_v29, %v266_v27  ;;  %v4441_v15 = vpack.c.bf16 %v353_v21, %v345_v61  ;;  %v344_v26 = vld [vmem:[%s8742_s1 + $0xa00] sm:$0xff]  ;;  %v435_v61 = vld [vmem:[%s8742_s1 + $0xcd8] sm:$0xff] }
 0x14d   :  { %v4425_v37 = vpack.c.bf16 %v289_v31, %v281_v30  ;;  %v352_v27 = vld [vmem:[%s8742_s1 + $0xa40] sm:$0xff]  ;;  %v354_v30 = vld [vmem:[%s8742_s1 + $0xa50] sm:$0xff]  ;;  %v361_v31 = vld [vmem:[%s8742_s1 + $0xa88] sm:$0xff] }
 0x14e   :  { %4404 = vmatpush1.bf16.msra.mxu0 %v4403_v38  ;;  %v280_v38 = vld [vmem:[%s8742_s1 + $0x800] sm:$0xff] }
 0x14f   :  { %4548 = vmatpush1.bf16.msra.mxu1 %v4547_v40  ;;  %4406 = vmatprep.subr.bf16.mxu0 %v4405_v42  ;;  %v288_v40 = vld [vmem:[%s8742_s1 + $0x840] sm:$0xff]  ;;  %v282_v42 = vld [vmem:[%s8742_s1 + $0x810] sm:$0xff] }
 0x150   :  { %4550 = vmatprep.subr.bf16.mxu1 %v4549_v46  ;;  %v305_v46 = vld [vmem:[%s8742_s1 + $0x8c8] sm:$0xff]  ;;  %v4427_v50 = vpack.c.bf16 %v288_v40, %v280_v38  ;;  %v4571_v51 = vpack.c.bf16 %v290_v44, %v282_v42  ;;  %v4445_v38 = vpack.c.bf16 %v369_v33, %v361_v31  ;;  %v360_v40 = vld [vmem:[%s8742_s1 + $0xa80] sm:$0xff]  ;;  %v451_v31 = vld [vmem:[%s8742_s1 + $0xd58] sm:$0xff] }
 0x151   :  { %v368_v42 = vld [vmem:[%s8742_s1 + $0xac0] sm:$0xff] }
 0x152   :  { %4408 = vmatpush1.bf16.msra.mxu0 %v4407_v32  ;;  %v4429_v32 = vpack.c.bf16 %v305_v46, %v297_v45  ;;  %v370_v45 = vld [vmem:[%s8742_s1 + $0xad0] sm:$0xff]  ;;  %v377_v46 = vld [vmem:[%s8742_s1 + $0xb08] sm:$0xff] }
 0x153   :  { %4552 = vmatpush1.bf16.msra.mxu1 %v4551_v53  ;;  %4410 = vmatprep.subr.bf16.mxu0 %v4409_v54  ;;  %v296_v53 = vld [vmem:[%s8742_s1 + $0x880] sm:$0xff] }
 0x154   :  { %4554 = vmatprep.subr.bf16.mxu1 %v4553_v58  ;;  %v304_v54 = vld [vmem:[%s8742_s1 + $0x8c0] sm:$0xff]  ;;  %v313_v58 = vld [vmem:[%s8742_s1 + $0x908] sm:$0xff] }
 0x155   :  { %v4431_v0 = vpack.c.bf16 %v304_v54, %v296_v53  ;;  %v376_v53 = vld [vmem:[%s8742_s1 + $0xb00] sm:$0xff] }
 0x156   :  { %4412 = vmatpush1.bf16.msra.mxu0 %v4411_v1  ;;  %v19_v1 = vld [vmem:[%s8743_s0 + $0x50] sm:$0xff]  ;;  %v384_v54 = vld [vmem:[%s8742_s1 + $0xb40] sm:$0xff] }
 0x157   :  { %4556 = vmatpush1.bf16.msra.mxu1 %v4555_v2  ;;  %4414 = vmatprep.subr.bf16.mxu0 %v4413_v3  ;;  %v4575_v2 = vpack.c.bf16 %v306_v57, %v298_v55  ;;  %v4433_v3 = vpack.c.bf16 %v321_v23, %v313_v58  ;;  %v378_v55 = vld [vmem:[%s8742_s1 + $0xb10] sm:$0xff]  ;;  %v393_v58 = vld [vmem:[%s8742_s1 + $0xb88] sm:$0xff] }
 0x158   :  { %4558 = vmatprep.subr.bf16.mxu1 %v4557_v41  ;;  %v4577_v41 = vpack.c.bf16 %v323_v60, %v315_v59  ;;  %v386_v57 = vld [vmem:[%s8742_s1 + $0xb50] sm:$0xff]  ;;  %v401_v23 = vld [vmem:[%s8742_s1 + $0xbc8] sm:$0xff]  ;;  %v395_v59 = vld [vmem:[%s8742_s1 + $0xb98] sm:$0xff] }
 0x159   :  { %v403_v60 = vld [vmem:[%s8742_s1 + $0xbd8] sm:$0xff] }
 0x15a   :  { %4416 = vmatpush1.bf16.msra.mxu0 %v4415_v11  ;;  %v17_v11 = vld [vmem:[%s8743_s0 + $0x18] sm:$0xff] }
 0x15b   :  { %4560 = vmatpush1.bf16.msra.mxu1 %v4559_v18  ;;  %4418 = vmatprep.subr.bf16.mxu0 %v4417_v12  ;;  %v4435_v18 = vpack.c.bf16 %v320_v5, %v312_v4  ;;  %v4579_v12 = vpack.c.bf16 %v322_v7, %v314_v6  ;;  %v394_v4 = vld [vmem:[%s8742_s1 + $0xb90] sm:$0xff]  ;;  %v4597_v5 = vpack.c.bf16 %v403_v60, %v395_v59  ;;  %v417_v7 = vld [vmem:[%s8742_s1 + $0xc48] sm:$0xff] }
 0x15c   :  { %4562 = vmatprep.subr.bf16.mxu1 %v4561_v17  ;;  %v330_v17 = vld [vmem:[%s8742_s1 + $0x990] sm:$0xff] }
 0x15d   :  { %v402_v6 = vld [vmem:[%s8742_s1 + $0xbd0] sm:$0xff] }
 0x15e   :  { %4420 = vmatpush1.bf16.msra.mxu0 %v4419_v22  ;;  %v355_v22 = vld [vmem:[%s8742_s1 + $0xa58] sm:$0xff]  ;;  %v4599_v10 = vpack.c.bf16 %v402_v6, %v394_v4  ;;  %v489_v4 = vld [vmem:[%s8742_s1 + $0xe88] sm:$0xff] }
 0x15f   :  { %4564 = vmatpush1.bf16.msra.mxu1 %v4563_v24  ;;  %4422 = vmatprep.subr.bf16.mxu0 %v4421_v25  ;;  %v4439_v24 = vpack.c.bf16 %v336_v16, %v328_v14  ;;  %v4583_v25 = vpack.c.bf16 %v338_v20, %v330_v17  ;;  %v4585_v29 = vpack.c.bf16 %v355_v22, %v347_v13  ;;  %v418_v16 = vld [vmem:[%s8742_s1 + $0xc50] sm:$0xff]  ;;  %v425_v17 = vld [vmem:[%s8742_s1 + $0xc88] sm:$0xff]  ;;  %v427_v20 = vld [vmem:[%s8742_s1 + $0xc98] sm:$0xff] }
 0x160   :  { %4566 = vmatprep.subr.bf16.mxu1 %v4565_v28  ;;  %v346_v28 = vld [vmem:[%s8742_s1 + $0xa10] sm:$0xff]  ;;  %v4601_v14 = vpack.c.bf16 %v419_v8, %v411_v52  ;;  %v491_v6 = vld [vmem:[%s8742_s1 + $0xe98] sm:$0xff] }
 0x162   :  { %4424 = vmatpush1.bf16.msra.mxu0 %v4423_v35  ;;  %v371_v35 = vld [vmem:[%s8742_s1 + $0xad8] sm:$0xff] }
 0x163   :  { %4568 = vmatpush1.bf16.msra.mxu1 %v4567_v36  ;;  %4426 = vmatprep.subr.bf16.mxu0 %v4425_v37  ;;  %v4443_v36 = vpack.c.bf16 %v352_v27, %v344_v26  ;;  %v4587_v37 = vpack.c.bf16 %v354_v30, %v346_v28  ;;  %v4589_v44 = vpack.c.bf16 %v371_v35, %v363_v34  ;;  %v434_v27 = vld [vmem:[%s8742_s1 + $0xcd0] sm:$0xff]  ;;  %v441_v28 = vld [vmem:[%s8742_s1 + $0xd08] sm:$0xff]  ;;  %v443_v30 = vld [vmem:[%s8742_s1 + $0xd18] sm:$0xff] }
 0x164   :  { %4570 = vmatprep.subr.bf16.mxu1 %v4569_v43  ;;  %v362_v43 = vld [vmem:[%s8742_s1 + $0xa90] sm:$0xff]  ;;  %v4605_v26 = vpack.c.bf16 %v435_v61, %v427_v20 }
 0x165   :  { %2256 = vmatmul.mubr.f32.vlgmr.msra.gmra.mrb[0].mxu0 %v14_v49 }
 0x166   :  { %4428 = vmatpush1.bf16.msra.mxu0 %v4427_v50  ;;  %2487 = vmatmul.mubr.f32.vlgmr.msra.gmra.mrb[0].mxu1 %v14_v49  ;;  %v387_v49 = vld [vmem:[%s8742_s1 + $0xb58] sm:$0xff]  ;;  %v4447_v50 = vpack.c.bf16 %v368_v42, %v360_v40  ;;  %v4609_v40 = vpack.c.bf16 %v451_v31, %v443_v30  ;;  %v450_v42 = vld [vmem:[%s8742_s1 + $0xd50] sm:$0xff] }
 0x167   :  { %4572 = vmatpush1.bf16.msra.mxu1 %v4571_v51  ;;  %4430 = vmatprep.subr.bf16.mxu0 %v4429_v32  ;;  %v4591_v51 = vpack.c.bf16 %v370_v45, %v362_v43  ;;  %v4449_v32 = vpack.c.bf16 %v385_v47, %v377_v46  ;;  %v457_v43 = vld [vmem:[%s8742_s1 + $0xd88] sm:$0xff]  ;;  %v459_v45 = vld [vmem:[%s8742_s1 + $0xd98] sm:$0xff] }
 0x168   :  { %4574 = vmatprep.subr.bf16.mxu1 %v4573_v56  ;;  %2261 = vmatprep.mubr.f32.mxu0 %v20_v63  ;;  %v4593_v56 = vpack.c.bf16 %v387_v49, %v379_v48  ;;  %v467_v46 = vld [vmem:[%s8742_s1 + $0xdd8] sm:$0xff] }
 0x169   :  { %2492 = vmatprep.mubr.f32.mxu1 %v20_v63  ;;  %2262 = vmatmul.mubr.f32.gmra.mrb[2].mxu0 %v19_v1  ;;  %v4451_v63 = vpack.c.bf16 %v384_v54, %v376_v53  ;;  %v4613_v53 = vpack.c.bf16 %v467_v46, %v459_v45  ;;  %v466_v54 = vld [vmem:[%s8742_s1 + $0xdd0] sm:$0xff] }
 0x16a   :  { %4432 = vmatpush1.bf16.msra.mxu0 %v4431_v0  ;;  %2493 = vmatmul.mubr.f32.gmra.mrb[2].mxu1 %v19_v1  ;;  %v4595_v0 = vpack.c.bf16 %v386_v57, %v378_v55  ;;  %v4453_v1 = vpack.c.bf16 %v401_v23, %v393_v58  ;;  %v473_v55 = vld [vmem:[%s8742_s1 + $0xe08] sm:$0xff]  ;;  %v475_v57 = vld [vmem:[%s8742_s1 + $0xe18] sm:$0xff] }
 0x16b   :  { %4576 = vmatpush1.bf16.msra.mxu1 %v4575_v2  ;;  %4434 = vmatprep.subr.bf16.mxu0 %v4433_v3  ;;  %v392_v2 = vld [vmem:[%s8742_s1 + $0xb80] sm:$0xff]  ;;  %v483_v58 = vld [vmem:[%s8742_s1 + $0xe58] sm:$0xff] }
 0x16c   :  { %4578 = vmatprep.subr.bf16.mxu1 %v4577_v41  ;;  %2332 = vmatprep.mubr.f32.mxu0 %v17_v11  ;;  %v400_v3 = vld [vmem:[%s8742_s1 + $0xbc0] sm:$0xff]  ;;  %v409_v41 = vld [vmem:[%s8742_s1 + $0xc08] sm:$0xff] }
 0x16d   :  { %2563 = vmatprep.mubr.f32.mxu1 %v17_v11  ;;  %v4455_v9 = vpack.c.bf16 %v400_v3, %v392_v2  ;;  %v4457_v11 = vpack.c.bf16 %v417_v7, %v409_v41  ;;  %v4617_v2 = vpack.c.bf16 %v483_v58, %v475_v57  ;;  %v482_v3 = vld [vmem:[%s8742_s1 + $0xe50] sm:$0xff]  ;;  %v499_v41 = vld [vmem:[%s8742_s1 + $0xed8] sm:$0xff] }
 0x16e   :  { %4436 = vmatpush1.bf16.msra.mxu0 %v4435_v18  ;;  %v408_v18 = vld [vmem:[%s8742_s1 + $0xc00] sm:$0xff] }
 0x16f   :  { %4580 = vmatpush1.bf16.msra.mxu1 %v4579_v12  ;;  %4438 = vmatprep.subr.bf16.mxu0 %v4437_v62  ;;  %v416_v12 = vld [vmem:[%s8742_s1 + $0xc40] sm:$0xff]  ;;  %v410_v62 = vld [vmem:[%s8742_s1 + $0xc10] sm:$0xff] }
 0x170   :  { %4582 = vmatprep.subr.bf16.mxu1 %v4581_v19  ;;  %v433_v19 = vld [vmem:[%s8742_s1 + $0xcc8] sm:$0xff]  ;;  %v4459_v21 = vpack.c.bf16 %v416_v12, %v408_v18  ;;  %v4603_v13 = vpack.c.bf16 %v418_v16, %v410_v62  ;;  %v4621_v18 = vpack.c.bf16 %v499_v41, %v491_v6  ;;  %v498_v12 = vld [vmem:[%s8742_s1 + $0xed0] sm:$0xff]  ;;  %v507_v16 = vld [vmem:[%s8742_s1 + $0xf18] sm:$0xff] }
 0x171   :  { %v4461_v22 = vpack.c.bf16 %v433_v19, %v425_v17  ;;  %v505_v62 = vld [vmem:[%s8742_s1 + $0xf08] sm:$0xff]  ;;  %v515_v17 = vld [vmem:[%s8742_s1 + $0xf58] sm:$0xff] }
 0x172   :  { %4440 = vmatpush1.bf16.msra.mxu0 %v4439_v24  ;;  %v424_v24 = vld [vmem:[%s8742_s1 + $0xc80] sm:$0xff]  ;;  %v22_v6 = vld [vmem:[%s8743_s0 + $0x68] sm:$0xff] }
 0x173   :  { %4584 = vmatpush1.bf16.msra.mxu1 %v4583_v25  ;;  %4442 = vmatprep.subr.bf16.mxu0 %v4441_v15  ;;  %v432_v25 = vld [vmem:[%s8742_s1 + $0xcc0] sm:$0xff]  ;;  %v426_v15 = vld [vmem:[%s8742_s1 + $0xc90] sm:$0xff] }
 0x174   :  { %4586 = vmatprep.subr.bf16.mxu1 %v4585_v29  ;;  %v449_v29 = vld [vmem:[%s8742_s1 + $0xd48] sm:$0xff]  ;;  %v4463_v33 = vpack.c.bf16 %v432_v25, %v424_v24  ;;  %v4607_v34 = vpack.c.bf16 %v434_v27, %v426_v15  ;;  %v4625_v24 = vpack.c.bf16 %v515_v17, %v507_v16  ;;  %v514_v25 = vld [vmem:[%s8742_s1 + $0xf50] sm:$0xff]  ;;  %v523_v27 = vld [vmem:[%s8742_s1 + $0xf98] sm:$0xff] }
 0x175   :  { %v4465_v35 = vpack.c.bf16 %v449_v29, %v441_v28  ;;  %v521_v15 = vld [vmem:[%s8742_s1 + $0xf88] sm:$0xff]  ;;  %v531_v28 = vld [vmem:[%s8742_s1 + $0xfd8] sm:$0xff] }
 0x176   :  { %4444 = vmatpush1.bf16.msra.mxu0 %v4443_v36  ;;  %v440_v36 = vld [vmem:[%s8742_s1 + $0xd00] sm:$0xff]  ;;  %v587_v16 = vld [vmem:[%s8742_s1 + $0x1198] sm:$0xff] }
 0x177   :  { %4588 = vmatpush1.bf16.msra.mxu1 %v4587_v37  ;;  %4446 = vmatprep.subr.bf16.mxu0 %v4445_v38  ;;  %v448_v37 = vld [vmem:[%s8742_s1 + $0xd40] sm:$0xff]  ;;  %v442_v38 = vld [vmem:[%s8742_s1 + $0xd10] sm:$0xff]  ;;  %v595_v17 = vld [vmem:[%s8742_s1 + $0x11d8] sm:$0xff] }
 0x178   :  { %4590 = vmatprep.subr.bf16.mxu1 %v4589_v44  ;;  %v465_v44 = vld [vmem:[%s8742_s1 + $0xdc8] sm:$0xff]  ;;  %v4467_v47 = vpack.c.bf16 %v448_v37, %v440_v36  ;;  %v4611_v48 = vpack.c.bf16 %v450_v42, %v442_v38  ;;  %v4629_v36 = vpack.c.bf16 %v531_v28, %v523_v27  ;;  %v530_v37 = vld [vmem:[%s8742_s1 + $0xfd0] sm:$0xff]  ;;  %v539_v42 = vld [vmem:[%s8742_s1 + $0x1018] sm:$0xff] }
 0x179   :  { %v4469_v49 = vpack.c.bf16 %v465_v44, %v457_v43  ;;  %v537_v38 = vld [vmem:[%s8742_s1 + $0x1008] sm:$0xff]  ;;  %v547_v43 = vld [vmem:[%s8742_s1 + $0x1058] sm:$0xff] }
 0x17a   :  { %4448 = vmatpush1.bf16.msra.mxu0 %v4447_v50  ;;  %v456_v50 = vld [vmem:[%s8742_s1 + $0xd80] sm:$0xff]  ;;  %v31_v27 = vld [vmem:[%s8742_s1 + $0x38] sm:$0xff] }
 0x17b   :  { %4592 = vmatpush1.bf16.msra.mxu1 %v4591_v51  ;;  %4450 = vmatprep.subr.bf16.mxu0 %v4449_v32  ;;  %v464_v51 = vld [vmem:[%s8742_s1 + $0xdc0] sm:$0xff]  ;;  %v458_v32 = vld [vmem:[%s8742_s1 + $0xd90] sm:$0xff]  ;;  %v39_v28 = vld [vmem:[%s8742_s1 + $0x78] sm:$0xff] }
 0x17c   :  { %4594 = vmatprep.subr.bf16.mxu1 %v4593_v56  ;;  %v481_v56 = vld [vmem:[%s8742_s1 + $0xe48] sm:$0xff]  ;;  %v4471_v23 = vpack.c.bf16 %v464_v51, %v456_v50  ;;  %v4615_v59 = vpack.c.bf16 %v466_v54, %v458_v32  ;;  %v4633_v50 = vpack.c.bf16 %v547_v43, %v539_v42  ;;  %v546_v51 = vld [vmem:[%s8742_s1 + $0x1050] sm:$0xff]  ;;  %v555_v54 = vld [vmem:[%s8742_s1 + $0x1098] sm:$0xff] }
 0x17d   :  { %v4473_v60 = vpack.c.bf16 %v481_v56, %v473_v55  ;;  %v553_v32 = vld [vmem:[%s8742_s1 + $0x1088] sm:$0xff]  ;;  %v563_v55 = vld [vmem:[%s8742_s1 + $0x10d8] sm:$0xff]  ;;  %v16_v56 = vld [vmem:[%s8743_s0 + $0x10] sm:$0xff] }
 0x17e   :  { %4452 = vmatpush1.bf16.msra.mxu0 %v4451_v63  ;;  %v472_v63 = vld [vmem:[%s8742_s1 + $0xe00] sm:$0xff] }
 0x17f   :  { %4596 = vmatpush1.bf16.msra.mxu1 %v4595_v0  ;;  %4454 = vmatprep.subr.bf16.mxu0 %v4453_v1  ;;  %v480_v0 = vld [vmem:[%s8742_s1 + $0xe40] sm:$0xff]  ;;  %v474_v1 = vld [vmem:[%s8742_s1 + $0xe10] sm:$0xff] }
 0x180   :  { %4598 = vmatprep.subr.bf16.mxu1 %v4597_v5  ;;  %v497_v5 = vld [vmem:[%s8742_s1 + $0xec8] sm:$0xff]  ;;  %v4475_v7 = vpack.c.bf16 %v480_v0, %v472_v63  ;;  %v4619_v52 = vpack.c.bf16 %v482_v3, %v474_v1  ;;  %v554_v63 = vld [vmem:[%s8742_s1 + $0x1090] sm:$0xff]  ;;  %v4637_v0 = vpack.c.bf16 %v563_v55, %v555_v54  ;;  %v18_v42 = vld [vmem:[%s8743_s0 + $0x20] sm:$0xff] }
 0x181   :  { %v4477_v8 = vpack.c.bf16 %v497_v5, %v489_v4  ;;  %v562_v1 = vld [vmem:[%s8742_s1 + $0x10d0] sm:$0xff]  ;;  %v577_v3 = vld [vmem:[%s8742_s1 + $0x1148] sm:$0xff]  ;;  %v571_v4 = vld [vmem:[%s8742_s1 + $0x1118] sm:$0xff] }
 0x182   :  { %4456 = vmatpush1.bf16.msra.mxu0 %v4455_v9  ;;  %v488_v9 = vld [vmem:[%s8742_s1 + $0xe80] sm:$0xff]  ;;  %v579_v5 = vld [vmem:[%s8742_s1 + $0x1158] sm:$0xff] }
 0x183   :  { %4600 = vmatpush1.bf16.msra.mxu1 %v4599_v10  ;;  %4458 = vmatprep.subr.bf16.mxu0 %v4457_v11  ;;  %v496_v10 = vld [vmem:[%s8742_s1 + $0xec0] sm:$0xff]  ;;  %v490_v11 = vld [vmem:[%s8742_s1 + $0xe90] sm:$0xff]  ;;  %v63_v55 = vld [vmem:[%s8742_s1 + $0x138] sm:$0xff] }
 0x184   :  { %4602 = vmatprep.subr.bf16.mxu1 %v4601_v14  ;;  %v513_v14 = vld [vmem:[%s8742_s1 + $0xf48] sm:$0xff]  ;;  %v4479_v19 = vpack.c.bf16 %v496_v10, %v488_v9  ;;  %v4623_v20 = vpack.c.bf16 %v498_v12, %v490_v11  ;;  %v568_v9 = vld [vmem:[%s8742_s1 + $0x1100] sm:$0xff]  ;;  %v570_v11 = vld [vmem:[%s8742_s1 + $0x1110] sm:$0xff] }
 0x185   :  { %v4481_v61 = vpack.c.bf16 %v513_v14, %v505_v62  ;;  %v576_v10 = vld [vmem:[%s8742_s1 + $0x1140] sm:$0xff]  ;;  %v578_v12 = vld [vmem:[%s8742_s1 + $0x1150] sm:$0xff]  ;;  %v585_v62 = vld [vmem:[%s8742_s1 + $0x1188] sm:$0xff] }
 0x186   :  { %4460 = vmatpush1.bf16.msra.mxu0 %v4459_v21  ;;  %v504_v21 = vld [vmem:[%s8742_s1 + $0xf00] sm:$0xff]  ;;  %v593_v14 = vld [vmem:[%s8742_s1 + $0x11c8] sm:$0xff] }
 0x187   :  { %4604 = vmatpush1.bf16.msra.mxu1 %v4603_v13  ;;  %4462 = vmatprep.subr.bf16.mxu0 %v4461_v22  ;;  %v512_v13 = vld [vmem:[%s8742_s1 + $0xf40] sm:$0xff]  ;;  %v506_v22 = vld [vmem:[%s8742_s1 + $0xf10] sm:$0xff] }
 0x188   :  { %4606 = vmatprep.subr.bf16.mxu1 %v4605_v26  ;;  %v529_v26 = vld [vmem:[%s8742_s1 + $0xfc8] sm:$0xff]  ;;  %v4483_v29 = vpack.c.bf16 %v512_v13, %v504_v21  ;;  %v4627_v30 = vpack.c.bf16 %v514_v25, %v506_v22  ;;  %v584_v21 = vld [vmem:[%s8742_s1 + $0x1180] sm:$0xff]  ;;  %v586_v22 = vld [vmem:[%s8742_s1 + $0x1190] sm:$0xff] }
 0x189   :  { %v4485_v31 = vpack.c.bf16 %v529_v26, %v521_v15  ;;  %v592_v13 = vld [vmem:[%s8742_s1 + $0x11c0] sm:$0xff]  ;;  %v594_v25 = vld [vmem:[%s8742_s1 + $0x11d0] sm:$0xff]  ;;  %v29_v15 = vld [vmem:[%s8742_s1 + $0x28] sm:$0xff] }
 0x18a   :  { %4464 = vmatpush1.bf16.msra.mxu0 %v4463_v33  ;;  %v520_v33 = vld [vmem:[%s8742_s1 + $0xf80] sm:$0xff]  ;;  %v37_v26 = vld [vmem:[%s8742_s1 + $0x68] sm:$0xff] }
 0x18b   :  { %4608 = vmatpush1.bf16.msra.mxu1 %v4607_v34  ;;  %4466 = vmatprep.subr.bf16.mxu0 %v4465_v35  ;;  %v528_v34 = vld [vmem:[%s8742_s1 + $0xfc0] sm:$0xff]  ;;  %v522_v35 = vld [vmem:[%s8742_s1 + $0xf90] sm:$0xff] }
 0x18c   :  { %4610 = vmatprep.subr.bf16.mxu1 %v4609_v40  ;;  %v545_v40 = vld [vmem:[%s8742_s1 + $0x1048] sm:$0xff]  ;;  %v4487_v44 = vpack.c.bf16 %v528_v34, %v520_v33  ;;  %v4631_v45 = vpack.c.bf16 %v530_v37, %v522_v35  ;;  %v28_v33 = vld [vmem:[%s8742_s1 + $0x20] sm:$0xff]  ;;  %v4793_v35 = vpack.c.bf16 %v39_v28, %v31_v27  ;;  %v38_v37 = vld [vmem:[%s8742_s1 + $0x70] sm:$0xff] }
 0x18d   :  { %v4489_v46 = vpack.c.bf16 %v545_v40, %v537_v38  ;;  %v36_v34 = vld [vmem:[%s8742_s1 + $0x60] sm:$0xff]  ;;  %v45_v38 = vld [vmem:[%s8742_s1 + $0xa8] sm:$0xff]  ;;  %v111_v27 = vld [vmem:[%s8742_s1 + $0x2b8] sm:$0xff] }
 0x18e   :  { %4468 = vmatpush1.bf16.msra.mxu0 %v4467_v47  ;;  %v536_v47 = vld [vmem:[%s8742_s1 + $0x1000] sm:$0xff]  ;;  %v53_v40 = vld [vmem:[%s8742_s1 + $0xe8] sm:$0xff]  ;;  %v4651_v43 = vpack.c.bf16 %v36_v34, %v28_v33  ;;  %v119_v28 = vld [vmem:[%s8742_s1 + $0x2f8] sm:$0xff] }
 0x18f   :  { %4612 = vmatpush1.bf16.msra.mxu1 %v4611_v48  ;;  %4470 = vmatprep.subr.bf16.mxu0 %v4469_v49  ;;  %v544_v48 = vld [vmem:[%s8742_s1 + $0x1040] sm:$0xff]  ;;  %v538_v49 = vld [vmem:[%s8742_s1 + $0x1010] sm:$0xff] }
 0x190   :  { %4614 = vmatprep.subr.bf16.mxu1 %v4613_v53  ;;  %v561_v53 = vld [vmem:[%s8742_s1 + $0x10c8] sm:$0xff]  ;;  %v4491_v57 = vpack.c.bf16 %v544_v48, %v536_v47  ;;  %v4635_v58 = vpack.c.bf16 %v546_v51, %v538_v49  ;;  %v44_v47 = vld [vmem:[%s8742_s1 + $0xa0] sm:$0xff]  ;;  %v46_v49 = vld [vmem:[%s8742_s1 + $0xb0] sm:$0xff] }
 0x191   :  { %v52_v48 = vld [vmem:[%s8742_s1 + $0xe0] sm:$0xff]  ;;  %v54_v51 = vld [vmem:[%s8742_s1 + $0xf0] sm:$0xff] }
 0x192   :  { %4472 = vmatpush1.bf16.msra.mxu0 %v4471_v23  ;;  %v4493_v23 = vpack.c.bf16 %v561_v53, %v553_v32  ;;  %v61_v32 = vld [vmem:[%s8742_s1 + $0x128] sm:$0xff]  ;;  %v108_v33 = vld [vmem:[%s8742_s1 + $0x2a0] sm:$0xff] }
 0x193   :  { %4616 = vmatpush1.bf16.msra.mxu1 %v4615_v59  ;;  %4474 = vmatprep.subr.bf16.mxu0 %v4473_v60  ;;  %v552_v59 = vld [vmem:[%s8742_s1 + $0x1080] sm:$0xff]  ;;  %v69_v53 = vld [vmem:[%s8742_s1 + $0x168] sm:$0xff] }
 0x194   :  { %4618 = vmatprep.subr.bf16.mxu1 %v4617_v2  ;;  %v560_v60 = vld [vmem:[%s8742_s1 + $0x10c0] sm:$0xff]  ;;  %v569_v2 = vld [vmem:[%s8742_s1 + $0x1108] sm:$0xff] }
 0x195   :  { %v4495_v41 = vpack.c.bf16 %v560_v60, %v552_v59  ;;  %v4657_v59 = vpack.c.bf16 %v69_v53, %v61_v32  ;;  %v60_v60 = vld [vmem:[%s8742_s1 + $0x120] sm:$0xff]  ;;  %v141_v32 = vld [vmem:[%s8742_s1 + $0x3a8] sm:$0xff] }
 0x196   :  { %4476 = vmatpush1.bf16.msra.mxu0 %v4475_v7  ;;  %v21_v7 = vld [vmem:[%s8743_s0 + $0x60] sm:$0xff]  ;;  %v149_v53 = vld [vmem:[%s8742_s1 + $0x3e8] sm:$0xff] }
 0x197   :  { %4620 = vmatpush1.bf16.msra.mxu1 %v4619_v52  ;;  %4478 = vmatprep.subr.bf16.mxu0 %v4477_v8  ;;  %v4639_v52 = vpack.c.bf16 %v562_v1, %v554_v63  ;;  %v4497_v8 = vpack.c.bf16 %v577_v3, %v569_v2  ;;  %v68_v63 = vld [vmem:[%s8742_s1 + $0x160] sm:$0xff]  ;;  %v70_v2 = vld [vmem:[%s8742_s1 + $0x170] sm:$0xff]  ;;  %v77_v3 = vld [vmem:[%s8742_s1 + $0x1a8] sm:$0xff] }
 0x198   :  { %4622 = vmatprep.subr.bf16.mxu1 %v4621_v18  ;;  %v4641_v18 = vpack.c.bf16 %v579_v5, %v571_v4  ;;  %v85_v4 = vld [vmem:[%s8742_s1 + $0x1e8] sm:$0xff]  ;;  %v79_v5 = vld [vmem:[%s8742_s1 + $0x1b8] sm:$0xff]  ;;  %v116_v34 = vld [vmem:[%s8742_s1 + $0x2e0] sm:$0xff] }
 0x19a   :  { %4480 = vmatpush1.bf16.msra.mxu0 %v4479_v19  ;;  %v4499_v19 = vpack.c.bf16 %v576_v10, %v568_v9  ;;  %v84_v9 = vld [vmem:[%s8742_s1 + $0x1e0] sm:$0xff]  ;;  %v78_v10 = vld [vmem:[%s8742_s1 + $0x1b0] sm:$0xff] }
 0x19b   :  { %4624 = vmatpush1.bf16.msra.mxu1 %v4623_v20  ;;  %4482 = vmatprep.subr.bf16.mxu0 %v4481_v61  ;;  %v4643_v20 = vpack.c.bf16 %v578_v12, %v570_v11  ;;  %v4501_v61 = vpack.c.bf16 %v593_v14, %v585_v62  ;;  %v93_v12 = vld [vmem:[%s8742_s1 + $0x228] sm:$0xff] }
 0x19c   :  { %4626 = vmatprep.subr.bf16.mxu1 %v4625_v24  ;;  %v4645_v24 = vpack.c.bf16 %v595_v17, %v587_v16  ;;  %v101_v62 = vld [vmem:[%s8742_s1 + $0x268] sm:$0xff]  ;;  %v95_v16 = vld [vmem:[%s8742_s1 + $0x238] sm:$0xff] }
 0x19d   :  { %v5018_v14 = vld [vmem:[%s8743_s0 + $0x8] sm:$0xff]  ;;  %v103_v17 = vld [vmem:[%s8742_s1 + $0x278] sm:$0xff] }
 0x19e   :  { %4484 = vmatpush1.bf16.msra.mxu0 %v4483_v29  ;;  %v4503_v29 = vpack.c.bf16 %v592_v13, %v584_v21  ;;  %v92_v21 = vld [vmem:[%s8742_s1 + $0x220] sm:$0xff] }
 0x19f   :  { %4628 = vmatpush1.bf16.msra.mxu1 %v4627_v30  ;;  %4486 = vmatprep.subr.bf16.mxu0 %v4485_v31  ;;  %v4647_v30 = vpack.c.bf16 %v594_v25, %v586_v22  ;;  %v4649_v31 = vpack.c.bf16 %v37_v26, %v29_v15  ;;  %v100_v13 = vld [vmem:[%s8742_s1 + $0x260] sm:$0xff]  ;;  %v94_v22 = vld [vmem:[%s8742_s1 + $0x230] sm:$0xff]  ;;  %v109_v15 = vld [vmem:[%s8742_s1 + $0x2a8] sm:$0xff] }
 0x1a0   :  { %4630 = vmatprep.subr.bf16.mxu1 %v4629_v36  ;;  %v30_v36 = vld [vmem:[%s8742_s1 + $0x30] sm:$0xff]  ;;  %v117_v26 = vld [vmem:[%s8742_s1 + $0x2e8] sm:$0xff] }
 0x1a1   :  { %v102_v25 = vld [vmem:[%s8742_s1 + $0x270] sm:$0xff] }
 0x1a2   :  { %4488 = vmatpush1.bf16.msra.mxu0 %v4487_v44  ;;  %v47_v44 = vld [vmem:[%s8742_s1 + $0xb8] sm:$0xff] }
 0x1a3   :  { %4632 = vmatpush1.bf16.msra.mxu1 %v4631_v45  ;;  %4490 = vmatprep.subr.bf16.mxu0 %v4489_v46  ;;  %v55_v45 = vld [vmem:[%s8742_s1 + $0xf8] sm:$0xff]  ;;  %v4795_v46 = vpack.c.bf16 %v38_v37, %v30_v36  ;;  %v4813_v36 = vpack.c.bf16 %v119_v28, %v111_v27  ;;  %v118_v37 = vld [vmem:[%s8742_s1 + $0x2f0] sm:$0xff] }
 0x1a4   :  { %4634 = vmatprep.subr.bf16.mxu1 %v4633_v50  ;;  %v4653_v50 = vpack.c.bf16 %v53_v40, %v45_v38  ;;  %v4797_v54 = vpack.c.bf16 %v55_v45, %v47_v44  ;;  %v125_v38 = vld [vmem:[%s8742_s1 + $0x328] sm:$0xff]  ;;  %v4671_v44 = vpack.c.bf16 %v116_v34, %v108_v33  ;;  %v198_v34 = vld [vmem:[%s8742_s1 + $0x570] sm:$0xff] }
 0x1a5   :  { %2333 = vmatmul.mubr.f32.vlgmr.msra.gmra.mrb[0].mxu0 %v16_v56  ;;  %v133_v40 = vld [vmem:[%s8742_s1 + $0x368] sm:$0xff] }
 0x1a6   :  { %4492 = vmatpush1.bf16.msra.mxu0 %v4491_v57  ;;  %2564 = vmatmul.mubr.f32.vlgmr.msra.gmra.mrb[0].mxu1 %v16_v56  ;;  %v71_v56 = vld [vmem:[%s8742_s1 + $0x178] sm:$0xff]  ;;  %v23_v57 = vld [vmem:[%s8743_s0 + $0x70] sm:$0xff] }
 0x1a7   :  { %4636 = vmatpush1.bf16.msra.mxu1 %v4635_v58  ;;  %4494 = vmatprep.subr.bf16.mxu0 %v4493_v23  ;;  %v4655_v58 = vpack.c.bf16 %v52_v48, %v44_v47  ;;  %v4799_v23 = vpack.c.bf16 %v54_v51, %v46_v49  ;;  %v4801_v1 = vpack.c.bf16 %v71_v56, %v63_v55  ;;  %v124_v47 = vld [vmem:[%s8742_s1 + $0x320] sm:$0xff]  ;;  %v126_v49 = vld [vmem:[%s8742_s1 + $0x330] sm:$0xff]  ;;  %v151_v55 = vld [vmem:[%s8742_s1 + $0x3f8] sm:$0xff] }
 0x1a8   :  { %4638 = vmatprep.subr.bf16.mxu1 %v4637_v0  ;;  %2338 = vmatprep.mubr.f32.mxu0 %v22_v6  ;;  %v62_v0 = vld [vmem:[%s8742_s1 + $0x130] sm:$0xff]  ;;  %v132_v48 = vld [vmem:[%s8742_s1 + $0x360] sm:$0xff] }
 0x1a9   :  { %2569 = vmatprep.mubr.f32.mxu1 %v22_v6  ;;  %2339 = vmatmul.mubr.f32.gmra.mrb[2].mxu0 %v21_v7  ;;  %v87_v6 = vld [vmem:[%s8742_s1 + $0x1f8] sm:$0xff]  ;;  %v134_v51 = vld [vmem:[%s8742_s1 + $0x370] sm:$0xff]  ;;  %v4675_v56 = vpack.c.bf16 %v132_v48, %v124_v47 }
 0x1aa   :  { %4496 = vmatpush1.bf16.msra.mxu0 %v4495_v41  ;;  %2570 = vmatmul.mubr.f32.gmra.mrb[2].mxu1 %v21_v7  ;;  %v4659_v41 = vpack.c.bf16 %v68_v63, %v60_v60  ;;  %v4803_v7 = vpack.c.bf16 %v70_v2, %v62_v0  ;;  %v4805_v11 = vpack.c.bf16 %v87_v6, %v79_v5  ;;  %v142_v60 = vld [vmem:[%s8742_s1 + $0x3b0] sm:$0xff]  ;;  %v165_v2 = vld [vmem:[%s8742_s1 + $0x468] sm:$0xff] }
 0x1ab   :  { %4640 = vmatpush1.bf16.msra.mxu1 %v4639_v52  ;;  %4498 = vmatprep.subr.bf16.mxu0 %v4497_v8  ;;  %v4661_v52 = vpack.c.bf16 %v85_v4, %v77_v3  ;;  %v76_v8 = vld [vmem:[%s8742_s1 + $0x1a0] sm:$0xff]  ;;  %v150_v0 = vld [vmem:[%s8742_s1 + $0x3f0] sm:$0xff]  ;;  %v159_v3 = vld [vmem:[%s8742_s1 + $0x438] sm:$0xff] }
 0x1ac   :  { %4642 = vmatprep.subr.bf16.mxu1 %v4641_v18  ;;  %2409 = vmatprep.mubr.f32.mxu0 %v5028_v39  ;;  %v86_v18 = vld [vmem:[%s8742_s1 + $0x1f0] sm:$0xff]  ;;  %v167_v4 = vld [vmem:[%s8742_s1 + $0x478] sm:$0xff]  ;;  %v4823_v6 = vpack.c.bf16 %v150_v0, %v142_v60  ;;  %v237_v60 = vld [vmem:[%s8742_s1 + $0x6a8] sm:$0xff] }
 0x1ad   :  { %2640 = vmatprep.mubr.f32.mxu1 %v5028_v39  ;;  %v214_v48 = vld [vmem:[%s8742_s1 + $0x5f0] sm:$0xff]  ;;  %v239_v0 = vld [vmem:[%s8742_s1 + $0x6b8] sm:$0xff] }
 0x1ae   :  { %4500 = vmatpush1.bf16.msra.mxu0 %v4499_v19  ;;  %v4663_v19 = vpack.c.bf16 %v84_v9, %v76_v8  ;;  %v158_v8 = vld [vmem:[%s8742_s1 + $0x430] sm:$0xff]  ;;  %v4825_v9 = vpack.c.bf16 %v167_v4, %v159_v3 }
 0x1af   :  { %4644 = vmatpush1.bf16.msra.mxu1 %v4643_v20  ;;  %4502 = vmatprep.subr.bf16.mxu0 %v4501_v61  ;;  %v4807_v20 = vpack.c.bf16 %v86_v18, %v78_v10  ;;  %v4665_v61 = vpack.c.bf16 %v101_v62, %v93_v12  ;;  %v166_v10 = vld [vmem:[%s8742_s1 + $0x470] sm:$0xff]  ;;  %v181_v18 = vld [vmem:[%s8742_s1 + $0x4e8] sm:$0xff]  ;;  %v175_v12 = vld [vmem:[%s8742_s1 + $0x4b8] sm:$0xff] }
 0x1b0   :  { %4646 = vmatprep.subr.bf16.mxu1 %v4645_v24  ;;  %v4809_v24 = vpack.c.bf16 %v103_v17, %v95_v16  ;;  %v183_v62 = vld [vmem:[%s8742_s1 + $0x4f8] sm:$0xff]  ;;  %v4827_v16 = vpack.c.bf16 %v166_v10, %v158_v8  ;;  %v253_v8 = vld [vmem:[%s8742_s1 + $0x728] sm:$0xff] }
 0x1b1   :  { %v255_v10 = vld [vmem:[%s8742_s1 + $0x738] sm:$0xff] }
 0x1b2   :  { %4504 = vmatpush1.bf16.msra.mxu0 %v4503_v29  ;;  %v4667_v29 = vpack.c.bf16 %v100_v13, %v92_v21  ;;  %v4829_v21 = vpack.c.bf16 %v183_v62, %v175_v12  ;;  %v182_v13 = vld [vmem:[%s8742_s1 + $0x4f0] sm:$0xff] }
 0x1b3   :  { %4648 = vmatpush1.bf16.msra.mxu1 %v4647_v30  ;;  %4650 = vmatprep.subr.bf16.mxu0 %v4649_v31  ;;  %v4811_v30 = vpack.c.bf16 %v102_v25, %v94_v22  ;;  %v4669_v31 = vpack.c.bf16 %v117_v26, %v109_v15  ;;  %v189_v22 = vld [vmem:[%s8742_s1 + $0x528] sm:$0xff]  ;;  %v191_v25 = vld [vmem:[%s8742_s1 + $0x538] sm:$0xff] }
 0x1b4   :  { %4794 = vmatprep.subr.bf16.mxu1 %v4793_v35  ;;  %v110_v35 = vld [vmem:[%s8742_s1 + $0x2b0] sm:$0xff]  ;;  %v199_v15 = vld [vmem:[%s8742_s1 + $0x578] sm:$0xff] }
 0x1b5   :  { %3777 = vmatmul.mubr.msk.f32.vlgmr.msra.gmra.mrb[0].mxu0 %vm1256_vm1, %v18_v42  ;;  %v4815_v45 = vpack.c.bf16 %v118_v37, %v110_v35  ;;  %v4833_v33 = vpack.c.bf16 %v199_v15, %v191_v25  ;;  %v205_v35 = vld [vmem:[%s8742_s1 + $0x5a8] sm:$0xff]  ;;  %v207_v37 = vld [vmem:[%s8742_s1 + $0x5b8] sm:$0xff] }
 0x1b6   :  { %3779 = vmatmul.mubr.msk.f32.vlgmr.msra.gmra.mrb[0].mxu1 %vm1256_vm1, %v18_v42  ;;  %4652 = vmatpush1.bf16.msra.mxu0 %v4651_v43  ;;  %v127_v42 = vld [vmem:[%s8742_s1 + $0x338] sm:$0xff] }
 0x1b7   :  { %4796 = vmatpush1.bf16.msra.mxu1 %v4795_v46  ;;  %2415 = vmatprep.mubr.f32.mxu0 %v5028_v39  ;;  %v135_v43 = vld [vmem:[%s8742_s1 + $0x378] sm:$0xff]  ;;  %v4673_v46 = vpack.c.bf16 %v133_v40, %v125_v38 }
 0x1b8   :  { %2646 = vmatprep.mubr.f32.mxu1 %v5028_v39  ;;  %4654 = vmatprep.subr.bf16.mxu0 %v4653_v50  ;;  %v4817_v50 = vpack.c.bf16 %v135_v43, %v127_v42  ;;  %v215_v38 = vld [vmem:[%s8742_s1 + $0x5f8] sm:$0xff] }
 0x1b9   :  { %3778 = vmatmul.mubr.msk.f32.gmra.mrb[2].mxu0 %vm1256_vm1, %v23_v57  ;;  %4798 = vmatprep.subr.bf16.mxu1 %v4797_v54  ;;  %v143_v54 = vld [vmem:[%s8742_s1 + $0x3b8] sm:$0xff]  ;;  %v4837_v47 = vpack.c.bf16 %v215_v38, %v207_v37 }
 0x1ba   :  { %3780 = vmatmul.mubr.msk.f32.gmra.mrb[2].mxu1 %vm1256_vm1, %v23_v57  ;;  %4656 = vmatpush1.bf16.msra.mxu0 %v4655_v58  ;;  %v4819_v57 = vpack.c.bf16 %v134_v51, %v126_v49  ;;  %v4677_v58 = vpack.c.bf16 %v149_v53, %v141_v32  ;;  %v4821_v63 = vpack.c.bf16 %v151_v55, %v143_v54  ;;  %v221_v49 = vld [vmem:[%s8742_s1 + $0x628] sm:$0xff]  ;;  %v223_v51 = vld [vmem:[%s8742_s1 + $0x638] sm:$0xff] }
 0x1bb   :  { %4800 = vmatpush1.bf16.msra.mxu1 %v4799_v23  ;;  %4658 = vmatprep.subr.bf16.mxu0 %v4657_v59  ;;  %v140_v23 = vld [vmem:[%s8742_s1 + $0x3a0] sm:$0xff]  ;;  %v231_v32 = vld [vmem:[%s8742_s1 + $0x678] sm:$0xff] }
 0x1bc   :  { %4802 = vmatprep.subr.bf16.mxu1 %v4801_v1  ;;  %2717 = vmatprep.mubr.f32.mxu0 %v5018_v14  ;;  %v148_v59 = vld [vmem:[%s8742_s1 + $0x3e0] sm:$0xff]  ;;  %v157_v1 = vld [vmem:[%s8742_s1 + $0x428] sm:$0xff] }
 0x1bd   :  { %2948 = vmatprep.mubr.f32.mxu1 %v5018_v14  ;;  %v4679_v5 = vpack.c.bf16 %v148_v59, %v140_v23  ;;  %v4841_v23 = vpack.c.bf16 %v231_v32, %v223_v51  ;;  %v230_v59 = vld [vmem:[%s8742_s1 + $0x670] sm:$0xff] }
 0x1be   :  { %4660 = vmatpush1.bf16.msra.mxu0 %v4659_v41  ;;  %v4681_v41 = vpack.c.bf16 %v165_v2, %v157_v1  ;;  %v247_v1 = vld [vmem:[%s8742_s1 + $0x6f8] sm:$0xff] }
 0x1bf   :  { %4804 = vmatpush1.bf16.msra.mxu1 %v4803_v7  ;;  %4662 = vmatprep.subr.bf16.mxu0 %v4661_v52  ;;  %v156_v7 = vld [vmem:[%s8742_s1 + $0x420] sm:$0xff] }
 0x1c0   :  { %4806 = vmatprep.subr.bf16.mxu1 %v4805_v11  ;;  %v164_v52 = vld [vmem:[%s8742_s1 + $0x460] sm:$0xff]  ;;  %v173_v11 = vld [vmem:[%s8742_s1 + $0x4a8] sm:$0xff] }
 0x1c1   :  { %v4683_v14 = vpack.c.bf16 %v164_v52, %v156_v7  ;;  %v4685_v17 = vpack.c.bf16 %v181_v18, %v173_v11  ;;  %v4845_v7 = vpack.c.bf16 %v247_v1, %v239_v0  ;;  %v246_v52 = vld [vmem:[%s8742_s1 + $0x6f0] sm:$0xff]  ;;  %v263_v11 = vld [vmem:[%s8742_s1 + $0x778] sm:$0xff] }
 0x1c2   :  { %4664 = vmatpush1.bf16.msra.mxu0 %v4663_v19  ;;  %v172_v19 = vld [vmem:[%s8742_s1 + $0x4a0] sm:$0xff] }
 0x1c3   :  { %4808 = vmatpush1.bf16.msra.mxu1 %v4807_v20  ;;  %4666 = vmatprep.subr.bf16.mxu0 %v4665_v61  ;;  %v180_v20 = vld [vmem:[%s8742_s1 + $0x4e0] sm:$0xff]  ;;  %v174_v61 = vld [vmem:[%s8742_s1 + $0x4b0] sm:$0xff] }
 0x1c4   :  { %4810 = vmatprep.subr.bf16.mxu1 %v4809_v24  ;;  %v197_v24 = vld [vmem:[%s8742_s1 + $0x568] sm:$0xff]  ;;  %v4687_v26 = vpack.c.bf16 %v180_v20, %v172_v19  ;;  %v4831_v27 = vpack.c.bf16 %v182_v13, %v174_v61  ;;  %v4849_v19 = vpack.c.bf16 %v263_v11, %v255_v10  ;;  %v262_v20 = vld [vmem:[%s8742_s1 + $0x770] sm:$0xff]  ;;  %v271_v13 = vld [vmem:[%s8742_s1 + $0x7b8] sm:$0xff] }
 0x1c5   :  { %v4689_v28 = vpack.c.bf16 %v197_v24, %v189_v22  ;;  %v269_v61 = vld [vmem:[%s8742_s1 + $0x7a8] sm:$0xff]  ;;  %v279_v22 = vld [vmem:[%s8742_s1 + $0x7f8] sm:$0xff]  ;;  %v5021_v11 = vld [vmem:[%s8743_s0 + $0x50] sm:$0xff] }
 0x1c6   :  { %4668 = vmatpush1.bf16.msra.mxu0 %v4667_v29  ;;  %v188_v29 = vld [vmem:[%s8742_s1 + $0x520] sm:$0xff]  ;;  %v343_v10 = vld [vmem:[%s8742_s1 + $0x9f8] sm:$0xff] }
 0x1c7   :  { %4812 = vmatpush1.bf16.msra.mxu1 %v4811_v30  ;;  %4670 = vmatprep.subr.bf16.mxu0 %v4669_v31  ;;  %v196_v30 = vld [vmem:[%s8742_s1 + $0x560] sm:$0xff]  ;;  %v190_v31 = vld [vmem:[%s8742_s1 + $0x530] sm:$0xff] }
 0x1c8   :  { %4814 = vmatprep.subr.bf16.mxu1 %v4813_v36  ;;  %v213_v36 = vld [vmem:[%s8742_s1 + $0x5e8] sm:$0xff]  ;;  %v4691_v40 = vpack.c.bf16 %v196_v30, %v188_v29  ;;  %v4835_v42 = vpack.c.bf16 %v198_v34, %v190_v31  ;;  %v4853_v29 = vpack.c.bf16 %v279_v22, %v271_v13  ;;  %v278_v30 = vld [vmem:[%s8742_s1 + $0x7f0] sm:$0xff]  ;;  %v287_v34 = vld [vmem:[%s8742_s1 + $0x838] sm:$0xff] }
 0x1c9   :  { %v4693_v43 = vpack.c.bf16 %v213_v36, %v205_v35  ;;  %v285_v31 = vld [vmem:[%s8742_s1 + $0x828] sm:$0xff]  ;;  %v295_v35 = vld [vmem:[%s8742_s1 + $0x878] sm:$0xff] }
 0x1ca   :  { %4672 = vmatpush1.bf16.msra.mxu0 %v4671_v44  ;;  %v204_v44 = vld [vmem:[%s8742_s1 + $0x5a0] sm:$0xff]  ;;  %v5022_v13 = vld [vmem:[%s8743_s0 + $0x18] sm:$0xff] }
 0x1cb   :  { %4816 = vmatpush1.bf16.msra.mxu1 %v4815_v45  ;;  %4674 = vmatprep.subr.bf16.mxu0 %v4673_v46  ;;  %v212_v45 = vld [vmem:[%s8742_s1 + $0x5e0] sm:$0xff]  ;;  %v206_v46 = vld [vmem:[%s8742_s1 + $0x5b0] sm:$0xff]  ;;  %v351_v22 = vld [vmem:[%s8742_s1 + $0xa38] sm:$0xff] }
 0x1cc   :  { %4818 = vmatprep.subr.bf16.mxu1 %v4817_v50  ;;  %v229_v50 = vld [vmem:[%s8742_s1 + $0x668] sm:$0xff]  ;;  %v4695_v53 = vpack.c.bf16 %v212_v45, %v204_v44  ;;  %v4839_v54 = vpack.c.bf16 %v214_v48, %v206_v46  ;;  %v4857_v44 = vpack.c.bf16 %v295_v35, %v287_v34  ;;  %v294_v45 = vld [vmem:[%s8742_s1 + $0x870] sm:$0xff]  ;;  %v303_v48 = vld [vmem:[%s8742_s1 + $0x8b8] sm:$0xff] }
 0x1cd   :  { %v4697_v55 = vpack.c.bf16 %v229_v50, %v221_v49  ;;  %v301_v46 = vld [vmem:[%s8742_s1 + $0x8a8] sm:$0xff]  ;;  %v311_v49 = vld [vmem:[%s8742_s1 + $0x8f8] sm:$0xff] }
 0x1ce   :  { %4676 = vmatpush1.bf16.msra.mxu0 %v4675_v56  ;;  %v220_v56 = vld [vmem:[%s8742_s1 + $0x620] sm:$0xff]  ;;  %v373_v34 = vld [vmem:[%s8742_s1 + $0xae8] sm:$0xff]  ;;  %v367_v35 = vld [vmem:[%s8742_s1 + $0xab8] sm:$0xff] }
 0x1cf   :  { %4820 = vmatpush1.bf16.msra.mxu1 %v4819_v57  ;;  %4678 = vmatprep.subr.bf16.mxu0 %v4677_v58  ;;  %v228_v57 = vld [vmem:[%s8742_s1 + $0x660] sm:$0xff]  ;;  %v222_v58 = vld [vmem:[%s8742_s1 + $0x630] sm:$0xff] }
 0x1d0   :  { %4822 = vmatprep.subr.bf16.mxu1 %v4821_v63  ;;  %v245_v63 = vld [vmem:[%s8742_s1 + $0x6e8] sm:$0xff]  ;;  %v4699_v2 = vpack.c.bf16 %v228_v57, %v220_v56  ;;  %v4843_v3 = vpack.c.bf16 %v230_v59, %v222_v58  ;;  %v4861_v56 = vpack.c.bf16 %v311_v49, %v303_v48  ;;  %v310_v57 = vld [vmem:[%s8742_s1 + $0x8f0] sm:$0xff]  ;;  %v5019_v59 = vld [vmem:[%s8743_s0] sm:$0xff] }
 0x1d1   :  { %v4701_v4 = vpack.c.bf16 %v245_v63, %v237_v60  ;;  %v317_v58 = vld [vmem:[%s8742_s1 + $0x928] sm:$0xff]  ;;  %v319_v60 = vld [vmem:[%s8742_s1 + $0x938] sm:$0xff] }
 0x1d2   :  { %4680 = vmatpush1.bf16.msra.mxu0 %v4679_v5  ;;  %v236_v5 = vld [vmem:[%s8742_s1 + $0x6a0] sm:$0xff]  ;;  %v327_v63 = vld [vmem:[%s8742_s1 + $0x978] sm:$0xff]  ;;  %v389_v48 = vld [vmem:[%s8742_s1 + $0xb68] sm:$0xff] }
 0x1d3   :  { %4824 = vmatpush1.bf16.msra.mxu1 %v4823_v6  ;;  %4682 = vmatprep.subr.bf16.mxu0 %v4681_v41  ;;  %v244_v6 = vld [vmem:[%s8742_s1 + $0x6e0] sm:$0xff]  ;;  %v238_v41 = vld [vmem:[%s8742_s1 + $0x6b0] sm:$0xff]  ;;  %v383_v49 = vld [vmem:[%s8742_s1 + $0xb38] sm:$0xff] }
 0x1d4   :  { %4826 = vmatprep.subr.bf16.mxu1 %v4825_v9  ;;  %v261_v9 = vld [vmem:[%s8742_s1 + $0x768] sm:$0xff]  ;;  %v4703_v18 = vpack.c.bf16 %v244_v6, %v236_v5  ;;  %v4847_v12 = vpack.c.bf16 %v246_v52, %v238_v41  ;;  %v318_v5 = vld [vmem:[%s8742_s1 + $0x930] sm:$0xff]  ;;  %v4865_v6 = vpack.c.bf16 %v327_v63, %v319_v60  ;;  %v399_v60 = vld [vmem:[%s8742_s1 + $0xbb8] sm:$0xff] }
 0x1d5   :  { %v4705_v62 = vpack.c.bf16 %v261_v9, %v253_v8  ;;  %v326_v41 = vld [vmem:[%s8742_s1 + $0x970] sm:$0xff]  ;;  %v341_v52 = vld [vmem:[%s8742_s1 + $0x9e8] sm:$0xff]  ;;  %v5020_v8 = vld [vmem:[%s8743_s0 + $0x58] sm:$0xff] }
 0x1d6   :  { %4684 = vmatpush1.bf16.msra.mxu0 %v4683_v14  ;;  %v252_v14 = vld [vmem:[%s8742_s1 + $0x720] sm:$0xff]  ;;  %v335_v9 = vld [vmem:[%s8742_s1 + $0x9b8] sm:$0xff] }
 0x1d7   :  { %4828 = vmatpush1.bf16.msra.mxu1 %v4827_v16  ;;  %4686 = vmatprep.subr.bf16.mxu0 %v4685_v17  ;;  %v260_v16 = vld [vmem:[%s8742_s1 + $0x760] sm:$0xff]  ;;  %v254_v17 = vld [vmem:[%s8742_s1 + $0x730] sm:$0xff]  ;;  %v407_v63 = vld [vmem:[%s8742_s1 + $0xbf8] sm:$0xff] }
 0x1d8   :  { %4830 = vmatprep.subr.bf16.mxu1 %v4829_v21  ;;  %v277_v21 = vld [vmem:[%s8742_s1 + $0x7e8] sm:$0xff]  ;;  %v4707_v24 = vpack.c.bf16 %v260_v16, %v252_v14  ;;  %v4851_v25 = vpack.c.bf16 %v262_v20, %v254_v17  ;;  %v332_v14 = vld [vmem:[%s8742_s1 + $0x9a0] sm:$0xff]  ;;  %v334_v17 = vld [vmem:[%s8742_s1 + $0x9b0] sm:$0xff] }
 0x1d9   :  { %v4709_v15 = vpack.c.bf16 %v277_v21, %v269_v61  ;;  %v340_v16 = vld [vmem:[%s8742_s1 + $0x9e0] sm:$0xff]  ;;  %v342_v20 = vld [vmem:[%s8742_s1 + $0x9f0] sm:$0xff]  ;;  %v349_v61 = vld [vmem:[%s8742_s1 + $0xa28] sm:$0xff] }
 0x1da   :  { %4688 = vmatpush1.bf16.msra.mxu0 %v4687_v26  ;;  %v268_v26 = vld [vmem:[%s8742_s1 + $0x7a0] sm:$0xff]  ;;  %v357_v21 = vld [vmem:[%s8742_s1 + $0xa68] sm:$0xff] }
 0x1db   :  { %4832 = vmatpush1.bf16.msra.mxu1 %v4831_v27  ;;  %4690 = vmatprep.subr.bf16.mxu0 %v4689_v28  ;;  %v276_v27 = vld [vmem:[%s8742_s1 + $0x7e0] sm:$0xff]  ;;  %v270_v28 = vld [vmem:[%s8742_s1 + $0x7b0] sm:$0xff] }
 0x1dc   :  { %4834 = vmatprep.subr.bf16.mxu1 %v4833_v33  ;;  %v293_v33 = vld [vmem:[%s8742_s1 + $0x868] sm:$0xff]  ;;  %v4711_v36 = vpack.c.bf16 %v276_v27, %v268_v26  ;;  %v4855_v37 = vpack.c.bf16 %v278_v30, %v270_v28  ;;  %v4729_v26 = vpack.c.bf16 %v357_v21, %v349_v61  ;;  %v348_v27 = vld [vmem:[%s8742_s1 + $0xa20] sm:$0xff]  ;;  %v431_v61 = vld [vmem:[%s8742_s1 + $0xcb8] sm:$0xff] }
 0x1dd   :  { %v4713_v38 = vpack.c.bf16 %v293_v33, %v285_v31  ;;  %v356_v28 = vld [vmem:[%s8742_s1 + $0xa60] sm:$0xff]  ;;  %v358_v31 = vld [vmem:[%s8742_s1 + $0xa70] sm:$0xff]  ;;  %v365_v33 = vld [vmem:[%s8742_s1 + $0xaa8] sm:$0xff] }
 0x1de   :  { %4692 = vmatpush1.bf16.msra.mxu0 %v4691_v40  ;;  %v284_v40 = vld [vmem:[%s8742_s1 + $0x820] sm:$0xff]  ;;  %v439_v21 = vld [vmem:[%s8742_s1 + $0xcf8] sm:$0xff] }
 0x1df   :  { %4836 = vmatpush1.bf16.msra.mxu1 %v4835_v42  ;;  %4694 = vmatprep.subr.bf16.mxu0 %v4693_v43  ;;  %v292_v42 = vld [vmem:[%s8742_s1 + $0x860] sm:$0xff]  ;;  %v286_v43 = vld [vmem:[%s8742_s1 + $0x830] sm:$0xff] }
 0x1e0   :  { %4838 = vmatprep.subr.bf16.mxu1 %v4837_v47  ;;  %v309_v47 = vld [vmem:[%s8742_s1 + $0x8e8] sm:$0xff]  ;;  %v4715_v50 = vpack.c.bf16 %v292_v42, %v284_v40  ;;  %v4859_v51 = vpack.c.bf16 %v294_v45, %v286_v43  ;;  %v4733_v40 = vpack.c.bf16 %v373_v34, %v365_v33  ;;  %v364_v42 = vld [vmem:[%s8742_s1 + $0xaa0] sm:$0xff]  ;;  %v455_v33 = vld [vmem:[%s8742_s1 + $0xd78] sm:$0xff] }
 0x1e1   :  { %v4717_v32 = vpack.c.bf16 %v309_v47, %v301_v46  ;;  %v372_v43 = vld [vmem:[%s8742_s1 + $0xae0] sm:$0xff]  ;;  %v374_v46 = vld [vmem:[%s8742_s1 + $0xaf0] sm:$0xff]  ;;  %v381_v47 = vld [vmem:[%s8742_s1 + $0xb28] sm:$0xff] }
 0x1e2   :  { %4696 = vmatpush1.bf16.msra.mxu0 %v4695_v53  ;;  %v300_v53 = vld [vmem:[%s8742_s1 + $0x8a0] sm:$0xff] }
 0x1e3   :  { %4840 = vmatpush1.bf16.msra.mxu1 %v4839_v54  ;;  %4698 = vmatprep.subr.bf16.mxu0 %v4697_v55  ;;  %v308_v54 = vld [vmem:[%s8742_s1 + $0x8e0] sm:$0xff]  ;;  %v302_v55 = vld [vmem:[%s8742_s1 + $0x8b0] sm:$0xff] }
 0x1e4   :  { %4842 = vmatprep.subr.bf16.mxu1 %v4841_v23  ;;  %v325_v23 = vld [vmem:[%s8742_s1 + $0x968] sm:$0xff]  ;;  %v4719_v0 = vpack.c.bf16 %v308_v54, %v300_v53  ;;  %v4863_v1 = vpack.c.bf16 %v310_v57, %v302_v55  ;;  %v4737_v53 = vpack.c.bf16 %v389_v48, %v381_v47  ;;  %v380_v54 = vld [vmem:[%s8742_s1 + $0xb20] sm:$0xff]  ;;  %v471_v47 = vld [vmem:[%s8742_s1 + $0xdf8] sm:$0xff] }
 0x1e5   :  { %v388_v55 = vld [vmem:[%s8742_s1 + $0xb60] sm:$0xff] }
 0x1e6   :  { %4700 = vmatpush1.bf16.msra.mxu0 %v4699_v2  ;;  %v4721_v2 = vpack.c.bf16 %v325_v23, %v317_v58  ;;  %v390_v58 = vld [vmem:[%s8742_s1 + $0xb70] sm:$0xff]  ;;  %v397_v23 = vld [vmem:[%s8742_s1 + $0xba8] sm:$0xff] }
 0x1e7   :  { %4844 = vmatpush1.bf16.msra.mxu1 %v4843_v3  ;;  %4702 = vmatprep.subr.bf16.mxu0 %v4701_v4  ;;  %v316_v3 = vld [vmem:[%s8742_s1 + $0x920] sm:$0xff] }
 0x1e8   :  { %4846 = vmatprep.subr.bf16.mxu1 %v4845_v7  ;;  %v324_v4 = vld [vmem:[%s8742_s1 + $0x960] sm:$0xff]  ;;  %v333_v7 = vld [vmem:[%s8742_s1 + $0x9a8] sm:$0xff] }
 0x1ea   :  { %4704 = vmatpush1.bf16.msra.mxu0 %v4703_v18  ;;  %v4723_v18 = vpack.c.bf16 %v324_v4, %v316_v3  ;;  %v396_v3 = vld [vmem:[%s8742_s1 + $0xba0] sm:$0xff] }
 0x1eb   :  { %4848 = vmatpush1.bf16.msra.mxu1 %v4847_v12  ;;  %4706 = vmatprep.subr.bf16.mxu0 %v4705_v62  ;;  %v4867_v12 = vpack.c.bf16 %v326_v41, %v318_v5  ;;  %v4725_v62 = vpack.c.bf16 %v341_v52, %v333_v7  ;;  %v404_v4 = vld [vmem:[%s8742_s1 + $0xbe0] sm:$0xff]  ;;  %v398_v5 = vld [vmem:[%s8742_s1 + $0xbb0] sm:$0xff]  ;;  %v413_v7 = vld [vmem:[%s8742_s1 + $0xc28] sm:$0xff] }
 0x1ec   :  { %4850 = vmatprep.subr.bf16.mxu1 %v4849_v19  ;;  %v4869_v19 = vpack.c.bf16 %v343_v10, %v335_v9  ;;  %v406_v41 = vld [vmem:[%s8742_s1 + $0xbf0] sm:$0xff]  ;;  %v421_v52 = vld [vmem:[%s8742_s1 + $0xc68] sm:$0xff]  ;;  %v423_v9 = vld [vmem:[%s8742_s1 + $0xc78] sm:$0xff]  ;;  %v4743_v10 = vpack.c.bf16 %v404_v4, %v396_v3 }
 0x1ed   :  { %v486_v4 = vld [vmem:[%s8742_s1 + $0xe70] sm:$0xff] }
 0x1ee   :  { %4708 = vmatpush1.bf16.msra.mxu0 %v4707_v24  ;;  %v359_v24 = vld [vmem:[%s8742_s1 + $0xa78] sm:$0xff] }
 0x1ef   :  { %4852 = vmatpush1.bf16.msra.mxu1 %v4851_v25  ;;  %4710 = vmatprep.subr.bf16.mxu0 %v4709_v15  ;;  %v4727_v25 = vpack.c.bf16 %v340_v16, %v332_v14  ;;  %v4871_v15 = vpack.c.bf16 %v342_v20, %v334_v17  ;;  %v4873_v30 = vpack.c.bf16 %v359_v24, %v351_v22  ;;  %v414_v14 = vld [vmem:[%s8742_s1 + $0xc30] sm:$0xff]  ;;  %v437_v20 = vld [vmem:[%s8742_s1 + $0xce8] sm:$0xff] }
 0x1f0   :  { %4854 = vmatprep.subr.bf16.mxu1 %v4853_v29  ;;  %v350_v29 = vld [vmem:[%s8742_s1 + $0xa30] sm:$0xff] }
 0x1f1   :  { %v422_v17 = vld [vmem:[%s8742_s1 + $0xc70] sm:$0xff] }
 0x1f2   :  { %4712 = vmatpush1.bf16.msra.mxu0 %v4711_v36  ;;  %v375_v36 = vld [vmem:[%s8742_s1 + $0xaf8] sm:$0xff]  ;;  %v4891_v22 = vpack.c.bf16 %v422_v17, %v414_v14  ;;  %v509_v14 = vld [vmem:[%s8742_s1 + $0xf28] sm:$0xff] }
 0x1f3   :  { %4856 = vmatpush1.bf16.msra.mxu1 %v4855_v37  ;;  %4714 = vmatprep.subr.bf16.mxu0 %v4713_v38  ;;  %v4731_v37 = vpack.c.bf16 %v356_v28, %v348_v27  ;;  %v4875_v38 = vpack.c.bf16 %v358_v31, %v350_v29  ;;  %v4877_v45 = vpack.c.bf16 %v375_v36, %v367_v35  ;;  %v438_v28 = vld [vmem:[%s8742_s1 + $0xcf0] sm:$0xff]  ;;  %v445_v29 = vld [vmem:[%s8742_s1 + $0xd28] sm:$0xff]  ;;  %v447_v31 = vld [vmem:[%s8742_s1 + $0xd38] sm:$0xff] }
 0x1f4   :  { %4858 = vmatprep.subr.bf16.mxu1 %v4857_v44  ;;  %v366_v44 = vld [vmem:[%s8742_s1 + $0xab0] sm:$0xff]  ;;  %v4893_v27 = vpack.c.bf16 %v439_v21, %v431_v61  ;;  %v511_v17 = vld [vmem:[%s8742_s1 + $0xf38] sm:$0xff] }
 0x1f5   :  { %2718 = vmatmul.mubr.f32.vlgmr.msra.gmra.mrb[4].mxu0 %v5019_v59 }
 0x1f6   :  { %4716 = vmatpush1.bf16.msra.mxu0 %v4715_v50  ;;  %2949 = vmatmul.mubr.f32.vlgmr.msra.gmra.mrb[4].mxu1 %v5019_v59  ;;  %v391_v50 = vld [vmem:[%s8742_s1 + $0xb78] sm:$0xff]  ;;  %v405_v59 = vld [vmem:[%s8742_s1 + $0xbe8] sm:$0xff] }
 0x1f7   :  { %4860 = vmatpush1.bf16.msra.mxu1 %v4859_v51  ;;  %4718 = vmatprep.subr.bf16.mxu0 %v4717_v32  ;;  %v4735_v51 = vpack.c.bf16 %v372_v43, %v364_v42  ;;  %v4879_v32 = vpack.c.bf16 %v374_v46, %v366_v44  ;;  %v4881_v57 = vpack.c.bf16 %v391_v50, %v383_v49  ;;  %v454_v43 = vld [vmem:[%s8742_s1 + $0xd70] sm:$0xff]  ;;  %v461_v44 = vld [vmem:[%s8742_s1 + $0xda8] sm:$0xff]  ;;  %v463_v46 = vld [vmem:[%s8742_s1 + $0xdb8] sm:$0xff] }
 0x1f8   :  { %4862 = vmatprep.subr.bf16.mxu1 %v4861_v56  ;;  %2723 = vmatprep.mubr.f32.mxu0 %v5020_v8  ;;  %v382_v56 = vld [vmem:[%s8742_s1 + $0xb30] sm:$0xff]  ;;  %v4897_v42 = vpack.c.bf16 %v455_v33, %v447_v31 }
 0x1f9   :  { %2954 = vmatprep.mubr.f32.mxu1 %v5020_v8  ;;  %2724 = vmatmul.mubr.f32.gmra.mrb[6].mxu0 %v5021_v11  ;;  %v415_v8 = vld [vmem:[%s8742_s1 + $0xc38] sm:$0xff] }
 0x1fa   :  { %4720 = vmatpush1.bf16.msra.mxu0 %v4719_v0  ;;  %2955 = vmatmul.mubr.f32.gmra.mrb[6].mxu1 %v5021_v11  ;;  %v4739_v0 = vpack.c.bf16 %v388_v55, %v380_v54  ;;  %v4887_v11 = vpack.c.bf16 %v406_v41, %v398_v5  ;;  %v4889_v16 = vpack.c.bf16 %v423_v9, %v415_v8  ;;  %v470_v55 = vld [vmem:[%s8742_s1 + $0xdf0] sm:$0xff]  ;;  %v493_v5 = vld [vmem:[%s8742_s1 + $0xea8] sm:$0xff]  ;;  %v495_v41 = vld [vmem:[%s8742_s1 + $0xeb8] sm:$0xff] }
 0x1fb   :  { %4864 = vmatpush1.bf16.msra.mxu1 %v4863_v1  ;;  %4722 = vmatprep.subr.bf16.mxu0 %v4721_v2  ;;  %v4883_v1 = vpack.c.bf16 %v390_v58, %v382_v56  ;;  %v4741_v2 = vpack.c.bf16 %v405_v59, %v397_v23  ;;  %v4901_v54 = vpack.c.bf16 %v471_v47, %v463_v46  ;;  %v477_v56 = vld [vmem:[%s8742_s1 + $0xe28] sm:$0xff]  ;;  %v479_v58 = vld [vmem:[%s8742_s1 + $0xe38] sm:$0xff] }
 0x1fc   :  { %4866 = vmatprep.subr.bf16.mxu1 %v4865_v6  ;;  %2794 = vmatprep.mubr.f32.mxu0 %v5022_v13  ;;  %v4885_v6 = vpack.c.bf16 %v407_v63, %v399_v60  ;;  %v487_v23 = vld [vmem:[%s8742_s1 + $0xe78] sm:$0xff] }
 0x1fd   :  { %3025 = vmatprep.mubr.f32.mxu1 %v5022_v13  ;;  %v4905_v3 = vpack.c.bf16 %v487_v23, %v479_v58 }
 0x1fe   :  { %4724 = vmatpush1.bf16.msra.mxu0 %v4723_v18  ;;  %v4745_v18 = vpack.c.bf16 %v421_v52, %v413_v7  ;;  %v503_v7 = vld [vmem:[%s8742_s1 + $0xef8] sm:$0xff] }
 0x1ff   :  { %4868 = vmatpush1.bf16.msra.mxu1 %v4867_v12  ;;  %4726 = vmatprep.subr.bf16.mxu0 %v4725_v62  ;;  %v412_v12 = vld [vmem:[%s8742_s1 + $0xc20] sm:$0xff] }
 0x200   :  { %4870 = vmatprep.subr.bf16.mxu1 %v4869_v19  ;;  %v420_v62 = vld [vmem:[%s8742_s1 + $0xc60] sm:$0xff]  ;;  %v429_v19 = vld [vmem:[%s8742_s1 + $0xca8] sm:$0xff] }
 0x201   :  { %v4747_v13 = vpack.c.bf16 %v420_v62, %v412_v12  ;;  %v4749_v24 = vpack.c.bf16 %v437_v20, %v429_v19  ;;  %v4909_v12 = vpack.c.bf16 %v503_v7, %v495_v41  ;;  %v502_v62 = vld [vmem:[%s8742_s1 + $0xef0] sm:$0xff]  ;;  %v519_v19 = vld [vmem:[%s8742_s1 + $0xf78] sm:$0xff] }
 0x202   :  { %4728 = vmatpush1.bf16.msra.mxu0 %v4727_v25  ;;  %v428_v25 = vld [vmem:[%s8742_s1 + $0xca0] sm:$0xff] }
 0x203   :  { %4872 = vmatpush1.bf16.msra.mxu1 %v4871_v15  ;;  %4730 = vmatprep.subr.bf16.mxu0 %v4729_v26  ;;  %v436_v15 = vld [vmem:[%s8742_s1 + $0xce0] sm:$0xff]  ;;  %v430_v26 = vld [vmem:[%s8742_s1 + $0xcb0] sm:$0xff] }
 0x204   :  { %4874 = vmatprep.subr.bf16.mxu1 %v4873_v30  ;;  %v453_v30 = vld [vmem:[%s8742_s1 + $0xd68] sm:$0xff]  ;;  %v4751_v34 = vpack.c.bf16 %v436_v15, %v428_v25  ;;  %v4895_v35 = vpack.c.bf16 %v438_v28, %v430_v26  ;;  %v4913_v25 = vpack.c.bf16 %v519_v19, %v511_v17  ;;  %v518_v15 = vld [vmem:[%s8742_s1 + $0xf70] sm:$0xff]  ;;  %v527_v28 = vld [vmem:[%s8742_s1 + $0xfb8] sm:$0xff] }
 0x205   :  { %v4753_v36 = vpack.c.bf16 %v453_v30, %v445_v29  ;;  %v525_v26 = vld [vmem:[%s8742_s1 + $0xfa8] sm:$0xff]  ;;  %v535_v29 = vld [vmem:[%s8742_s1 + $0xff8] sm:$0xff] }
 0x206   :  { %4732 = vmatpush1.bf16.msra.mxu0 %v4731_v37  ;;  %v444_v37 = vld [vmem:[%s8742_s1 + $0xd20] sm:$0xff]  ;;  %v591_v17 = vld [vmem:[%s8742_s1 + $0x11b8] sm:$0xff] }
 0x207   :  { %4876 = vmatpush1.bf16.msra.mxu1 %v4875_v38  ;;  %4734 = vmatprep.subr.bf16.mxu0 %v4733_v40  ;;  %v452_v38 = vld [vmem:[%s8742_s1 + $0xd60] sm:$0xff]  ;;  %v446_v40 = vld [vmem:[%s8742_s1 + $0xd30] sm:$0xff]  ;;  %v599_v19 = vld [vmem:[%s8742_s1 + $0x11f8] sm:$0xff] }
 0x208   :  { %4878 = vmatprep.subr.bf16.mxu1 %v4877_v45  ;;  %v469_v45 = vld [vmem:[%s8742_s1 + $0xde8] sm:$0xff]  ;;  %v4755_v48 = vpack.c.bf16 %v452_v38, %v444_v37  ;;  %v4899_v49 = vpack.c.bf16 %v454_v43, %v446_v40  ;;  %v4917_v37 = vpack.c.bf16 %v535_v29, %v527_v28  ;;  %v534_v38 = vld [vmem:[%s8742_s1 + $0xff0] sm:$0xff]  ;;  %v543_v43 = vld [vmem:[%s8742_s1 + $0x1038] sm:$0xff] }
 0x209   :  { %v4757_v50 = vpack.c.bf16 %v469_v45, %v461_v44  ;;  %v541_v40 = vld [vmem:[%s8742_s1 + $0x1028] sm:$0xff]  ;;  %v551_v44 = vld [vmem:[%s8742_s1 + $0x1078] sm:$0xff]  ;;  %v5026_v28 = vld [vmem:[%s8743_s0 + $0x20] sm:$0xff] }
 0x20a   :  { %4736 = vmatpush1.bf16.msra.mxu0 %v4735_v51  ;;  %v460_v51 = vld [vmem:[%s8742_s1 + $0xda0] sm:$0xff]  ;;  %v5027_v29 = vld [vmem:[%s8743_s0 + $0x70] sm:$0xff] }
 0x20b   :  { %4880 = vmatpush1.bf16.msra.mxu1 %v4879_v32  ;;  %4738 = vmatprep.subr.bf16.mxu0 %v4737_v53  ;;  %v468_v32 = vld [vmem:[%s8742_s1 + $0xde0] sm:$0xff]  ;;  %v462_v53 = vld [vmem:[%s8742_s1 + $0xdb0] sm:$0xff] }
 0x20c   :  { %4882 = vmatprep.subr.bf16.mxu1 %v4881_v57  ;;  %v485_v57 = vld [vmem:[%s8742_s1 + $0xe68] sm:$0xff]  ;;  %v4759_v59 = vpack.c.bf16 %v468_v32, %v460_v51  ;;  %v4903_v60 = vpack.c.bf16 %v470_v55, %v462_v53  ;;  %v4921_v51 = vpack.c.bf16 %v551_v44, %v543_v43  ;;  %v550_v32 = vld [vmem:[%s8742_s1 + $0x1070] sm:$0xff]  ;;  %v559_v55 = vld [vmem:[%s8742_s1 + $0x10b8] sm:$0xff] }
 0x20d   :  { %v4761_v63 = vpack.c.bf16 %v485_v57, %v477_v56  ;;  %v557_v53 = vld [vmem:[%s8742_s1 + $0x10a8] sm:$0xff]  ;;  %v567_v56 = vld [vmem:[%s8742_s1 + $0x10f8] sm:$0xff] }
 0x20e   :  { %4740 = vmatpush1.bf16.msra.mxu0 %v4739_v0  ;;  %v476_v0 = vld [vmem:[%s8742_s1 + $0xe20] sm:$0xff] }
 0x20f   :  { %4884 = vmatpush1.bf16.msra.mxu1 %v4883_v1  ;;  %4742 = vmatprep.subr.bf16.mxu0 %v4741_v2  ;;  %v484_v1 = vld [vmem:[%s8742_s1 + $0xe60] sm:$0xff]  ;;  %v478_v2 = vld [vmem:[%s8742_s1 + $0xe30] sm:$0xff] }
 0x210   :  { %4886 = vmatprep.subr.bf16.mxu1 %v4885_v6  ;;  %v501_v6 = vld [vmem:[%s8742_s1 + $0xee8] sm:$0xff]  ;;  %v4763_v52 = vpack.c.bf16 %v484_v1, %v476_v0  ;;  %v4907_v8 = vpack.c.bf16 %v486_v4, %v478_v2  ;;  %v4925_v0 = vpack.c.bf16 %v567_v56, %v559_v55  ;;  %v566_v1 = vld [vmem:[%s8742_s1 + $0x10f0] sm:$0xff] }
 0x211   :  { %v4765_v9 = vpack.c.bf16 %v501_v6, %v493_v5  ;;  %v573_v2 = vld [vmem:[%s8742_s1 + $0x1128] sm:$0xff]  ;;  %v5023_v4 = vld [vmem:[%s8743_s0 + $0x10] sm:$0xff]  ;;  %v575_v5 = vld [vmem:[%s8742_s1 + $0x1138] sm:$0xff] }
 0x212   :  { %4744 = vmatpush1.bf16.msra.mxu0 %v4743_v10  ;;  %v492_v10 = vld [vmem:[%s8742_s1 + $0xea0] sm:$0xff]  ;;  %v583_v6 = vld [vmem:[%s8742_s1 + $0x1178] sm:$0xff] }
 0x213   :  { %4888 = vmatpush1.bf16.msra.mxu1 %v4887_v11  ;;  %4746 = vmatprep.subr.bf16.mxu0 %v4745_v18  ;;  %v500_v11 = vld [vmem:[%s8742_s1 + $0xee0] sm:$0xff]  ;;  %v494_v18 = vld [vmem:[%s8742_s1 + $0xeb0] sm:$0xff] }
 0x214   :  { %4890 = vmatprep.subr.bf16.mxu1 %v4889_v16  ;;  %v517_v16 = vld [vmem:[%s8742_s1 + $0xf68] sm:$0xff]  ;;  %v4767_v20 = vpack.c.bf16 %v500_v11, %v492_v10  ;;  %v4911_v61 = vpack.c.bf16 %v502_v62, %v494_v18  ;;  %v574_v10 = vld [vmem:[%s8742_s1 + $0x1130] sm:$0xff]  ;;  %v4929_v11 = vpack.c.bf16 %v583_v6, %v575_v5 }
 0x215   :  { %v4769_v21 = vpack.c.bf16 %v517_v16, %v509_v14  ;;  %v582_v18 = vld [vmem:[%s8742_s1 + $0x1170] sm:$0xff]  ;;  %v589_v62 = vld [vmem:[%s8742_s1 + $0x11a8] sm:$0xff]  ;;  %v5025_v16 = vld [vmem:[%s8743_s0 + $0x60] sm:$0xff] }
 0x216   :  { %4748 = vmatpush1.bf16.msra.mxu0 %v4747_v13  ;;  %v508_v13 = vld [vmem:[%s8742_s1 + $0xf20] sm:$0xff]  ;;  %v597_v14 = vld [vmem:[%s8742_s1 + $0x11e8] sm:$0xff] }
 0x217   :  { %4892 = vmatpush1.bf16.msra.mxu1 %v4891_v22  ;;  %4750 = vmatprep.subr.bf16.mxu0 %v4749_v24  ;;  %v516_v22 = vld [vmem:[%s8742_s1 + $0xf60] sm:$0xff]  ;;  %v510_v24 = vld [vmem:[%s8742_s1 + $0xf30] sm:$0xff] }
 0x218   :  { %4894 = vmatprep.subr.bf16.mxu1 %v4893_v27  ;;  %v533_v27 = vld [vmem:[%s8742_s1 + $0xfe8] sm:$0xff]  ;;  %v4771_v30 = vpack.c.bf16 %v516_v22, %v508_v13  ;;  %v4915_v31 = vpack.c.bf16 %v518_v15, %v510_v24  ;;  %v588_v13 = vld [vmem:[%s8742_s1 + $0x11a0] sm:$0xff]  ;;  %v4933_v24 = vpack.c.bf16 %v599_v19, %v591_v17  ;;  %v598_v15 = vld [vmem:[%s8742_s1 + $0x11f0] sm:$0xff] }
 0x219   :  { %v4773_v33 = vpack.c.bf16 %v533_v27, %v525_v26  ;;  %v596_v22 = vld [vmem:[%s8742_s1 + $0x11e0] sm:$0xff] }
 0x21a   :  { %4752 = vmatpush1.bf16.msra.mxu0 %v4751_v34  ;;  %v524_v34 = vld [vmem:[%s8742_s1 + $0xfa0] sm:$0xff]  ;;  %v4791_v26 = vpack.c.bf16 %v596_v22, %v588_v13 }
 0x21b   :  { %4896 = vmatpush1.bf16.msra.mxu1 %v4895_v35  ;;  %4754 = vmatprep.subr.bf16.mxu0 %v4753_v36  ;;  %v532_v35 = vld [vmem:[%s8742_s1 + $0xfe0] sm:$0xff]  ;;  %v526_v36 = vld [vmem:[%s8742_s1 + $0xfb0] sm:$0xff] }
 0x21c   :  { %4898 = vmatprep.subr.bf16.mxu1 %v4897_v42  ;;  %v549_v42 = vld [vmem:[%s8742_s1 + $0x1068] sm:$0xff]  ;;  %v4775_v45 = vpack.c.bf16 %v532_v35, %v524_v34  ;;  %v4919_v46 = vpack.c.bf16 %v534_v38, %v526_v36  ;;  %v3115_v34 = vld [vmem:[%s8744_s2] sm:$0xff] }
 0x21d   :  { %v4777_v47 = vpack.c.bf16 %v549_v42, %v541_v40 }
 0x21e   :  { %4756 = vmatpush1.bf16.msra.mxu0 %v4755_v48  ;;  %v540_v48 = vld [vmem:[%s8742_s1 + $0x1020] sm:$0xff] }
 0x21f   :  { %4900 = vmatpush1.bf16.msra.mxu1 %v4899_v49  ;;  %4758 = vmatprep.subr.bf16.mxu0 %v4757_v50  ;;  %v548_v49 = vld [vmem:[%s8742_s1 + $0x1060] sm:$0xff]  ;;  %v542_v50 = vld [vmem:[%s8742_s1 + $0x1030] sm:$0xff] }
 0x220   :  { %4902 = vmatprep.subr.bf16.mxu1 %v4901_v54  ;;  %v565_v54 = vld [vmem:[%s8742_s1 + $0x10e8] sm:$0xff]  ;;  %v4779_v57 = vpack.c.bf16 %v548_v49, %v540_v48  ;;  %v4923_v58 = vpack.c.bf16 %v550_v32, %v542_v50 }
 0x221   :  { %v4781_v23 = vpack.c.bf16 %v565_v54, %v557_v53 }
 0x222   :  { %4760 = vmatpush1.bf16.msra.mxu0 %v4759_v59  ;;  %v556_v59 = vld [vmem:[%s8742_s1 + $0x10a0] sm:$0xff] }
 0x223   :  { %4904 = vmatpush1.bf16.msra.mxu1 %v4903_v60  ;;  %4762 = vmatprep.subr.bf16.mxu0 %v4761_v63  ;;  %v564_v60 = vld [vmem:[%s8742_s1 + $0x10e0] sm:$0xff]  ;;  %v558_v63 = vld [vmem:[%s8742_s1 + $0x10b0] sm:$0xff] }
 0x224   :  { %4906 = vmatprep.subr.bf16.mxu1 %v4905_v3  ;;  %v581_v3 = vld [vmem:[%s8742_s1 + $0x1168] sm:$0xff]  ;;  %v4783_v41 = vpack.c.bf16 %v564_v60, %v556_v59  ;;  %v4927_v7 = vpack.c.bf16 %v566_v1, %v558_v63 }
 0x226   :  { %4764 = vmatpush1.bf16.msra.mxu0 %v4763_v52  ;;  %v4785_v52 = vpack.c.bf16 %v581_v3, %v573_v2 }
 0x227   :  { %4908 = vmatpush1.bf16.msra.mxu1 %v4907_v8  ;;  %4766 = vmatprep.subr.bf16.mxu0 %v4765_v9  ;;  %v572_v8 = vld [vmem:[%s8742_s1 + $0x1120] sm:$0xff] }
 0x228   :  { %4910 = vmatprep.subr.bf16.mxu1 %v4909_v12  ;;  %v580_v9 = vld [vmem:[%s8742_s1 + $0x1160] sm:$0xff]  ;;  %v5024_v12 = vld [vmem:[%s8743_s0 + $0x68] sm:$0xff] }
 0x22a   :  { %4768 = vmatpush1.bf16.msra.mxu0 %v4767_v20  ;;  %v4787_v20 = vpack.c.bf16 %v580_v9, %v572_v8 }
 0x22b   :  { %4912 = vmatpush1.bf16.msra.mxu1 %v4911_v61  ;;  %4770 = vmatprep.subr.bf16.mxu0 %v4769_v21  ;;  %v4931_v61 = vpack.c.bf16 %v582_v18, %v574_v10  ;;  %v4789_v21 = vpack.c.bf16 %v597_v14, %v589_v62 }
 0x22c   :  { %4914 = vmatprep.subr.bf16.mxu1 %v4913_v25  ;;  %v590_v25 = vld [vmem:[%s8742_s1 + $0x11b0] sm:$0xff] }
 0x22d   :  { %v4935_v27 = vpack.c.bf16 %v598_v15, %v590_v25 }
 0x22e   :  { %4772 = vmatpush1.bf16.msra.mxu0 %v4771_v30  ;;  %v3117_v30 = vlaneseq }
 0x22f   :  { %4916 = vmatpush1.bf16.msra.mxu1 %v4915_v31  ;;  %4774 = vmatprep.subr.bf16.mxu0 %v4773_v33 }
 0x230   :  { %4918 = vmatprep.subr.bf16.mxu1 %v4917_v37  ;;  %v3118_v31 = vshrl.u32 %v3117_v30, 7 }
 0x232   :  { %4776 = vmatpush1.bf16.msra.mxu0 %v4775_v45  ;;  %v3119_v33 = vsub.s32 0, %v3118_v31  ;;  %v3127_v35 = vsub.s32 2, %v3118_v31  ;;  %v3123_v36 = vsub.s32 1, %v3118_v31  ;;  %v3131_v37 = vsub.s32 3, %v3118_v31 }
 0x233   :  { %4920 = vmatpush1.bf16.msra.mxu1 %v4919_v46  ;;  %4778 = vmatprep.subr.bf16.mxu0 %v4777_v47  ;;  %v3143_v1 = vsub.s32 6, %v3118_v31  ;;  %v3139_v2 = vsub.s32 5, %v3118_v31  ;;  %v3147_v3 = vsub.s32 7, %v3118_v31 }
 0x234   :  { %4922 = vmatprep.subr.bf16.mxu1 %v4921_v51  ;;  %v3120_v38 = vrot.slane %v3115_v34, %v3119_v33  ;;  %v3124_v40 = vrot.slane %v3115_v34, %v3123_v36  ;;  %v3132_v42 = vrot.slane %v3115_v34, %v3131_v37 }
 0x235   :  { %2795 = vmatmul.mubr.f32.vlgmr.msra.gmra.mrb[4].mxu0 %v5023_v4  ;;  %v3144_v5 = vrot.slane %v3115_v34, %v3143_v1  ;;  %v3140_v6 = vrot.slane %v3115_v34, %v3139_v2 }
 0x236   :  { %4780 = vmatpush1.bf16.msra.mxu0 %v4779_v57  ;;  %3026 = vmatmul.mubr.f32.vlgmr.msra.gmra.mrb[4].mxu1 %v5023_v4 }
 0x237   :  { %4924 = vmatpush1.bf16.msra.mxu1 %v4923_v58  ;;  %4782 = vmatprep.subr.bf16.mxu0 %v4781_v23 }
 0x238   :  { %4926 = vmatprep.subr.bf16.mxu1 %v4925_v0  ;;  %2800 = vmatprep.mubr.f32.mxu0 %v5024_v12  ;;  %v3135_v0 = vsub.s32 4, %v3118_v31 }
 0x239   :  { %3031 = vmatprep.mubr.f32.mxu1 %v5024_v12  ;;  %2801 = vmatmul.mubr.f32.gmra.mrb[6].mxu0 %v5025_v16 }
 0x23a   :  { %4784 = vmatpush1.bf16.msra.mxu0 %v4783_v41  ;;  %3032 = vmatmul.mubr.f32.gmra.mrb[6].mxu1 %v5025_v16  ;;  %v3136_v4 = vrot.slane %v3115_v34, %v3135_v0  ;;  %v3148_v41 = vrot.slane %v3115_v34, %v3147_v3 }
 0x23b   :  { %4928 = vmatpush1.bf16.msra.mxu1 %v4927_v7  ;;  %4786 = vmatprep.subr.bf16.mxu0 %v4785_v52 }
 0x23c   :  { %4930 = vmatprep.subr.bf16.mxu1 %v4929_v11  ;;  %2871 = vmatprep.mubr.f32.mxu0 %v5028_v39 }
 0x23d   :  { %3102 = vmatprep.mubr.f32.mxu1 %v5028_v39 }
 0x23e   :  { %4788 = vmatpush1.bf16.msra.mxu0 %v4787_v20 }
 0x23f   :  { %4932 = vmatpush1.bf16.msra.mxu1 %v4931_v61  ;;  %4790 = vmatprep.subr.bf16.mxu0 %v4789_v21 }
 0x240   :  { %4934 = vmatprep.subr.bf16.mxu1 %v4933_v24 }
 0x242   :  { %4792 = vmatpush1.bf16.msra.mxu0 %v4791_v26 }
 0x243   :  { %4936 = vmatpush1.bf16.msra.mxu1 %v4935_v27 }
 0x245   :  { %3781 = vmatmul.mubr.msk.f32.vlgmr.msra.gmra.mrb[4].mxu0 %vm1256_vm1, %v5026_v28 }
 0x246   :  { %3783 = vmatmul.mubr.msk.f32.vlgmr.msra.gmra.mrb[4].mxu1 %vm1256_vm1, %v5026_v28  ;;  %2877 = vmatprep.mubr.f32.mxu0 %v5028_v39 }
 0x247   :  { %3108 = vmatprep.mubr.f32.mxu1 %v5028_v39  ;;  %v3128_v39 = vrot.slane %v3115_v34, %v3127_v35 }
 0x249   :  { %3782 = vmatmul.mubr.msk.f32.gmra.mrb[6].mxu0 %vm1256_vm1, %v5027_v29 }
 0x24a   :  { %3784 = vmatmul.mubr.msk.f32.gmra.mrb[6].mxu1 %vm1256_vm1, %v5027_v29 }
 0x288   :  { %v2411_v43 = vpop.f32.mrb[0].mxu0 }
 0x289   :  { %v3157_v44 = vadd.f32 %v3120_v38, %v2411_v43  ;;  %v2642_v45 = vpop.f32.mrb[0].mxu1  ;;  %v2413_v46 = vpop.f32.mrb[1].mxu0 }
 0x28a   :  { %v3159_v47 = vadd.f32 %v3128_v39, %v2642_v45  ;;  %v3158_v48 = vadd.f32 %v3124_v40, %v2413_v46  ;;  %v2644_v49 = vpop.f32.mrb[1].mxu1 }
 0x28b   :  { %v3160_v50 = vadd.f32 %v3132_v42, %v2644_v49 }
 0x28c   :  { %v3173_v51 = vmax.f32 %v3157_v44, %v3159_v47  ;;  %v2417_v32 = vpop.f32.mrb[2].mxu0 }
 0x28d   :  { %v3174_v53 = vmax.f32 %v3158_v48, %v3160_v50  ;;  %v3165_v54 = vadd.f32 %v3120_v38, %v2417_v32  ;;  %v2648_v55 = vpop.f32.mrb[2].mxu1  ;;  %v2419_v56 = vpop.f32.mrb[3].mxu0 }
 0x28e   :  { %v3167_v57 = vadd.f32 %v3128_v39, %v2648_v55  ;;  %v3166_v58 = vadd.f32 %v3124_v40, %v2419_v56  ;;  %v2650_v23 = vpop.f32.mrb[3].mxu1 }
 0x28f   :  { %v3168_v59 = vadd.f32 %v3132_v42, %v2650_v23 }
 0x290   :  { %v3175_v60 = vmax.f32 %v3165_v54, %v3167_v57 }
 0x291   :  { %v3176_v63 = vmax.f32 %v3166_v58, %v3168_v59 }
 0x318   :  { %v2873_v7 = vpop.f32.mrb[4].mxu0 }
 0x319   :  { %v3161_v52 = vadd.f32 %v3136_v4, %v2873_v7  ;;  %v3104_v8 = vpop.f32.mrb[4].mxu1  ;;  %v2875_v9 = vpop.f32.mrb[5].mxu0 }
 0x31a   :  { %v3163_v10 = vadd.f32 %v3144_v5, %v3104_v8  ;;  %v3162_v11 = vadd.f32 %v3140_v6, %v2875_v9  ;;  %v3106_v18 = vpop.f32.mrb[5].mxu1 }
 0x31b   :  { %v3164_v12 = vadd.f32 %v3148_v41, %v3106_v18 }
 0x31c   :  { %v3177_v62 = vmax.f32 %v3161_v52, %v3163_v10  ;;  %v2879_v14 = vpop.f32.mrb[6].mxu0 }
 0x31d   :  { %v3178_v16 = vmax.f32 %v3162_v11, %v3164_v12  ;;  %v3169_v17 = vadd.f32 %v3136_v4, %v2879_v14  ;;  %v3110_v19 = vpop.f32.mrb[6].mxu1  ;;  %v2881_v20 = vpop.f32.mrb[7].mxu0 }
 0x31e   :  { %v3181_v61 = vmax.f32 %v3173_v51, %v3177_v62  ;;  %v3171_v21 = vadd.f32 %v3144_v5, %v3110_v19  ;;  %v3170_v13 = vadd.f32 %v3140_v6, %v2881_v20  ;;  %v3112_v22 = vpop.f32.mrb[7].mxu1 }
 0x31f   :  { %v3182_v24 = vmax.f32 %v3174_v53, %v3178_v16  ;;  %v3172_v25 = vadd.f32 %v3148_v41, %v3112_v22 }
 0x320   :  { %3185 = vst [vmem:[%s8745_s3] sm:$0xff] %v3181_v61  ;;  %v3179_v15 = vmax.f32 %v3169_v17, %v3171_v21 }
 0x321   :  { %3186 = vst [vmem:[%s8745_s3 + $0x8] sm:$0xff] %v3182_v24  ;;  %v3180_v26 = vmax.f32 %v3170_v13, %v3172_v25 }
 0x322   :  { %v3183_v27 = vmax.f32 %v3175_v60, %v3179_v15 }
 0x323   :  { %v3184_v28 = vmax.f32 %v3176_v63, %v3180_v26 }
 0x324   :  { %3187 = vst [vmem:[%s8745_s3 + $0x10] sm:$0xff] %v3183_v27 }
 0x325   :  { %3188 = vst [vmem:[%s8745_s3 + $0x18] sm:$0xff] %v3184_v28 }

</bundles_post_ra>
